<compile_context>
chip_gen: v6e
topology: v6e:2x2x1
jax: 0.10.0
libtpu: 0.0.40
codegen_flags: <defaults>
</compile_context>

<pallas_src>
import functools

import jax
import jax.numpy as jnp
from jax.experimental import pallas as pl
from jax.experimental.pallas import tpu as pltpu


def _layernorm(x, gamma, beta, eps=1e-5):
    mu = jnp.mean(x, axis=-1, keepdims=True)
    var = jnp.mean((x - mu) ** 2, axis=-1, keepdims=True)
    return (x - mu) * jax.lax.rsqrt(var + eps) * gamma + beta


def _encoder_layer_math(x, wqkv, bqkv, wo, bo, ln1_g, ln1_b,
                        w1, b1, w2, b2, ln2_g, ln2_b, *, nhead):
    """One post-norm TransformerEncoderLayer on a single (S, D) f32 activation.

    Weight matrices are pre-transposed to (in, out), bf16, with the attention
    scale already folded into the Q columns of wqkv/bqkv. Biases / LayerNorm
    params are f32 with a broadcast leading dim (1, X). All matmuls run
    bf16 x bf16 with f32 accumulation; softmax / LayerNorm / residuals in f32.
    Used both inside the Pallas kernel and by the pure-JAX reference.
    """
    S, D = x.shape
    hd = D // nhead

    # ---- fused QKV projection: (S, D) @ (D, 3D), scale pre-folded into Q ----
    qkv = jnp.dot(x.astype(jnp.bfloat16), wqkv,
                  preferred_element_type=jnp.float32) + bqkv
    qkv_bf = qkv.astype(jnp.bfloat16)

    # ---- per-head attention; project each head through its W_o slice and
    #      accumulate in f32 (no lane-axis concat of contexts) ----
    acc = None
    for h in range(nhead):
        qh = qkv_bf[:, h * hd:(h + 1) * hd]
        kh = qkv_bf[:, D + h * hd:D + (h + 1) * hd]
        vh = qkv_bf[:, 2 * D + h * hd:2 * D + (h + 1) * hd]
        s = jax.lax.dot_general(qh, kh, (((1,), (1,)), ((), ())),
                                preferred_element_type=jnp.float32)
        m = jnp.max(s, axis=-1, keepdims=True)
        p = jnp.exp(s - m)
        attn = (p / jnp.sum(p, axis=-1, keepdims=True)).astype(jnp.bfloat16)
        ctx = jnp.dot(attn, vh, preferred_element_type=jnp.float32)    # (S, hd)
        woh = wo[h * hd:(h + 1) * hd, :]                               # (hd, D)
        part = jnp.dot(ctx.astype(jnp.bfloat16), woh,
                       preferred_element_type=jnp.float32)             # (S, D)
        acc = part if acc is None else acc + part
    attn_out = acc + bo

    # ---- Add & Norm 1 ----
    x1 = _layernorm(x + attn_out, ln1_g, ln1_b)

    # ---- FFN: Linear(D->FF) -> ReLU -> Linear(FF->D) ----
    h1 = jnp.dot(x1.astype(jnp.bfloat16), w1,
                 preferred_element_type=jnp.float32) + b1
    h1 = jnp.maximum(h1, 0.0)
    ff = jnp.dot(h1.astype(jnp.bfloat16), w2,
                 preferred_element_type=jnp.float32) + b2

    # ---- Add & Norm 2 ----
    return _layernorm(x1 + ff, ln2_g, ln2_b)


def encoder_stack_kernel(x_ref,
                         wqkv_ref, bqkv_ref, wo_ref, bo_ref,
                         ln1_g_ref, ln1_b_ref,
                         w1_ref, b1_ref, w2_ref, b2_ref,
                         ln2_g_ref, ln2_b_ref,
                         o_ref, *, nhead, num_layers):
    """Runs the full L-layer encoder stack for one batch element (S, D)."""
    x = x_ref[...]
    for l in range(num_layers):            # static unroll; weight refs hold all layers
        x = _encoder_layer_math(
            x,
            wqkv_ref[l], bqkv_ref[l], wo_ref[l], bo_ref[l],
            ln1_g_ref[l], ln1_b_ref[l],
            w1_ref[l], b1_ref[l], w2_ref[l], b2_ref[l],
            ln2_g_ref[l], ln2_b_ref[l],
            nhead=nhead)
    o_ref[...] = x


_WEIGHT_ORDER = ('wqkv', 'bqkv', 'wo', 'bo', 'ln1_g', 'ln1_b',
                 'w1', 'b1', 'w2', 'b2', 'ln2_g', 'ln2_b')


def attention_net_encoder_pallas(x, stacked, nhead):
    """x: (B, S, D) f32. stacked: dict of per-layer-stacked, pre-transposed weights."""
    B, S, D = x.shape
    L = stacked['wqkv'].shape[0]
    weight_args = tuple(stacked[k] for k in _WEIGHT_ORDER)

    def w_spec(arr):
        # Full-array block, constant index map -> weights are DMA'd once and
        # stay VMEM-resident across all grid steps (revisit skips the DMA).
        nd = arr.ndim
        return pl.BlockSpec(arr.shape, lambda b, _nd=nd: (0,) * _nd)

    grid_spec = pltpu.PrefetchScalarGridSpec(
        num_scalar_prefetch=0,
        grid=(B,),
        in_specs=[pl.BlockSpec((None, S, D), lambda b: (b, 0, 0))]
                 + [w_spec(a) for a in weight_args],
        out_specs=pl.BlockSpec((None, S, D), lambda b: (b, 0, 0)),
    )

    kern = functools.partial(encoder_stack_kernel, nhead=nhead, num_layers=L)
    return pl.pallas_call(
        kern,
        out_shape=jax.ShapeDtypeStruct((B, S, D), jnp.float32),
        grid_spec=grid_spec,
        compiler_params=pltpu.CompilerParams(
            dimension_semantics=("parallel",)),   # v7x: one batch element per TC
    )(x, *weight_args)


def prepare_stacked_params(params, nhead):
    """PyTorch-layout per-layer params -> layer-stacked, (in,out)-transposed,
    bf16 weight matrices + f32 (1, X) biases / LayerNorm params.

    The 1/sqrt(head_dim) attention scale is folded into the Q columns of the
    fused QKV weight and bias (constant fold at prep time, not a runtime mul).
    """
    D = params[0]['in_proj_w'].shape[1]
    hd = D // nhead
    scale = 1.0 / float(jnp.sqrt(jnp.float32(hd)))

    def qkv_w(p):
        w = p['in_proj_w'].T                       # (D, 3D)
        return w.at[:, :D].multiply(scale)         # fold scale into Q columns

    def qkv_b(p):
        b = p['in_proj_b'].at[:D].multiply(scale)  # fold scale into Q bias
        return b.reshape(1, -1)

    def stack(fn):
        return jnp.stack([fn(p) for p in params])

    return dict(
        wqkv=stack(qkv_w).astype(jnp.bfloat16),                        # (L, D, 3D)
        bqkv=stack(qkv_b),                                             # (L, 1, 3D)
        wo=stack(lambda p: p['out_proj_w'].T).astype(jnp.bfloat16),    # (L, D, D)
        bo=stack(lambda p: p['out_proj_b'].reshape(1, -1)),            # (L, 1, D)
        ln1_g=stack(lambda p: p['ln1_g'].reshape(1, -1)),
        ln1_b=stack(lambda p: p['ln1_b'].reshape(1, -1)),
        w1=stack(lambda p: p['lin1_w'].T).astype(jnp.bfloat16),        # (L, D, FF)
        b1=stack(lambda p: p['lin1_b'].reshape(1, -1)),                # (L, 1, FF)
        w2=stack(lambda p: p['lin2_w'].T).astype(jnp.bfloat16),        # (L, FF, D)
        b2=stack(lambda p: p['lin2_b'].reshape(1, -1)),                # (L, 1, D)
        ln2_g=stack(lambda p: p['ln2_g'].reshape(1, -1)),
        ln2_b=stack(lambda p: p['ln2_b'].reshape(1, -1)),
    )


# ----------------------- pure-JAX reference (same math) -------------------------
def attention_net_encoder_ref(x, stacked, nhead):
    B, S, D = x.shape
    L = stacked['wqkv'].shape[0]
    outs = []
    for b in range(B):
        xb = x[b]
        for l in range(L):
            xb = _encoder_layer_math(
                xb,
                stacked['wqkv'][l], stacked['bqkv'][l],
                stacked['wo'][l], stacked['bo'][l],
                stacked['ln1_g'][l], stacked['ln1_b'][l],
                stacked['w1'][l], stacked['b1'][l],
                stacked['w2'][l], stacked['b2'][l],
                stacked['ln2_g'][l], stacked['ln2_b'][l],
                nhead=nhead)
        outs.append(xb)
    return jnp.stack(outs)


if __name__ == "__main__":
    # Shapes consistent with the module:
    #   input_len (= d_model) = 32 -> 32 % 4 == 0 -> nhead = 4
    #   tsfm_layer_num default = 6 ; dim_feedforward = 2048 (PyTorch default)
    B, S, D = 2, 8, 32
    NHEAD = 4
    FF = 2048
    NUM_LAYERS = 6

    key = jax.random.PRNGKey(0)

    def init_layer(l):
        ks = jax.random.split(jax.random.fold_in(key, l), 4)
        return dict(
            in_proj_w=0.05 * jax.random.normal(ks[0], (3 * D, D), jnp.float32),
            in_proj_b=jnp.zeros((3 * D,), jnp.float32),
            out_proj_w=0.05 * jax.random.normal(ks[1], (D, D), jnp.float32),
            out_proj_b=jnp.zeros((D,), jnp.float32),
            ln1_g=jnp.ones((D,), jnp.float32),
            ln1_b=jnp.zeros((D,), jnp.float32),
            lin1_w=0.05 * jax.random.normal(ks[2], (FF, D), jnp.float32),
            lin1_b=jnp.zeros((FF,), jnp.float32),
            lin2_w=0.05 * jax.random.normal(ks[3], (D, FF), jnp.float32),
            lin2_b=jnp.zeros((D,), jnp.float32),
            ln2_g=jnp.ones((D,), jnp.float32),
            ln2_b=jnp.zeros((D,), jnp.float32),
        )

    params = [init_layer(l) for l in range(NUM_LAYERS)]
    stacked = prepare_stacked_params(params, NHEAD)
    x = jax.random.normal(jax.random.fold_in(key, 1000), (B, S, D), jnp.float32)

    @jax.jit
    def run(x, stacked):
        return attention_net_encoder_pallas(x, stacked, NHEAD)

    out = jax.block_until_ready(run(x, stacked))

    # Cross-check against a pure-JAX reference of the same (bf16-weight) math.
    # Tolerance covers accumulation-order / compiler differences only.
    ref = attention_net_encoder_ref(x, stacked, NHEAD)
    assert out.shape == (B, S, D)
    assert jnp.allclose(out, ref, rtol=1e-2, atol=1e-2), "mismatch vs reference"

    print("KERNEL_OK")
</pallas_src>

<mosaic_0001>
module attributes {stable_mosaic.version = 11 : i64} {
  func.func @encoder_stack_kernel(%arg0: i32, %arg1: memref<1x8x32xf32, #tpu.memory_space<vmem>>, %arg2: memref<6x32x96xbf16, #tpu.memory_space<vmem>>, %arg3: memref<6x1x96xf32, #tpu.memory_space<vmem>>, %arg4: memref<6x32x32xbf16, #tpu.memory_space<vmem>>, %arg5: memref<6x1x32xf32, #tpu.memory_space<vmem>>, %arg6: memref<6x1x32xf32, #tpu.memory_space<vmem>>, %arg7: memref<6x1x32xf32, #tpu.memory_space<vmem>>, %arg8: memref<6x32x2048xbf16, #tpu.memory_space<vmem>>, %arg9: memref<6x1x2048xf32, #tpu.memory_space<vmem>>, %arg10: memref<6x2048x32xbf16, #tpu.memory_space<vmem>>, %arg11: memref<6x1x32xf32, #tpu.memory_space<vmem>>, %arg12: memref<6x1x32xf32, #tpu.memory_space<vmem>>, %arg13: memref<6x1x32xf32, #tpu.memory_space<vmem>>, %arg14: memref<1x8x32xf32, #tpu.memory_space<vmem>>) attributes {dimension_semantics = [#tpu.dimension_semantics<parallel>], iteration_bounds = array<i64: 2>, scalar_prefetch = 0 : i64, scratch_operands = 0 : i64, tpu.core_type = #tpu.core_type<tc>, window_params = [{transform_indices = @transform_0, window_bounds = array<i64: 1, 8, 32>}, {pipeline_mode = #tpu.pipeline_mode<synchronous>, transform_indices = @transform_1, window_bounds = array<i64: 6, 32, 96>}, {pipeline_mode = #tpu.pipeline_mode<synchronous>, transform_indices = @transform_2, window_bounds = array<i64: 6, 1, 96>}, {pipeline_mode = #tpu.pipeline_mode<synchronous>, transform_indices = @transform_3, window_bounds = array<i64: 6, 32, 32>}, {pipeline_mode = #tpu.pipeline_mode<synchronous>, transform_indices = @transform_4, window_bounds = array<i64: 6, 1, 32>}, {pipeline_mode = #tpu.pipeline_mode<synchronous>, transform_indices = @transform_5, window_bounds = array<i64: 6, 1, 32>}, {pipeline_mode = #tpu.pipeline_mode<synchronous>, transform_indices = @transform_6, window_bounds = array<i64: 6, 1, 32>}, {pipeline_mode = #tpu.pipeline_mode<synchronous>, transform_indices = @transform_7, window_bounds = array<i64: 6, 32, 2048>}, {pipeline_mode = #tpu.pipeline_mode<synchronous>, transform_indices = @transform_8, window_bounds = array<i64: 6, 1, 2048>}, {pipeline_mode = #tpu.pipeline_mode<synchronous>, transform_indices = @transform_9, window_bounds = array<i64: 6, 2048, 32>}, {pipeline_mode = #tpu.pipeline_mode<synchronous>, transform_indices = @transform_10, window_bounds = array<i64: 6, 1, 32>}, {pipeline_mode = #tpu.pipeline_mode<synchronous>, transform_indices = @transform_11, window_bounds = array<i64: 6, 1, 32>}, {pipeline_mode = #tpu.pipeline_mode<synchronous>, transform_indices = @transform_12, window_bounds = array<i64: 6, 1, 32>}, {transform_indices = @transform_13, window_bounds = array<i64: 1, 8, 32>}]} {
    %c0 = arith.constant 0 : index
    %c0_0 = arith.constant 0 : index
    %c0_1 = arith.constant 0 : index
    %0 = vector.load %arg1[%c0, %c0_0, %c0_1] : memref<1x8x32xf32, #tpu.memory_space<vmem>>, vector<1x8x32xf32>
    %1 = vector.shape_cast %0 : vector<1x8x32xf32> to vector<8x32xf32>
    %c0_2 = arith.constant 0 : index
    %c0_3 = arith.constant 0 : index
    %c0_4 = arith.constant 0 : index
    %2 = vector.load %arg2[%c0_2, %c0_3, %c0_4] : memref<6x32x96xbf16, #tpu.memory_space<vmem>>, vector<1x32x96xbf16>
    %3 = vector.shape_cast %2 : vector<1x32x96xbf16> to vector<32x96xbf16>
    %c0_5 = arith.constant 0 : index
    %c0_6 = arith.constant 0 : index
    %c0_7 = arith.constant 0 : index
    %4 = vector.load %arg3[%c0_5, %c0_6, %c0_7] : memref<6x1x96xf32, #tpu.memory_space<vmem>>, vector<1x1x96xf32>
    %5 = vector.shape_cast %4 : vector<1x1x96xf32> to vector<1x96xf32>
    %c0_8 = arith.constant 0 : index
    %c0_9 = arith.constant 0 : index
    %c0_10 = arith.constant 0 : index
    %6 = vector.load %arg4[%c0_8, %c0_9, %c0_10] : memref<6x32x32xbf16, #tpu.memory_space<vmem>>, vector<1x32x32xbf16>
    %7 = vector.shape_cast %6 : vector<1x32x32xbf16> to vector<32x32xbf16>
    %c0_11 = arith.constant 0 : index
    %c0_12 = arith.constant 0 : index
    %c0_13 = arith.constant 0 : index
    %8 = vector.load %arg5[%c0_11, %c0_12, %c0_13] : memref<6x1x32xf32, #tpu.memory_space<vmem>>, vector<1x1x32xf32>
    %9 = vector.shape_cast %8 : vector<1x1x32xf32> to vector<1x32xf32>
    %c0_14 = arith.constant 0 : index
    %c0_15 = arith.constant 0 : index
    %c0_16 = arith.constant 0 : index
    %10 = vector.load %arg6[%c0_14, %c0_15, %c0_16] : memref<6x1x32xf32, #tpu.memory_space<vmem>>, vector<1x1x32xf32>
    %11 = vector.shape_cast %10 : vector<1x1x32xf32> to vector<1x32xf32>
    %c0_17 = arith.constant 0 : index
    %c0_18 = arith.constant 0 : index
    %c0_19 = arith.constant 0 : index
    %12 = vector.load %arg7[%c0_17, %c0_18, %c0_19] : memref<6x1x32xf32, #tpu.memory_space<vmem>>, vector<1x1x32xf32>
    %13 = vector.shape_cast %12 : vector<1x1x32xf32> to vector<1x32xf32>
    %c0_20 = arith.constant 0 : index
    %c0_21 = arith.constant 0 : index
    %c0_22 = arith.constant 0 : index
    %14 = vector.load %arg8[%c0_20, %c0_21, %c0_22] : memref<6x32x2048xbf16, #tpu.memory_space<vmem>>, vector<1x32x2048xbf16>
    %15 = vector.shape_cast %14 : vector<1x32x2048xbf16> to vector<32x2048xbf16>
    %c0_23 = arith.constant 0 : index
    %c0_24 = arith.constant 0 : index
    %c0_25 = arith.constant 0 : index
    %16 = vector.load %arg9[%c0_23, %c0_24, %c0_25] : memref<6x1x2048xf32, #tpu.memory_space<vmem>>, vector<1x1x2048xf32>
    %17 = vector.shape_cast %16 : vector<1x1x2048xf32> to vector<1x2048xf32>
    %c0_26 = arith.constant 0 : index
    %c0_27 = arith.constant 0 : index
    %c0_28 = arith.constant 0 : index
    %18 = vector.load %arg10[%c0_26, %c0_27, %c0_28] : memref<6x2048x32xbf16, #tpu.memory_space<vmem>>, vector<1x2048x32xbf16>
    %19 = vector.shape_cast %18 : vector<1x2048x32xbf16> to vector<2048x32xbf16>
    %c0_29 = arith.constant 0 : index
    %c0_30 = arith.constant 0 : index
    %c0_31 = arith.constant 0 : index
    %20 = vector.load %arg11[%c0_29, %c0_30, %c0_31] : memref<6x1x32xf32, #tpu.memory_space<vmem>>, vector<1x1x32xf32>
    %21 = vector.shape_cast %20 : vector<1x1x32xf32> to vector<1x32xf32>
    %c0_32 = arith.constant 0 : index
    %c0_33 = arith.constant 0 : index
    %c0_34 = arith.constant 0 : index
    %22 = vector.load %arg12[%c0_32, %c0_33, %c0_34] : memref<6x1x32xf32, #tpu.memory_space<vmem>>, vector<1x1x32xf32>
    %23 = vector.shape_cast %22 : vector<1x1x32xf32> to vector<1x32xf32>
    %c0_35 = arith.constant 0 : index
    %c0_36 = arith.constant 0 : index
    %c0_37 = arith.constant 0 : index
    %24 = vector.load %arg13[%c0_35, %c0_36, %c0_37] : memref<6x1x32xf32, #tpu.memory_space<vmem>>, vector<1x1x32xf32>
    %25 = vector.shape_cast %24 : vector<1x1x32xf32> to vector<1x32xf32>
    %26 = arith.truncf %1 : vector<8x32xf32> to vector<8x32xbf16>
    %cst = arith.constant dense<0.000000e+00> : vector<8x96xf32>
    %27 = tpu.matmul %26, %3, %cst {dimension_numbers = #tpu.dot_dimension_numbers<[1], [0], [0], [1], [0, 0, 1, 1], [], []>} : vector<8x32xbf16>, vector<32x96xbf16>, vector<8x96xf32> -> vector<8x96xf32>
    %28 = vector.broadcast %5 : vector<1x96xf32> to vector<8x96xf32>
    %29 = arith.addf %27, %28 : vector<8x96xf32>
    %30 = arith.truncf %29 : vector<8x96xf32> to vector<8x96xbf16>
    %31 = vector.extract_strided_slice %30 {offsets = [0, 0], sizes = [8, 8], strides = [1, 1]} : vector<8x96xbf16> to vector<8x8xbf16>
    %32 = vector.extract_strided_slice %30 {offsets = [0, 32], sizes = [8, 8], strides = [1, 1]} : vector<8x96xbf16> to vector<8x8xbf16>
    %33 = vector.extract_strided_slice %30 {offsets = [0, 64], sizes = [8, 8], strides = [1, 1]} : vector<8x96xbf16> to vector<8x8xbf16>
    %cst_38 = arith.constant dense<0.000000e+00> : vector<8x8xf32>
    %34 = tpu.matmul %31, %32, %cst_38 {dimension_numbers = #tpu.dot_dimension_numbers<[1], [1], [0], [0], [0, 0, 1, 0], [], []>} : vector<8x8xbf16>, vector<8x8xbf16>, vector<8x8xf32> -> vector<8x8xf32>
    %cst_39 = arith.constant dense<0xFF800000> : vector<8xf32>
    %35 = vector.multi_reduction <maximumf>, %34, %cst_39 [1] : vector<8x8xf32> to vector<8xf32>
    %36 = vector.shape_cast %35 : vector<8xf32> to vector<8x1xf32>
    %37 = vector.broadcast %36 : vector<8x1xf32> to vector<8x8xf32>
    %38 = arith.subf %34, %37 : vector<8x8xf32>
    %39 = math.exp %38 : vector<8x8xf32>
    %cst_40 = arith.constant dense<0.000000e+00> : vector<8xf32>
    %40 = vector.multi_reduction <add>, %39, %cst_40 [1] : vector<8x8xf32> to vector<8xf32>
    %41 = vector.shape_cast %40 : vector<8xf32> to vector<8x1xf32>
    %42 = vector.broadcast %41 : vector<8x1xf32> to vector<8x8xf32>
    %43 = arith.divf %39, %42 : vector<8x8xf32>
    %44 = arith.truncf %43 : vector<8x8xf32> to vector<8x8xbf16>
    %cst_41 = arith.constant dense<0.000000e+00> : vector<8x8xf32>
    %45 = tpu.matmul %44, %33, %cst_41 {dimension_numbers = #tpu.dot_dimension_numbers<[1], [0], [0], [1], [0, 0, 1, 1], [], []>} : vector<8x8xbf16>, vector<8x8xbf16>, vector<8x8xf32> -> vector<8x8xf32>
    %46 = vector.extract_strided_slice %7 {offsets = [0, 0], sizes = [8, 32], strides = [1, 1]} : vector<32x32xbf16> to vector<8x32xbf16>
    %47 = arith.truncf %45 : vector<8x8xf32> to vector<8x8xbf16>
    %cst_42 = arith.constant dense<0.000000e+00> : vector<8x32xf32>
    %48 = tpu.matmul %47, %46, %cst_42 {dimension_numbers = #tpu.dot_dimension_numbers<[1], [0], [0], [1], [0, 0, 1, 1], [], []>} : vector<8x8xbf16>, vector<8x32xbf16>, vector<8x32xf32> -> vector<8x32xf32>
    %49 = vector.extract_strided_slice %30 {offsets = [0, 8], sizes = [8, 8], strides = [1, 1]} : vector<8x96xbf16> to vector<8x8xbf16>
    %50 = vector.extract_strided_slice %30 {offsets = [0, 40], sizes = [8, 8], strides = [1, 1]} : vector<8x96xbf16> to vector<8x8xbf16>
    %51 = vector.extract_strided_slice %30 {offsets = [0, 72], sizes = [8, 8], strides = [1, 1]} : vector<8x96xbf16> to vector<8x8xbf16>
    %cst_43 = arith.constant dense<0.000000e+00> : vector<8x8xf32>
    %52 = tpu.matmul %49, %50, %cst_43 {dimension_numbers = #tpu.dot_dimension_numbers<[1], [1], [0], [0], [0, 0, 1, 0], [], []>} : vector<8x8xbf16>, vector<8x8xbf16>, vector<8x8xf32> -> vector<8x8xf32>
    %cst_44 = arith.constant dense<0xFF800000> : vector<8xf32>
    %53 = vector.multi_reduction <maximumf>, %52, %cst_44 [1] : vector<8x8xf32> to vector<8xf32>
    %54 = vector.shape_cast %53 : vector<8xf32> to vector<8x1xf32>
    %55 = vector.broadcast %54 : vector<8x1xf32> to vector<8x8xf32>
    %56 = arith.subf %52, %55 : vector<8x8xf32>
    %57 = math.exp %56 : vector<8x8xf32>
    %cst_45 = arith.constant dense<0.000000e+00> : vector<8xf32>
    %58 = vector.multi_reduction <add>, %57, %cst_45 [1] : vector<8x8xf32> to vector<8xf32>
    %59 = vector.shape_cast %58 : vector<8xf32> to vector<8x1xf32>
    %60 = vector.broadcast %59 : vector<8x1xf32> to vector<8x8xf32>
    %61 = arith.divf %57, %60 : vector<8x8xf32>
    %62 = arith.truncf %61 : vector<8x8xf32> to vector<8x8xbf16>
    %cst_46 = arith.constant dense<0.000000e+00> : vector<8x8xf32>
    %63 = tpu.matmul %62, %51, %cst_46 {dimension_numbers = #tpu.dot_dimension_numbers<[1], [0], [0], [1], [0, 0, 1, 1], [], []>} : vector<8x8xbf16>, vector<8x8xbf16>, vector<8x8xf32> -> vector<8x8xf32>
    %64 = vector.extract_strided_slice %7 {offsets = [8, 0], sizes = [8, 32], strides = [1, 1]} : vector<32x32xbf16> to vector<8x32xbf16>
    %65 = arith.truncf %63 : vector<8x8xf32> to vector<8x8xbf16>
    %cst_47 = arith.constant dense<0.000000e+00> : vector<8x32xf32>
    %66 = tpu.matmul %65, %64, %cst_47 {dimension_numbers = #tpu.dot_dimension_numbers<[1], [0], [0], [1], [0, 0, 1, 1], [], []>} : vector<8x8xbf16>, vector<8x32xbf16>, vector<8x32xf32> -> vector<8x32xf32>
    %67 = arith.addf %48, %66 : vector<8x32xf32>
    %68 = vector.extract_strided_slice %30 {offsets = [0, 16], sizes = [8, 8], strides = [1, 1]} : vector<8x96xbf16> to vector<8x8xbf16>
    %69 = vector.extract_strided_slice %30 {offsets = [0, 48], sizes = [8, 8], strides = [1, 1]} : vector<8x96xbf16> to vector<8x8xbf16>
    %70 = vector.extract_strided_slice %30 {offsets = [0, 80], sizes = [8, 8], strides = [1, 1]} : vector<8x96xbf16> to vector<8x8xbf16>
    %cst_48 = arith.constant dense<0.000000e+00> : vector<8x8xf32>
    %71 = tpu.matmul %68, %69, %cst_48 {dimension_numbers = #tpu.dot_dimension_numbers<[1], [1], [0], [0], [0, 0, 1, 0], [], []>} : vector<8x8xbf16>, vector<8x8xbf16>, vector<8x8xf32> -> vector<8x8xf32>
    %cst_49 = arith.constant dense<0xFF800000> : vector<8xf32>
    %72 = vector.multi_reduction <maximumf>, %71, %cst_49 [1] : vector<8x8xf32> to vector<8xf32>
    %73 = vector.shape_cast %72 : vector<8xf32> to vector<8x1xf32>
    %74 = vector.broadcast %73 : vector<8x1xf32> to vector<8x8xf32>
    %75 = arith.subf %71, %74 : vector<8x8xf32>
    %76 = math.exp %75 : vector<8x8xf32>
    %cst_50 = arith.constant dense<0.000000e+00> : vector<8xf32>
    %77 = vector.multi_reduction <add>, %76, %cst_50 [1] : vector<8x8xf32> to vector<8xf32>
    %78 = vector.shape_cast %77 : vector<8xf32> to vector<8x1xf32>
    %79 = vector.broadcast %78 : vector<8x1xf32> to vector<8x8xf32>
    %80 = arith.divf %76, %79 : vector<8x8xf32>
    %81 = arith.truncf %80 : vector<8x8xf32> to vector<8x8xbf16>
    %cst_51 = arith.constant dense<0.000000e+00> : vector<8x8xf32>
    %82 = tpu.matmul %81, %70, %cst_51 {dimension_numbers = #tpu.dot_dimension_numbers<[1], [0], [0], [1], [0, 0, 1, 1], [], []>} : vector<8x8xbf16>, vector<8x8xbf16>, vector<8x8xf32> -> vector<8x8xf32>
    %83 = vector.extract_strided_slice %7 {offsets = [16, 0], sizes = [8, 32], strides = [1, 1]} : vector<32x32xbf16> to vector<8x32xbf16>
    %84 = arith.truncf %82 : vector<8x8xf32> to vector<8x8xbf16>
    %cst_52 = arith.constant dense<0.000000e+00> : vector<8x32xf32>
    %85 = tpu.matmul %84, %83, %cst_52 {dimension_numbers = #tpu.dot_dimension_numbers<[1], [0], [0], [1], [0, 0, 1, 1], [], []>} : vector<8x8xbf16>, vector<8x32xbf16>, vector<8x32xf32> -> vector<8x32xf32>
    %86 = arith.addf %67, %85 : vector<8x32xf32>
    %87 = vector.extract_strided_slice %30 {offsets = [0, 24], sizes = [8, 8], strides = [1, 1]} : vector<8x96xbf16> to vector<8x8xbf16>
    %88 = vector.extract_strided_slice %30 {offsets = [0, 56], sizes = [8, 8], strides = [1, 1]} : vector<8x96xbf16> to vector<8x8xbf16>
    %89 = vector.extract_strided_slice %30 {offsets = [0, 88], sizes = [8, 8], strides = [1, 1]} : vector<8x96xbf16> to vector<8x8xbf16>
    %cst_53 = arith.constant dense<0.000000e+00> : vector<8x8xf32>
    %90 = tpu.matmul %87, %88, %cst_53 {dimension_numbers = #tpu.dot_dimension_numbers<[1], [1], [0], [0], [0, 0, 1, 0], [], []>} : vector<8x8xbf16>, vector<8x8xbf16>, vector<8x8xf32> -> vector<8x8xf32>
    %cst_54 = arith.constant dense<0xFF800000> : vector<8xf32>
    %91 = vector.multi_reduction <maximumf>, %90, %cst_54 [1] : vector<8x8xf32> to vector<8xf32>
    %92 = vector.shape_cast %91 : vector<8xf32> to vector<8x1xf32>
    %93 = vector.broadcast %92 : vector<8x1xf32> to vector<8x8xf32>
    %94 = arith.subf %90, %93 : vector<8x8xf32>
    %95 = math.exp %94 : vector<8x8xf32>
    %cst_55 = arith.constant dense<0.000000e+00> : vector<8xf32>
    %96 = vector.multi_reduction <add>, %95, %cst_55 [1] : vector<8x8xf32> to vector<8xf32>
    %97 = vector.shape_cast %96 : vector<8xf32> to vector<8x1xf32>
    %98 = vector.broadcast %97 : vector<8x1xf32> to vector<8x8xf32>
    %99 = arith.divf %95, %98 : vector<8x8xf32>
    %100 = arith.truncf %99 : vector<8x8xf32> to vector<8x8xbf16>
    %cst_56 = arith.constant dense<0.000000e+00> : vector<8x8xf32>
    %101 = tpu.matmul %100, %89, %cst_56 {dimension_numbers = #tpu.dot_dimension_numbers<[1], [0], [0], [1], [0, 0, 1, 1], [], []>} : vector<8x8xbf16>, vector<8x8xbf16>, vector<8x8xf32> -> vector<8x8xf32>
    %102 = vector.extract_strided_slice %7 {offsets = [24, 0], sizes = [8, 32], strides = [1, 1]} : vector<32x32xbf16> to vector<8x32xbf16>
    %103 = arith.truncf %101 : vector<8x8xf32> to vector<8x8xbf16>
    %cst_57 = arith.constant dense<0.000000e+00> : vector<8x32xf32>
    %104 = tpu.matmul %103, %102, %cst_57 {dimension_numbers = #tpu.dot_dimension_numbers<[1], [0], [0], [1], [0, 0, 1, 1], [], []>} : vector<8x8xbf16>, vector<8x32xbf16>, vector<8x32xf32> -> vector<8x32xf32>
    %105 = arith.addf %86, %104 : vector<8x32xf32>
    %106 = vector.broadcast %9 : vector<1x32xf32> to vector<8x32xf32>
    %107 = arith.addf %105, %106 : vector<8x32xf32>
    %108 = arith.addf %1, %107 : vector<8x32xf32>
    %cst_58 = arith.constant dense<0.000000e+00> : vector<8xf32>
    %109 = vector.multi_reduction <add>, %108, %cst_58 [1] : vector<8x32xf32> to vector<8xf32>
    %110 = vector.shape_cast %109 : vector<8xf32> to vector<8x1xf32>
    %cst_59 = arith.constant 3.200000e+01 : f32
    %111 = vector.broadcast %cst_59 : f32 to vector<8x1xf32>
    %112 = arith.divf %110, %111 : vector<8x1xf32>
    %113 = vector.broadcast %112 : vector<8x1xf32> to vector<8x32xf32>
    %114 = arith.subf %108, %113 : vector<8x32xf32>
    %115 = arith.mulf %114, %114 : vector<8x32xf32>
    %cst_60 = arith.constant dense<0.000000e+00> : vector<8xf32>
    %116 = vector.multi_reduction <add>, %115, %cst_60 [1] : vector<8x32xf32> to vector<8xf32>
    %117 = vector.shape_cast %116 : vector<8xf32> to vector<8x1xf32>
    %cst_61 = arith.constant 3.200000e+01 : f32
    %118 = vector.broadcast %cst_61 : f32 to vector<8x1xf32>
    %119 = arith.divf %117, %118 : vector<8x1xf32>
    %120 = vector.broadcast %112 : vector<8x1xf32> to vector<8x32xf32>
    %121 = arith.subf %108, %120 : vector<8x32xf32>
    %cst_62 = arith.constant 9.99999974E-6 : f32
    %122 = vector.broadcast %cst_62 : f32 to vector<8x1xf32>
    %123 = arith.addf %119, %122 : vector<8x1xf32>
    %124 = math.rsqrt %123 : vector<8x1xf32>
    %125 = vector.broadcast %124 : vector<8x1xf32> to vector<8x32xf32>
    %126 = arith.mulf %121, %125 : vector<8x32xf32>
    %127 = vector.broadcast %11 : vector<1x32xf32> to vector<8x32xf32>
    %128 = arith.mulf %126, %127 : vector<8x32xf32>
    %129 = vector.broadcast %13 : vector<1x32xf32> to vector<8x32xf32>
    %130 = arith.addf %128, %129 : vector<8x32xf32>
    %131 = arith.truncf %130 : vector<8x32xf32> to vector<8x32xbf16>
    %cst_63 = arith.constant dense<0.000000e+00> : vector<8x2048xf32>
    %132 = tpu.matmul %131, %15, %cst_63 {dimension_numbers = #tpu.dot_dimension_numbers<[1], [0], [0], [1], [0, 0, 1, 1], [], []>} : vector<8x32xbf16>, vector<32x2048xbf16>, vector<8x2048xf32> -> vector<8x2048xf32>
    %133 = vector.broadcast %17 : vector<1x2048xf32> to vector<8x2048xf32>
    %134 = arith.addf %132, %133 : vector<8x2048xf32>
    %cst_64 = arith.constant 0.000000e+00 : f32
    %135 = vector.broadcast %cst_64 : f32 to vector<8x2048xf32>
    %136 = arith.maximumf %134, %135 : vector<8x2048xf32>
    %137 = arith.truncf %136 : vector<8x2048xf32> to vector<8x2048xbf16>
    %cst_65 = arith.constant dense<0.000000e+00> : vector<8x32xf32>
    %138 = tpu.matmul %137, %19, %cst_65 {dimension_numbers = #tpu.dot_dimension_numbers<[1], [0], [0], [1], [0, 0, 1, 1], [], []>} : vector<8x2048xbf16>, vector<2048x32xbf16>, vector<8x32xf32> -> vector<8x32xf32>
    %139 = vector.broadcast %21 : vector<1x32xf32> to vector<8x32xf32>
    %140 = arith.addf %138, %139 : vector<8x32xf32>
    %141 = arith.addf %130, %140 : vector<8x32xf32>
    %cst_66 = arith.constant dense<0.000000e+00> : vector<8xf32>
    %142 = vector.multi_reduction <add>, %141, %cst_66 [1] : vector<8x32xf32> to vector<8xf32>
    %143 = vector.shape_cast %142 : vector<8xf32> to vector<8x1xf32>
    %cst_67 = arith.constant 3.200000e+01 : f32
    %144 = vector.broadcast %cst_67 : f32 to vector<8x1xf32>
    %145 = arith.divf %143, %144 : vector<8x1xf32>
    %146 = vector.broadcast %145 : vector<8x1xf32> to vector<8x32xf32>
    %147 = arith.subf %141, %146 : vector<8x32xf32>
    %148 = arith.mulf %147, %147 : vector<8x32xf32>
    %cst_68 = arith.constant dense<0.000000e+00> : vector<8xf32>
    %149 = vector.multi_reduction <add>, %148, %cst_68 [1] : vector<8x32xf32> to vector<8xf32>
    %150 = vector.shape_cast %149 : vector<8xf32> to vector<8x1xf32>
    %cst_69 = arith.constant 3.200000e+01 : f32
    %151 = vector.broadcast %cst_69 : f32 to vector<8x1xf32>
    %152 = arith.divf %150, %151 : vector<8x1xf32>
    %153 = vector.broadcast %145 : vector<8x1xf32> to vector<8x32xf32>
    %154 = arith.subf %141, %153 : vector<8x32xf32>
    %cst_70 = arith.constant 9.99999974E-6 : f32
    %155 = vector.broadcast %cst_70 : f32 to vector<8x1xf32>
    %156 = arith.addf %152, %155 : vector<8x1xf32>
    %157 = math.rsqrt %156 : vector<8x1xf32>
    %158 = vector.broadcast %157 : vector<8x1xf32> to vector<8x32xf32>
    %159 = arith.mulf %154, %158 : vector<8x32xf32>
    %160 = vector.broadcast %23 : vector<1x32xf32> to vector<8x32xf32>
    %161 = arith.mulf %159, %160 : vector<8x32xf32>
    %162 = vector.broadcast %25 : vector<1x32xf32> to vector<8x32xf32>
    %163 = arith.addf %161, %162 : vector<8x32xf32>
    %c1 = arith.constant 1 : index
    %c0_71 = arith.constant 0 : index
    %c0_72 = arith.constant 0 : index
    %164 = vector.load %arg2[%c1, %c0_71, %c0_72] : memref<6x32x96xbf16, #tpu.memory_space<vmem>>, vector<1x32x96xbf16>
    %165 = vector.shape_cast %164 : vector<1x32x96xbf16> to vector<32x96xbf16>
    %c1_73 = arith.constant 1 : index
    %c0_74 = arith.constant 0 : index
    %c0_75 = arith.constant 0 : index
    %166 = vector.load %arg3[%c1_73, %c0_74, %c0_75] : memref<6x1x96xf32, #tpu.memory_space<vmem>>, vector<1x1x96xf32>
    %167 = vector.shape_cast %166 : vector<1x1x96xf32> to vector<1x96xf32>
    %c1_76 = arith.constant 1 : index
    %c0_77 = arith.constant 0 : index
    %c0_78 = arith.constant 0 : index
    %168 = vector.load %arg4[%c1_76, %c0_77, %c0_78] : memref<6x32x32xbf16, #tpu.memory_space<vmem>>, vector<1x32x32xbf16>
    %169 = vector.shape_cast %168 : vector<1x32x32xbf16> to vector<32x32xbf16>
    %c1_79 = arith.constant 1 : index
    %c0_80 = arith.constant 0 : index
    %c0_81 = arith.constant 0 : index
    %170 = vector.load %arg5[%c1_79, %c0_80, %c0_81] : memref<6x1x32xf32, #tpu.memory_space<vmem>>, vector<1x1x32xf32>
    %171 = vector.shape_cast %170 : vector<1x1x32xf32> to vector<1x32xf32>
    %c1_82 = arith.constant 1 : index
    %c0_83 = arith.constant 0 : index
    %c0_84 = arith.constant 0 : index
    %172 = vector.load %arg6[%c1_82, %c0_83, %c0_84] : memref<6x1x32xf32, #tpu.memory_space<vmem>>, vector<1x1x32xf32>
    %173 = vector.shape_cast %172 : vector<1x1x32xf32> to vector<1x32xf32>
    %c1_85 = arith.constant 1 : index
    %c0_86 = arith.constant 0 : index
    %c0_87 = arith.constant 0 : index
    %174 = vector.load %arg7[%c1_85, %c0_86, %c0_87] : memref<6x1x32xf32, #tpu.memory_space<vmem>>, vector<1x1x32xf32>
    %175 = vector.shape_cast %174 : vector<1x1x32xf32> to vector<1x32xf32>
    %c1_88 = arith.constant 1 : index
    %c0_89 = arith.constant 0 : index
    %c0_90 = arith.constant 0 : index
    %176 = vector.load %arg8[%c1_88, %c0_89, %c0_90] : memref<6x32x2048xbf16, #tpu.memory_space<vmem>>, vector<1x32x2048xbf16>
    %177 = vector.shape_cast %176 : vector<1x32x2048xbf16> to vector<32x2048xbf16>
    %c1_91 = arith.constant 1 : index
    %c0_92 = arith.constant 0 : index
    %c0_93 = arith.constant 0 : index
    %178 = vector.load %arg9[%c1_91, %c0_92, %c0_93] : memref<6x1x2048xf32, #tpu.memory_space<vmem>>, vector<1x1x2048xf32>
    %179 = vector.shape_cast %178 : vector<1x1x2048xf32> to vector<1x2048xf32>
    %c1_94 = arith.constant 1 : index
    %c0_95 = arith.constant 0 : index
    %c0_96 = arith.constant 0 : index
    %180 = vector.load %arg10[%c1_94, %c0_95, %c0_96] : memref<6x2048x32xbf16, #tpu.memory_space<vmem>>, vector<1x2048x32xbf16>
    %181 = vector.shape_cast %180 : vector<1x2048x32xbf16> to vector<2048x32xbf16>
    %c1_97 = arith.constant 1 : index
    %c0_98 = arith.constant 0 : index
    %c0_99 = arith.constant 0 : index
    %182 = vector.load %arg11[%c1_97, %c0_98, %c0_99] : memref<6x1x32xf32, #tpu.memory_space<vmem>>, vector<1x1x32xf32>
    %183 = vector.shape_cast %182 : vector<1x1x32xf32> to vector<1x32xf32>
    %c1_100 = arith.constant 1 : index
    %c0_101 = arith.constant 0 : index
    %c0_102 = arith.constant 0 : index
    %184 = vector.load %arg12[%c1_100, %c0_101, %c0_102] : memref<6x1x32xf32, #tpu.memory_space<vmem>>, vector<1x1x32xf32>
    %185 = vector.shape_cast %184 : vector<1x1x32xf32> to vector<1x32xf32>
    %c1_103 = arith.constant 1 : index
    %c0_104 = arith.constant 0 : index
    %c0_105 = arith.constant 0 : index
    %186 = vector.load %arg13[%c1_103, %c0_104, %c0_105] : memref<6x1x32xf32, #tpu.memory_space<vmem>>, vector<1x1x32xf32>
    %187 = vector.shape_cast %186 : vector<1x1x32xf32> to vector<1x32xf32>
    %188 = arith.truncf %163 : vector<8x32xf32> to vector<8x32xbf16>
    %cst_106 = arith.constant dense<0.000000e+00> : vector<8x96xf32>
    %189 = tpu.matmul %188, %165, %cst_106 {dimension_numbers = #tpu.dot_dimension_numbers<[1], [0], [0], [1], [0, 0, 1, 1], [], []>} : vector<8x32xbf16>, vector<32x96xbf16>, vector<8x96xf32> -> vector<8x96xf32>
    %190 = vector.broadcast %167 : vector<1x96xf32> to vector<8x96xf32>
    %191 = arith.addf %189, %190 : vector<8x96xf32>
    %192 = arith.truncf %191 : vector<8x96xf32> to vector<8x96xbf16>
    %193 = vector.extract_strided_slice %192 {offsets = [0, 0], sizes = [8, 8], strides = [1, 1]} : vector<8x96xbf16> to vector<8x8xbf16>
    %194 = vector.extract_strided_slice %192 {offsets = [0, 32], sizes = [8, 8], strides = [1, 1]} : vector<8x96xbf16> to vector<8x8xbf16>
    %195 = vector.extract_strided_slice %192 {offsets = [0, 64], sizes = [8, 8], strides = [1, 1]} : vector<8x96xbf16> to vector<8x8xbf16>
    %cst_107 = arith.constant dense<0.000000e+00> : vector<8x8xf32>
    %196 = tpu.matmul %193, %194, %cst_107 {dimension_numbers = #tpu.dot_dimension_numbers<[1], [1], [0], [0], [0, 0, 1, 0], [], []>} : vector<8x8xbf16>, vector<8x8xbf16>, vector<8x8xf32> -> vector<8x8xf32>
    %cst_108 = arith.constant dense<0xFF800000> : vector<8xf32>
    %197 = vector.multi_reduction <maximumf>, %196, %cst_108 [1] : vector<8x8xf32> to vector<8xf32>
    %198 = vector.shape_cast %197 : vector<8xf32> to vector<8x1xf32>
    %199 = vector.broadcast %198 : vector<8x1xf32> to vector<8x8xf32>
    %200 = arith.subf %196, %199 : vector<8x8xf32>
    %201 = math.exp %200 : vector<8x8xf32>
    %cst_109 = arith.constant dense<0.000000e+00> : vector<8xf32>
    %202 = vector.multi_reduction <add>, %201, %cst_109 [1] : vector<8x8xf32> to vector<8xf32>
    %203 = vector.shape_cast %202 : vector<8xf32> to vector<8x1xf32>
    %204 = vector.broadcast %203 : vector<8x1xf32> to vector<8x8xf32>
    %205 = arith.divf %201, %204 : vector<8x8xf32>
    %206 = arith.truncf %205 : vector<8x8xf32> to vector<8x8xbf16>
    %cst_110 = arith.constant dense<0.000000e+00> : vector<8x8xf32>
    %207 = tpu.matmul %206, %195, %cst_110 {dimension_numbers = #tpu.dot_dimension_numbers<[1], [0], [0], [1], [0, 0, 1, 1], [], []>} : vector<8x8xbf16>, vector<8x8xbf16>, vector<8x8xf32> -> vector<8x8xf32>
    %208 = vector.extract_strided_slice %169 {offsets = [0, 0], sizes = [8, 32], strides = [1, 1]} : vector<32x32xbf16> to vector<8x32xbf16>
    %209 = arith.truncf %207 : vector<8x8xf32> to vector<8x8xbf16>
    %cst_111 = arith.constant dense<0.000000e+00> : vector<8x32xf32>
    %210 = tpu.matmul %209, %208, %cst_111 {dimension_numbers = #tpu.dot_dimension_numbers<[1], [0], [0], [1], [0, 0, 1, 1], [], []>} : vector<8x8xbf16>, vector<8x32xbf16>, vector<8x32xf32> -> vector<8x32xf32>
    %211 = vector.extract_strided_slice %192 {offsets = [0, 8], sizes = [8, 8], strides = [1, 1]} : vector<8x96xbf16> to vector<8x8xbf16>
    %212 = vector.extract_strided_slice %192 {offsets = [0, 40], sizes = [8, 8], strides = [1, 1]} : vector<8x96xbf16> to vector<8x8xbf16>
    %213 = vector.extract_strided_slice %192 {offsets = [0, 72], sizes = [8, 8], strides = [1, 1]} : vector<8x96xbf16> to vector<8x8xbf16>
    %cst_112 = arith.constant dense<0.000000e+00> : vector<8x8xf32>
    %214 = tpu.matmul %211, %212, %cst_112 {dimension_numbers = #tpu.dot_dimension_numbers<[1], [1], [0], [0], [0, 0, 1, 0], [], []>} : vector<8x8xbf16>, vector<8x8xbf16>, vector<8x8xf32> -> vector<8x8xf32>
    %cst_113 = arith.constant dense<0xFF800000> : vector<8xf32>
    %215 = vector.multi_reduction <maximumf>, %214, %cst_113 [1] : vector<8x8xf32> to vector<8xf32>
    %216 = vector.shape_cast %215 : vector<8xf32> to vector<8x1xf32>
    %217 = vector.broadcast %216 : vector<8x1xf32> to vector<8x8xf32>
    %218 = arith.subf %214, %217 : vector<8x8xf32>
    %219 = math.exp %218 : vector<8x8xf32>
    %cst_114 = arith.constant dense<0.000000e+00> : vector<8xf32>
    %220 = vector.multi_reduction <add>, %219, %cst_114 [1] : vector<8x8xf32> to vector<8xf32>
    %221 = vector.shape_cast %220 : vector<8xf32> to vector<8x1xf32>
    %222 = vector.broadcast %221 : vector<8x1xf32> to vector<8x8xf32>
    %223 = arith.divf %219, %222 : vector<8x8xf32>
    %224 = arith.truncf %223 : vector<8x8xf32> to vector<8x8xbf16>
    %cst_115 = arith.constant dense<0.000000e+00> : vector<8x8xf32>
    %225 = tpu.matmul %224, %213, %cst_115 {dimension_numbers = #tpu.dot_dimension_numbers<[1], [0], [0], [1], [0, 0, 1, 1], [], []>} : vector<8x8xbf16>, vector<8x8xbf16>, vector<8x8xf32> -> vector<8x8xf32>
    %226 = vector.extract_strided_slice %169 {offsets = [8, 0], sizes = [8, 32], strides = [1, 1]} : vector<32x32xbf16> to vector<8x32xbf16>
    %227 = arith.truncf %225 : vector<8x8xf32> to vector<8x8xbf16>
    %cst_116 = arith.constant dense<0.000000e+00> : vector<8x32xf32>
    %228 = tpu.matmul %227, %226, %cst_116 {dimension_numbers = #tpu.dot_dimension_numbers<[1], [0], [0], [1], [0, 0, 1, 1], [], []>} : vector<8x8xbf16>, vector<8x32xbf16>, vector<8x32xf32> -> vector<8x32xf32>
    %229 = arith.addf %210, %228 : vector<8x32xf32>
    %230 = vector.extract_strided_slice %192 {offsets = [0, 16], sizes = [8, 8], strides = [1, 1]} : vector<8x96xbf16> to vector<8x8xbf16>
    %231 = vector.extract_strided_slice %192 {offsets = [0, 48], sizes = [8, 8], strides = [1, 1]} : vector<8x96xbf16> to vector<8x8xbf16>
    %232 = vector.extract_strided_slice %192 {offsets = [0, 80], sizes = [8, 8], strides = [1, 1]} : vector<8x96xbf16> to vector<8x8xbf16>
    %cst_117 = arith.constant dense<0.000000e+00> : vector<8x8xf32>
    %233 = tpu.matmul %230, %231, %cst_117 {dimension_numbers = #tpu.dot_dimension_numbers<[1], [1], [0], [0], [0, 0, 1, 0], [], []>} : vector<8x8xbf16>, vector<8x8xbf16>, vector<8x8xf32> -> vector<8x8xf32>
    %cst_118 = arith.constant dense<0xFF800000> : vector<8xf32>
    %234 = vector.multi_reduction <maximumf>, %233, %cst_118 [1] : vector<8x8xf32> to vector<8xf32>
    %235 = vector.shape_cast %234 : vector<8xf32> to vector<8x1xf32>
    %236 = vector.broadcast %235 : vector<8x1xf32> to vector<8x8xf32>
    %237 = arith.subf %233, %236 : vector<8x8xf32>
    %238 = math.exp %237 : vector<8x8xf32>
    %cst_119 = arith.constant dense<0.000000e+00> : vector<8xf32>
    %239 = vector.multi_reduction <add>, %238, %cst_119 [1] : vector<8x8xf32> to vector<8xf32>
    %240 = vector.shape_cast %239 : vector<8xf32> to vector<8x1xf32>
    %241 = vector.broadcast %240 : vector<8x1xf32> to vector<8x8xf32>
    %242 = arith.divf %238, %241 : vector<8x8xf32>
    %243 = arith.truncf %242 : vector<8x8xf32> to vector<8x8xbf16>
    %cst_120 = arith.constant dense<0.000000e+00> : vector<8x8xf32>
    %244 = tpu.matmul %243, %232, %cst_120 {dimension_numbers = #tpu.dot_dimension_numbers<[1], [0], [0], [1], [0, 0, 1, 1], [], []>} : vector<8x8xbf16>, vector<8x8xbf16>, vector<8x8xf32> -> vector<8x8xf32>
    %245 = vector.extract_strided_slice %169 {offsets = [16, 0], sizes = [8, 32], strides = [1, 1]} : vector<32x32xbf16> to vector<8x32xbf16>
    %246 = arith.truncf %244 : vector<8x8xf32> to vector<8x8xbf16>
    %cst_121 = arith.constant dense<0.000000e+00> : vector<8x32xf32>
    %247 = tpu.matmul %246, %245, %cst_121 {dimension_numbers = #tpu.dot_dimension_numbers<[1], [0], [0], [1], [0, 0, 1, 1], [], []>} : vector<8x8xbf16>, vector<8x32xbf16>, vector<8x32xf32> -> vector<8x32xf32>
    %248 = arith.addf %229, %247 : vector<8x32xf32>
    %249 = vector.extract_strided_slice %192 {offsets = [0, 24], sizes = [8, 8], strides = [1, 1]} : vector<8x96xbf16> to vector<8x8xbf16>
    %250 = vector.extract_strided_slice %192 {offsets = [0, 56], sizes = [8, 8], strides = [1, 1]} : vector<8x96xbf16> to vector<8x8xbf16>
    %251 = vector.extract_strided_slice %192 {offsets = [0, 88], sizes = [8, 8], strides = [1, 1]} : vector<8x96xbf16> to vector<8x8xbf16>
    %cst_122 = arith.constant dense<0.000000e+00> : vector<8x8xf32>
    %252 = tpu.matmul %249, %250, %cst_122 {dimension_numbers = #tpu.dot_dimension_numbers<[1], [1], [0], [0], [0, 0, 1, 0], [], []>} : vector<8x8xbf16>, vector<8x8xbf16>, vector<8x8xf32> -> vector<8x8xf32>
    %cst_123 = arith.constant dense<0xFF800000> : vector<8xf32>
    %253 = vector.multi_reduction <maximumf>, %252, %cst_123 [1] : vector<8x8xf32> to vector<8xf32>
    %254 = vector.shape_cast %253 : vector<8xf32> to vector<8x1xf32>
    %255 = vector.broadcast %254 : vector<8x1xf32> to vector<8x8xf32>
    %256 = arith.subf %252, %255 : vector<8x8xf32>
    %257 = math.exp %256 : vector<8x8xf32>
    %cst_124 = arith.constant dense<0.000000e+00> : vector<8xf32>
    %258 = vector.multi_reduction <add>, %257, %cst_124 [1] : vector<8x8xf32> to vector<8xf32>
    %259 = vector.shape_cast %258 : vector<8xf32> to vector<8x1xf32>
    %260 = vector.broadcast %259 : vector<8x1xf32> to vector<8x8xf32>
    %261 = arith.divf %257, %260 : vector<8x8xf32>
    %262 = arith.truncf %261 : vector<8x8xf32> to vector<8x8xbf16>
    %cst_125 = arith.constant dense<0.000000e+00> : vector<8x8xf32>
    %263 = tpu.matmul %262, %251, %cst_125 {dimension_numbers = #tpu.dot_dimension_numbers<[1], [0], [0], [1], [0, 0, 1, 1], [], []>} : vector<8x8xbf16>, vector<8x8xbf16>, vector<8x8xf32> -> vector<8x8xf32>
    %264 = vector.extract_strided_slice %169 {offsets = [24, 0], sizes = [8, 32], strides = [1, 1]} : vector<32x32xbf16> to vector<8x32xbf16>
    %265 = arith.truncf %263 : vector<8x8xf32> to vector<8x8xbf16>
    %cst_126 = arith.constant dense<0.000000e+00> : vector<8x32xf32>
    %266 = tpu.matmul %265, %264, %cst_126 {dimension_numbers = #tpu.dot_dimension_numbers<[1], [0], [0], [1], [0, 0, 1, 1], [], []>} : vector<8x8xbf16>, vector<8x32xbf16>, vector<8x32xf32> -> vector<8x32xf32>
    %267 = arith.addf %248, %266 : vector<8x32xf32>
    %268 = vector.broadcast %171 : vector<1x32xf32> to vector<8x32xf32>
    %269 = arith.addf %267, %268 : vector<8x32xf32>
    %270 = arith.addf %163, %269 : vector<8x32xf32>
    %cst_127 = arith.constant dense<0.000000e+00> : vector<8xf32>
    %271 = vector.multi_reduction <add>, %270, %cst_127 [1] : vector<8x32xf32> to vector<8xf32>
    %272 = vector.shape_cast %271 : vector<8xf32> to vector<8x1xf32>
    %cst_128 = arith.constant 3.200000e+01 : f32
    %273 = vector.broadcast %cst_128 : f32 to vector<8x1xf32>
    %274 = arith.divf %272, %273 : vector<8x1xf32>
    %275 = vector.broadcast %274 : vector<8x1xf32> to vector<8x32xf32>
    %276 = arith.subf %270, %275 : vector<8x32xf32>
    %277 = arith.mulf %276, %276 : vector<8x32xf32>
    %cst_129 = arith.constant dense<0.000000e+00> : vector<8xf32>
    %278 = vector.multi_reduction <add>, %277, %cst_129 [1] : vector<8x32xf32> to vector<8xf32>
    %279 = vector.shape_cast %278 : vector<8xf32> to vector<8x1xf32>
    %cst_130 = arith.constant 3.200000e+01 : f32
    %280 = vector.broadcast %cst_130 : f32 to vector<8x1xf32>
    %281 = arith.divf %279, %280 : vector<8x1xf32>
    %282 = vector.broadcast %274 : vector<8x1xf32> to vector<8x32xf32>
    %283 = arith.subf %270, %282 : vector<8x32xf32>
    %cst_131 = arith.constant 9.99999974E-6 : f32
    %284 = vector.broadcast %cst_131 : f32 to vector<8x1xf32>
    %285 = arith.addf %281, %284 : vector<8x1xf32>
    %286 = math.rsqrt %285 : vector<8x1xf32>
    %287 = vector.broadcast %286 : vector<8x1xf32> to vector<8x32xf32>
    %288 = arith.mulf %283, %287 : vector<8x32xf32>
    %289 = vector.broadcast %173 : vector<1x32xf32> to vector<8x32xf32>
    %290 = arith.mulf %288, %289 : vector<8x32xf32>
    %291 = vector.broadcast %175 : vector<1x32xf32> to vector<8x32xf32>
    %292 = arith.addf %290, %291 : vector<8x32xf32>
    %293 = arith.truncf %292 : vector<8x32xf32> to vector<8x32xbf16>
    %cst_132 = arith.constant dense<0.000000e+00> : vector<8x2048xf32>
    %294 = tpu.matmul %293, %177, %cst_132 {dimension_numbers = #tpu.dot_dimension_numbers<[1], [0], [0], [1], [0, 0, 1, 1], [], []>} : vector<8x32xbf16>, vector<32x2048xbf16>, vector<8x2048xf32> -> vector<8x2048xf32>
    %295 = vector.broadcast %179 : vector<1x2048xf32> to vector<8x2048xf32>
    %296 = arith.addf %294, %295 : vector<8x2048xf32>
    %cst_133 = arith.constant 0.000000e+00 : f32
    %297 = vector.broadcast %cst_133 : f32 to vector<8x2048xf32>
    %298 = arith.maximumf %296, %297 : vector<8x2048xf32>
    %299 = arith.truncf %298 : vector<8x2048xf32> to vector<8x2048xbf16>
    %cst_134 = arith.constant dense<0.000000e+00> : vector<8x32xf32>
    %300 = tpu.matmul %299, %181, %cst_134 {dimension_numbers = #tpu.dot_dimension_numbers<[1], [0], [0], [1], [0, 0, 1, 1], [], []>} : vector<8x2048xbf16>, vector<2048x32xbf16>, vector<8x32xf32> -> vector<8x32xf32>
    %301 = vector.broadcast %183 : vector<1x32xf32> to vector<8x32xf32>
    %302 = arith.addf %300, %301 : vector<8x32xf32>
    %303 = arith.addf %292, %302 : vector<8x32xf32>
    %cst_135 = arith.constant dense<0.000000e+00> : vector<8xf32>
    %304 = vector.multi_reduction <add>, %303, %cst_135 [1] : vector<8x32xf32> to vector<8xf32>
    %305 = vector.shape_cast %304 : vector<8xf32> to vector<8x1xf32>
    %cst_136 = arith.constant 3.200000e+01 : f32
    %306 = vector.broadcast %cst_136 : f32 to vector<8x1xf32>
    %307 = arith.divf %305, %306 : vector<8x1xf32>
    %308 = vector.broadcast %307 : vector<8x1xf32> to vector<8x32xf32>
    %309 = arith.subf %303, %308 : vector<8x32xf32>
    %310 = arith.mulf %309, %309 : vector<8x32xf32>
    %cst_137 = arith.constant dense<0.000000e+00> : vector<8xf32>
    %311 = vector.multi_reduction <add>, %310, %cst_137 [1] : vector<8x32xf32> to vector<8xf32>
    %312 = vector.shape_cast %311 : vector<8xf32> to vector<8x1xf32>
    %cst_138 = arith.constant 3.200000e+01 : f32
    %313 = vector.broadcast %cst_138 : f32 to vector<8x1xf32>
    %314 = arith.divf %312, %313 : vector<8x1xf32>
    %315 = vector.broadcast %307 : vector<8x1xf32> to vector<8x32xf32>
    %316 = arith.subf %303, %315 : vector<8x32xf32>
    %cst_139 = arith.constant 9.99999974E-6 : f32
    %317 = vector.broadcast %cst_139 : f32 to vector<8x1xf32>
    %318 = arith.addf %314, %317 : vector<8x1xf32>
    %319 = math.rsqrt %318 : vector<8x1xf32>
    %320 = vector.broadcast %319 : vector<8x1xf32> to vector<8x32xf32>
    %321 = arith.mulf %316, %320 : vector<8x32xf32>
    %322 = vector.broadcast %185 : vector<1x32xf32> to vector<8x32xf32>
    %323 = arith.mulf %321, %322 : vector<8x32xf32>
    %324 = vector.broadcast %187 : vector<1x32xf32> to vector<8x32xf32>
    %325 = arith.addf %323, %324 : vector<8x32xf32>
    %c2 = arith.constant 2 : index
    %c0_140 = arith.constant 0 : index
    %c0_141 = arith.constant 0 : index
    %326 = vector.load %arg2[%c2, %c0_140, %c0_141] : memref<6x32x96xbf16, #tpu.memory_space<vmem>>, vector<1x32x96xbf16>
    %327 = vector.shape_cast %326 : vector<1x32x96xbf16> to vector<32x96xbf16>
    %c2_142 = arith.constant 2 : index
    %c0_143 = arith.constant 0 : index
    %c0_144 = arith.constant 0 : index
    %328 = vector.load %arg3[%c2_142, %c0_143, %c0_144] : memref<6x1x96xf32, #tpu.memory_space<vmem>>, vector<1x1x96xf32>
    %329 = vector.shape_cast %328 : vector<1x1x96xf32> to vector<1x96xf32>
    %c2_145 = arith.constant 2 : index
    %c0_146 = arith.constant 0 : index
    %c0_147 = arith.constant 0 : index
    %330 = vector.load %arg4[%c2_145, %c0_146, %c0_147] : memref<6x32x32xbf16, #tpu.memory_space<vmem>>, vector<1x32x32xbf16>
    %331 = vector.shape_cast %330 : vector<1x32x32xbf16> to vector<32x32xbf16>
    %c2_148 = arith.constant 2 : index
    %c0_149 = arith.constant 0 : index
    %c0_150 = arith.constant 0 : index
    %332 = vector.load %arg5[%c2_148, %c0_149, %c0_150] : memref<6x1x32xf32, #tpu.memory_space<vmem>>, vector<1x1x32xf32>
    %333 = vector.shape_cast %332 : vector<1x1x32xf32> to vector<1x32xf32>
    %c2_151 = arith.constant 2 : index
    %c0_152 = arith.constant 0 : index
    %c0_153 = arith.constant 0 : index
    %334 = vector.load %arg6[%c2_151, %c0_152, %c0_153] : memref<6x1x32xf32, #tpu.memory_space<vmem>>, vector<1x1x32xf32>
    %335 = vector.shape_cast %334 : vector<1x1x32xf32> to vector<1x32xf32>
    %c2_154 = arith.constant 2 : index
    %c0_155 = arith.constant 0 : index
    %c0_156 = arith.constant 0 : index
    %336 = vector.load %arg7[%c2_154, %c0_155, %c0_156] : memref<6x1x32xf32, #tpu.memory_space<vmem>>, vector<1x1x32xf32>
    %337 = vector.shape_cast %336 : vector<1x1x32xf32> to vector<1x32xf32>
    %c2_157 = arith.constant 2 : index
    %c0_158 = arith.constant 0 : index
    %c0_159 = arith.constant 0 : index
    %338 = vector.load %arg8[%c2_157, %c0_158, %c0_159] : memref<6x32x2048xbf16, #tpu.memory_space<vmem>>, vector<1x32x2048xbf16>
    %339 = vector.shape_cast %338 : vector<1x32x2048xbf16> to vector<32x2048xbf16>
    %c2_160 = arith.constant 2 : index
    %c0_161 = arith.constant 0 : index
    %c0_162 = arith.constant 0 : index
    %340 = vector.load %arg9[%c2_160, %c0_161, %c0_162] : memref<6x1x2048xf32, #tpu.memory_space<vmem>>, vector<1x1x2048xf32>
    %341 = vector.shape_cast %340 : vector<1x1x2048xf32> to vector<1x2048xf32>
    %c2_163 = arith.constant 2 : index
    %c0_164 = arith.constant 0 : index
    %c0_165 = arith.constant 0 : index
    %342 = vector.load %arg10[%c2_163, %c0_164, %c0_165] : memref<6x2048x32xbf16, #tpu.memory_space<vmem>>, vector<1x2048x32xbf16>
    %343 = vector.shape_cast %342 : vector<1x2048x32xbf16> to vector<2048x32xbf16>
    %c2_166 = arith.constant 2 : index
    %c0_167 = arith.constant 0 : index
    %c0_168 = arith.constant 0 : index
    %344 = vector.load %arg11[%c2_166, %c0_167, %c0_168] : memref<6x1x32xf32, #tpu.memory_space<vmem>>, vector<1x1x32xf32>
    %345 = vector.shape_cast %344 : vector<1x1x32xf32> to vector<1x32xf32>
    %c2_169 = arith.constant 2 : index
    %c0_170 = arith.constant 0 : index
    %c0_171 = arith.constant 0 : index
    %346 = vector.load %arg12[%c2_169, %c0_170, %c0_171] : memref<6x1x32xf32, #tpu.memory_space<vmem>>, vector<1x1x32xf32>
    %347 = vector.shape_cast %346 : vector<1x1x32xf32> to vector<1x32xf32>
    %c2_172 = arith.constant 2 : index
    %c0_173 = arith.constant 0 : index
    %c0_174 = arith.constant 0 : index
    %348 = vector.load %arg13[%c2_172, %c0_173, %c0_174] : memref<6x1x32xf32, #tpu.memory_space<vmem>>, vector<1x1x32xf32>
    %349 = vector.shape_cast %348 : vector<1x1x32xf32> to vector<1x32xf32>
    %350 = arith.truncf %325 : vector<8x32xf32> to vector<8x32xbf16>
    %cst_175 = arith.constant dense<0.000000e+00> : vector<8x96xf32>
    %351 = tpu.matmul %350, %327, %cst_175 {dimension_numbers = #tpu.dot_dimension_numbers<[1], [0], [0], [1], [0, 0, 1, 1], [], []>} : vector<8x32xbf16>, vector<32x96xbf16>, vector<8x96xf32> -> vector<8x96xf32>
    %352 = vector.broadcast %329 : vector<1x96xf32> to vector<8x96xf32>
    %353 = arith.addf %351, %352 : vector<8x96xf32>
    %354 = arith.truncf %353 : vector<8x96xf32> to vector<8x96xbf16>
    %355 = vector.extract_strided_slice %354 {offsets = [0, 0], sizes = [8, 8], strides = [1, 1]} : vector<8x96xbf16> to vector<8x8xbf16>
    %356 = vector.extract_strided_slice %354 {offsets = [0, 32], sizes = [8, 8], strides = [1, 1]} : vector<8x96xbf16> to vector<8x8xbf16>
    %357 = vector.extract_strided_slice %354 {offsets = [0, 64], sizes = [8, 8], strides = [1, 1]} : vector<8x96xbf16> to vector<8x8xbf16>
    %cst_176 = arith.constant dense<0.000000e+00> : vector<8x8xf32>
    %358 = tpu.matmul %355, %356, %cst_176 {dimension_numbers = #tpu.dot_dimension_numbers<[1], [1], [0], [0], [0, 0, 1, 0], [], []>} : vector<8x8xbf16>, vector<8x8xbf16>, vector<8x8xf32> -> vector<8x8xf32>
    %cst_177 = arith.constant dense<0xFF800000> : vector<8xf32>
    %359 = vector.multi_reduction <maximumf>, %358, %cst_177 [1] : vector<8x8xf32> to vector<8xf32>
    %360 = vector.shape_cast %359 : vector<8xf32> to vector<8x1xf32>
    %361 = vector.broadcast %360 : vector<8x1xf32> to vector<8x8xf32>
    %362 = arith.subf %358, %361 : vector<8x8xf32>
    %363 = math.exp %362 : vector<8x8xf32>
    %cst_178 = arith.constant dense<0.000000e+00> : vector<8xf32>
    %364 = vector.multi_reduction <add>, %363, %cst_178 [1] : vector<8x8xf32> to vector<8xf32>
    %365 = vector.shape_cast %364 : vector<8xf32> to vector<8x1xf32>
    %366 = vector.broadcast %365 : vector<8x1xf32> to vector<8x8xf32>
    %367 = arith.divf %363, %366 : vector<8x8xf32>
    %368 = arith.truncf %367 : vector<8x8xf32> to vector<8x8xbf16>
    %cst_179 = arith.constant dense<0.000000e+00> : vector<8x8xf32>
    %369 = tpu.matmul %368, %357, %cst_179 {dimension_numbers = #tpu.dot_dimension_numbers<[1], [0], [0], [1], [0, 0, 1, 1], [], []>} : vector<8x8xbf16>, vector<8x8xbf16>, vector<8x8xf32> -> vector<8x8xf32>
    %370 = vector.extract_strided_slice %331 {offsets = [0, 0], sizes = [8, 32], strides = [1, 1]} : vector<32x32xbf16> to vector<8x32xbf16>
    %371 = arith.truncf %369 : vector<8x8xf32> to vector<8x8xbf16>
    %cst_180 = arith.constant dense<0.000000e+00> : vector<8x32xf32>
    %372 = tpu.matmul %371, %370, %cst_180 {dimension_numbers = #tpu.dot_dimension_numbers<[1], [0], [0], [1], [0, 0, 1, 1], [], []>} : vector<8x8xbf16>, vector<8x32xbf16>, vector<8x32xf32> -> vector<8x32xf32>
    %373 = vector.extract_strided_slice %354 {offsets = [0, 8], sizes = [8, 8], strides = [1, 1]} : vector<8x96xbf16> to vector<8x8xbf16>
    %374 = vector.extract_strided_slice %354 {offsets = [0, 40], sizes = [8, 8], strides = [1, 1]} : vector<8x96xbf16> to vector<8x8xbf16>
    %375 = vector.extract_strided_slice %354 {offsets = [0, 72], sizes = [8, 8], strides = [1, 1]} : vector<8x96xbf16> to vector<8x8xbf16>
    %cst_181 = arith.constant dense<0.000000e+00> : vector<8x8xf32>
    %376 = tpu.matmul %373, %374, %cst_181 {dimension_numbers = #tpu.dot_dimension_numbers<[1], [1], [0], [0], [0, 0, 1, 0], [], []>} : vector<8x8xbf16>, vector<8x8xbf16>, vector<8x8xf32> -> vector<8x8xf32>
    %cst_182 = arith.constant dense<0xFF800000> : vector<8xf32>
    %377 = vector.multi_reduction <maximumf>, %376, %cst_182 [1] : vector<8x8xf32> to vector<8xf32>
    %378 = vector.shape_cast %377 : vector<8xf32> to vector<8x1xf32>
    %379 = vector.broadcast %378 : vector<8x1xf32> to vector<8x8xf32>
    %380 = arith.subf %376, %379 : vector<8x8xf32>
    %381 = math.exp %380 : vector<8x8xf32>
    %cst_183 = arith.constant dense<0.000000e+00> : vector<8xf32>
    %382 = vector.multi_reduction <add>, %381, %cst_183 [1] : vector<8x8xf32> to vector<8xf32>
    %383 = vector.shape_cast %382 : vector<8xf32> to vector<8x1xf32>
    %384 = vector.broadcast %383 : vector<8x1xf32> to vector<8x8xf32>
    %385 = arith.divf %381, %384 : vector<8x8xf32>
    %386 = arith.truncf %385 : vector<8x8xf32> to vector<8x8xbf16>
    %cst_184 = arith.constant dense<0.000000e+00> : vector<8x8xf32>
    %387 = tpu.matmul %386, %375, %cst_184 {dimension_numbers = #tpu.dot_dimension_numbers<[1], [0], [0], [1], [0, 0, 1, 1], [], []>} : vector<8x8xbf16>, vector<8x8xbf16>, vector<8x8xf32> -> vector<8x8xf32>
    %388 = vector.extract_strided_slice %331 {offsets = [8, 0], sizes = [8, 32], strides = [1, 1]} : vector<32x32xbf16> to vector<8x32xbf16>
    %389 = arith.truncf %387 : vector<8x8xf32> to vector<8x8xbf16>
    %cst_185 = arith.constant dense<0.000000e+00> : vector<8x32xf32>
    %390 = tpu.matmul %389, %388, %cst_185 {dimension_numbers = #tpu.dot_dimension_numbers<[1], [0], [0], [1], [0, 0, 1, 1], [], []>} : vector<8x8xbf16>, vector<8x32xbf16>, vector<8x32xf32> -> vector<8x32xf32>
    %391 = arith.addf %372, %390 : vector<8x32xf32>
    %392 = vector.extract_strided_slice %354 {offsets = [0, 16], sizes = [8, 8], strides = [1, 1]} : vector<8x96xbf16> to vector<8x8xbf16>
    %393 = vector.extract_strided_slice %354 {offsets = [0, 48], sizes = [8, 8], strides = [1, 1]} : vector<8x96xbf16> to vector<8x8xbf16>
    %394 = vector.extract_strided_slice %354 {offsets = [0, 80], sizes = [8, 8], strides = [1, 1]} : vector<8x96xbf16> to vector<8x8xbf16>
    %cst_186 = arith.constant dense<0.000000e+00> : vector<8x8xf32>
    %395 = tpu.matmul %392, %393, %cst_186 {dimension_numbers = #tpu.dot_dimension_numbers<[1], [1], [0], [0], [0, 0, 1, 0], [], []>} : vector<8x8xbf16>, vector<8x8xbf16>, vector<8x8xf32> -> vector<8x8xf32>
    %cst_187 = arith.constant dense<0xFF800000> : vector<8xf32>
    %396 = vector.multi_reduction <maximumf>, %395, %cst_187 [1] : vector<8x8xf32> to vector<8xf32>
    %397 = vector.shape_cast %396 : vector<8xf32> to vector<8x1xf32>
    %398 = vector.broadcast %397 : vector<8x1xf32> to vector<8x8xf32>
    %399 = arith.subf %395, %398 : vector<8x8xf32>
    %400 = math.exp %399 : vector<8x8xf32>
    %cst_188 = arith.constant dense<0.000000e+00> : vector<8xf32>
    %401 = vector.multi_reduction <add>, %400, %cst_188 [1] : vector<8x8xf32> to vector<8xf32>
    %402 = vector.shape_cast %401 : vector<8xf32> to vector<8x1xf32>
    %403 = vector.broadcast %402 : vector<8x1xf32> to vector<8x8xf32>
    %404 = arith.divf %400, %403 : vector<8x8xf32>
    %405 = arith.truncf %404 : vector<8x8xf32> to vector<8x8xbf16>
    %cst_189 = arith.constant dense<0.000000e+00> : vector<8x8xf32>
    %406 = tpu.matmul %405, %394, %cst_189 {dimension_numbers = #tpu.dot_dimension_numbers<[1], [0], [0], [1], [0, 0, 1, 1], [], []>} : vector<8x8xbf16>, vector<8x8xbf16>, vector<8x8xf32> -> vector<8x8xf32>
    %407 = vector.extract_strided_slice %331 {offsets = [16, 0], sizes = [8, 32], strides = [1, 1]} : vector<32x32xbf16> to vector<8x32xbf16>
    %408 = arith.truncf %406 : vector<8x8xf32> to vector<8x8xbf16>
    %cst_190 = arith.constant dense<0.000000e+00> : vector<8x32xf32>
    %409 = tpu.matmul %408, %407, %cst_190 {dimension_numbers = #tpu.dot_dimension_numbers<[1], [0], [0], [1], [0, 0, 1, 1], [], []>} : vector<8x8xbf16>, vector<8x32xbf16>, vector<8x32xf32> -> vector<8x32xf32>
    %410 = arith.addf %391, %409 : vector<8x32xf32>
    %411 = vector.extract_strided_slice %354 {offsets = [0, 24], sizes = [8, 8], strides = [1, 1]} : vector<8x96xbf16> to vector<8x8xbf16>
    %412 = vector.extract_strided_slice %354 {offsets = [0, 56], sizes = [8, 8], strides = [1, 1]} : vector<8x96xbf16> to vector<8x8xbf16>
    %413 = vector.extract_strided_slice %354 {offsets = [0, 88], sizes = [8, 8], strides = [1, 1]} : vector<8x96xbf16> to vector<8x8xbf16>
    %cst_191 = arith.constant dense<0.000000e+00> : vector<8x8xf32>
    %414 = tpu.matmul %411, %412, %cst_191 {dimension_numbers = #tpu.dot_dimension_numbers<[1], [1], [0], [0], [0, 0, 1, 0], [], []>} : vector<8x8xbf16>, vector<8x8xbf16>, vector<8x8xf32> -> vector<8x8xf32>
    %cst_192 = arith.constant dense<0xFF800000> : vector<8xf32>
    %415 = vector.multi_reduction <maximumf>, %414, %cst_192 [1] : vector<8x8xf32> to vector<8xf32>
    %416 = vector.shape_cast %415 : vector<8xf32> to vector<8x1xf32>
    %417 = vector.broadcast %416 : vector<8x1xf32> to vector<8x8xf32>
    %418 = arith.subf %414, %417 : vector<8x8xf32>
    %419 = math.exp %418 : vector<8x8xf32>
    %cst_193 = arith.constant dense<0.000000e+00> : vector<8xf32>
    %420 = vector.multi_reduction <add>, %419, %cst_193 [1] : vector<8x8xf32> to vector<8xf32>
    %421 = vector.shape_cast %420 : vector<8xf32> to vector<8x1xf32>
    %422 = vector.broadcast %421 : vector<8x1xf32> to vector<8x8xf32>
    %423 = arith.divf %419, %422 : vector<8x8xf32>
    %424 = arith.truncf %423 : vector<8x8xf32> to vector<8x8xbf16>
    %cst_194 = arith.constant dense<0.000000e+00> : vector<8x8xf32>
    %425 = tpu.matmul %424, %413, %cst_194 {dimension_numbers = #tpu.dot_dimension_numbers<[1], [0], [0], [1], [0, 0, 1, 1], [], []>} : vector<8x8xbf16>, vector<8x8xbf16>, vector<8x8xf32> -> vector<8x8xf32>
    %426 = vector.extract_strided_slice %331 {offsets = [24, 0], sizes = [8, 32], strides = [1, 1]} : vector<32x32xbf16> to vector<8x32xbf16>
    %427 = arith.truncf %425 : vector<8x8xf32> to vector<8x8xbf16>
    %cst_195 = arith.constant dense<0.000000e+00> : vector<8x32xf32>
    %428 = tpu.matmul %427, %426, %cst_195 {dimension_numbers = #tpu.dot_dimension_numbers<[1], [0], [0], [1], [0, 0, 1, 1], [], []>} : vector<8x8xbf16>, vector<8x32xbf16>, vector<8x32xf32> -> vector<8x32xf32>
    %429 = arith.addf %410, %428 : vector<8x32xf32>
    %430 = vector.broadcast %333 : vector<1x32xf32> to vector<8x32xf32>
    %431 = arith.addf %429, %430 : vector<8x32xf32>
    %432 = arith.addf %325, %431 : vector<8x32xf32>
    %cst_196 = arith.constant dense<0.000000e+00> : vector<8xf32>
    %433 = vector.multi_reduction <add>, %432, %cst_196 [1] : vector<8x32xf32> to vector<8xf32>
    %434 = vector.shape_cast %433 : vector<8xf32> to vector<8x1xf32>
    %cst_197 = arith.constant 3.200000e+01 : f32
    %435 = vector.broadcast %cst_197 : f32 to vector<8x1xf32>
    %436 = arith.divf %434, %435 : vector<8x1xf32>
    %437 = vector.broadcast %436 : vector<8x1xf32> to vector<8x32xf32>
    %438 = arith.subf %432, %437 : vector<8x32xf32>
    %439 = arith.mulf %438, %438 : vector<8x32xf32>
    %cst_198 = arith.constant dense<0.000000e+00> : vector<8xf32>
    %440 = vector.multi_reduction <add>, %439, %cst_198 [1] : vector<8x32xf32> to vector<8xf32>
    %441 = vector.shape_cast %440 : vector<8xf32> to vector<8x1xf32>
    %cst_199 = arith.constant 3.200000e+01 : f32
    %442 = vector.broadcast %cst_199 : f32 to vector<8x1xf32>
    %443 = arith.divf %441, %442 : vector<8x1xf32>
    %444 = vector.broadcast %436 : vector<8x1xf32> to vector<8x32xf32>
    %445 = arith.subf %432, %444 : vector<8x32xf32>
    %cst_200 = arith.constant 9.99999974E-6 : f32
    %446 = vector.broadcast %cst_200 : f32 to vector<8x1xf32>
    %447 = arith.addf %443, %446 : vector<8x1xf32>
    %448 = math.rsqrt %447 : vector<8x1xf32>
    %449 = vector.broadcast %448 : vector<8x1xf32> to vector<8x32xf32>
    %450 = arith.mulf %445, %449 : vector<8x32xf32>
    %451 = vector.broadcast %335 : vector<1x32xf32> to vector<8x32xf32>
    %452 = arith.mulf %450, %451 : vector<8x32xf32>
    %453 = vector.broadcast %337 : vector<1x32xf32> to vector<8x32xf32>
    %454 = arith.addf %452, %453 : vector<8x32xf32>
    %455 = arith.truncf %454 : vector<8x32xf32> to vector<8x32xbf16>
    %cst_201 = arith.constant dense<0.000000e+00> : vector<8x2048xf32>
    %456 = tpu.matmul %455, %339, %cst_201 {dimension_numbers = #tpu.dot_dimension_numbers<[1], [0], [0], [1], [0, 0, 1, 1], [], []>} : vector<8x32xbf16>, vector<32x2048xbf16>, vector<8x2048xf32> -> vector<8x2048xf32>
    %457 = vector.broadcast %341 : vector<1x2048xf32> to vector<8x2048xf32>
    %458 = arith.addf %456, %457 : vector<8x2048xf32>
    %cst_202 = arith.constant 0.000000e+00 : f32
    %459 = vector.broadcast %cst_202 : f32 to vector<8x2048xf32>
    %460 = arith.maximumf %458, %459 : vector<8x2048xf32>
    %461 = arith.truncf %460 : vector<8x2048xf32> to vector<8x2048xbf16>
    %cst_203 = arith.constant dense<0.000000e+00> : vector<8x32xf32>
    %462 = tpu.matmul %461, %343, %cst_203 {dimension_numbers = #tpu.dot_dimension_numbers<[1], [0], [0], [1], [0, 0, 1, 1], [], []>} : vector<8x2048xbf16>, vector<2048x32xbf16>, vector<8x32xf32> -> vector<8x32xf32>
    %463 = vector.broadcast %345 : vector<1x32xf32> to vector<8x32xf32>
    %464 = arith.addf %462, %463 : vector<8x32xf32>
    %465 = arith.addf %454, %464 : vector<8x32xf32>
    %cst_204 = arith.constant dense<0.000000e+00> : vector<8xf32>
    %466 = vector.multi_reduction <add>, %465, %cst_204 [1] : vector<8x32xf32> to vector<8xf32>
    %467 = vector.shape_cast %466 : vector<8xf32> to vector<8x1xf32>
    %cst_205 = arith.constant 3.200000e+01 : f32
    %468 = vector.broadcast %cst_205 : f32 to vector<8x1xf32>
    %469 = arith.divf %467, %468 : vector<8x1xf32>
    %470 = vector.broadcast %469 : vector<8x1xf32> to vector<8x32xf32>
    %471 = arith.subf %465, %470 : vector<8x32xf32>
    %472 = arith.mulf %471, %471 : vector<8x32xf32>
    %cst_206 = arith.constant dense<0.000000e+00> : vector<8xf32>
    %473 = vector.multi_reduction <add>, %472, %cst_206 [1] : vector<8x32xf32> to vector<8xf32>
    %474 = vector.shape_cast %473 : vector<8xf32> to vector<8x1xf32>
    %cst_207 = arith.constant 3.200000e+01 : f32
    %475 = vector.broadcast %cst_207 : f32 to vector<8x1xf32>
    %476 = arith.divf %474, %475 : vector<8x1xf32>
    %477 = vector.broadcast %469 : vector<8x1xf32> to vector<8x32xf32>
    %478 = arith.subf %465, %477 : vector<8x32xf32>
    %cst_208 = arith.constant 9.99999974E-6 : f32
    %479 = vector.broadcast %cst_208 : f32 to vector<8x1xf32>
    %480 = arith.addf %476, %479 : vector<8x1xf32>
    %481 = math.rsqrt %480 : vector<8x1xf32>
    %482 = vector.broadcast %481 : vector<8x1xf32> to vector<8x32xf32>
    %483 = arith.mulf %478, %482 : vector<8x32xf32>
    %484 = vector.broadcast %347 : vector<1x32xf32> to vector<8x32xf32>
    %485 = arith.mulf %483, %484 : vector<8x32xf32>
    %486 = vector.broadcast %349 : vector<1x32xf32> to vector<8x32xf32>
    %487 = arith.addf %485, %486 : vector<8x32xf32>
    %c3 = arith.constant 3 : index
    %c0_209 = arith.constant 0 : index
    %c0_210 = arith.constant 0 : index
    %488 = vector.load %arg2[%c3, %c0_209, %c0_210] : memref<6x32x96xbf16, #tpu.memory_space<vmem>>, vector<1x32x96xbf16>
    %489 = vector.shape_cast %488 : vector<1x32x96xbf16> to vector<32x96xbf16>
    %c3_211 = arith.constant 3 : index
    %c0_212 = arith.constant 0 : index
    %c0_213 = arith.constant 0 : index
    %490 = vector.load %arg3[%c3_211, %c0_212, %c0_213] : memref<6x1x96xf32, #tpu.memory_space<vmem>>, vector<1x1x96xf32>
    %491 = vector.shape_cast %490 : vector<1x1x96xf32> to vector<1x96xf32>
    %c3_214 = arith.constant 3 : index
    %c0_215 = arith.constant 0 : index
    %c0_216 = arith.constant 0 : index
    %492 = vector.load %arg4[%c3_214, %c0_215, %c0_216] : memref<6x32x32xbf16, #tpu.memory_space<vmem>>, vector<1x32x32xbf16>
    %493 = vector.shape_cast %492 : vector<1x32x32xbf16> to vector<32x32xbf16>
    %c3_217 = arith.constant 3 : index
    %c0_218 = arith.constant 0 : index
    %c0_219 = arith.constant 0 : index
    %494 = vector.load %arg5[%c3_217, %c0_218, %c0_219] : memref<6x1x32xf32, #tpu.memory_space<vmem>>, vector<1x1x32xf32>
    %495 = vector.shape_cast %494 : vector<1x1x32xf32> to vector<1x32xf32>
    %c3_220 = arith.constant 3 : index
    %c0_221 = arith.constant 0 : index
    %c0_222 = arith.constant 0 : index
    %496 = vector.load %arg6[%c3_220, %c0_221, %c0_222] : memref<6x1x32xf32, #tpu.memory_space<vmem>>, vector<1x1x32xf32>
    %497 = vector.shape_cast %496 : vector<1x1x32xf32> to vector<1x32xf32>
    %c3_223 = arith.constant 3 : index
    %c0_224 = arith.constant 0 : index
    %c0_225 = arith.constant 0 : index
    %498 = vector.load %arg7[%c3_223, %c0_224, %c0_225] : memref<6x1x32xf32, #tpu.memory_space<vmem>>, vector<1x1x32xf32>
    %499 = vector.shape_cast %498 : vector<1x1x32xf32> to vector<1x32xf32>
    %c3_226 = arith.constant 3 : index
    %c0_227 = arith.constant 0 : index
    %c0_228 = arith.constant 0 : index
    %500 = vector.load %arg8[%c3_226, %c0_227, %c0_228] : memref<6x32x2048xbf16, #tpu.memory_space<vmem>>, vector<1x32x2048xbf16>
    %501 = vector.shape_cast %500 : vector<1x32x2048xbf16> to vector<32x2048xbf16>
    %c3_229 = arith.constant 3 : index
    %c0_230 = arith.constant 0 : index
    %c0_231 = arith.constant 0 : index
    %502 = vector.load %arg9[%c3_229, %c0_230, %c0_231] : memref<6x1x2048xf32, #tpu.memory_space<vmem>>, vector<1x1x2048xf32>
    %503 = vector.shape_cast %502 : vector<1x1x2048xf32> to vector<1x2048xf32>
    %c3_232 = arith.constant 3 : index
    %c0_233 = arith.constant 0 : index
    %c0_234 = arith.constant 0 : index
    %504 = vector.load %arg10[%c3_232, %c0_233, %c0_234] : memref<6x2048x32xbf16, #tpu.memory_space<vmem>>, vector<1x2048x32xbf16>
    %505 = vector.shape_cast %504 : vector<1x2048x32xbf16> to vector<2048x32xbf16>
    %c3_235 = arith.constant 3 : index
    %c0_236 = arith.constant 0 : index
    %c0_237 = arith.constant 0 : index
    %506 = vector.load %arg11[%c3_235, %c0_236, %c0_237] : memref<6x1x32xf32, #tpu.memory_space<vmem>>, vector<1x1x32xf32>
    %507 = vector.shape_cast %506 : vector<1x1x32xf32> to vector<1x32xf32>
    %c3_238 = arith.constant 3 : index
    %c0_239 = arith.constant 0 : index
    %c0_240 = arith.constant 0 : index
    %508 = vector.load %arg12[%c3_238, %c0_239, %c0_240] : memref<6x1x32xf32, #tpu.memory_space<vmem>>, vector<1x1x32xf32>
    %509 = vector.shape_cast %508 : vector<1x1x32xf32> to vector<1x32xf32>
    %c3_241 = arith.constant 3 : index
    %c0_242 = arith.constant 0 : index
    %c0_243 = arith.constant 0 : index
    %510 = vector.load %arg13[%c3_241, %c0_242, %c0_243] : memref<6x1x32xf32, #tpu.memory_space<vmem>>, vector<1x1x32xf32>
    %511 = vector.shape_cast %510 : vector<1x1x32xf32> to vector<1x32xf32>
    %512 = arith.truncf %487 : vector<8x32xf32> to vector<8x32xbf16>
    %cst_244 = arith.constant dense<0.000000e+00> : vector<8x96xf32>
    %513 = tpu.matmul %512, %489, %cst_244 {dimension_numbers = #tpu.dot_dimension_numbers<[1], [0], [0], [1], [0, 0, 1, 1], [], []>} : vector<8x32xbf16>, vector<32x96xbf16>, vector<8x96xf32> -> vector<8x96xf32>
    %514 = vector.broadcast %491 : vector<1x96xf32> to vector<8x96xf32>
    %515 = arith.addf %513, %514 : vector<8x96xf32>
    %516 = arith.truncf %515 : vector<8x96xf32> to vector<8x96xbf16>
    %517 = vector.extract_strided_slice %516 {offsets = [0, 0], sizes = [8, 8], strides = [1, 1]} : vector<8x96xbf16> to vector<8x8xbf16>
    %518 = vector.extract_strided_slice %516 {offsets = [0, 32], sizes = [8, 8], strides = [1, 1]} : vector<8x96xbf16> to vector<8x8xbf16>
    %519 = vector.extract_strided_slice %516 {offsets = [0, 64], sizes = [8, 8], strides = [1, 1]} : vector<8x96xbf16> to vector<8x8xbf16>
    %cst_245 = arith.constant dense<0.000000e+00> : vector<8x8xf32>
    %520 = tpu.matmul %517, %518, %cst_245 {dimension_numbers = #tpu.dot_dimension_numbers<[1], [1], [0], [0], [0, 0, 1, 0], [], []>} : vector<8x8xbf16>, vector<8x8xbf16>, vector<8x8xf32> -> vector<8x8xf32>
    %cst_246 = arith.constant dense<0xFF800000> : vector<8xf32>
    %521 = vector.multi_reduction <maximumf>, %520, %cst_246 [1] : vector<8x8xf32> to vector<8xf32>
    %522 = vector.shape_cast %521 : vector<8xf32> to vector<8x1xf32>
    %523 = vector.broadcast %522 : vector<8x1xf32> to vector<8x8xf32>
    %524 = arith.subf %520, %523 : vector<8x8xf32>
    %525 = math.exp %524 : vector<8x8xf32>
    %cst_247 = arith.constant dense<0.000000e+00> : vector<8xf32>
    %526 = vector.multi_reduction <add>, %525, %cst_247 [1] : vector<8x8xf32> to vector<8xf32>
    %527 = vector.shape_cast %526 : vector<8xf32> to vector<8x1xf32>
    %528 = vector.broadcast %527 : vector<8x1xf32> to vector<8x8xf32>
    %529 = arith.divf %525, %528 : vector<8x8xf32>
    %530 = arith.truncf %529 : vector<8x8xf32> to vector<8x8xbf16>
    %cst_248 = arith.constant dense<0.000000e+00> : vector<8x8xf32>
    %531 = tpu.matmul %530, %519, %cst_248 {dimension_numbers = #tpu.dot_dimension_numbers<[1], [0], [0], [1], [0, 0, 1, 1], [], []>} : vector<8x8xbf16>, vector<8x8xbf16>, vector<8x8xf32> -> vector<8x8xf32>
    %532 = vector.extract_strided_slice %493 {offsets = [0, 0], sizes = [8, 32], strides = [1, 1]} : vector<32x32xbf16> to vector<8x32xbf16>
    %533 = arith.truncf %531 : vector<8x8xf32> to vector<8x8xbf16>
    %cst_249 = arith.constant dense<0.000000e+00> : vector<8x32xf32>
    %534 = tpu.matmul %533, %532, %cst_249 {dimension_numbers = #tpu.dot_dimension_numbers<[1], [0], [0], [1], [0, 0, 1, 1], [], []>} : vector<8x8xbf16>, vector<8x32xbf16>, vector<8x32xf32> -> vector<8x32xf32>
    %535 = vector.extract_strided_slice %516 {offsets = [0, 8], sizes = [8, 8], strides = [1, 1]} : vector<8x96xbf16> to vector<8x8xbf16>
    %536 = vector.extract_strided_slice %516 {offsets = [0, 40], sizes = [8, 8], strides = [1, 1]} : vector<8x96xbf16> to vector<8x8xbf16>
    %537 = vector.extract_strided_slice %516 {offsets = [0, 72], sizes = [8, 8], strides = [1, 1]} : vector<8x96xbf16> to vector<8x8xbf16>
    %cst_250 = arith.constant dense<0.000000e+00> : vector<8x8xf32>
    %538 = tpu.matmul %535, %536, %cst_250 {dimension_numbers = #tpu.dot_dimension_numbers<[1], [1], [0], [0], [0, 0, 1, 0], [], []>} : vector<8x8xbf16>, vector<8x8xbf16>, vector<8x8xf32> -> vector<8x8xf32>
    %cst_251 = arith.constant dense<0xFF800000> : vector<8xf32>
    %539 = vector.multi_reduction <maximumf>, %538, %cst_251 [1] : vector<8x8xf32> to vector<8xf32>
    %540 = vector.shape_cast %539 : vector<8xf32> to vector<8x1xf32>
    %541 = vector.broadcast %540 : vector<8x1xf32> to vector<8x8xf32>
    %542 = arith.subf %538, %541 : vector<8x8xf32>
    %543 = math.exp %542 : vector<8x8xf32>
    %cst_252 = arith.constant dense<0.000000e+00> : vector<8xf32>
    %544 = vector.multi_reduction <add>, %543, %cst_252 [1] : vector<8x8xf32> to vector<8xf32>
    %545 = vector.shape_cast %544 : vector<8xf32> to vector<8x1xf32>
    %546 = vector.broadcast %545 : vector<8x1xf32> to vector<8x8xf32>
    %547 = arith.divf %543, %546 : vector<8x8xf32>
    %548 = arith.truncf %547 : vector<8x8xf32> to vector<8x8xbf16>
    %cst_253 = arith.constant dense<0.000000e+00> : vector<8x8xf32>
    %549 = tpu.matmul %548, %537, %cst_253 {dimension_numbers = #tpu.dot_dimension_numbers<[1], [0], [0], [1], [0, 0, 1, 1], [], []>} : vector<8x8xbf16>, vector<8x8xbf16>, vector<8x8xf32> -> vector<8x8xf32>
    %550 = vector.extract_strided_slice %493 {offsets = [8, 0], sizes = [8, 32], strides = [1, 1]} : vector<32x32xbf16> to vector<8x32xbf16>
    %551 = arith.truncf %549 : vector<8x8xf32> to vector<8x8xbf16>
    %cst_254 = arith.constant dense<0.000000e+00> : vector<8x32xf32>
    %552 = tpu.matmul %551, %550, %cst_254 {dimension_numbers = #tpu.dot_dimension_numbers<[1], [0], [0], [1], [0, 0, 1, 1], [], []>} : vector<8x8xbf16>, vector<8x32xbf16>, vector<8x32xf32> -> vector<8x32xf32>
    %553 = arith.addf %534, %552 : vector<8x32xf32>
    %554 = vector.extract_strided_slice %516 {offsets = [0, 16], sizes = [8, 8], strides = [1, 1]} : vector<8x96xbf16> to vector<8x8xbf16>
    %555 = vector.extract_strided_slice %516 {offsets = [0, 48], sizes = [8, 8], strides = [1, 1]} : vector<8x96xbf16> to vector<8x8xbf16>
    %556 = vector.extract_strided_slice %516 {offsets = [0, 80], sizes = [8, 8], strides = [1, 1]} : vector<8x96xbf16> to vector<8x8xbf16>
    %cst_255 = arith.constant dense<0.000000e+00> : vector<8x8xf32>
    %557 = tpu.matmul %554, %555, %cst_255 {dimension_numbers = #tpu.dot_dimension_numbers<[1], [1], [0], [0], [0, 0, 1, 0], [], []>} : vector<8x8xbf16>, vector<8x8xbf16>, vector<8x8xf32> -> vector<8x8xf32>
    %cst_256 = arith.constant dense<0xFF800000> : vector<8xf32>
    %558 = vector.multi_reduction <maximumf>, %557, %cst_256 [1] : vector<8x8xf32> to vector<8xf32>
    %559 = vector.shape_cast %558 : vector<8xf32> to vector<8x1xf32>
    %560 = vector.broadcast %559 : vector<8x1xf32> to vector<8x8xf32>
    %561 = arith.subf %557, %560 : vector<8x8xf32>
    %562 = math.exp %561 : vector<8x8xf32>
    %cst_257 = arith.constant dense<0.000000e+00> : vector<8xf32>
    %563 = vector.multi_reduction <add>, %562, %cst_257 [1] : vector<8x8xf32> to vector<8xf32>
    %564 = vector.shape_cast %563 : vector<8xf32> to vector<8x1xf32>
    %565 = vector.broadcast %564 : vector<8x1xf32> to vector<8x8xf32>
    %566 = arith.divf %562, %565 : vector<8x8xf32>
    %567 = arith.truncf %566 : vector<8x8xf32> to vector<8x8xbf16>
    %cst_258 = arith.constant dense<0.000000e+00> : vector<8x8xf32>
    %568 = tpu.matmul %567, %556, %cst_258 {dimension_numbers = #tpu.dot_dimension_numbers<[1], [0], [0], [1], [0, 0, 1, 1], [], []>} : vector<8x8xbf16>, vector<8x8xbf16>, vector<8x8xf32> -> vector<8x8xf32>
    %569 = vector.extract_strided_slice %493 {offsets = [16, 0], sizes = [8, 32], strides = [1, 1]} : vector<32x32xbf16> to vector<8x32xbf16>
    %570 = arith.truncf %568 : vector<8x8xf32> to vector<8x8xbf16>
    %cst_259 = arith.constant dense<0.000000e+00> : vector<8x32xf32>
    %571 = tpu.matmul %570, %569, %cst_259 {dimension_numbers = #tpu.dot_dimension_numbers<[1], [0], [0], [1], [0, 0, 1, 1], [], []>} : vector<8x8xbf16>, vector<8x32xbf16>, vector<8x32xf32> -> vector<8x32xf32>
    %572 = arith.addf %553, %571 : vector<8x32xf32>
    %573 = vector.extract_strided_slice %516 {offsets = [0, 24], sizes = [8, 8], strides = [1, 1]} : vector<8x96xbf16> to vector<8x8xbf16>
    %574 = vector.extract_strided_slice %516 {offsets = [0, 56], sizes = [8, 8], strides = [1, 1]} : vector<8x96xbf16> to vector<8x8xbf16>
    %575 = vector.extract_strided_slice %516 {offsets = [0, 88], sizes = [8, 8], strides = [1, 1]} : vector<8x96xbf16> to vector<8x8xbf16>
    %cst_260 = arith.constant dense<0.000000e+00> : vector<8x8xf32>
    %576 = tpu.matmul %573, %574, %cst_260 {dimension_numbers = #tpu.dot_dimension_numbers<[1], [1], [0], [0], [0, 0, 1, 0], [], []>} : vector<8x8xbf16>, vector<8x8xbf16>, vector<8x8xf32> -> vector<8x8xf32>
    %cst_261 = arith.constant dense<0xFF800000> : vector<8xf32>
    %577 = vector.multi_reduction <maximumf>, %576, %cst_261 [1] : vector<8x8xf32> to vector<8xf32>
    %578 = vector.shape_cast %577 : vector<8xf32> to vector<8x1xf32>
    %579 = vector.broadcast %578 : vector<8x1xf32> to vector<8x8xf32>
    %580 = arith.subf %576, %579 : vector<8x8xf32>
    %581 = math.exp %580 : vector<8x8xf32>
    %cst_262 = arith.constant dense<0.000000e+00> : vector<8xf32>
    %582 = vector.multi_reduction <add>, %581, %cst_262 [1] : vector<8x8xf32> to vector<8xf32>
    %583 = vector.shape_cast %582 : vector<8xf32> to vector<8x1xf32>
    %584 = vector.broadcast %583 : vector<8x1xf32> to vector<8x8xf32>
    %585 = arith.divf %581, %584 : vector<8x8xf32>
    %586 = arith.truncf %585 : vector<8x8xf32> to vector<8x8xbf16>
    %cst_263 = arith.constant dense<0.000000e+00> : vector<8x8xf32>
    %587 = tpu.matmul %586, %575, %cst_263 {dimension_numbers = #tpu.dot_dimension_numbers<[1], [0], [0], [1], [0, 0, 1, 1], [], []>} : vector<8x8xbf16>, vector<8x8xbf16>, vector<8x8xf32> -> vector<8x8xf32>
    %588 = vector.extract_strided_slice %493 {offsets = [24, 0], sizes = [8, 32], strides = [1, 1]} : vector<32x32xbf16> to vector<8x32xbf16>
    %589 = arith.truncf %587 : vector<8x8xf32> to vector<8x8xbf16>
    %cst_264 = arith.constant dense<0.000000e+00> : vector<8x32xf32>
    %590 = tpu.matmul %589, %588, %cst_264 {dimension_numbers = #tpu.dot_dimension_numbers<[1], [0], [0], [1], [0, 0, 1, 1], [], []>} : vector<8x8xbf16>, vector<8x32xbf16>, vector<8x32xf32> -> vector<8x32xf32>
    %591 = arith.addf %572, %590 : vector<8x32xf32>
    %592 = vector.broadcast %495 : vector<1x32xf32> to vector<8x32xf32>
    %593 = arith.addf %591, %592 : vector<8x32xf32>
    %594 = arith.addf %487, %593 : vector<8x32xf32>
    %cst_265 = arith.constant dense<0.000000e+00> : vector<8xf32>
    %595 = vector.multi_reduction <add>, %594, %cst_265 [1] : vector<8x32xf32> to vector<8xf32>
    %596 = vector.shape_cast %595 : vector<8xf32> to vector<8x1xf32>
    %cst_266 = arith.constant 3.200000e+01 : f32
    %597 = vector.broadcast %cst_266 : f32 to vector<8x1xf32>
    %598 = arith.divf %596, %597 : vector<8x1xf32>
    %599 = vector.broadcast %598 : vector<8x1xf32> to vector<8x32xf32>
    %600 = arith.subf %594, %599 : vector<8x32xf32>
    %601 = arith.mulf %600, %600 : vector<8x32xf32>
    %cst_267 = arith.constant dense<0.000000e+00> : vector<8xf32>
    %602 = vector.multi_reduction <add>, %601, %cst_267 [1] : vector<8x32xf32> to vector<8xf32>
    %603 = vector.shape_cast %602 : vector<8xf32> to vector<8x1xf32>
    %cst_268 = arith.constant 3.200000e+01 : f32
    %604 = vector.broadcast %cst_268 : f32 to vector<8x1xf32>
    %605 = arith.divf %603, %604 : vector<8x1xf32>
    %606 = vector.broadcast %598 : vector<8x1xf32> to vector<8x32xf32>
    %607 = arith.subf %594, %606 : vector<8x32xf32>
    %cst_269 = arith.constant 9.99999974E-6 : f32
    %608 = vector.broadcast %cst_269 : f32 to vector<8x1xf32>
    %609 = arith.addf %605, %608 : vector<8x1xf32>
    %610 = math.rsqrt %609 : vector<8x1xf32>
    %611 = vector.broadcast %610 : vector<8x1xf32> to vector<8x32xf32>
    %612 = arith.mulf %607, %611 : vector<8x32xf32>
    %613 = vector.broadcast %497 : vector<1x32xf32> to vector<8x32xf32>
    %614 = arith.mulf %612, %613 : vector<8x32xf32>
    %615 = vector.broadcast %499 : vector<1x32xf32> to vector<8x32xf32>
    %616 = arith.addf %614, %615 : vector<8x32xf32>
    %617 = arith.truncf %616 : vector<8x32xf32> to vector<8x32xbf16>
    %cst_270 = arith.constant dense<0.000000e+00> : vector<8x2048xf32>
    %618 = tpu.matmul %617, %501, %cst_270 {dimension_numbers = #tpu.dot_dimension_numbers<[1], [0], [0], [1], [0, 0, 1, 1], [], []>} : vector<8x32xbf16>, vector<32x2048xbf16>, vector<8x2048xf32> -> vector<8x2048xf32>
    %619 = vector.broadcast %503 : vector<1x2048xf32> to vector<8x2048xf32>
    %620 = arith.addf %618, %619 : vector<8x2048xf32>
    %cst_271 = arith.constant 0.000000e+00 : f32
    %621 = vector.broadcast %cst_271 : f32 to vector<8x2048xf32>
    %622 = arith.maximumf %620, %621 : vector<8x2048xf32>
    %623 = arith.truncf %622 : vector<8x2048xf32> to vector<8x2048xbf16>
    %cst_272 = arith.constant dense<0.000000e+00> : vector<8x32xf32>
    %624 = tpu.matmul %623, %505, %cst_272 {dimension_numbers = #tpu.dot_dimension_numbers<[1], [0], [0], [1], [0, 0, 1, 1], [], []>} : vector<8x2048xbf16>, vector<2048x32xbf16>, vector<8x32xf32> -> vector<8x32xf32>
    %625 = vector.broadcast %507 : vector<1x32xf32> to vector<8x32xf32>
    %626 = arith.addf %624, %625 : vector<8x32xf32>
    %627 = arith.addf %616, %626 : vector<8x32xf32>
    %cst_273 = arith.constant dense<0.000000e+00> : vector<8xf32>
    %628 = vector.multi_reduction <add>, %627, %cst_273 [1] : vector<8x32xf32> to vector<8xf32>
    %629 = vector.shape_cast %628 : vector<8xf32> to vector<8x1xf32>
    %cst_274 = arith.constant 3.200000e+01 : f32
    %630 = vector.broadcast %cst_274 : f32 to vector<8x1xf32>
    %631 = arith.divf %629, %630 : vector<8x1xf32>
    %632 = vector.broadcast %631 : vector<8x1xf32> to vector<8x32xf32>
    %633 = arith.subf %627, %632 : vector<8x32xf32>
    %634 = arith.mulf %633, %633 : vector<8x32xf32>
    %cst_275 = arith.constant dense<0.000000e+00> : vector<8xf32>
    %635 = vector.multi_reduction <add>, %634, %cst_275 [1] : vector<8x32xf32> to vector<8xf32>
    %636 = vector.shape_cast %635 : vector<8xf32> to vector<8x1xf32>
    %cst_276 = arith.constant 3.200000e+01 : f32
    %637 = vector.broadcast %cst_276 : f32 to vector<8x1xf32>
    %638 = arith.divf %636, %637 : vector<8x1xf32>
    %639 = vector.broadcast %631 : vector<8x1xf32> to vector<8x32xf32>
    %640 = arith.subf %627, %639 : vector<8x32xf32>
    %cst_277 = arith.constant 9.99999974E-6 : f32
    %641 = vector.broadcast %cst_277 : f32 to vector<8x1xf32>
    %642 = arith.addf %638, %641 : vector<8x1xf32>
    %643 = math.rsqrt %642 : vector<8x1xf32>
    %644 = vector.broadcast %643 : vector<8x1xf32> to vector<8x32xf32>
    %645 = arith.mulf %640, %644 : vector<8x32xf32>
    %646 = vector.broadcast %509 : vector<1x32xf32> to vector<8x32xf32>
    %647 = arith.mulf %645, %646 : vector<8x32xf32>
    %648 = vector.broadcast %511 : vector<1x32xf32> to vector<8x32xf32>
    %649 = arith.addf %647, %648 : vector<8x32xf32>
    %c4 = arith.constant 4 : index
    %c0_278 = arith.constant 0 : index
    %c0_279 = arith.constant 0 : index
    %650 = vector.load %arg2[%c4, %c0_278, %c0_279] : memref<6x32x96xbf16, #tpu.memory_space<vmem>>, vector<1x32x96xbf16>
    %651 = vector.shape_cast %650 : vector<1x32x96xbf16> to vector<32x96xbf16>
    %c4_280 = arith.constant 4 : index
    %c0_281 = arith.constant 0 : index
    %c0_282 = arith.constant 0 : index
    %652 = vector.load %arg3[%c4_280, %c0_281, %c0_282] : memref<6x1x96xf32, #tpu.memory_space<vmem>>, vector<1x1x96xf32>
    %653 = vector.shape_cast %652 : vector<1x1x96xf32> to vector<1x96xf32>
    %c4_283 = arith.constant 4 : index
    %c0_284 = arith.constant 0 : index
    %c0_285 = arith.constant 0 : index
    %654 = vector.load %arg4[%c4_283, %c0_284, %c0_285] : memref<6x32x32xbf16, #tpu.memory_space<vmem>>, vector<1x32x32xbf16>
    %655 = vector.shape_cast %654 : vector<1x32x32xbf16> to vector<32x32xbf16>
    %c4_286 = arith.constant 4 : index
    %c0_287 = arith.constant 0 : index
    %c0_288 = arith.constant 0 : index
    %656 = vector.load %arg5[%c4_286, %c0_287, %c0_288] : memref<6x1x32xf32, #tpu.memory_space<vmem>>, vector<1x1x32xf32>
    %657 = vector.shape_cast %656 : vector<1x1x32xf32> to vector<1x32xf32>
    %c4_289 = arith.constant 4 : index
    %c0_290 = arith.constant 0 : index
    %c0_291 = arith.constant 0 : index
    %658 = vector.load %arg6[%c4_289, %c0_290, %c0_291] : memref<6x1x32xf32, #tpu.memory_space<vmem>>, vector<1x1x32xf32>
    %659 = vector.shape_cast %658 : vector<1x1x32xf32> to vector<1x32xf32>
    %c4_292 = arith.constant 4 : index
    %c0_293 = arith.constant 0 : index
    %c0_294 = arith.constant 0 : index
    %660 = vector.load %arg7[%c4_292, %c0_293, %c0_294] : memref<6x1x32xf32, #tpu.memory_space<vmem>>, vector<1x1x32xf32>
    %661 = vector.shape_cast %660 : vector<1x1x32xf32> to vector<1x32xf32>
    %c4_295 = arith.constant 4 : index
    %c0_296 = arith.constant 0 : index
    %c0_297 = arith.constant 0 : index
    %662 = vector.load %arg8[%c4_295, %c0_296, %c0_297] : memref<6x32x2048xbf16, #tpu.memory_space<vmem>>, vector<1x32x2048xbf16>
    %663 = vector.shape_cast %662 : vector<1x32x2048xbf16> to vector<32x2048xbf16>
    %c4_298 = arith.constant 4 : index
    %c0_299 = arith.constant 0 : index
    %c0_300 = arith.constant 0 : index
    %664 = vector.load %arg9[%c4_298, %c0_299, %c0_300] : memref<6x1x2048xf32, #tpu.memory_space<vmem>>, vector<1x1x2048xf32>
    %665 = vector.shape_cast %664 : vector<1x1x2048xf32> to vector<1x2048xf32>
    %c4_301 = arith.constant 4 : index
    %c0_302 = arith.constant 0 : index
    %c0_303 = arith.constant 0 : index
    %666 = vector.load %arg10[%c4_301, %c0_302, %c0_303] : memref<6x2048x32xbf16, #tpu.memory_space<vmem>>, vector<1x2048x32xbf16>
    %667 = vector.shape_cast %666 : vector<1x2048x32xbf16> to vector<2048x32xbf16>
    %c4_304 = arith.constant 4 : index
    %c0_305 = arith.constant 0 : index
    %c0_306 = arith.constant 0 : index
    %668 = vector.load %arg11[%c4_304, %c0_305, %c0_306] : memref<6x1x32xf32, #tpu.memory_space<vmem>>, vector<1x1x32xf32>
    %669 = vector.shape_cast %668 : vector<1x1x32xf32> to vector<1x32xf32>
    %c4_307 = arith.constant 4 : index
    %c0_308 = arith.constant 0 : index
    %c0_309 = arith.constant 0 : index
    %670 = vector.load %arg12[%c4_307, %c0_308, %c0_309] : memref<6x1x32xf32, #tpu.memory_space<vmem>>, vector<1x1x32xf32>
    %671 = vector.shape_cast %670 : vector<1x1x32xf32> to vector<1x32xf32>
    %c4_310 = arith.constant 4 : index
    %c0_311 = arith.constant 0 : index
    %c0_312 = arith.constant 0 : index
    %672 = vector.load %arg13[%c4_310, %c0_311, %c0_312] : memref<6x1x32xf32, #tpu.memory_space<vmem>>, vector<1x1x32xf32>
    %673 = vector.shape_cast %672 : vector<1x1x32xf32> to vector<1x32xf32>
    %674 = arith.truncf %649 : vector<8x32xf32> to vector<8x32xbf16>
    %cst_313 = arith.constant dense<0.000000e+00> : vector<8x96xf32>
    %675 = tpu.matmul %674, %651, %cst_313 {dimension_numbers = #tpu.dot_dimension_numbers<[1], [0], [0], [1], [0, 0, 1, 1], [], []>} : vector<8x32xbf16>, vector<32x96xbf16>, vector<8x96xf32> -> vector<8x96xf32>
    %676 = vector.broadcast %653 : vector<1x96xf32> to vector<8x96xf32>
    %677 = arith.addf %675, %676 : vector<8x96xf32>
    %678 = arith.truncf %677 : vector<8x96xf32> to vector<8x96xbf16>
    %679 = vector.extract_strided_slice %678 {offsets = [0, 0], sizes = [8, 8], strides = [1, 1]} : vector<8x96xbf16> to vector<8x8xbf16>
    %680 = vector.extract_strided_slice %678 {offsets = [0, 32], sizes = [8, 8], strides = [1, 1]} : vector<8x96xbf16> to vector<8x8xbf16>
    %681 = vector.extract_strided_slice %678 {offsets = [0, 64], sizes = [8, 8], strides = [1, 1]} : vector<8x96xbf16> to vector<8x8xbf16>
    %cst_314 = arith.constant dense<0.000000e+00> : vector<8x8xf32>
    %682 = tpu.matmul %679, %680, %cst_314 {dimension_numbers = #tpu.dot_dimension_numbers<[1], [1], [0], [0], [0, 0, 1, 0], [], []>} : vector<8x8xbf16>, vector<8x8xbf16>, vector<8x8xf32> -> vector<8x8xf32>
    %cst_315 = arith.constant dense<0xFF800000> : vector<8xf32>
    %683 = vector.multi_reduction <maximumf>, %682, %cst_315 [1] : vector<8x8xf32> to vector<8xf32>
    %684 = vector.shape_cast %683 : vector<8xf32> to vector<8x1xf32>
    %685 = vector.broadcast %684 : vector<8x1xf32> to vector<8x8xf32>
    %686 = arith.subf %682, %685 : vector<8x8xf32>
    %687 = math.exp %686 : vector<8x8xf32>
    %cst_316 = arith.constant dense<0.000000e+00> : vector<8xf32>
    %688 = vector.multi_reduction <add>, %687, %cst_316 [1] : vector<8x8xf32> to vector<8xf32>
    %689 = vector.shape_cast %688 : vector<8xf32> to vector<8x1xf32>
    %690 = vector.broadcast %689 : vector<8x1xf32> to vector<8x8xf32>
    %691 = arith.divf %687, %690 : vector<8x8xf32>
    %692 = arith.truncf %691 : vector<8x8xf32> to vector<8x8xbf16>
    %cst_317 = arith.constant dense<0.000000e+00> : vector<8x8xf32>
    %693 = tpu.matmul %692, %681, %cst_317 {dimension_numbers = #tpu.dot_dimension_numbers<[1], [0], [0], [1], [0, 0, 1, 1], [], []>} : vector<8x8xbf16>, vector<8x8xbf16>, vector<8x8xf32> -> vector<8x8xf32>
    %694 = vector.extract_strided_slice %655 {offsets = [0, 0], sizes = [8, 32], strides = [1, 1]} : vector<32x32xbf16> to vector<8x32xbf16>
    %695 = arith.truncf %693 : vector<8x8xf32> to vector<8x8xbf16>
    %cst_318 = arith.constant dense<0.000000e+00> : vector<8x32xf32>
    %696 = tpu.matmul %695, %694, %cst_318 {dimension_numbers = #tpu.dot_dimension_numbers<[1], [0], [0], [1], [0, 0, 1, 1], [], []>} : vector<8x8xbf16>, vector<8x32xbf16>, vector<8x32xf32> -> vector<8x32xf32>
    %697 = vector.extract_strided_slice %678 {offsets = [0, 8], sizes = [8, 8], strides = [1, 1]} : vector<8x96xbf16> to vector<8x8xbf16>
    %698 = vector.extract_strided_slice %678 {offsets = [0, 40], sizes = [8, 8], strides = [1, 1]} : vector<8x96xbf16> to vector<8x8xbf16>
    %699 = vector.extract_strided_slice %678 {offsets = [0, 72], sizes = [8, 8], strides = [1, 1]} : vector<8x96xbf16> to vector<8x8xbf16>
    %cst_319 = arith.constant dense<0.000000e+00> : vector<8x8xf32>
    %700 = tpu.matmul %697, %698, %cst_319 {dimension_numbers = #tpu.dot_dimension_numbers<[1], [1], [0], [0], [0, 0, 1, 0], [], []>} : vector<8x8xbf16>, vector<8x8xbf16>, vector<8x8xf32> -> vector<8x8xf32>
    %cst_320 = arith.constant dense<0xFF800000> : vector<8xf32>
    %701 = vector.multi_reduction <maximumf>, %700, %cst_320 [1] : vector<8x8xf32> to vector<8xf32>
    %702 = vector.shape_cast %701 : vector<8xf32> to vector<8x1xf32>
    %703 = vector.broadcast %702 : vector<8x1xf32> to vector<8x8xf32>
    %704 = arith.subf %700, %703 : vector<8x8xf32>
    %705 = math.exp %704 : vector<8x8xf32>
    %cst_321 = arith.constant dense<0.000000e+00> : vector<8xf32>
    %706 = vector.multi_reduction <add>, %705, %cst_321 [1] : vector<8x8xf32> to vector<8xf32>
    %707 = vector.shape_cast %706 : vector<8xf32> to vector<8x1xf32>
    %708 = vector.broadcast %707 : vector<8x1xf32> to vector<8x8xf32>
    %709 = arith.divf %705, %708 : vector<8x8xf32>
    %710 = arith.truncf %709 : vector<8x8xf32> to vector<8x8xbf16>
    %cst_322 = arith.constant dense<0.000000e+00> : vector<8x8xf32>
    %711 = tpu.matmul %710, %699, %cst_322 {dimension_numbers = #tpu.dot_dimension_numbers<[1], [0], [0], [1], [0, 0, 1, 1], [], []>} : vector<8x8xbf16>, vector<8x8xbf16>, vector<8x8xf32> -> vector<8x8xf32>
    %712 = vector.extract_strided_slice %655 {offsets = [8, 0], sizes = [8, 32], strides = [1, 1]} : vector<32x32xbf16> to vector<8x32xbf16>
    %713 = arith.truncf %711 : vector<8x8xf32> to vector<8x8xbf16>
    %cst_323 = arith.constant dense<0.000000e+00> : vector<8x32xf32>
    %714 = tpu.matmul %713, %712, %cst_323 {dimension_numbers = #tpu.dot_dimension_numbers<[1], [0], [0], [1], [0, 0, 1, 1], [], []>} : vector<8x8xbf16>, vector<8x32xbf16>, vector<8x32xf32> -> vector<8x32xf32>
    %715 = arith.addf %696, %714 : vector<8x32xf32>
    %716 = vector.extract_strided_slice %678 {offsets = [0, 16], sizes = [8, 8], strides = [1, 1]} : vector<8x96xbf16> to vector<8x8xbf16>
    %717 = vector.extract_strided_slice %678 {offsets = [0, 48], sizes = [8, 8], strides = [1, 1]} : vector<8x96xbf16> to vector<8x8xbf16>
    %718 = vector.extract_strided_slice %678 {offsets = [0, 80], sizes = [8, 8], strides = [1, 1]} : vector<8x96xbf16> to vector<8x8xbf16>
    %cst_324 = arith.constant dense<0.000000e+00> : vector<8x8xf32>
    %719 = tpu.matmul %716, %717, %cst_324 {dimension_numbers = #tpu.dot_dimension_numbers<[1], [1], [0], [0], [0, 0, 1, 0], [], []>} : vector<8x8xbf16>, vector<8x8xbf16>, vector<8x8xf32> -> vector<8x8xf32>
    %cst_325 = arith.constant dense<0xFF800000> : vector<8xf32>
    %720 = vector.multi_reduction <maximumf>, %719, %cst_325 [1] : vector<8x8xf32> to vector<8xf32>
    %721 = vector.shape_cast %720 : vector<8xf32> to vector<8x1xf32>
    %722 = vector.broadcast %721 : vector<8x1xf32> to vector<8x8xf32>
    %723 = arith.subf %719, %722 : vector<8x8xf32>
    %724 = math.exp %723 : vector<8x8xf32>
    %cst_326 = arith.constant dense<0.000000e+00> : vector<8xf32>
    %725 = vector.multi_reduction <add>, %724, %cst_326 [1] : vector<8x8xf32> to vector<8xf32>
    %726 = vector.shape_cast %725 : vector<8xf32> to vector<8x1xf32>
    %727 = vector.broadcast %726 : vector<8x1xf32> to vector<8x8xf32>
    %728 = arith.divf %724, %727 : vector<8x8xf32>
    %729 = arith.truncf %728 : vector<8x8xf32> to vector<8x8xbf16>
    %cst_327 = arith.constant dense<0.000000e+00> : vector<8x8xf32>
    %730 = tpu.matmul %729, %718, %cst_327 {dimension_numbers = #tpu.dot_dimension_numbers<[1], [0], [0], [1], [0, 0, 1, 1], [], []>} : vector<8x8xbf16>, vector<8x8xbf16>, vector<8x8xf32> -> vector<8x8xf32>
    %731 = vector.extract_strided_slice %655 {offsets = [16, 0], sizes = [8, 32], strides = [1, 1]} : vector<32x32xbf16> to vector<8x32xbf16>
    %732 = arith.truncf %730 : vector<8x8xf32> to vector<8x8xbf16>
    %cst_328 = arith.constant dense<0.000000e+00> : vector<8x32xf32>
    %733 = tpu.matmul %732, %731, %cst_328 {dimension_numbers = #tpu.dot_dimension_numbers<[1], [0], [0], [1], [0, 0, 1, 1], [], []>} : vector<8x8xbf16>, vector<8x32xbf16>, vector<8x32xf32> -> vector<8x32xf32>
    %734 = arith.addf %715, %733 : vector<8x32xf32>
    %735 = vector.extract_strided_slice %678 {offsets = [0, 24], sizes = [8, 8], strides = [1, 1]} : vector<8x96xbf16> to vector<8x8xbf16>
    %736 = vector.extract_strided_slice %678 {offsets = [0, 56], sizes = [8, 8], strides = [1, 1]} : vector<8x96xbf16> to vector<8x8xbf16>
    %737 = vector.extract_strided_slice %678 {offsets = [0, 88], sizes = [8, 8], strides = [1, 1]} : vector<8x96xbf16> to vector<8x8xbf16>
    %cst_329 = arith.constant dense<0.000000e+00> : vector<8x8xf32>
    %738 = tpu.matmul %735, %736, %cst_329 {dimension_numbers = #tpu.dot_dimension_numbers<[1], [1], [0], [0], [0, 0, 1, 0], [], []>} : vector<8x8xbf16>, vector<8x8xbf16>, vector<8x8xf32> -> vector<8x8xf32>
    %cst_330 = arith.constant dense<0xFF800000> : vector<8xf32>
    %739 = vector.multi_reduction <maximumf>, %738, %cst_330 [1] : vector<8x8xf32> to vector<8xf32>
    %740 = vector.shape_cast %739 : vector<8xf32> to vector<8x1xf32>
    %741 = vector.broadcast %740 : vector<8x1xf32> to vector<8x8xf32>
    %742 = arith.subf %738, %741 : vector<8x8xf32>
    %743 = math.exp %742 : vector<8x8xf32>
    %cst_331 = arith.constant dense<0.000000e+00> : vector<8xf32>
    %744 = vector.multi_reduction <add>, %743, %cst_331 [1] : vector<8x8xf32> to vector<8xf32>
    %745 = vector.shape_cast %744 : vector<8xf32> to vector<8x1xf32>
    %746 = vector.broadcast %745 : vector<8x1xf32> to vector<8x8xf32>
    %747 = arith.divf %743, %746 : vector<8x8xf32>
    %748 = arith.truncf %747 : vector<8x8xf32> to vector<8x8xbf16>
    %cst_332 = arith.constant dense<0.000000e+00> : vector<8x8xf32>
    %749 = tpu.matmul %748, %737, %cst_332 {dimension_numbers = #tpu.dot_dimension_numbers<[1], [0], [0], [1], [0, 0, 1, 1], [], []>} : vector<8x8xbf16>, vector<8x8xbf16>, vector<8x8xf32> -> vector<8x8xf32>
    %750 = vector.extract_strided_slice %655 {offsets = [24, 0], sizes = [8, 32], strides = [1, 1]} : vector<32x32xbf16> to vector<8x32xbf16>
    %751 = arith.truncf %749 : vector<8x8xf32> to vector<8x8xbf16>
    %cst_333 = arith.constant dense<0.000000e+00> : vector<8x32xf32>
    %752 = tpu.matmul %751, %750, %cst_333 {dimension_numbers = #tpu.dot_dimension_numbers<[1], [0], [0], [1], [0, 0, 1, 1], [], []>} : vector<8x8xbf16>, vector<8x32xbf16>, vector<8x32xf32> -> vector<8x32xf32>
    %753 = arith.addf %734, %752 : vector<8x32xf32>
    %754 = vector.broadcast %657 : vector<1x32xf32> to vector<8x32xf32>
    %755 = arith.addf %753, %754 : vector<8x32xf32>
    %756 = arith.addf %649, %755 : vector<8x32xf32>
    %cst_334 = arith.constant dense<0.000000e+00> : vector<8xf32>
    %757 = vector.multi_reduction <add>, %756, %cst_334 [1] : vector<8x32xf32> to vector<8xf32>
    %758 = vector.shape_cast %757 : vector<8xf32> to vector<8x1xf32>
    %cst_335 = arith.constant 3.200000e+01 : f32
    %759 = vector.broadcast %cst_335 : f32 to vector<8x1xf32>
    %760 = arith.divf %758, %759 : vector<8x1xf32>
    %761 = vector.broadcast %760 : vector<8x1xf32> to vector<8x32xf32>
    %762 = arith.subf %756, %761 : vector<8x32xf32>
    %763 = arith.mulf %762, %762 : vector<8x32xf32>
    %cst_336 = arith.constant dense<0.000000e+00> : vector<8xf32>
    %764 = vector.multi_reduction <add>, %763, %cst_336 [1] : vector<8x32xf32> to vector<8xf32>
    %765 = vector.shape_cast %764 : vector<8xf32> to vector<8x1xf32>
    %cst_337 = arith.constant 3.200000e+01 : f32
    %766 = vector.broadcast %cst_337 : f32 to vector<8x1xf32>
    %767 = arith.divf %765, %766 : vector<8x1xf32>
    %768 = vector.broadcast %760 : vector<8x1xf32> to vector<8x32xf32>
    %769 = arith.subf %756, %768 : vector<8x32xf32>
    %cst_338 = arith.constant 9.99999974E-6 : f32
    %770 = vector.broadcast %cst_338 : f32 to vector<8x1xf32>
    %771 = arith.addf %767, %770 : vector<8x1xf32>
    %772 = math.rsqrt %771 : vector<8x1xf32>
    %773 = vector.broadcast %772 : vector<8x1xf32> to vector<8x32xf32>
    %774 = arith.mulf %769, %773 : vector<8x32xf32>
    %775 = vector.broadcast %659 : vector<1x32xf32> to vector<8x32xf32>
    %776 = arith.mulf %774, %775 : vector<8x32xf32>
    %777 = vector.broadcast %661 : vector<1x32xf32> to vector<8x32xf32>
    %778 = arith.addf %776, %777 : vector<8x32xf32>
    %779 = arith.truncf %778 : vector<8x32xf32> to vector<8x32xbf16>
    %cst_339 = arith.constant dense<0.000000e+00> : vector<8x2048xf32>
    %780 = tpu.matmul %779, %663, %cst_339 {dimension_numbers = #tpu.dot_dimension_numbers<[1], [0], [0], [1], [0, 0, 1, 1], [], []>} : vector<8x32xbf16>, vector<32x2048xbf16>, vector<8x2048xf32> -> vector<8x2048xf32>
    %781 = vector.broadcast %665 : vector<1x2048xf32> to vector<8x2048xf32>
    %782 = arith.addf %780, %781 : vector<8x2048xf32>
    %cst_340 = arith.constant 0.000000e+00 : f32
    %783 = vector.broadcast %cst_340 : f32 to vector<8x2048xf32>
    %784 = arith.maximumf %782, %783 : vector<8x2048xf32>
    %785 = arith.truncf %784 : vector<8x2048xf32> to vector<8x2048xbf16>
    %cst_341 = arith.constant dense<0.000000e+00> : vector<8x32xf32>
    %786 = tpu.matmul %785, %667, %cst_341 {dimension_numbers = #tpu.dot_dimension_numbers<[1], [0], [0], [1], [0, 0, 1, 1], [], []>} : vector<8x2048xbf16>, vector<2048x32xbf16>, vector<8x32xf32> -> vector<8x32xf32>
    %787 = vector.broadcast %669 : vector<1x32xf32> to vector<8x32xf32>
    %788 = arith.addf %786, %787 : vector<8x32xf32>
    %789 = arith.addf %778, %788 : vector<8x32xf32>
    %cst_342 = arith.constant dense<0.000000e+00> : vector<8xf32>
    %790 = vector.multi_reduction <add>, %789, %cst_342 [1] : vector<8x32xf32> to vector<8xf32>
    %791 = vector.shape_cast %790 : vector<8xf32> to vector<8x1xf32>
    %cst_343 = arith.constant 3.200000e+01 : f32
    %792 = vector.broadcast %cst_343 : f32 to vector<8x1xf32>
    %793 = arith.divf %791, %792 : vector<8x1xf32>
    %794 = vector.broadcast %793 : vector<8x1xf32> to vector<8x32xf32>
    %795 = arith.subf %789, %794 : vector<8x32xf32>
    %796 = arith.mulf %795, %795 : vector<8x32xf32>
    %cst_344 = arith.constant dense<0.000000e+00> : vector<8xf32>
    %797 = vector.multi_reduction <add>, %796, %cst_344 [1] : vector<8x32xf32> to vector<8xf32>
    %798 = vector.shape_cast %797 : vector<8xf32> to vector<8x1xf32>
    %cst_345 = arith.constant 3.200000e+01 : f32
    %799 = vector.broadcast %cst_345 : f32 to vector<8x1xf32>
    %800 = arith.divf %798, %799 : vector<8x1xf32>
    %801 = vector.broadcast %793 : vector<8x1xf32> to vector<8x32xf32>
    %802 = arith.subf %789, %801 : vector<8x32xf32>
    %cst_346 = arith.constant 9.99999974E-6 : f32
    %803 = vector.broadcast %cst_346 : f32 to vector<8x1xf32>
    %804 = arith.addf %800, %803 : vector<8x1xf32>
    %805 = math.rsqrt %804 : vector<8x1xf32>
    %806 = vector.broadcast %805 : vector<8x1xf32> to vector<8x32xf32>
    %807 = arith.mulf %802, %806 : vector<8x32xf32>
    %808 = vector.broadcast %671 : vector<1x32xf32> to vector<8x32xf32>
    %809 = arith.mulf %807, %808 : vector<8x32xf32>
    %810 = vector.broadcast %673 : vector<1x32xf32> to vector<8x32xf32>
    %811 = arith.addf %809, %810 : vector<8x32xf32>
    %c5 = arith.constant 5 : index
    %c0_347 = arith.constant 0 : index
    %c0_348 = arith.constant 0 : index
    %812 = vector.load %arg2[%c5, %c0_347, %c0_348] : memref<6x32x96xbf16, #tpu.memory_space<vmem>>, vector<1x32x96xbf16>
    %813 = vector.shape_cast %812 : vector<1x32x96xbf16> to vector<32x96xbf16>
    %c5_349 = arith.constant 5 : index
    %c0_350 = arith.constant 0 : index
    %c0_351 = arith.constant 0 : index
    %814 = vector.load %arg3[%c5_349, %c0_350, %c0_351] : memref<6x1x96xf32, #tpu.memory_space<vmem>>, vector<1x1x96xf32>
    %815 = vector.shape_cast %814 : vector<1x1x96xf32> to vector<1x96xf32>
    %c5_352 = arith.constant 5 : index
    %c0_353 = arith.constant 0 : index
    %c0_354 = arith.constant 0 : index
    %816 = vector.load %arg4[%c5_352, %c0_353, %c0_354] : memref<6x32x32xbf16, #tpu.memory_space<vmem>>, vector<1x32x32xbf16>
    %817 = vector.shape_cast %816 : vector<1x32x32xbf16> to vector<32x32xbf16>
    %c5_355 = arith.constant 5 : index
    %c0_356 = arith.constant 0 : index
    %c0_357 = arith.constant 0 : index
    %818 = vector.load %arg5[%c5_355, %c0_356, %c0_357] : memref<6x1x32xf32, #tpu.memory_space<vmem>>, vector<1x1x32xf32>
    %819 = vector.shape_cast %818 : vector<1x1x32xf32> to vector<1x32xf32>
    %c5_358 = arith.constant 5 : index
    %c0_359 = arith.constant 0 : index
    %c0_360 = arith.constant 0 : index
    %820 = vector.load %arg6[%c5_358, %c0_359, %c0_360] : memref<6x1x32xf32, #tpu.memory_space<vmem>>, vector<1x1x32xf32>
    %821 = vector.shape_cast %820 : vector<1x1x32xf32> to vector<1x32xf32>
    %c5_361 = arith.constant 5 : index
    %c0_362 = arith.constant 0 : index
    %c0_363 = arith.constant 0 : index
    %822 = vector.load %arg7[%c5_361, %c0_362, %c0_363] : memref<6x1x32xf32, #tpu.memory_space<vmem>>, vector<1x1x32xf32>
    %823 = vector.shape_cast %822 : vector<1x1x32xf32> to vector<1x32xf32>
    %c5_364 = arith.constant 5 : index
    %c0_365 = arith.constant 0 : index
    %c0_366 = arith.constant 0 : index
    %824 = vector.load %arg8[%c5_364, %c0_365, %c0_366] : memref<6x32x2048xbf16, #tpu.memory_space<vmem>>, vector<1x32x2048xbf16>
    %825 = vector.shape_cast %824 : vector<1x32x2048xbf16> to vector<32x2048xbf16>
    %c5_367 = arith.constant 5 : index
    %c0_368 = arith.constant 0 : index
    %c0_369 = arith.constant 0 : index
    %826 = vector.load %arg9[%c5_367, %c0_368, %c0_369] : memref<6x1x2048xf32, #tpu.memory_space<vmem>>, vector<1x1x2048xf32>
    %827 = vector.shape_cast %826 : vector<1x1x2048xf32> to vector<1x2048xf32>
    %c5_370 = arith.constant 5 : index
    %c0_371 = arith.constant 0 : index
    %c0_372 = arith.constant 0 : index
    %828 = vector.load %arg10[%c5_370, %c0_371, %c0_372] : memref<6x2048x32xbf16, #tpu.memory_space<vmem>>, vector<1x2048x32xbf16>
    %829 = vector.shape_cast %828 : vector<1x2048x32xbf16> to vector<2048x32xbf16>
    %c5_373 = arith.constant 5 : index
    %c0_374 = arith.constant 0 : index
    %c0_375 = arith.constant 0 : index
    %830 = vector.load %arg11[%c5_373, %c0_374, %c0_375] : memref<6x1x32xf32, #tpu.memory_space<vmem>>, vector<1x1x32xf32>
    %831 = vector.shape_cast %830 : vector<1x1x32xf32> to vector<1x32xf32>
    %c5_376 = arith.constant 5 : index
    %c0_377 = arith.constant 0 : index
    %c0_378 = arith.constant 0 : index
    %832 = vector.load %arg12[%c5_376, %c0_377, %c0_378] : memref<6x1x32xf32, #tpu.memory_space<vmem>>, vector<1x1x32xf32>
    %833 = vector.shape_cast %832 : vector<1x1x32xf32> to vector<1x32xf32>
    %c5_379 = arith.constant 5 : index
    %c0_380 = arith.constant 0 : index
    %c0_381 = arith.constant 0 : index
    %834 = vector.load %arg13[%c5_379, %c0_380, %c0_381] : memref<6x1x32xf32, #tpu.memory_space<vmem>>, vector<1x1x32xf32>
    %835 = vector.shape_cast %834 : vector<1x1x32xf32> to vector<1x32xf32>
    %836 = arith.truncf %811 : vector<8x32xf32> to vector<8x32xbf16>
    %cst_382 = arith.constant dense<0.000000e+00> : vector<8x96xf32>
    %837 = tpu.matmul %836, %813, %cst_382 {dimension_numbers = #tpu.dot_dimension_numbers<[1], [0], [0], [1], [0, 0, 1, 1], [], []>} : vector<8x32xbf16>, vector<32x96xbf16>, vector<8x96xf32> -> vector<8x96xf32>
    %838 = vector.broadcast %815 : vector<1x96xf32> to vector<8x96xf32>
    %839 = arith.addf %837, %838 : vector<8x96xf32>
    %840 = arith.truncf %839 : vector<8x96xf32> to vector<8x96xbf16>
    %841 = vector.extract_strided_slice %840 {offsets = [0, 0], sizes = [8, 8], strides = [1, 1]} : vector<8x96xbf16> to vector<8x8xbf16>
    %842 = vector.extract_strided_slice %840 {offsets = [0, 32], sizes = [8, 8], strides = [1, 1]} : vector<8x96xbf16> to vector<8x8xbf16>
    %843 = vector.extract_strided_slice %840 {offsets = [0, 64], sizes = [8, 8], strides = [1, 1]} : vector<8x96xbf16> to vector<8x8xbf16>
    %cst_383 = arith.constant dense<0.000000e+00> : vector<8x8xf32>
    %844 = tpu.matmul %841, %842, %cst_383 {dimension_numbers = #tpu.dot_dimension_numbers<[1], [1], [0], [0], [0, 0, 1, 0], [], []>} : vector<8x8xbf16>, vector<8x8xbf16>, vector<8x8xf32> -> vector<8x8xf32>
    %cst_384 = arith.constant dense<0xFF800000> : vector<8xf32>
    %845 = vector.multi_reduction <maximumf>, %844, %cst_384 [1] : vector<8x8xf32> to vector<8xf32>
    %846 = vector.shape_cast %845 : vector<8xf32> to vector<8x1xf32>
    %847 = vector.broadcast %846 : vector<8x1xf32> to vector<8x8xf32>
    %848 = arith.subf %844, %847 : vector<8x8xf32>
    %849 = math.exp %848 : vector<8x8xf32>
    %cst_385 = arith.constant dense<0.000000e+00> : vector<8xf32>
    %850 = vector.multi_reduction <add>, %849, %cst_385 [1] : vector<8x8xf32> to vector<8xf32>
    %851 = vector.shape_cast %850 : vector<8xf32> to vector<8x1xf32>
    %852 = vector.broadcast %851 : vector<8x1xf32> to vector<8x8xf32>
    %853 = arith.divf %849, %852 : vector<8x8xf32>
    %854 = arith.truncf %853 : vector<8x8xf32> to vector<8x8xbf16>
    %cst_386 = arith.constant dense<0.000000e+00> : vector<8x8xf32>
    %855 = tpu.matmul %854, %843, %cst_386 {dimension_numbers = #tpu.dot_dimension_numbers<[1], [0], [0], [1], [0, 0, 1, 1], [], []>} : vector<8x8xbf16>, vector<8x8xbf16>, vector<8x8xf32> -> vector<8x8xf32>
    %856 = vector.extract_strided_slice %817 {offsets = [0, 0], sizes = [8, 32], strides = [1, 1]} : vector<32x32xbf16> to vector<8x32xbf16>
    %857 = arith.truncf %855 : vector<8x8xf32> to vector<8x8xbf16>
    %cst_387 = arith.constant dense<0.000000e+00> : vector<8x32xf32>
    %858 = tpu.matmul %857, %856, %cst_387 {dimension_numbers = #tpu.dot_dimension_numbers<[1], [0], [0], [1], [0, 0, 1, 1], [], []>} : vector<8x8xbf16>, vector<8x32xbf16>, vector<8x32xf32> -> vector<8x32xf32>
    %859 = vector.extract_strided_slice %840 {offsets = [0, 8], sizes = [8, 8], strides = [1, 1]} : vector<8x96xbf16> to vector<8x8xbf16>
    %860 = vector.extract_strided_slice %840 {offsets = [0, 40], sizes = [8, 8], strides = [1, 1]} : vector<8x96xbf16> to vector<8x8xbf16>
    %861 = vector.extract_strided_slice %840 {offsets = [0, 72], sizes = [8, 8], strides = [1, 1]} : vector<8x96xbf16> to vector<8x8xbf16>
    %cst_388 = arith.constant dense<0.000000e+00> : vector<8x8xf32>
    %862 = tpu.matmul %859, %860, %cst_388 {dimension_numbers = #tpu.dot_dimension_numbers<[1], [1], [0], [0], [0, 0, 1, 0], [], []>} : vector<8x8xbf16>, vector<8x8xbf16>, vector<8x8xf32> -> vector<8x8xf32>
    %cst_389 = arith.constant dense<0xFF800000> : vector<8xf32>
    %863 = vector.multi_reduction <maximumf>, %862, %cst_389 [1] : vector<8x8xf32> to vector<8xf32>
    %864 = vector.shape_cast %863 : vector<8xf32> to vector<8x1xf32>
    %865 = vector.broadcast %864 : vector<8x1xf32> to vector<8x8xf32>
    %866 = arith.subf %862, %865 : vector<8x8xf32>
    %867 = math.exp %866 : vector<8x8xf32>
    %cst_390 = arith.constant dense<0.000000e+00> : vector<8xf32>
    %868 = vector.multi_reduction <add>, %867, %cst_390 [1] : vector<8x8xf32> to vector<8xf32>
    %869 = vector.shape_cast %868 : vector<8xf32> to vector<8x1xf32>
    %870 = vector.broadcast %869 : vector<8x1xf32> to vector<8x8xf32>
    %871 = arith.divf %867, %870 : vector<8x8xf32>
    %872 = arith.truncf %871 : vector<8x8xf32> to vector<8x8xbf16>
    %cst_391 = arith.constant dense<0.000000e+00> : vector<8x8xf32>
    %873 = tpu.matmul %872, %861, %cst_391 {dimension_numbers = #tpu.dot_dimension_numbers<[1], [0], [0], [1], [0, 0, 1, 1], [], []>} : vector<8x8xbf16>, vector<8x8xbf16>, vector<8x8xf32> -> vector<8x8xf32>
    %874 = vector.extract_strided_slice %817 {offsets = [8, 0], sizes = [8, 32], strides = [1, 1]} : vector<32x32xbf16> to vector<8x32xbf16>
    %875 = arith.truncf %873 : vector<8x8xf32> to vector<8x8xbf16>
    %cst_392 = arith.constant dense<0.000000e+00> : vector<8x32xf32>
    %876 = tpu.matmul %875, %874, %cst_392 {dimension_numbers = #tpu.dot_dimension_numbers<[1], [0], [0], [1], [0, 0, 1, 1], [], []>} : vector<8x8xbf16>, vector<8x32xbf16>, vector<8x32xf32> -> vector<8x32xf32>
    %877 = arith.addf %858, %876 : vector<8x32xf32>
    %878 = vector.extract_strided_slice %840 {offsets = [0, 16], sizes = [8, 8], strides = [1, 1]} : vector<8x96xbf16> to vector<8x8xbf16>
    %879 = vector.extract_strided_slice %840 {offsets = [0, 48], sizes = [8, 8], strides = [1, 1]} : vector<8x96xbf16> to vector<8x8xbf16>
    %880 = vector.extract_strided_slice %840 {offsets = [0, 80], sizes = [8, 8], strides = [1, 1]} : vector<8x96xbf16> to vector<8x8xbf16>
    %cst_393 = arith.constant dense<0.000000e+00> : vector<8x8xf32>
    %881 = tpu.matmul %878, %879, %cst_393 {dimension_numbers = #tpu.dot_dimension_numbers<[1], [1], [0], [0], [0, 0, 1, 0], [], []>} : vector<8x8xbf16>, vector<8x8xbf16>, vector<8x8xf32> -> vector<8x8xf32>
    %cst_394 = arith.constant dense<0xFF800000> : vector<8xf32>
    %882 = vector.multi_reduction <maximumf>, %881, %cst_394 [1] : vector<8x8xf32> to vector<8xf32>
    %883 = vector.shape_cast %882 : vector<8xf32> to vector<8x1xf32>
    %884 = vector.broadcast %883 : vector<8x1xf32> to vector<8x8xf32>
    %885 = arith.subf %881, %884 : vector<8x8xf32>
    %886 = math.exp %885 : vector<8x8xf32>
    %cst_395 = arith.constant dense<0.000000e+00> : vector<8xf32>
    %887 = vector.multi_reduction <add>, %886, %cst_395 [1] : vector<8x8xf32> to vector<8xf32>
    %888 = vector.shape_cast %887 : vector<8xf32> to vector<8x1xf32>
    %889 = vector.broadcast %888 : vector<8x1xf32> to vector<8x8xf32>
    %890 = arith.divf %886, %889 : vector<8x8xf32>
    %891 = arith.truncf %890 : vector<8x8xf32> to vector<8x8xbf16>
    %cst_396 = arith.constant dense<0.000000e+00> : vector<8x8xf32>
    %892 = tpu.matmul %891, %880, %cst_396 {dimension_numbers = #tpu.dot_dimension_numbers<[1], [0], [0], [1], [0, 0, 1, 1], [], []>} : vector<8x8xbf16>, vector<8x8xbf16>, vector<8x8xf32> -> vector<8x8xf32>
    %893 = vector.extract_strided_slice %817 {offsets = [16, 0], sizes = [8, 32], strides = [1, 1]} : vector<32x32xbf16> to vector<8x32xbf16>
    %894 = arith.truncf %892 : vector<8x8xf32> to vector<8x8xbf16>
    %cst_397 = arith.constant dense<0.000000e+00> : vector<8x32xf32>
    %895 = tpu.matmul %894, %893, %cst_397 {dimension_numbers = #tpu.dot_dimension_numbers<[1], [0], [0], [1], [0, 0, 1, 1], [], []>} : vector<8x8xbf16>, vector<8x32xbf16>, vector<8x32xf32> -> vector<8x32xf32>
    %896 = arith.addf %877, %895 : vector<8x32xf32>
    %897 = vector.extract_strided_slice %840 {offsets = [0, 24], sizes = [8, 8], strides = [1, 1]} : vector<8x96xbf16> to vector<8x8xbf16>
    %898 = vector.extract_strided_slice %840 {offsets = [0, 56], sizes = [8, 8], strides = [1, 1]} : vector<8x96xbf16> to vector<8x8xbf16>
    %899 = vector.extract_strided_slice %840 {offsets = [0, 88], sizes = [8, 8], strides = [1, 1]} : vector<8x96xbf16> to vector<8x8xbf16>
    %cst_398 = arith.constant dense<0.000000e+00> : vector<8x8xf32>
    %900 = tpu.matmul %897, %898, %cst_398 {dimension_numbers = #tpu.dot_dimension_numbers<[1], [1], [0], [0], [0, 0, 1, 0], [], []>} : vector<8x8xbf16>, vector<8x8xbf16>, vector<8x8xf32> -> vector<8x8xf32>
    %cst_399 = arith.constant dense<0xFF800000> : vector<8xf32>
    %901 = vector.multi_reduction <maximumf>, %900, %cst_399 [1] : vector<8x8xf32> to vector<8xf32>
    %902 = vector.shape_cast %901 : vector<8xf32> to vector<8x1xf32>
    %903 = vector.broadcast %902 : vector<8x1xf32> to vector<8x8xf32>
    %904 = arith.subf %900, %903 : vector<8x8xf32>
    %905 = math.exp %904 : vector<8x8xf32>
    %cst_400 = arith.constant dense<0.000000e+00> : vector<8xf32>
    %906 = vector.multi_reduction <add>, %905, %cst_400 [1] : vector<8x8xf32> to vector<8xf32>
    %907 = vector.shape_cast %906 : vector<8xf32> to vector<8x1xf32>
    %908 = vector.broadcast %907 : vector<8x1xf32> to vector<8x8xf32>
    %909 = arith.divf %905, %908 : vector<8x8xf32>
    %910 = arith.truncf %909 : vector<8x8xf32> to vector<8x8xbf16>
    %cst_401 = arith.constant dense<0.000000e+00> : vector<8x8xf32>
    %911 = tpu.matmul %910, %899, %cst_401 {dimension_numbers = #tpu.dot_dimension_numbers<[1], [0], [0], [1], [0, 0, 1, 1], [], []>} : vector<8x8xbf16>, vector<8x8xbf16>, vector<8x8xf32> -> vector<8x8xf32>
    %912 = vector.extract_strided_slice %817 {offsets = [24, 0], sizes = [8, 32], strides = [1, 1]} : vector<32x32xbf16> to vector<8x32xbf16>
    %913 = arith.truncf %911 : vector<8x8xf32> to vector<8x8xbf16>
    %cst_402 = arith.constant dense<0.000000e+00> : vector<8x32xf32>
    %914 = tpu.matmul %913, %912, %cst_402 {dimension_numbers = #tpu.dot_dimension_numbers<[1], [0], [0], [1], [0, 0, 1, 1], [], []>} : vector<8x8xbf16>, vector<8x32xbf16>, vector<8x32xf32> -> vector<8x32xf32>
    %915 = arith.addf %896, %914 : vector<8x32xf32>
    %916 = vector.broadcast %819 : vector<1x32xf32> to vector<8x32xf32>
    %917 = arith.addf %915, %916 : vector<8x32xf32>
    %918 = arith.addf %811, %917 : vector<8x32xf32>
    %cst_403 = arith.constant dense<0.000000e+00> : vector<8xf32>
    %919 = vector.multi_reduction <add>, %918, %cst_403 [1] : vector<8x32xf32> to vector<8xf32>
    %920 = vector.shape_cast %919 : vector<8xf32> to vector<8x1xf32>
    %cst_404 = arith.constant 3.200000e+01 : f32
    %921 = vector.broadcast %cst_404 : f32 to vector<8x1xf32>
    %922 = arith.divf %920, %921 : vector<8x1xf32>
    %923 = vector.broadcast %922 : vector<8x1xf32> to vector<8x32xf32>
    %924 = arith.subf %918, %923 : vector<8x32xf32>
    %925 = arith.mulf %924, %924 : vector<8x32xf32>
    %cst_405 = arith.constant dense<0.000000e+00> : vector<8xf32>
    %926 = vector.multi_reduction <add>, %925, %cst_405 [1] : vector<8x32xf32> to vector<8xf32>
    %927 = vector.shape_cast %926 : vector<8xf32> to vector<8x1xf32>
    %cst_406 = arith.constant 3.200000e+01 : f32
    %928 = vector.broadcast %cst_406 : f32 to vector<8x1xf32>
    %929 = arith.divf %927, %928 : vector<8x1xf32>
    %930 = vector.broadcast %922 : vector<8x1xf32> to vector<8x32xf32>
    %931 = arith.subf %918, %930 : vector<8x32xf32>
    %cst_407 = arith.constant 9.99999974E-6 : f32
    %932 = vector.broadcast %cst_407 : f32 to vector<8x1xf32>
    %933 = arith.addf %929, %932 : vector<8x1xf32>
    %934 = math.rsqrt %933 : vector<8x1xf32>
    %935 = vector.broadcast %934 : vector<8x1xf32> to vector<8x32xf32>
    %936 = arith.mulf %931, %935 : vector<8x32xf32>
    %937 = vector.broadcast %821 : vector<1x32xf32> to vector<8x32xf32>
    %938 = arith.mulf %936, %937 : vector<8x32xf32>
    %939 = vector.broadcast %823 : vector<1x32xf32> to vector<8x32xf32>
    %940 = arith.addf %938, %939 : vector<8x32xf32>
    %941 = arith.truncf %940 : vector<8x32xf32> to vector<8x32xbf16>
    %cst_408 = arith.constant dense<0.000000e+00> : vector<8x2048xf32>
    %942 = tpu.matmul %941, %825, %cst_408 {dimension_numbers = #tpu.dot_dimension_numbers<[1], [0], [0], [1], [0, 0, 1, 1], [], []>} : vector<8x32xbf16>, vector<32x2048xbf16>, vector<8x2048xf32> -> vector<8x2048xf32>
    %943 = vector.broadcast %827 : vector<1x2048xf32> to vector<8x2048xf32>
    %944 = arith.addf %942, %943 : vector<8x2048xf32>
    %cst_409 = arith.constant 0.000000e+00 : f32
    %945 = vector.broadcast %cst_409 : f32 to vector<8x2048xf32>
    %946 = arith.maximumf %944, %945 : vector<8x2048xf32>
    %947 = arith.truncf %946 : vector<8x2048xf32> to vector<8x2048xbf16>
    %cst_410 = arith.constant dense<0.000000e+00> : vector<8x32xf32>
    %948 = tpu.matmul %947, %829, %cst_410 {dimension_numbers = #tpu.dot_dimension_numbers<[1], [0], [0], [1], [0, 0, 1, 1], [], []>} : vector<8x2048xbf16>, vector<2048x32xbf16>, vector<8x32xf32> -> vector<8x32xf32>
    %949 = vector.broadcast %831 : vector<1x32xf32> to vector<8x32xf32>
    %950 = arith.addf %948, %949 : vector<8x32xf32>
    %951 = arith.addf %940, %950 : vector<8x32xf32>
    %cst_411 = arith.constant dense<0.000000e+00> : vector<8xf32>
    %952 = vector.multi_reduction <add>, %951, %cst_411 [1] : vector<8x32xf32> to vector<8xf32>
    %953 = vector.shape_cast %952 : vector<8xf32> to vector<8x1xf32>
    %cst_412 = arith.constant 3.200000e+01 : f32
    %954 = vector.broadcast %cst_412 : f32 to vector<8x1xf32>
    %955 = arith.divf %953, %954 : vector<8x1xf32>
    %956 = vector.broadcast %955 : vector<8x1xf32> to vector<8x32xf32>
    %957 = arith.subf %951, %956 : vector<8x32xf32>
    %958 = arith.mulf %957, %957 : vector<8x32xf32>
    %cst_413 = arith.constant dense<0.000000e+00> : vector<8xf32>
    %959 = vector.multi_reduction <add>, %958, %cst_413 [1] : vector<8x32xf32> to vector<8xf32>
    %960 = vector.shape_cast %959 : vector<8xf32> to vector<8x1xf32>
    %cst_414 = arith.constant 3.200000e+01 : f32
    %961 = vector.broadcast %cst_414 : f32 to vector<8x1xf32>
    %962 = arith.divf %960, %961 : vector<8x1xf32>
    %963 = vector.broadcast %955 : vector<8x1xf32> to vector<8x32xf32>
    %964 = arith.subf %951, %963 : vector<8x32xf32>
    %cst_415 = arith.constant 9.99999974E-6 : f32
    %965 = vector.broadcast %cst_415 : f32 to vector<8x1xf32>
    %966 = arith.addf %962, %965 : vector<8x1xf32>
    %967 = math.rsqrt %966 : vector<8x1xf32>
    %968 = vector.broadcast %967 : vector<8x1xf32> to vector<8x32xf32>
    %969 = arith.mulf %964, %968 : vector<8x32xf32>
    %970 = vector.broadcast %833 : vector<1x32xf32> to vector<8x32xf32>
    %971 = arith.mulf %969, %970 : vector<8x32xf32>
    %972 = vector.broadcast %835 : vector<1x32xf32> to vector<8x32xf32>
    %973 = arith.addf %971, %972 : vector<8x32xf32>
    %c0_416 = arith.constant 0 : index
    %c0_417 = arith.constant 0 : index
    %c0_418 = arith.constant 0 : index
    %974 = vector.load %arg14[%c0_416, %c0_417, %c0_418] : memref<1x8x32xf32, #tpu.memory_space<vmem>>, vector<1x8x32xf32>
    %975 = vector.shape_cast %974 : vector<1x8x32xf32> to vector<8x32xf32>
    %976 = vector.shape_cast %973 : vector<8x32xf32> to vector<1x8x32xf32>
    tpu.vector_store %arg14[%c0_416, %c0_417, %c0_418], %976 {strides = array<i32>} : memref<1x8x32xf32, #tpu.memory_space<vmem>>, vector<1x8x32xf32>,
    return
  }
  func.func @transform_0(%arg0: i32) -> (i32, i32, i32) {
    %c0_i32 = arith.constant 0 : i32
    %c0_i32_0 = arith.constant 0 : i32
    %c0_i32_1 = arith.constant 0 : i32
    return %arg0, %c0_i32, %c0_i32_0 : i32, i32, i32
  }
  func.func @transform_1(%arg0: i32) -> (i32, i32, i32) {
    %c0_i32 = arith.constant 0 : i32
    %c0_i32_0 = arith.constant 0 : i32
    %c0_i32_1 = arith.constant 0 : i32
    %c0_i32_2 = arith.constant 0 : i32
    return %c0_i32, %c0_i32_0, %c0_i32_1 : i32, i32, i32
  }
  func.func @transform_2(%arg0: i32) -> (i32, i32, i32) {
    %c0_i32 = arith.constant 0 : i32
    %c0_i32_0 = arith.constant 0 : i32
    %c0_i32_1 = arith.constant 0 : i32
    %c0_i32_2 = arith.constant 0 : i32
    return %c0_i32, %c0_i32_0, %c0_i32_1 : i32, i32, i32
  }
  func.func @transform_3(%arg0: i32) -> (i32, i32, i32) {
    %c0_i32 = arith.constant 0 : i32
    %c0_i32_0 = arith.constant 0 : i32
    %c0_i32_1 = arith.constant 0 : i32
    %c0_i32_2 = arith.constant 0 : i32
    return %c0_i32, %c0_i32_0, %c0_i32_1 : i32, i32, i32
  }
  func.func @transform_4(%arg0: i32) -> (i32, i32, i32) {
    %c0_i32 = arith.constant 0 : i32
    %c0_i32_0 = arith.constant 0 : i32
    %c0_i32_1 = arith.constant 0 : i32
    %c0_i32_2 = arith.constant 0 : i32
    return %c0_i32, %c0_i32_0, %c0_i32_1 : i32, i32, i32
  }
  func.func @transform_5(%arg0: i32) -> (i32, i32, i32) {
    %c0_i32 = arith.constant 0 : i32
    %c0_i32_0 = arith.constant 0 : i32
    %c0_i32_1 = arith.constant 0 : i32
    %c0_i32_2 = arith.constant 0 : i32
    return %c0_i32, %c0_i32_0, %c0_i32_1 : i32, i32, i32
  }
  func.func @transform_6(%arg0: i32) -> (i32, i32, i32) {
    %c0_i32 = arith.constant 0 : i32
    %c0_i32_0 = arith.constant 0 : i32
    %c0_i32_1 = arith.constant 0 : i32
    %c0_i32_2 = arith.constant 0 : i32
    return %c0_i32, %c0_i32_0, %c0_i32_1 : i32, i32, i32
  }
  func.func @transform_7(%arg0: i32) -> (i32, i32, i32) {
    %c0_i32 = arith.constant 0 : i32
    %c0_i32_0 = arith.constant 0 : i32
    %c0_i32_1 = arith.constant 0 : i32
    %c0_i32_2 = arith.constant 0 : i32
    return %c0_i32, %c0_i32_0, %c0_i32_1 : i32, i32, i32
  }
  func.func @transform_8(%arg0: i32) -> (i32, i32, i32) {
    %c0_i32 = arith.constant 0 : i32
    %c0_i32_0 = arith.constant 0 : i32
    %c0_i32_1 = arith.constant 0 : i32
    %c0_i32_2 = arith.constant 0 : i32
    return %c0_i32, %c0_i32_0, %c0_i32_1 : i32, i32, i32
  }
  func.func @transform_9(%arg0: i32) -> (i32, i32, i32) {
    %c0_i32 = arith.constant 0 : i32
    %c0_i32_0 = arith.constant 0 : i32
    %c0_i32_1 = arith.constant 0 : i32
    %c0_i32_2 = arith.constant 0 : i32
    return %c0_i32, %c0_i32_0, %c0_i32_1 : i32, i32, i32
  }
  func.func @transform_10(%arg0: i32) -> (i32, i32, i32) {
    %c0_i32 = arith.constant 0 : i32
    %c0_i32_0 = arith.constant 0 : i32
    %c0_i32_1 = arith.constant 0 : i32
    %c0_i32_2 = arith.constant 0 : i32
    return %c0_i32, %c0_i32_0, %c0_i32_1 : i32, i32, i32
  }
  func.func @transform_11(%arg0: i32) -> (i32, i32, i32) {
    %c0_i32 = arith.constant 0 : i32
    %c0_i32_0 = arith.constant 0 : i32
    %c0_i32_1 = arith.constant 0 : i32
    %c0_i32_2 = arith.constant 0 : i32
    return %c0_i32, %c0_i32_0, %c0_i32_1 : i32, i32, i32
  }
  func.func @transform_12(%arg0: i32) -> (i32, i32, i32) {
    %c0_i32 = arith.constant 0 : i32
    %c0_i32_0 = arith.constant 0 : i32
    %c0_i32_1 = arith.constant 0 : i32
    %c0_i32_2 = arith.constant 0 : i32
    return %c0_i32, %c0_i32_0, %c0_i32_1 : i32, i32, i32
  }
  func.func @transform_13(%arg0: i32) -> (i32, i32, i32) {
    %c0_i32 = arith.constant 0 : i32
    %c0_i32_0 = arith.constant 0 : i32
    %c0_i32_1 = arith.constant 0 : i32
    return %arg0, %c0_i32, %c0_i32_0 : i32, i32, i32
  }
}

</mosaic_0001>

<bundles_post_ra>
// kernel: run.1
= control target key start
LH: loop header
LB: loop body
LE: loop exit
PB: predicated region body
PF: predicated region fallthrough
CT: control target
= control target key end

     0   :  { %s27079_s0 = inlined_call_operand.vmem [shape: f32[2,8,32], index: 0, kind: input, shape index: {}]   ;;  %s27080_s1 = inlined_call_operand.vmem [shape: bf16[6,32,96], index: 1, kind: input, shape index: {}]   ;;  %s27081_s2 = inlined_call_operand.vmem [shape: f32[6,1,96], index: 2, kind: input, shape index: {}]   ;;  %s27082_s3 = inlined_call_operand.vmem [shape: bf16[6,32,32], index: 3, kind: input, shape index: {}]   ;;  %s27083_s4 = inlined_call_operand.vmem [shape: f32[6,1,32], index: 4, kind: input, shape index: {}]   ;;  %s27084_s5 = inlined_call_operand.vmem [shape: f32[6,1,32], index: 5, kind: input, shape index: {}]   ;;  %s27085_s6 = inlined_call_operand.vmem [shape: f32[6,1,32], index: 6, kind: input, shape index: {}]   ;;  %s27086_s7 = inlined_call_operand.vmem [shape: bf16[6,32,2048], index: 7, kind: input, shape index: {}]   ;;  %s27087_s8 = inlined_call_operand.vmem [shape: f32[6,1,2048], index: 8, kind: input, shape index: {}]   ;;  %s27088_s9 = inlined_call_operand.vmem [shape: bf16[6,2048,32], index: 9, kind: input, shape index: {}]   ;;  %s27089_s10 = inlined_call_operand.vmem [shape: f32[6,1,32], index: 10, kind: input, shape index: {}]   ;;  %s27090_s11 = inlined_call_operand.vmem [shape: f32[6,1,32], index: 11, kind: input, shape index: {}]   ;;  %s27091_s12 = inlined_call_operand.vmem [shape: f32[6,1,32], index: 12, kind: input, shape index: {}]   ;;  %s27092_s13 = inlined_call_operand.hbm [shape: f32[2,8,32], index: 13, kind: output, shape index: {}]  }
   0x1   :  { %27127 = sst [smem:[#allocation14_spill]] %s27079_s0 }
   0x2   :  { %27128 = sst [smem:[#allocation15_spill]] %s27083_s4 }
   0x3   :  { %27129 = sst [smem:[#allocation16_spill]] %s27092_s13 }
   0x4   :  { %18 = vsyncpa [#allocation3], 0 }
   0x5   :  { %20 = vsyncpa [#allocation3 + $0x1], 0  ;;  %s22610_s25 = smov 0   ;;  %s22612_s26 = smov 0  }
   0x6   :  { %s22614_s27 = smov 0   ;;  %s22616_s28 = smov 0  }
   0x7 LB: > { %27130 = sst [smem:[#allocation5_spill]] %s22511_s25  ;;  %s22631_s29 = sadd.s32 4294967295, %s22523_s28   ;;  %s22523_s28 = sphi %s22616_s28, %s27169_s28   ;;  %s22519_s27 = sphi %s22614_s27, %s27172_s27   ;;  %s22515_s26 = sphi %s22612_s26, %s27171_s26   ;;  %s22511_s25 = sphi %s22610_s25, %s27170_s25  }
   0x8   : > { %27131 = sst [smem:[#allocation6_spill]] %s22515_s26  ;;  %s17136_s30 = sadd.s32 4294967294, %s22523_s28  }
   0x9   : > { %27132 = sst [smem:[#allocation7_spill]] %s22519_s27  ;;  %s22635_s14 = sadd.s32 1, %s22523_s28  }
   0xa   : > { %27133 = sst [smem:[#allocation8_spill]] %s22523_s28  ;;  %s311_s15 = sadd.s32 1, %s22519_s27 }
   0xb   : > { %27134 = sst [smem:[#allocation9_spill]] %s22631_s29  ;;  %s308_s16 = ssub.s32 %s22523_s28, %s22635_s14 }
   0xc   : > { %27135 = sst [smem:[#allocation10_spill]] %s22635_s14  ;;  %p321_p0 = scmp.ne.s32.totalorder %s22519_s27, %s22515_s26 }
   0xd   : > { %p309_p1 = scmp.eq.s32.totalorder %s308_s16, 0  ;;  %p322_p2 = scmp.eq.s32.totalorder %s22631_s29, 1 }
   0xe   : > { %p327_p3 = scmp.ne.s32.totalorder %s22515_s26, %s22511_s25  ;;  %p328_p4 = scmp.eq.s32.totalorder %s17136_s30, 1 }
   0xf   : > { %s22646_s17 = scalar_select %p309_p1, %s22519_s27, %s311_s15  }
  0x10   : > { %p22648_p5 = por %p322_p2, %p321_p0  ;;  %p22652_p6 = por %p328_p4, %p327_p3 }
  0x11   : > { %27136 = sst [smem:[#allocation11_spill]] %s22646_s17  ;;  %p17139_p7 = scmp.ge.s32.totalorder %s22523_s28, 1 }
  0x12   : > { %s27137_s18 = scalar_select %p22648_p5, 1, 0 }
  0x13   : > { %s27139_s19 = scalar_select %p22652_p6, 1, 0 }
  0x14   : > { %27138 = sst [smem:[#allocation12_spill]] %s27137_s18  ;;  %p389_p8 = scmp.lt.s32.totalorder %s22523_s28, 3 }
  0x15   : > { %27140 = sst [smem:[#allocation13_spill]] %s27139_s19 }
  0x16   : > { %p390_p9 = pnand %p17139_p7, %p389_p8 }
  0x17   : > { %p432_p10 = scmp.lt.s32.totalorder (!%p390_p9), %s22631_s29, 1  ;;  %s27141_s0 = sld [smem:[#allocation14_spill]] (!%p390_p9) }
  0x18   : > { %393 = sbr.rel (%p390_p9) target bundleno = 21499 (0x53fb), region = 72  ;;  %s27109_s23 = smov (!%p390_p9), 120  }
  0x19   : > { %s27095_s15 = smov (!%p390_p9), 64   ;;  %s27099_s16 = smov (!%p390_p9), 56  }
  0x1a   : > { %s27097_s21 = smov (!%p390_p9), 112   ;;  %s27093_s22 = smov (!%p390_p9), 80  }
  0x1b   : > { %s27142_s4 = sld [smem:[#allocation15_spill]] (!%p390_p9)  ;;  %s27144_s17 = smov (!%p390_p9), 96  }
  0x1c   : > { %s27150_s27 = smov (!%p390_p9), 48   ;;  %s27153_s14 = smov (!%p390_p9), 40  }
  0x1d   : > { %v21562_v0 = vld [vmem:[%s27080_s1 + $0x8] sm:$0xff]   ;;  %v22525_v1 = vmov 0.0   ;;  %v21563_v2 = vld [vmem:[%s27080_s1] sm:$0xff]   ;;  %vm22526_vm0 = vmmov 0   ;;  %s433_s24 = scalar_select %p432_p10, %s22631_s29, 1  ;;  %vm762_vm1 = vcmask 261120  }
  0x1e   : > { %21029 = vmatprep.subr.bf16.mxu0 %v22525_v1  ;;  %21037 = vmatprep.subr.bf16.mxu1 %v22525_v1  ;;  %v17142_v5 = vld [vmem:[%s27081_s2] ss:$0 sm:$0xff]  ;;  %vm810_vm2 = vcmask 64512   ;;  %vm874_vm3 = vcmask 1043456   ;;  %v444_v51 = vld [vmem:[%s27082_s3 + $0x4] sm:$0xf] }
  0x1f   : > { %21030 = vmatpush3.bf16.msra.mxu0 %v21562_v0  ;;  %21033 = vmatprep.mubr.msk.bf16.mxu0 %vm22526_vm0, %v22525_v1  ;;  %s17141_s30 = sshll.u32 %s433_s24, 3  ;;  %s27111_s24 = smov 96   ;;  %v443_v49 = vld [vmem:[%s27082_s3] sm:$0xf]  ;;  %v1034_v52 = vsel %vm874_vm3, %v444_v51, 0 }
  0x20   : > { %21031 = vmatprep.subr.bf16.mxu0 %v22525_v1  ;;  %21039 = vmatprep.mubr.msk.bf16.mxu1 %vm22526_vm0, %v22525_v1  ;;  %s22676_s20 = scalar_lea.vmem %s27141_s0, %s17141_s30  ;;  %s27113_s30 = smov 88   ;;  %v1080_v50 = vsel %vm874_vm3, %v443_v49, 0 }
  0x21   : > { %v437_v3 = vld [vmem:[%s22676_s20] sm:$0xff]  ;;  %s27143_s0 = smov 88   ;;  %s27154_s25 = smov 40  }
  0x22   : > { %v743_v4 = vpack.c.bf16 %v437_v3, %v437_v3  ;;  %s27156_s19 = smov 40   ;;  %s27158_s26 = smov 40  }
  0x23   : > { %21032 = vmatpush3.bf16.msra.mxu0 %v21563_v2  ;;  %s27165_s18 = sld [smem:[#allocation16_spill]] }
  0x24   : > { %21043 = vmatprep.subr.bf16.mxu0 %v22525_v1 }
  0x26   : > { %21034 = vmatmul.mubr.msk.bf16.vlgmr.msra.gmra.mxu0 %vm762_vm1, %v743_v4 }
  0x27   : > { %21045 = vmatprep.mubr.msk.bf16.mxu0 %vm22526_vm0, %v22525_v1 }
  0xe6   : > { %v800_v6 = vpop.f32.mrf.mxu0 }
  0xe7   : > { %v801_v7 = vadd.f32 %v17142_v5, %v800_v6 }
  0xe8   : > { %v21035_v8 = vpop.f32.mrf.mxu0 }
  0xe9   : > { %v22686_v9 = vpack.c.bf16 %v801_v7, %v801_v7 }
  0xea   : > { %v803_v10 = vpop.f32.mrf.mxu0 }
  0xeb   : > { %919 = vrot.lane.b32.xlu1 %v22686_v9, %s27109_s23  ;;  %808 = vrot.lane.b32.xlu0 %v22686_v9, %s27111_s24  ;;  %s27145_s24 = smov 120   ;;  %s27152_s23 = smov 72  }
  0xec   : > { %v21036_v11 = vpop.f32.mrf.mxu0 }
  0xef   : > { %921 = vrot.lane.b32.xlu0 %v22686_v9, %s27113_s30  ;;  %s27146_s30 = smov 56  }
 0x15d   : > { %v809_v12 = vpop.permute.xlu0 %808  ;;  %v920_v16 = vpop.permute.xlu1 %919 }
 0x15e   : > { %v815_v13 = vsel %vm810_vm2, %v809_v12, 0 }
 0x15f   : > { %21038 = vmatpush3.bf16.xpose.msra.mxu1 %v815_v13 }
 0x160   : > { %21049 = vmatprep.subr.bf16.mxu1 %v22525_v1 }
 0x161   : > { %v922_v14 = vpop.permute.xlu0 %921 }
 0x162   : > { %v927_v15 = vsel %vm810_vm2, %v922_v14, 0 }
 0x166   : > { %21040 = vmatmul.mubr.msk.bf16.vlgmr.msra.gmra.mxu1 %vm810_vm2, %v22686_v9 }
 0x167   : > { %21050 = vmatpush3.bf16.xpose.msra.mxu1 %v927_v15  ;;  %21051 = vmatprep.mubr.msk.bf16.mxu1 %vm22526_vm0, %v22525_v1 }
 0x168   : > { %21061 = vmatprep.subr.bf16.mxu1 %v22525_v1 }
 0x16e   : > { %21052 = vmatmul.mubr.msk.bf16.vlgmr.msra.gmra.mxu1 %vm810_vm2, %v920_v16 }
 0x16f   : > { %21063 = vmatprep.mubr.msk.bf16.mxu1 %vm22526_vm0, %v22525_v1  ;;  %21062 = vmatpush3.bf16.msra.mxu1 %v1034_v52  ;;  %v446_v52 = vld [vmem:[%s27082_s3 + $0xc] sm:$0xf] }
 0x170   : > { %21073 = vmatprep.subr.bf16.mxu1 %v22525_v1 }
 0x226   : > { %v851_v17 = vpop.f32.mrf.mxu1 }
 0x227   : > { %v857_v18 = vsel %vm810_vm2, %v851_v17, -inf }
 0x228   : > { %858 = vmax.xlane.f32.xlu1 %v857_v18  ;;  %v21041_v19 = vpop.f32.mrf.mxu1 }
 0x22a   : > { %v854_v20 = vpop.f32.mrf.mxu1 }
 0x22c   : > { %v21042_v21 = vpop.f32.mrf.mxu1 }
 0x22e   : > { %v963_v22 = vpop.f32.mrf.mxu1 }
 0x22f   : > { %v969_v23 = vsel %vm810_vm2, %v963_v22, -inf }
 0x230   : > { %970 = vmax.xlane.f32.xlu0 %v969_v23  ;;  %v21053_v24 = vpop.f32.mrf.mxu1 }
 0x232   : > { %v966_v25 = vpop.f32.mrf.mxu1 }
 0x234   : > { %v21054_v26 = vpop.f32.mrf.mxu1 }
 0x2b1   : > { %v859_v27 = vpop.xlane.xlu1 %858 }
 0x2b2   : > { %v860_v28 = vsub.f32 %v851_v17, %v859_v27 }
 0x2b4   : > { %v861_v29 = vmul.f32 1.442695, %v860_v28 }
 0x2b6   : > { %22342 = vpow2.f32 %v861_v29 }
 0x2b9   : > { %v971_v30 = vpop.xlane.xlu0 %970 }
 0x2ba   : > { %v972_v31 = vsub.f32 %v963_v22, %v971_v30 }
 0x2bc   : > { %v973_v32 = vmul.f32 1.442695, %v972_v31 }
 0x2be   : > { %22344 = vpow2.f32 %v973_v32  ;;  %v445_v32 = vld [vmem:[%s27082_s3 + $0x8] sm:$0xf] }
 0x2c3   : > { %v22343_v33 = vpop.eup %22342 }
 0x2c4   : > { %v863_v34 = vsel %vm810_vm2, %v22343_v33, 0.0 }
 0x2c5   : > { %864 = vadd.xlane.f32.xlu0 %v863_v34 }
 0x2cb   : > { %v22345_v35 = vpop.eup %22344 }
 0x2cc   : > { %v975_v36 = vsel %vm810_vm2, %v22345_v35, 0.0 }
 0x2cd   : > { %976 = vadd.xlane.f32.xlu1 %v975_v36 }
 0x2db   : > { %869 = vrot.lane.b32.xlu0 %v22686_v9, %s27095_s15  ;;  %s27101_s15 = smov 72  }
 0x2de   : > { %981 = vrot.lane.b32.xlu1 %v22686_v9, %s27099_s16  ;;  %s27103_s16 = smov 104  }
 0x2df   : > { %1122 = vrot.lane.b32.xlu0 %v22686_v9, %s27097_s21  ;;  %s27107_s21 = smov 48  }
 0x2e2   : > { %1124 = vrot.lane.b32.xlu1 %v22686_v9, %s27093_s22  ;;  %s27148_s22 = smov 64  }
 0x34e   : > { %v865_v37 = vpop.xlane.xlu0 %864 }
 0x34f   : > { %22346 = vrcp.f32 %v865_v37 }
 0x352   : > { %v870_v38 = vpop.permute.xlu0 %869 }
 0x353   : > { %v876_v39 = vsel %vm874_vm3, %v870_v38, 0 }
 0x354   : > { %21044 = vmatpush3.bf16.msra.mxu0 %v876_v39 }
 0x355   : > { %21055 = vmatprep.subr.bf16.mxu0 %v22525_v1 }
 0x356   : > { %v977_v40 = vpop.xlane.xlu1 %976  ;;  %v1123_v2 = vpop.permute.xlu0 %1122 }
 0x357   : > { %22348 = vrcp.f32 %v977_v40 }
 0x35a   : > { %v982_v43 = vpop.permute.xlu1 %981 }
 0x35b   : > { %v987_v45 = vsel %vm874_vm3, %v982_v43, 0 }
 0x35c   : > { %v22347_v41 = vpop.eup %22346 }
 0x35d   : > { %v867_v42 = vmul.f32 %v22347_v41, %v22343_v33  ;;  %v1237_v33 = vsel %vm874_vm3, %v445_v32, 0 }
 0x35e   : > { %v1125_v58 = vpop.permute.xlu1 %1124 }
 0x35f   : > { %v868_v44 = vpack.c.bf16 %v867_v42, %v867_v42  ;;  %v1130_v62 = vsel %vm810_vm2, %v1125_v58, 0 }
 0x361   : > { %21046 = vmatmul.mubr.msk.bf16.vlgmr.msra.gmra.mxu0 %vm810_vm2, %v868_v44 }
 0x362   : > { %21056 = vmatpush3.bf16.msra.mxu0 %v987_v45  ;;  %21057 = vmatprep.mubr.msk.bf16.mxu0 %vm22526_vm0, %v22525_v1 }
 0x363   : > { %21067 = vmatprep.subr.bf16.mxu0 %v22525_v1 }
 0x364   : > { %v22349_v46 = vpop.eup %22348 }
 0x365   : > { %v979_v47 = vmul.f32 %v22349_v46, %v22345_v35 }
 0x367   : > { %v980_v48 = vpack.c.bf16 %v979_v47, %v979_v47 }
 0x369   : > { %21058 = vmatmul.mubr.msk.bf16.vlgmr.msra.gmra.mxu0 %vm810_vm2, %v980_v48 }
 0x36a   : > { %21069 = vmatprep.mubr.msk.bf16.mxu0 %vm22526_vm0, %v22525_v1  ;;  %21068 = vmatpush3.bf16.msra.mxu0 %v1080_v50 }
 0x36b   : > { %21079 = vmatprep.subr.bf16.mxu0 %v22525_v1 }
 0x421   : > { %v912_v53 = vpop.f32.mrf.mxu0 }
 0x422   : > { %v918_v54 = vpack.c.bf16 %v912_v53, %v912_v53 }
 0x423   : > { %v21047_v55 = vpop.f32.mrf.mxu0 }
 0x424   : > { %21070 = vmatmul.mubr.msk.bf16.vlgmr.msra.gmra.mxu0 %vm810_vm2, %v918_v54 }
 0x425   : > { %v915_v56 = vpop.f32.mrf.mxu0  ;;  %21081 = vmatprep.mubr.msk.bf16.mxu0 %vm22526_vm0, %v22525_v1 }
 0x427   : > { %v21048_v57 = vpop.f32.mrf.mxu0 }
 0x429   : > { %v1023_v59 = vpop.f32.mrf.mxu0 }
 0x42a   : > { %v1029_v60 = vpack.c.bf16 %v1023_v59, %v1023_v59 }
 0x42b   : > { %v21059_v61 = vpop.f32.mrf.mxu0 }
 0x42c   : > { %21064 = vmatmul.mubr.msk.bf16.vlgmr.msra.gmra.mxu1 %vm810_vm2, %v1029_v60 }
 0x42d   : > { %21074 = vmatpush3.bf16.xpose.msra.mxu1 %v1130_v62  ;;  %v1026_v63 = vpop.f32.mrf.mxu0  ;;  %21075 = vmatprep.mubr.msk.bf16.mxu1 %vm22526_vm0, %v22525_v1 }
 0x42e   : > { %21085 = vmatprep.subr.bf16.mxu1 %v22525_v1 }
 0x42f   : > { %v21060_v0 = vpop.f32.mrf.mxu0 }
 0x434   : > { %21076 = vmatmul.mubr.msk.bf16.vlgmr.msra.gmra.mxu1 %vm810_vm2, %v1123_v2 }
 0x435   : > { %21087 = vmatprep.mubr.msk.bf16.mxu1 %vm22526_vm0, %v22525_v1  ;;  %21086 = vmatpush3.bf16.msra.mxu1 %v1237_v33 }
 0x436   : > { %21097 = vmatprep.subr.bf16.mxu1 %v22525_v1 }
 0x4e4   : > { %v1116_v3 = vpop.f32.mrf.mxu0 }
 0x4e6   : > { %v21071_v4 = vpop.f32.mrf.mxu0 }
 0x4e8   : > { %v1119_v5 = vpop.f32.mrf.mxu0 }
 0x4ea   : > { %v21072_v6 = vpop.f32.mrf.mxu0 }
 0x4ec   : > { %v1070_v7 = vpop.f32.mrf.mxu1 }
 0x4ed   : > { %v22748_v8 = vadd.f32 %v1116_v3, %v1070_v7  ;;  %v17158_v3 = vld [vmem:[%s27142_s4] ss:$0 sm:$0xff] }
 0x4ee   : > { %v21065_v10 = vpop.f32.mrf.mxu1 }
 0x4ef   : > { %v22462_v10 = vld [vmem:[%s22676_s20] sm:$0xff] }
 0x4f0   : > { %v1073_v11 = vpop.f32.mrf.mxu1 }
 0x4f2   : > { %v21066_v12 = vpop.f32.mrf.mxu1 }
 0x4f4   : > { %v1166_v13 = vpop.f32.mrf.mxu1 }
 0x4f5   : > { %v1172_v14 = vsel %vm810_vm2, %v1166_v13, -inf }
 0x4f6   : > { %1173 = vmax.xlane.f32.xlu1 %v1172_v14  ;;  %v21077_v15 = vpop.f32.mrf.mxu1 }
 0x4f8   : > { %v1169_v16 = vpop.f32.mrf.mxu1 }
 0x4fa   : > { %v21078_v17 = vpop.f32.mrf.mxu1 }
 0x507   : > { %1282 = vrot.lane.b32.xlu1 %v22686_v9, %s27101_s15  ;;  %s27105_s15 = smov 40  }
 0x50b   : > { %1280 = vrot.lane.b32.xlu1 %v22686_v9, %s27103_s16  ;;  %s27147_s16 = smov 112  }
 0x57f   : > { %v1174_v18 = vpop.xlane.xlu1 %1173 }
 0x580   : > { %v1175_v19 = vsub.f32 %v1166_v13, %v1174_v18 }
 0x582   : > { %v1176_v20 = vmul.f32 1.442695, %v1175_v19  ;;  %v466_v19 = vld [vmem:[%s27086_s7 + $0x80] sm:$0xff] }
 0x583   : > { %v1283_v28 = vpop.permute.xlu1 %1282 }
 0x584   : > { %22350 = vpow2.f32 %v1176_v20  ;;  %v1288_v30 = vsel %vm810_vm2, %v1283_v28, 0  ;;  %v474_v20 = vld [vmem:[%s27086_s7 + $0xc0] sm:$0xff] }
 0x585   : > { %v458_v28 = vld [vmem:[%s27086_s7 + $0x40] sm:$0xff] }
 0x587   : > { %v1281_v31 = vpop.permute.xlu1 %1280 }
 0x591   : > { %v22351_v21 = vpop.eup %22350 }
 0x592   : > { %v1178_v22 = vsel %vm810_vm2, %v22351_v21, 0.0 }
 0x593   : > { %1179 = vadd.xlane.f32.xlu0 %v1178_v22  ;;  %v17178_v22 = vcombine.high %v466_v19, %v474_v20 }
 0x5a9   : > { %1184 = vrot.lane.b32.xlu0 %v22686_v9, %s27107_s21  ;;  %s27149_s21 = smov 80  }
 0x61c   : > { %v1180_v23 = vpop.xlane.xlu0 %1179 }
 0x61d   : > { %22352 = vrcp.f32 %v1180_v23  ;;  %v475_v23 = vld [vmem:[%s27086_s7 + $0xc8] sm:$0xff] }
 0x620   : > { %v1185_v24 = vpop.permute.xlu0 %1184 }
 0x621   : > { %v1190_v25 = vsel %vm874_vm3, %v1185_v24, 0  ;;  %v17177_v24 = vcombine.low %v466_v19, %v474_v20 }
 0x622   : > { %21080 = vmatpush3.bf16.msra.mxu0 %v1190_v25 }
 0x623   : > { %21091 = vmatprep.subr.bf16.mxu0 %v22525_v1 }
 0x62a   : > { %v22353_v26 = vpop.eup %22352 }
 0x62b   : > { %v1182_v27 = vmul.f32 %v22353_v26, %v22351_v21  ;;  %v467_v21 = vld [vmem:[%s27086_s7 + $0x88] sm:$0xff] }
 0x62c   : > { %v17179_v25 = vcombine.low %v467_v21, %v475_v23  ;;  %v17180_v26 = vcombine.high %v467_v21, %v475_v23  ;;  %v456_v21 = vld [vmem:[%s27086_s7 + $0x30] sm:$0xff]  ;;  %v457_v23 = vld [vmem:[%s27086_s7 + $0x38] sm:$0xff] }
 0x62d   : > { %v1183_v29 = vpack.c.bf16 %v1182_v27, %v1182_v27  ;;  %v450_v27 = vld [vmem:[%s27086_s7] sm:$0xff] }
 0x62e   : > { %v17161_v32 = vcombine.low %v450_v27, %v458_v28 }
 0x62f   : > { %21082 = vmatmul.mubr.msk.bf16.vlgmr.msra.gmra.mxu0 %vm810_vm2, %v1183_v29  ;;  %v451_v29 = vld [vmem:[%s27086_s7 + $0x8] sm:$0xff] }
 0x630   : > { %21092 = vmatpush3.bf16.xpose.msra.mxu0 %v1288_v30  ;;  %21093 = vmatprep.mubr.msk.bf16.mxu0 %vm22526_vm0, %v22525_v1  ;;  %v17162_v30 = vcombine.high %v450_v27, %v458_v28 }
 0x631   : > { %21103 = vmatprep.subr.bf16.mxu0 %v22525_v1 }
 0x637   : > { %21094 = vmatmul.mubr.msk.bf16.vlgmr.msra.gmra.mxu0 %vm810_vm2, %v1281_v31  ;;  %v459_v31 = vld [vmem:[%s27086_s7 + $0x48] sm:$0xff] }
 0x638   : > { %21105 = vmatprep.mubr.msk.bf16.mxu0 %vm22526_vm0, %v22525_v1  ;;  %v17163_v33 = vcombine.low %v451_v29, %v459_v31 }
 0x6ef   : > { %v1226_v34 = vpop.f32.mrf.mxu0 }
 0x6f0   : > { %v1232_v35 = vpack.c.bf16 %v1226_v34, %v1226_v34  ;;  %v17164_v34 = vcombine.high %v451_v29, %v459_v31  ;;  %v21564_v31 = vld [vmem:[%s27088_s9 + $0x78] sm:$0xff]  }
 0x6f1   : > { %v21083_v36 = vpop.f32.mrf.mxu0 }
 0x6f2   : > { %21088 = vmatmul.mubr.msk.bf16.vlgmr.msra.gmra.mxu1 %vm810_vm2, %v1232_v35  ;;  %v468_v35 = vld [vmem:[%s27086_s7 + $0x90] sm:$0xff] }
 0x6f3   : > { %v1229_v37 = vpop.f32.mrf.mxu0  ;;  %21099 = vmatprep.mubr.msk.bf16.mxu1 %vm22526_vm0, %v22525_v1  ;;  %v476_v36 = vld [vmem:[%s27086_s7 + $0xd0] sm:$0xff] }
 0x6f4   : > { %v469_v37 = vld [vmem:[%s27086_s7 + $0x98] sm:$0xff] }
 0x6f5   : > { %v21084_v38 = vpop.f32.mrf.mxu0 }
 0x6f6   : > { %v22538_v38 = vmov 0  }
 0x6f7   : > { %v1324_v39 = vpop.f32.mrf.mxu0 }
 0x6f8   : > { %v1330_v40 = vsel %vm810_vm2, %v1324_v39, -inf }
 0x6f9   : > { %1331 = vmax.xlane.f32.xlu0 %v1330_v40  ;;  %v21095_v41 = vpop.f32.mrf.mxu0  ;;  %v477_v40 = vld [vmem:[%s27086_s7 + $0xd8] sm:$0xff] }
 0x6fa   : > { %v17181_v41 = vcombine.low %v468_v35, %v476_v36 }
 0x6fb   : > { %v1327_v42 = vpop.f32.mrf.mxu0 }
 0x6fc   : > { %v17183_v42 = vcombine.low %v469_v37, %v477_v40 }
 0x6fd   : > { %v21096_v43 = vpop.f32.mrf.mxu0 }
 0x6fe   : > { %v17184_v43 = vcombine.high %v469_v37, %v477_v40  ;;  %v21570_v37 = vld [vmem:[%s27088_s9 + $0x30] sm:$0xff]   ;;  %v21572_v40 = vld [vmem:[%s27088_s9 + $0x68] sm:$0xff]  }
 0x70f   : > { %1342 = vrot.lane.b32.xlu0 %v22686_v9, %s27105_s15  ;;  %v1395_v9 = vsel %vm874_vm3, %v446_v52, 0  ;;  %v452_v52 = vld [vmem:[%s27086_s7 + $0x10] sm:$0xff]  ;;  %s27151_s15 = smov 104  }
 0x710   : > { %21104 = vmatpush3.bf16.msra.mxu0 %v1395_v9  ;;  %v453_v9 = vld [vmem:[%s27086_s7 + $0x18] sm:$0xff] }
 0x711   : > { %1773 = vmatprep.subr.bf16.mxu0 %v17180_v26 }
 0x782   : > { %v1332_v44 = vpop.xlane.xlu0 %1331 }
 0x783   : > { %v1333_v45 = vsub.f32 %v1324_v39, %v1332_v44  ;;  %v17182_v39 = vcombine.high %v468_v35, %v476_v36  ;;  %v21568_v35 = vld [vmem:[%s27088_s9 + $0x70] sm:$0xff]  }
 0x784   : > { %v21569_v36 = vld [vmem:[%s27088_s9 + $0xf0] sm:$0xff]  }
 0x785   : > { %v1334_v46 = vmul.f32 1.442695, %v1333_v45 }
 0x786   : > { %v1343_v47 = vpop.permute.xlu0 %1342 }
 0x787   : > { %22354 = vpow2.f32 %v1334_v46  ;;  %v1348_v48 = vsel %vm874_vm3, %v1343_v47, 0 }
 0x788   : > { %21098 = vmatpush3.bf16.msra.mxu1 %v1348_v48  ;;  %v17159_v48 = vld [vmem:[%s27084_s5] ss:$0 sm:$0xff] }
 0x789   : > { %1732 = vmatprep.subr.bf16.mxu1 %v17178_v22  ;;  %v464_v22 = vld [vmem:[%s27086_s7 + $0x70] sm:$0xff] }
 0x78a   : > { %v17174_v27 = vcombine.high %v456_v21, %v464_v22  ;;  %v17173_v29 = vcombine.low %v456_v21, %v464_v22 }
 0x794   : > { %v22355_v49 = vpop.eup %22354 }
 0x795   : > { %v1336_v50 = vsel %vm810_vm2, %v22355_v49, 0.0 }
 0x796   : > { %1337 = vadd.xlane.f32.xlu1 %v1336_v50  ;;  %v17160_v50 = vld [vmem:[%s27085_s6] ss:$0 sm:$0xff] }
 0x7b2   : > { %v1273_v51 = vpop.f32.mrf.mxu1 }
 0x7b3   : > { %v1279_v53 = vadd.f32 %v1273_v51, %v22748_v8 }
 0x7b4   : > { %v21089_v54 = vpop.f32.mrf.mxu1 }
 0x7b5   : > { %v461_v54 = vld [vmem:[%s27086_s7 + $0x58] sm:$0xff] }
 0x7b6   : > { %v1276_v55 = vpop.f32.mrf.mxu1 }
 0x7b8   : > { %v21090_v56 = vpop.f32.mrf.mxu1 }
 0x81f   : > { %v1338_v57 = vpop.xlane.xlu1 %1337 }
 0x820   : > { %22356 = vrcp.f32 %v1338_v57 }
 0x82d   : > { %v22357_v58 = vpop.eup %22356 }
 0x82e   : > { %v1340_v59 = vmul.f32 %v22357_v58, %v22355_v49  ;;  %v17168_v58 = vcombine.high %v453_v9, %v461_v54 }
 0x830   : > { %v1341_v60 = vpack.c.bf16 %v1340_v59, %v1340_v59  ;;  %v470_v59 = vld [vmem:[%s27086_s7 + $0xa0] sm:$0xff] }
 0x832   : > { %21100 = vmatmul.mubr.msk.bf16.vlgmr.msra.gmra.mxu1 %vm810_vm2, %v1341_v60  ;;  %v478_v60 = vld [vmem:[%s27086_s7 + $0xe0] sm:$0xff] }
 0x833   : > { %1733 = vmatpush1.bf16.msra.mxu1 %v17177_v24  ;;  %1752 = vmatprep.mubr.bf16.mxu1 %v22538_v38  ;;  %v465_v24 = vld [vmem:[%s27086_s7 + $0x78] sm:$0xff] }
 0x834   : > { %1734 = vmatprep.subr.bf16.mxu1 %v17162_v30  ;;  %v17176_v28 = vcombine.high %v457_v23, %v465_v24  ;;  %v17175_v30 = vcombine.low %v457_v23, %v465_v24 }
 0x837   : > { %1735 = vmatpush1.bf16.msra.mxu1 %v17161_v32  ;;  %v21565_v32 = vld [vmem:[%s27088_s9 + $0xf8] sm:$0xff]  }
 0x838   : > { %1814 = vmatprep.subr.bf16.mxu1 %v17182_v39  ;;  %v21571_v39 = vld [vmem:[%s27088_s9 + $0xb0] sm:$0xff]  }
 0x8f2   : > { %v1384_v61 = vpop.f32.mrf.mxu1 }
 0x8f3   : > { %v1390_v62 = vpack.c.bf16 %v1384_v61, %v1384_v61  ;;  %v471_v61 = vld [vmem:[%s27086_s7 + $0xa8] sm:$0xff] }
 0x8f4   : > { %v21101_v63 = vpop.f32.mrf.mxu1 }
 0x8f5   : > { %21106 = vmatmul.mubr.msk.bf16.vlgmr.msra.gmra.mxu0 %vm810_vm2, %v1390_v62  ;;  %v479_v62 = vld [vmem:[%s27086_s7 + $0xe8] sm:$0xff] }
 0x8f6   : > { %v1387_v0 = vpop.f32.mrf.mxu1  ;;  %1774 = vmatpush1.bf16.msra.mxu0 %v17179_v25  ;;  %1793 = vmatprep.mubr.bf16.mxu0 %v22538_v38 }
 0x8f7   : > { %1775 = vmatprep.subr.bf16.mxu0 %v17164_v34  ;;  %v17167_v0 = vcombine.low %v453_v9, %v461_v54  ;;  %v21567_v34 = vld [vmem:[%s27088_s9 + $0xb8] sm:$0xff]   ;;  %v21586_v9 = vld [vmem:[%s27088_s9 + $0x10] sm:$0xff]  }
 0x8f8   : > { %v21102_v2 = vpop.f32.mrf.mxu1  ;;  %v21587_v54 = vld [vmem:[%s27088_s9 + $0x90] sm:$0xff]  }
 0x8f9   : > { %v17186_v2 = vcombine.high %v470_v59, %v478_v60 }
 0x8fa   : > { %1776 = vmatpush1.bf16.msra.mxu0 %v17163_v33  ;;  %v21566_v33 = vld [vmem:[%s27088_s9 + $0x38] sm:$0xff]  }
 0x8fb   : > { %1855 = vmatprep.subr.bf16.mxu0 %v17184_v43  ;;  %v21575_v43 = vld [vmem:[%s27088_s9 + $0xa8] sm:$0xff]  }
 0x9b5   : > { %v1431_v4 = vpop.f32.mrf.mxu0 }
 0x9b6   : > { %v1437_v5 = vadd.f32 %v1431_v4, %v1279_v53  ;;  %v460_v53 = vld [vmem:[%s27086_s7 + $0x50] sm:$0xff]  ;;  %v454_v4 = vld [vmem:[%s27086_s7 + $0x20] sm:$0xff] }
 0x9b7   : > { %v21107_v6 = vpop.f32.mrf.mxu0  ;;  %v17166_v57 = vcombine.high %v452_v52, %v460_v53  ;;  %v17165_v63 = vcombine.low %v452_v52, %v460_v53  ;;  %v21584_v52 = vld [vmem:[%s27088_s9 + $0x50] sm:$0xff]  }
 0x9b8   : > { %v1444_v7 = vadd.f32 %v17158_v3, %v1437_v5  ;;  %v17188_v3 = vcombine.high %v471_v61, %v479_v62  ;;  %v462_v5 = vld [vmem:[%s27086_s7 + $0x60] sm:$0xff]  ;;  %v455_v6 = vld [vmem:[%s27086_s7 + $0x28] sm:$0xff]  ;;  %v21585_v53 = vld [vmem:[%s27088_s9 + $0xd0] sm:$0xff]  }
 0x9b9   : > { %v1434_v8 = vpop.f32.mrf.mxu0 }
 0x9ba   : > { %v1445_v11 = vadd.f32 %v22462_v10, %v1444_v7  ;;  %v463_v7 = vld [vmem:[%s27086_s7 + $0x68] sm:$0xff]  ;;  %v17185_v8 = vcombine.low %v470_v59, %v478_v60  ;;  %v17187_v10 = vcombine.low %v471_v61, %v479_v62  ;;  %v21592_v60 = vld [vmem:[%s27088_s9 + $0x40] sm:$0xff]  }
 0x9bb   : > { %v21108_v12 = vpop.f32.mrf.mxu0  ;;  %v21591_v59 = vld [vmem:[%s27088_s9 + $0x88] sm:$0xff]   ;;  %v21593_v61 = vld [vmem:[%s27088_s9 + $0xc0] sm:$0xff]  }
 0x9bc   : > { %v1446_v13 = vsel %vm762_vm1, %v1445_v11, 0.0  ;;  %v17172_v12 = vcombine.high %v455_v6, %v463_v7  ;;  %v21594_v62 = vld [vmem:[%s27088_s9] sm:$0xff]  }
 0x9bd   : > { %1447 = vadd.xlane.f32.xlu1 %v1446_v13  ;;  %v472_v13 = vld [vmem:[%s27086_s7 + $0xb0] sm:$0xff] }
 0xa46   : > { %v1448_v14 = vpop.xlane.xlu1 %1447 }
 0xa47   : > { %v1450_v15 = vmul.f32 0.03125, %v1448_v14  ;;  %v480_v14 = vld [vmem:[%s27086_s7 + $0xf0] sm:$0xff] }
 0xa48   : > { %v17190_v19 = vcombine.high %v472_v13, %v480_v14  ;;  %v17189_v25 = vcombine.low %v472_v13, %v480_v14 }
 0xa49   : > { %v1451_v16 = vsub.f32 %v1445_v11, %v1450_v15  ;;  %v17170_v11 = vcombine.high %v454_v4, %v462_v5  ;;  %v473_v15 = vld [vmem:[%s27086_s7 + $0xb8] sm:$0xff] }
 0xa4b   : > { %v1452_v17 = vmul.f32 %v1451_v16, %v1451_v16 }
 0xa4d   : > { %v1453_v18 = vsel %vm762_vm1, %v1452_v17, 0.0  ;;  %v17169_v17 = vcombine.low %v454_v4, %v462_v5 }
 0xa4e   : > { %1454 = vadd.xlane.f32.xlu1 %v1453_v18  ;;  %v17171_v18 = vcombine.low %v455_v6, %v463_v7  ;;  %v23039_v7 = vld [vmem:[%s27087_s8] sm:$0xff] }
 0xad7   : > { %v1455_v44 = vpop.xlane.xlu1 %1454 }
 0xad8   : > { %v1456_v45 = vmul.f32 0.03125, %v1455_v44  ;;  %v21576_v44 = vld [vmem:[%s27088_s9 + $0x60] sm:$0xff]  }
 0xada   : > { %v1457_v46 = vadd.f32 1e-05, %v1456_v45  ;;  %v21577_v45 = vld [vmem:[%s27088_s9 + $0xe0] sm:$0xff]  }
 0xadc   : > { %22358 = vrsqrt.f32 %v1457_v46  ;;  %v21578_v46 = vld [vmem:[%s27088_s9 + $0x20] sm:$0xff]  }
 0xae9   : > { %v22359_v47 = vpop.eup %22358 }
 0xaea   : > { %v1459_v49 = vmul.f32 %v22359_v47, %v1451_v16  ;;  %v481_v16 = vld [vmem:[%s27086_s7 + $0xf8] sm:$0xff]  ;;  %v21579_v47 = vld [vmem:[%s27088_s9 + $0xa0] sm:$0xff]  }
 0xaeb   : > { %v17192_v20 = vcombine.high %v473_v15, %v481_v16  ;;  %v17191_v26 = vcombine.low %v473_v15, %v481_v16 }
 0xaec   : > { %v1466_v51 = vmul.f32 %v17159_v48, %v1459_v49  ;;  %v21580_v48 = vld [vmem:[%s27088_s9 + $0x58] sm:$0xff]  }
 0xaed   : > { %v21581_v49 = vld [vmem:[%s27088_s9 + $0xd8] sm:$0xff]  }
 0xaee   : > { %v22850_v55 = vadd.f32 %v17160_v50, %v1466_v51  ;;  %v21582_v50 = vld [vmem:[%s27088_s9 + $0x18] sm:$0xff]  }
 0xaef   : > { %v21583_v51 = vld [vmem:[%s27088_s9 + $0x98] sm:$0xff]  }
 0xaf0   : > { %v22854_v56 = vpack.c.bf16 %v22850_v55, %v22850_v55 }
 0xaf2   : > { %17193 = vmatmul.mubr.msk.bf16.vlgmr.msra.gmra.mxu1 %vm762_vm1, %v22854_v56  ;;  %17194 = vmatmul.mubr.msk.bf16.vlgmr.msra.gmra.mxu0 %vm762_vm1, %v22854_v56 }
 0xaf3   : > { %1815 = vmatpush1.bf16.msra.mxu1 %v17181_v41  ;;  %1856 = vmatpush1.bf16.msra.mxu0 %v17183_v42  ;;  %v21573_v41 = vld [vmem:[%s27088_s9 + $0xe8] sm:$0xff]  }
 0xaf4   : > { %1816 = vmatprep.subr.bf16.mxu1 %v17166_v57  ;;  %1857 = vmatprep.subr.bf16.mxu0 %v17168_v58  ;;  %v21574_v42 = vld [vmem:[%s27088_s9 + $0x28] sm:$0xff]  }
 0xaf5   : > { %1834 = vmatprep.mubr.bf16.mxu1 %v22538_v38  ;;  %1875 = vmatprep.mubr.bf16.mxu0 %v22538_v38  ;;  %v21589_v57 = vld [vmem:[%s27088_s9 + $0xc8] sm:$0xff]  }
 0xaf6   : > { %v21590_v58 = vld [vmem:[%s27088_s9 + $0x8] sm:$0xff]  }
 0xaf7   : > { %1817 = vmatpush1.bf16.msra.mxu1 %v17165_v63  ;;  %1858 = vmatpush1.bf16.msra.mxu0 %v17167_v0  ;;  %v21595_v63 = vld [vmem:[%s27088_s9 + $0x80] sm:$0xff]   ;;  %v21596_v0 = vld [vmem:[%s27088_s9 + $0x178] sm:$0xff]  }
 0xaf8   : > { %1896 = vmatprep.subr.bf16.mxu1 %v17186_v2  ;;  %1937 = vmatprep.subr.bf16.mxu0 %v17188_v3  ;;  %v21597_v2 = vld [vmem:[%s27088_s9 + $0x1f8] sm:$0xff]   ;;  %v1477_v3 = vlaneseq }
 0xafa   : > { %17195 = vmatmul.mubr.msk.bf16.vlgmr.msra.gmra.mxu1 %vm762_vm1, %v22854_v56  ;;  %17196 = vmatmul.mubr.msk.bf16.vlgmr.msra.gmra.mxu0 %vm762_vm1, %v22854_v56  ;;  %v23028_v4 = vshrl.u32 %v1477_v3, 7  ;;  %v21608_v3 = vld [vmem:[%s27088_s9 + $0x160] sm:$0xff]  }
 0xafb   : > { %1897 = vmatpush1.bf16.msra.mxu1 %v17185_v8  ;;  %1938 = vmatpush1.bf16.msra.mxu0 %v17187_v10 }
 0xafc   : > { %1898 = vmatprep.subr.bf16.mxu1 %v17170_v11  ;;  %1939 = vmatprep.subr.bf16.mxu0 %v17172_v12  ;;  %v23031_v5 = vsub.s32 0, %v23028_v4  ;;  %v23034_v6 = vsub.s32 2, %v23028_v4  ;;  %v23042_v8 = vsub.s32 1, %v23028_v4  ;;  %v23045_v10 = vsub.s32 3, %v23028_v4 }
 0xafd   : > { %1916 = vmatprep.mubr.bf16.mxu1 %v22538_v38  ;;  %1957 = vmatprep.mubr.bf16.mxu0 %v22538_v38  ;;  %v23056_v23 = vsub.s32 5, %v23028_v4  ;;  %v23059_v24 = vsub.s32 7, %v23028_v4 }
 0xafe   : > { %v1480_v11 = vrot.slane %v23039_v7, %v23031_v5  ;;  %v1488_v12 = vrot.slane %v23039_v7, %v23034_v6  ;;  %v1484_v13 = vrot.slane %v23039_v7, %v23042_v8  ;;  %v1492_v14 = vrot.slane %v23039_v7, %v23045_v10 }
 0xaff   : > { %1899 = vmatpush1.bf16.msra.mxu1 %v17169_v17  ;;  %1940 = vmatpush1.bf16.msra.mxu0 %v17171_v18 }
 0xb00   : > { %1978 = vmatprep.subr.bf16.mxu1 %v17190_v19  ;;  %2019 = vmatprep.subr.bf16.mxu0 %v17192_v20 }
 0xb02   : > { %17197 = vmatmul.mubr.msk.bf16.vlgmr.msra.gmra.mxu1 %vm762_vm1, %v22854_v56  ;;  %17198 = vmatmul.mubr.msk.bf16.vlgmr.msra.gmra.mxu0 %vm762_vm1, %v22854_v56 }
 0xb03   : > { %1979 = vmatpush1.bf16.msra.mxu1 %v17189_v25  ;;  %2020 = vmatpush1.bf16.msra.mxu0 %v17191_v26 }
 0xb04   : > { %1980 = vmatprep.subr.bf16.mxu1 %v17174_v27  ;;  %2021 = vmatprep.subr.bf16.mxu0 %v17176_v28 }
 0xb05   : > { %1998 = vmatprep.mubr.bf16.mxu1 %v22538_v38  ;;  %2039 = vmatprep.mubr.bf16.mxu0 %v22538_v38 }
 0xb07   : > { %1981 = vmatpush1.bf16.msra.mxu1 %v17173_v29  ;;  %2022 = vmatpush1.bf16.msra.mxu0 %v17175_v30 }
 0xb08   : > { %19838 = vmatprep.subr.bf16.mxu1 %v21564_v31  ;;  %19860 = vmatprep.subr.bf16.mxu0 %v21565_v32 }
 0xb0a   : > { %17199 = vmatmul.mubr.msk.bf16.vlgmr.msra.gmra.mxu1 %vm762_vm1, %v22854_v56  ;;  %17200 = vmatmul.mubr.msk.bf16.vlgmr.msra.gmra.mxu0 %vm762_vm1, %v22854_v56  ;;  %v21588_v56 = vld [vmem:[%s27088_s9 + $0x48] sm:$0xff]  }
 0xb0b   : > { %19839 = vmatpush3.bf16.msra.mxu1 %v21566_v33  ;;  %19861 = vmatpush3.bf16.msra.mxu0 %v21567_v34 }
 0xb0c   : > { %19840 = vmatprep.subr.bf16.mxu1 %v21568_v35  ;;  %19862 = vmatprep.subr.bf16.mxu0 %v21569_v36  ;;  %v1500_v35 = vrot.slane %v23039_v7, %v23056_v23  ;;  %v1508_v36 = vrot.slane %v23039_v7, %v23059_v24 }
 0xb0f   : > { %19841 = vmatpush3.bf16.msra.mxu1 %v21570_v37  ;;  %19863 = vmatpush3.bf16.msra.mxu0 %v21571_v39  ;;  %v21598_v37 = vld [vmem:[%s27088_s9 + $0x138] sm:$0xff]  }
 0xb10   : > { %19842 = vmatprep.subr.bf16.mxu1 %v21572_v40  ;;  %19864 = vmatprep.subr.bf16.mxu0 %v21573_v41  ;;  %v21599_v39 = vld [vmem:[%s27088_s9 + $0x1b8] sm:$0xff]  }
 0xb13   : > { %19843 = vmatpush3.bf16.msra.mxu1 %v21574_v42  ;;  %19865 = vmatpush3.bf16.msra.mxu0 %v21575_v43 }
 0xb14   : > { %19844 = vmatprep.subr.bf16.mxu1 %v21576_v44  ;;  %19866 = vmatprep.subr.bf16.mxu0 %v21577_v45  ;;  %v21600_v44 = vld [vmem:[%s27088_s9 + $0x170] sm:$0xff]  }
 0xb15   : > { %v21601_v45 = vld [vmem:[%s27088_s9 + $0x1f0] sm:$0xff]  }
 0xb17   : > { %19845 = vmatpush3.bf16.msra.mxu1 %v21578_v46  ;;  %19867 = vmatpush3.bf16.msra.mxu0 %v21579_v47 }
 0xb18   : > { %19846 = vmatprep.subr.bf16.mxu1 %v21580_v48  ;;  %19868 = vmatprep.subr.bf16.mxu0 %v21581_v49 }
 0xb1b   : > { %19847 = vmatpush3.bf16.msra.mxu1 %v21582_v50  ;;  %19869 = vmatpush3.bf16.msra.mxu0 %v21583_v51  ;;  %v21602_v50 = vld [vmem:[%s27088_s9 + $0x130] sm:$0xff]  }
 0xb1c   : > { %19848 = vmatprep.subr.bf16.mxu1 %v21584_v52  ;;  %19870 = vmatprep.subr.bf16.mxu0 %v21585_v53  ;;  %v21603_v51 = vld [vmem:[%s27088_s9 + $0x1b0] sm:$0xff]  }
 0xb1f   : > { %19849 = vmatpush3.bf16.msra.mxu1 %v21586_v9  ;;  %19871 = vmatpush3.bf16.msra.mxu0 %v21587_v54  ;;  %v21604_v9 = vld [vmem:[%s27088_s9 + $0x168] sm:$0xff]  }
 0xb20   : > { %19850 = vmatprep.subr.bf16.mxu1 %v21588_v56  ;;  %19872 = vmatprep.subr.bf16.mxu0 %v21589_v57  ;;  %v21605_v54 = vld [vmem:[%s27088_s9 + $0x1e8] sm:$0xff]  }
 0xb23   : > { %19851 = vmatpush3.bf16.msra.mxu1 %v21590_v58  ;;  %19873 = vmatpush3.bf16.msra.mxu0 %v21591_v59 }
 0xb24   : > { %19852 = vmatprep.subr.bf16.mxu1 %v21592_v60  ;;  %19874 = vmatprep.subr.bf16.mxu0 %v21593_v61 }
 0xb27   : > { %19853 = vmatpush3.bf16.msra.mxu1 %v21594_v62  ;;  %19875 = vmatpush3.bf16.msra.mxu0 %v21595_v63  ;;  %v21606_v62 = vld [vmem:[%s27088_s9 + $0x128] sm:$0xff]  }
 0xb28   : > { %19882 = vmatprep.subr.bf16.mxu1 %v21596_v0  ;;  %19904 = vmatprep.subr.bf16.mxu0 %v21597_v2  ;;  %v21607_v63 = vld [vmem:[%s27088_s9 + $0x1a8] sm:$0xff]  }
 0xbb2   : > { %v1754_v15 = vpop.f32.mrf.mxu1  ;;  %v1795_v16 = vpop.f32.mrf.mxu0 }
 0xbb3   : > { %v1755_v17 = vadd.f32 %v1754_v15, %v1480_v11  ;;  %v1796_v18 = vadd.f32 %v1795_v16, %v1488_v12  ;;  %v21609_v11 = vld [vmem:[%s27088_s9 + $0x1e0] sm:$0xff]  }
 0xbb4   : > { %v1756_v19 = vpop.f32.mrf.mxu1  ;;  %v1797_v20 = vpop.f32.mrf.mxu0  ;;  %v21610_v15 = vld [vmem:[%s27088_s9 + $0x120] sm:$0xff]  }
 0xbb5   : > { %v1757_v21 = vadd.f32 %v1756_v19, %v1484_v13  ;;  %v1798_v22 = vadd.f32 %v1797_v20, %v1492_v14  ;;  %v2048_v25 = vmax.f32 %v1755_v17, 0.0  ;;  %v2050_v26 = vmax.f32 %v1796_v18, 0.0  ;;  %v21611_v16 = vld [vmem:[%s27088_s9 + $0x1a0] sm:$0xff]   ;;  %v23121_v17 = vld [vmem:[%s27087_s8 + $0x8] sm:$0xff]  ;;  %v21612_v20 = vld [vmem:[%s27088_s9 + $0x158] sm:$0xff]  }
 0xbb6   : > { %v1758_v27 = vpop.f32.mrf.mxu1  ;;  %v1799_v28 = vpop.f32.mrf.mxu0  ;;  %v23110_v14 = vsub.s32 6, %v23028_v4 }
 0xbb7   : > { %v2049_v29 = vmax.f32 %v1757_v21, 0.0  ;;  %v2051_v30 = vmax.f32 %v1798_v22, 0.0  ;;  %v2064_v40 = vpack.c.bf16 %v2048_v25, %v2048_v25  ;;  %v2066_v41 = vpack.c.bf16 %v2050_v26, %v2050_v26  ;;  %v21613_v21 = vld [vmem:[%s27088_s9 + $0x1d8] sm:$0xff]  }
 0xbb8   : > { %v1759_v31 = vpop.f32.mrf.mxu1  ;;  %v1800_v32 = vpop.f32.mrf.mxu0  ;;  %v1536_v22 = vrot.slane %v23121_v17, %v23110_v14  ;;  %v21614_v27 = vld [vmem:[%s27088_s9 + $0x118] sm:$0xff]  }
 0xbb9   : > { %v2065_v33 = vpack.c.bf16 %v2049_v29, %v2049_v29  ;;  %v2067_v34 = vpack.c.bf16 %v2051_v30, %v2051_v30  ;;  %v21615_v28 = vld [vmem:[%s27088_s9 + $0x198] sm:$0xff]   ;;  %v23138_v29 = vsub.s32 4, %v23028_v4  ;;  %v21616_v32 = vld [vmem:[%s27088_s9 + $0x150] sm:$0xff]  }
 0xbba   : > { %v23071_v42 = vpop.f32.mrf.mxu1  ;;  %v23073_v43 = vpop.f32.mrf.mxu0  ;;  %v21618_v4 = vld [vmem:[%s27088_s9 + $0x110] sm:$0xff]  }
 0xbbb   : > { %2886 = vmatprep.mubr.bf16.mxu1 %v2065_v33  ;;  %2926 = vmatprep.mubr.bf16.mxu0 %v2067_v34  ;;  %v21617_v33 = vld [vmem:[%s27088_s9 + $0x1d0] sm:$0xff]  }
 0xbbc   : > { %v1838_v46 = vpop.f32.mrf.mxu1  ;;  %v1879_v47 = vpop.f32.mrf.mxu0  ;;  %2887 = vmatmul.mubr.bf16.vlgmr.msra.gmra.mxu1 %v2064_v40  ;;  %2927 = vmatmul.mubr.bf16.vlgmr.msra.gmra.mxu0 %v2066_v41  ;;  %v1504_v40 = vrot.slane %v23039_v7, %v23110_v14 }
 0xbbd   : > { %v1839_v48 = vadd.f32 %v1838_v46, %v1500_v35  ;;  %v1880_v49 = vadd.f32 %v1879_v47, %v1508_v36  ;;  %19883 = vmatpush3.bf16.msra.mxu1 %v21598_v37  ;;  %19905 = vmatpush3.bf16.msra.mxu0 %v21599_v39  ;;  %v21619_v37 = vld [vmem:[%s27088_s9 + $0x190] sm:$0xff]   ;;  %v1496_v39 = vrot.slane %v23039_v7, %v23138_v29  ;;  %v21621_v46 = vld [vmem:[%s27088_s9 + $0x1c8] sm:$0xff]  }
 0xbbe   : > { %v1840_v52 = vpop.f32.mrf.mxu1  ;;  %v1881_v53 = vpop.f32.mrf.mxu0  ;;  %19884 = vmatprep.subr.bf16.mxu1 %v21600_v44  ;;  %19906 = vmatprep.subr.bf16.mxu0 %v21601_v45  ;;  %v21620_v45 = vld [vmem:[%s27088_s9 + $0x148] sm:$0xff]   ;;  %v1516_v47 = vrot.slane %v23121_v17, %v23042_v8 }
 0xbbf   : > { %v2053_v56 = vmax.f32 %v1839_v48, 0.0  ;;  %v2055_v57 = vmax.f32 %v1880_v49, 0.0  ;;  %v1524_v48 = vrot.slane %v23121_v17, %v23045_v10  ;;  %v1837_v52 = vadd.f32 %v23071_v42, %v1496_v39  ;;  %v21626_v42 = vld [vmem:[%s27088_s9 + $0x100] sm:$0xff]   ;;  %v21646_v39 = vld [vmem:[%s27088_s9 + $0x218] sm:$0xff]  }
 0xbc0   : > { %v1841_v58 = vpop.f32.mrf.mxu1  ;;  %v1882_v59 = vpop.f32.mrf.mxu0  ;;  %v1878_v53 = vadd.f32 %v23073_v43, %v1504_v40  ;;  %v21627_v43 = vld [vmem:[%s27088_s9 + $0x180] sm:$0xff]   ;;  %v21647_v40 = vld [vmem:[%s27088_s9 + $0x298] sm:$0xff]  }
 0xbc1   : > { %v2069_v60 = vpack.c.bf16 %v2053_v56, %v2053_v56  ;;  %v2071_v61 = vpack.c.bf16 %v2055_v57, %v2055_v57  ;;  %19885 = vmatpush3.bf16.msra.mxu1 %v21602_v50  ;;  %19907 = vmatpush3.bf16.msra.mxu0 %v21603_v51  ;;  %v21622_v50 = vld [vmem:[%s27088_s9 + $0x108] sm:$0xff]   ;;  %v2052_v58 = vmax.f32 %v1837_v52, 0.0 }
 0xbc2   : > { %v23099_v0 = vpop.f32.mrf.mxu1  ;;  %v23101_v2 = vpop.f32.mrf.mxu0  ;;  %19886 = vmatprep.subr.bf16.mxu1 %v21604_v9  ;;  %19908 = vmatprep.subr.bf16.mxu0 %v21605_v54  ;;  %v21623_v51 = vld [vmem:[%s27088_s9 + $0x188] sm:$0xff]   ;;  %v21624_v9 = vld [vmem:[%s27088_s9 + $0x140] sm:$0xff]   ;;  %v2054_v59 = vmax.f32 %v1878_v53, 0.0 }
 0xbc3   : > { %2966 = vmatprep.mubr.bf16.mxu1 %v2069_v60  ;;  %3006 = vmatprep.mubr.bf16.mxu0 %v2071_v61  ;;  %v21625_v54 = vld [vmem:[%s27088_s9 + $0x1c0] sm:$0xff]   ;;  %v21628_v60 = vld [vmem:[%s27088_s9 + $0x278] sm:$0xff]   ;;  %v21654_v52 = vld [vmem:[%s27088_s9 + $0x208] sm:$0xff]  }
 0xbc4   : > { %v1920_v12 = vpop.f32.mrf.mxu1  ;;  %v1961_v13 = vpop.f32.mrf.mxu0  ;;  %v21629_v61 = vld [vmem:[%s27088_s9 + $0x2f8] sm:$0xff]  }
 0xbc5   : > { %19887 = vmatpush3.bf16.msra.mxu1 %v21606_v62  ;;  %19909 = vmatpush3.bf16.msra.mxu0 %v21607_v63  ;;  %v1921_v56 = vadd.f32 %v1920_v12, %v1516_v47  ;;  %v1962_v57 = vadd.f32 %v1961_v13, %v1524_v48  ;;  %v2070_v12 = vpack.c.bf16 %v2054_v59, %v2054_v59  ;;  %v21631_v13 = vld [vmem:[%s27088_s9 + $0x2b8] sm:$0xff]   ;;  %v21651_v47 = vld [vmem:[%s27088_s9 + $0x290] sm:$0xff]   ;;  %v21652_v48 = vld [vmem:[%s27088_s9 + $0x248] sm:$0xff]  }
 0xbc6   : > { %v1922_v18 = vpop.f32.mrf.mxu1  ;;  %v1963_v19 = vpop.f32.mrf.mxu0  ;;  %19888 = vmatprep.subr.bf16.mxu1 %v21608_v3  ;;  %19910 = vmatprep.subr.bf16.mxu0 %v21609_v11  ;;  %v21630_v3 = vld [vmem:[%s27088_s9 + $0x238] sm:$0xff]   ;;  %v2068_v11 = vpack.c.bf16 %v2052_v58, %v2052_v58 }
 0xbc7   : > { %v2057_v62 = vmax.f32 %v1921_v56, 0.0  ;;  %v2059_v63 = vmax.f32 %v1962_v57, 0.0  ;;  %v21633_v18 = vld [vmem:[%s27088_s9 + $0x2f0] sm:$0xff]   ;;  %v21657_v57 = vld [vmem:[%s27088_s9 + $0x2c0] sm:$0xff]   ;;  %v21660_v59 = vld [vmem:[%s27088_s9 + $0x378] sm:$0xff]  }
 0xbc8   : > { %v1923_v25 = vpop.f32.mrf.mxu1  ;;  %v1964_v26 = vpop.f32.mrf.mxu0 }
 0xbc9   : > { %19889 = vmatpush3.bf16.msra.mxu1 %v21610_v15  ;;  %19911 = vmatpush3.bf16.msra.mxu0 %v21611_v16  ;;  %v2073_v15 = vpack.c.bf16 %v2057_v62, %v2057_v62  ;;  %v21632_v16 = vld [vmem:[%s27088_s9 + $0x270] sm:$0xff]   ;;  %v2075_v19 = vpack.c.bf16 %v2059_v63, %v2059_v63  ;;  %v21637_v25 = vld [vmem:[%s27088_s9 + $0x2e8] sm:$0xff]   ;;  %v21662_v62 = vld [vmem:[%s27088_s9 + $0x338] sm:$0xff]  }
 0xbca   : > { %v23140_v30 = vpop.f32.mrf.mxu1  ;;  %v2041_v31 = vpop.f32.mrf.mxu0  ;;  %19890 = vmatprep.subr.bf16.mxu1 %v21612_v20  ;;  %19912 = vmatprep.subr.bf16.mxu0 %v21613_v21  ;;  %v21634_v20 = vld [vmem:[%s27088_s9 + $0x230] sm:$0xff]   ;;  %v21638_v26 = vld [vmem:[%s27088_s9 + $0x228] sm:$0xff]  }
 0xbcb   : > { %v23148_v34 = vadd.f32 %v2041_v31, %v1536_v22  ;;  %v21635_v21 = vld [vmem:[%s27088_s9 + $0x2b0] sm:$0xff]   ;;  %v21636_v22 = vld [vmem:[%s27088_s9 + $0x268] sm:$0xff]   ;;  %v21641_v31 = vld [vmem:[%s27088_s9 + $0x2e0] sm:$0xff]  }
 0xbcc   : > { %v23150_v35 = vpop.f32.mrf.mxu1  ;;  %v23152_v36 = vpop.f32.mrf.mxu0 }
 0xbcd   : > { %19891 = vmatpush3.bf16.msra.mxu1 %v21614_v27  ;;  %19913 = vmatpush3.bf16.msra.mxu0 %v21615_v28  ;;  %v21639_v27 = vld [vmem:[%s27088_s9 + $0x2a8] sm:$0xff]   ;;  %v21640_v28 = vld [vmem:[%s27088_s9 + $0x260] sm:$0xff]  }
 0xbce   : > { %v2004_v41 = vpop.f32.mrf.mxu1  ;;  %v2045_v44 = vpop.f32.mrf.mxu0  ;;  %19892 = vmatprep.subr.bf16.mxu1 %v21616_v32  ;;  %19914 = vmatprep.subr.bf16.mxu0 %v21617_v33  ;;  %v21642_v32 = vld [vmem:[%s27088_s9 + $0x220] sm:$0xff]  }
 0xbcf   : > { %v21643_v33 = vld [vmem:[%s27088_s9 + $0x2a0] sm:$0xff]   ;;  %v21648_v41 = vld [vmem:[%s27088_s9 + $0x250] sm:$0xff]  }
 0xbd0   : > { %v2005_v49 = vpop.f32.mrf.mxu1  ;;  %v2046_v7 = vpop.f32.mrf.mxu0  ;;  %v21649_v44 = vld [vmem:[%s27088_s9 + $0x2d0] sm:$0xff]  }
 0xbd1   : > { %19893 = vmatpush3.bf16.msra.mxu1 %v21618_v4  ;;  %19915 = vmatpush3.bf16.msra.mxu0 %v21619_v37  ;;  %v21644_v4 = vld [vmem:[%s27088_s9 + $0x258] sm:$0xff]   ;;  %v1520_v49 = vrot.slane %v23121_v17, %v23034_v6  ;;  %v21653_v7 = vld [vmem:[%s27088_s9 + $0x2c8] sm:$0xff]  }
 0xbd2   : > { %19894 = vmatprep.subr.bf16.mxu1 %v21620_v45  ;;  %19916 = vmatprep.subr.bf16.mxu0 %v21621_v46  ;;  %v21645_v37 = vld [vmem:[%s27088_s9 + $0x2d8] sm:$0xff]   ;;  %v21650_v45 = vld [vmem:[%s27088_s9 + $0x210] sm:$0xff]   ;;  %v1512_v46 = vrot.slane %v23121_v17, %v23031_v5 }
 0xbd3   : > { %v1960_v56 = vadd.f32 %v23101_v2, %v1520_v49  ;;  %v21659_v2 = vld [vmem:[%s27088_s9 + $0x280] sm:$0xff]   ;;  %v21687_v49 = vld [vmem:[%s27088_s9 + $0x388] sm:$0xff]  }
 0xbd4   : > { %v1919_v53 = vadd.f32 %v23099_v0, %v1512_v46  ;;  %v21684_v46 = vld [vmem:[%s27088_s9 + $0x348] sm:$0xff]  }
 0xbd5   : > { %19895 = vmatpush3.bf16.msra.mxu1 %v21622_v50  ;;  %19917 = vmatpush3.bf16.msra.mxu0 %v21623_v51  ;;  %v1532_v50 = vrot.slane %v23121_v17, %v23056_v23  ;;  %v1540_v51 = vrot.slane %v23121_v17, %v23059_v24 }
 0xbd6   : > { %19896 = vmatprep.subr.bf16.mxu1 %v21624_v9  ;;  %19918 = vmatprep.subr.bf16.mxu0 %v21625_v54  ;;  %v21655_v9 = vld [vmem:[%s27088_s9 + $0x288] sm:$0xff]   ;;  %v21656_v54 = vld [vmem:[%s27088_s9 + $0x240] sm:$0xff]   ;;  %v2056_v58 = vmax.f32 %v1919_v53, 0.0  ;;  %v2062_v53 = vmax.f32 %v23148_v34, 0.0 }
 0xbd7   : > { %v2044_v0 = vadd.f32 %v23152_v36, %v1540_v51  ;;  %v17201_v34 = vld [vmem:[%s27089_s10] ss:$0 sm:$0xff] }
 0xbd8   : > { %v2072_v63 = vpack.c.bf16 %v2056_v58, %v2056_v58 }
 0xbd9   : > { %19897 = vmatpush3.bf16.msra.mxu1 %v21626_v42  ;;  %19919 = vmatpush3.bf16.msra.mxu0 %v21627_v43  ;;  %v2003_v42 = vadd.f32 %v23150_v35, %v1532_v50  ;;  %v21658_v43 = vld [vmem:[%s27088_s9 + $0x200] sm:$0xff]   ;;  %v21661_v35 = vld [vmem:[%s27088_s9 + $0x3f8] sm:$0xff]  }
 0xbda   : > { %19926 = vmatprep.subr.bf16.mxu1 %v21628_v60  ;;  %19948 = vmatprep.subr.bf16.mxu0 %v21629_v61  ;;  %v2058_v60 = vmax.f32 %v1960_v56, 0.0  ;;  %v2063_v61 = vmax.f32 %v2044_v0, 0.0  ;;  %v21689_v50 = vld [vmem:[%s27088_s9 + $0x3c0] sm:$0xff]  }
 0xbdb   : > { %v2061_v36 = vmax.f32 %v2003_v42, 0.0 }
 0xbdc   : > { %2967 = vmatmul.mubr.bf16.vlgmr.msra.gmra.mxu1 %v2068_v11  ;;  %3007 = vmatmul.mubr.bf16.vlgmr.msra.gmra.mxu0 %v2070_v12  ;;  %v2074_v11 = vpack.c.bf16 %v2058_v60, %v2058_v60  ;;  %v21664_v12 = vld [vmem:[%s27088_s9 + $0x370] sm:$0xff]  }
 0xbdd   : > { %19927 = vmatpush3.bf16.msra.mxu1 %v21630_v3  ;;  %3046 = vmatprep.mubr.bf16.mxu1 %v2073_v15  ;;  %v21663_v3 = vld [vmem:[%s27088_s9 + $0x3b8] sm:$0xff]   ;;  %v21665_v15 = vld [vmem:[%s27088_s9 + $0x3f0] sm:$0xff]  }
 0xbde   : > { %19949 = vmatpush3.bf16.msra.mxu0 %v21631_v13  ;;  %3086 = vmatprep.mubr.bf16.mxu0 %v2075_v19  ;;  %v2077_v13 = vpack.c.bf16 %v2061_v36, %v2061_v36  ;;  %v21667_v19 = vld [vmem:[%s27088_s9 + $0x3b0] sm:$0xff]  }
 0xbdf   : > { %19928 = vmatprep.subr.bf16.mxu1 %v21632_v16  ;;  %19950 = vmatprep.subr.bf16.mxu0 %v21633_v18  ;;  %v2079_v16 = vpack.c.bf16 %v2063_v61, %v2063_v61  ;;  %v21666_v18 = vld [vmem:[%s27088_s9 + $0x330] sm:$0xff]  }
 0xbe1   : > { %19929 = vmatpush3.bf16.msra.mxu1 %v21634_v20  ;;  %v21668_v20 = vld [vmem:[%s27088_s9 + $0x368] sm:$0xff]  }
 0xbe2   : > { %19951 = vmatpush3.bf16.msra.mxu0 %v21635_v21  ;;  %19930 = vmatprep.subr.bf16.mxu1 %v21636_v22  ;;  %v21669_v21 = vld [vmem:[%s27088_s9 + $0x3e8] sm:$0xff]  }
 0xbe3   : > { %19952 = vmatprep.subr.bf16.mxu0 %v21637_v25  ;;  %v21670_v22 = vld [vmem:[%s27088_s9 + $0x328] sm:$0xff]  }
 0xbe4   : > { %v21671_v25 = vld [vmem:[%s27088_s9 + $0x3a8] sm:$0xff]  }
 0xbe5   : > { %19931 = vmatpush3.bf16.msra.mxu1 %v21638_v26  ;;  %v21672_v26 = vld [vmem:[%s27088_s9 + $0x360] sm:$0xff]  }
 0xbe6   : > { %19953 = vmatpush3.bf16.msra.mxu0 %v21639_v27  ;;  %19932 = vmatprep.subr.bf16.mxu1 %v21640_v28  ;;  %v21673_v27 = vld [vmem:[%s27088_s9 + $0x3e0] sm:$0xff]  }
 0xbe7   : > { %19954 = vmatprep.subr.bf16.mxu0 %v21641_v31  ;;  %v21674_v28 = vld [vmem:[%s27088_s9 + $0x320] sm:$0xff]  }
 0xbe8   : > { %v21675_v31 = vld [vmem:[%s27088_s9 + $0x3a0] sm:$0xff]  }
 0xbe9   : > { %19933 = vmatpush3.bf16.msra.mxu1 %v21642_v32  ;;  %v21676_v32 = vld [vmem:[%s27088_s9 + $0x358] sm:$0xff]  }
 0xbea   : > { %19955 = vmatpush3.bf16.msra.mxu0 %v21643_v33  ;;  %19934 = vmatprep.subr.bf16.mxu1 %v21644_v4  ;;  %v21677_v33 = vld [vmem:[%s27088_s9 + $0x3d8] sm:$0xff]  }
 0xbeb   : > { %19956 = vmatprep.subr.bf16.mxu0 %v21645_v37  ;;  %v21678_v4 = vld [vmem:[%s27088_s9 + $0x318] sm:$0xff]  }
 0xbec   : > { %v21679_v37 = vld [vmem:[%s27088_s9 + $0x398] sm:$0xff]  }
 0xbed   : > { %19935 = vmatpush3.bf16.msra.mxu1 %v21646_v39  ;;  %v21680_v39 = vld [vmem:[%s27088_s9 + $0x350] sm:$0xff]  }
 0xbee   : > { %19957 = vmatpush3.bf16.msra.mxu0 %v21647_v40  ;;  %19936 = vmatprep.subr.bf16.mxu1 %v21648_v41  ;;  %v21681_v40 = vld [vmem:[%s27088_s9 + $0x3d0] sm:$0xff]  }
 0xbef   : > { %19958 = vmatprep.subr.bf16.mxu0 %v21649_v44  ;;  %v21682_v41 = vld [vmem:[%s27088_s9 + $0x310] sm:$0xff]   ;;  %v1528_v44 = vrot.slane %v23121_v17, %v23138_v29  ;;  %v21686_v17 = vld [vmem:[%s27088_s9 + $0x308] sm:$0xff]  }
 0xbf1   : > { %19937 = vmatpush3.bf16.msra.mxu1 %v21650_v45  ;;  %v21683_v45 = vld [vmem:[%s27088_s9 + $0x390] sm:$0xff]  }
 0xbf2   : > { %19959 = vmatpush3.bf16.msra.mxu0 %v21651_v47  ;;  %19938 = vmatprep.subr.bf16.mxu1 %v21652_v48  ;;  %v21685_v47 = vld [vmem:[%s27088_s9 + $0x3c8] sm:$0xff]   ;;  %v2001_v48 = vadd.f32 %v23140_v30, %v1528_v44  ;;  %v21690_v30 = vld [vmem:[%s27088_s9 + $0x300] sm:$0xff]  }
 0xbf3   : > { %19960 = vmatprep.subr.bf16.mxu0 %v21653_v7  ;;  %v21688_v7 = vld [vmem:[%s27088_s9 + $0x340] sm:$0xff]  }
 0xbf4   : > { %v2060_v51 = vmax.f32 %v2001_v48, 0.0 }
 0xbf5   : > { %19939 = vmatpush3.bf16.msra.mxu1 %v21654_v52  ;;  %v21691_v52 = vld [vmem:[%s27088_s9 + $0x380] sm:$0xff]  }
 0xbf6   : > { %19961 = vmatpush3.bf16.msra.mxu0 %v21655_v9  ;;  %19940 = vmatprep.subr.bf16.mxu1 %v21656_v54  ;;  %v2076_v9 = vpack.c.bf16 %v2060_v51, %v2060_v51  ;;  %v2078_v54 = vpack.c.bf16 %v2062_v53, %v2062_v53 }
 0xbf7   : > { %19962 = vmatprep.subr.bf16.mxu0 %v21657_v57 }
 0xbf9   : > { %19941 = vmatpush3.bf16.msra.mxu1 %v21658_v43 }
 0xbfa   : > { %19963 = vmatpush3.bf16.msra.mxu0 %v21659_v2  ;;  %19970 = vmatprep.subr.bf16.mxu1 %v21660_v59 }
 0xbfb   : > { %19992 = vmatprep.subr.bf16.mxu0 %v21661_v35 }
 0xbfc   : > { %3047 = vmatmul.mubr.bf16.vlgmr.msra.gmra.mxu1 %v2072_v63 }
 0xbfd   : > { %3087 = vmatmul.mubr.bf16.vlgmr.msra.gmra.mxu0 %v2074_v11  ;;  %19971 = vmatpush3.bf16.msra.mxu1 %v21662_v62 }
 0xbfe   : > { %3126 = vmatprep.mubr.bf16.mxu1 %v2077_v13  ;;  %19993 = vmatpush3.bf16.msra.mxu0 %v21663_v3 }
 0xbff   : > { %3166 = vmatprep.mubr.bf16.mxu0 %v2079_v16  ;;  %19972 = vmatprep.subr.bf16.mxu1 %v21664_v12 }
 0xc00   : > { %19994 = vmatprep.subr.bf16.mxu0 %v21665_v15 }
 0xc01   : > { %19973 = vmatpush3.bf16.msra.mxu1 %v21666_v18 }
 0xc02   : > { %19995 = vmatpush3.bf16.msra.mxu0 %v21667_v19  ;;  %19974 = vmatprep.subr.bf16.mxu1 %v21668_v20 }
 0xc03   : > { %19996 = vmatprep.subr.bf16.mxu0 %v21669_v21 }
 0xc05   : > { %19975 = vmatpush3.bf16.msra.mxu1 %v21670_v22 }
 0xc06   : > { %19997 = vmatpush3.bf16.msra.mxu0 %v21671_v25  ;;  %19976 = vmatprep.subr.bf16.mxu1 %v21672_v26 }
 0xc07   : > { %19998 = vmatprep.subr.bf16.mxu0 %v21673_v27 }
 0xc09   : > { %19977 = vmatpush3.bf16.msra.mxu1 %v21674_v28 }
 0xc0a   : > { %19999 = vmatpush3.bf16.msra.mxu0 %v21675_v31  ;;  %19978 = vmatprep.subr.bf16.mxu1 %v21676_v32 }
 0xc0b   : > { %20000 = vmatprep.subr.bf16.mxu0 %v21677_v33 }
 0xc0d   : > { %19979 = vmatpush3.bf16.msra.mxu1 %v21678_v4 }
 0xc0e   : > { %20001 = vmatpush3.bf16.msra.mxu0 %v21679_v37  ;;  %19980 = vmatprep.subr.bf16.mxu1 %v21680_v39 }
 0xc0f   : > { %20002 = vmatprep.subr.bf16.mxu0 %v21681_v40 }
 0xc11   : > { %19981 = vmatpush3.bf16.msra.mxu1 %v21682_v41 }
 0xc12   : > { %20003 = vmatpush3.bf16.msra.mxu0 %v21683_v45  ;;  %19982 = vmatprep.subr.bf16.mxu1 %v21684_v46 }
 0xc13   : > { %20004 = vmatprep.subr.bf16.mxu0 %v21685_v47 }
 0xc15   : > { %19983 = vmatpush3.bf16.msra.mxu1 %v21686_v17 }
 0xc16   : > { %20005 = vmatpush3.bf16.msra.mxu0 %v21687_v49  ;;  %19984 = vmatprep.subr.bf16.mxu1 %v21688_v7 }
 0xc17   : > { %20006 = vmatprep.subr.bf16.mxu0 %v21689_v50 }
 0xc19   : > { %19985 = vmatpush3.bf16.msra.mxu1 %v21690_v30 }
 0xc1a   : > { %20007 = vmatpush3.bf16.msra.mxu0 %v21691_v52  ;;  %21109 = vmatprep.subr.bf16.mxu1 %v22525_v1 }
 0xc1b   : > { %21117 = vmatprep.subr.bf16.mxu0 %v22525_v1 }
 0xc1c   : > { %3127 = vmatmul.mubr.bf16.vlgmr.msra.gmra.mxu1 %v2076_v9 }
 0xc1d   : > { %3167 = vmatmul.mubr.bf16.vlgmr.msra.gmra.mxu0 %v2078_v54  ;;  %21113 = vmatprep.mubr.msk.bf16.mxu1 %vm22526_vm0, %v22525_v1 }
 0xc1e   : > { %21119 = vmatprep.mubr.msk.bf16.mxu0 %vm22526_vm0, %v22525_v1 }
 0xc7c   : > { %v19854_v56 = vpop.f32.mrf.mxu1  ;;  %v19876_v57 = vpop.f32.mrf.mxu0 }
 0xc7e   : > { %v19855_v42 = vpop.f32.mrf.mxu1  ;;  %v19877_v0 = vpop.f32.mrf.mxu0 }
 0xc7f   : > { %v19856_v43 = vadd.f32 %v19855_v42, %v19854_v56  ;;  %v19878_v58 = vadd.f32 %v19877_v0, %v19876_v57  ;;  %v21692_v42 = vld [vmem:[%s27080_s1 + $0x18] sm:$0xff]   ;;  %v21693_v0 = vld [vmem:[%s27080_s1 + $0x10] sm:$0xff]  }
 0xc80   : > { %v19857_v2 = vpop.f32.mrf.mxu1  ;;  %v19879_v59 = vpop.f32.mrf.mxu0  ;;  %21110 = vmatpush3.bf16.msra.mxu1 %v21692_v42 }
 0xc81   : > { %v2889_v60 = vadd.f32 %v19856_v43, %v17201_v34  ;;  %21111 = vmatprep.subr.bf16.mxu1 %v22525_v1  ;;  %v17330_v59 = vld [vmem:[%s27090_s11] ss:$0 sm:$0xff] }
 0xc82   : > { %v19858_v35 = vpop.f32.mrf.mxu1  ;;  %v19880_v36 = vpop.f32.mrf.mxu0 }
 0xc83   : > { %v2929_v61 = vadd.f32 %v19878_v58, %v2889_v60  ;;  %v17331_v35 = vld [vmem:[%s27091_s12] ss:$0 sm:$0xff] }
 0xc84   : > { %21112 = vmatpush3.bf16.msra.mxu1 %v21693_v0 }
 0xc85   : > { %21123 = vmatprep.subr.bf16.mxu1 %v22525_v1 }
 0xc9c   : > { %v19898_v62 = vpop.f32.mrf.mxu1  ;;  %v19920_v63 = vpop.f32.mrf.mxu0 }
 0xc9e   : > { %v19899_v3 = vpop.f32.mrf.mxu1  ;;  %v19921_v11 = vpop.f32.mrf.mxu0 }
 0xc9f   : > { %v19900_v28 = vadd.f32 %v19899_v3, %v19898_v62  ;;  %v19922_v32 = vadd.f32 %v19921_v11, %v19920_v63  ;;  %v17637_v63 = vld [vmem:[%s27081_s2 + $0x1] ss:$0 sm:$0xff] }
 0xca0   : > { %v19901_v12 = vpop.f32.mrf.mxu1  ;;  %v19923_v13 = vpop.f32.mrf.mxu0 }
 0xca1   : > { %v2969_v31 = vadd.f32 %v19900_v28, %v2929_v61 }
 0xca2   : > { %v19902_v15 = vpop.f32.mrf.mxu1  ;;  %v19924_v16 = vpop.f32.mrf.mxu0 }
 0xca3   : > { %v3009_v4 = vadd.f32 %v19922_v32, %v2969_v31 }
 0xcbc   : > { %v19942_v18 = vpop.f32.mrf.mxu1 }
 0xcbd   : > { %v19964_v19 = vpop.f32.mrf.mxu0 }
 0xcbe   : > { %v19943_v20 = vpop.f32.mrf.mxu1 }
 0xcbf   : > { %v19965_v21 = vpop.f32.mrf.mxu0  ;;  %v19944_v33 = vadd.f32 %v19943_v20, %v19942_v18 }
 0xcc0   : > { %v19945_v22 = vpop.f32.mrf.mxu1  ;;  %v19966_v40 = vadd.f32 %v19965_v21, %v19964_v19 }
 0xcc1   : > { %v19967_v25 = vpop.f32.mrf.mxu0  ;;  %v3049_v37 = vadd.f32 %v19944_v33, %v3009_v4 }
 0xcc2   : > { %v19946_v26 = vpop.f32.mrf.mxu1 }
 0xcc3   : > { %v19968_v27 = vpop.f32.mrf.mxu0  ;;  %v3089_v45 = vadd.f32 %v19966_v40, %v3049_v37 }
 0xcdc   : > { %v19986_v39 = vpop.f32.mrf.mxu1 }
 0xcdd   : > { %v20008_v41 = vpop.f32.mrf.mxu0 }
 0xcde   : > { %v19987_v44 = vpop.f32.mrf.mxu1 }
 0xcdf   : > { %v19988_v46 = vadd.f32 %v19987_v44, %v19986_v39  ;;  %v20009_v47 = vpop.f32.mrf.mxu0 }
 0xce0   : > { %v19989_v17 = vpop.f32.mrf.mxu1  ;;  %v20010_v49 = vadd.f32 %v20009_v47, %v20008_v41 }
 0xce1   : > { %v3129_v48 = vadd.f32 %v19988_v46, %v3089_v45  ;;  %v20011_v7 = vpop.f32.mrf.mxu0 }
 0xce2   : > { %v19990_v50 = vpop.f32.mrf.mxu1 }
 0xce3   : > { %v3169_v30 = vadd.f32 %v20010_v49, %v3129_v48  ;;  %v20012_v51 = vpop.f32.mrf.mxu0 }
 0xce5   : > { %v3174_v52 = vadd.f32 %v3169_v30, %v22850_v55 }
 0xce7   : > { %v3175_v53 = vsel %vm762_vm1, %v3174_v52, 0.0 }
 0xce8   : > { %3176 = vadd.xlane.f32.xlu1 %v3175_v53 }
 0xd71   : > { %v3177_v9 = vpop.xlane.xlu1 %3176 }
 0xd72   : > { %v3178_v54 = vmul.f32 0.03125, %v3177_v9 }
 0xd74   : > { %v3179_v56 = vsub.f32 %v3174_v52, %v3178_v54 }
 0xd76   : > { %v3180_v57 = vmul.f32 %v3179_v56, %v3179_v56 }
 0xd78   : > { %v3181_v34 = vsel %vm762_vm1, %v3180_v57, 0.0 }
 0xd79   : > { %3182 = vadd.xlane.f32.xlu1 %v3181_v34 }
 0xe02   : > { %v3183_v55 = vpop.xlane.xlu1 %3182 }
 0xe03   : > { %v3184_v43 = vmul.f32 0.03125, %v3183_v55  ;;  %v17337_v55 = vld [vmem:[%s27082_s3 + $0x10] sm:$0xf] }
 0xe05   : > { %v3185_v58 = vadd.f32 1e-05, %v3184_v43  ;;  %v3853_v43 = vsel %vm874_vm3, %v17337_v55, 0 }
 0xe07   : > { %22360 = vrsqrt.f32 %v3185_v58  ;;  %v17338_v58 = vld [vmem:[%s27082_s3 + $0x14] sm:$0xf] }
 0xe14   : > { %v22361_v2 = vpop.eup %22360 }
 0xe15   : > { %v3187_v60 = vmul.f32 %v22361_v2, %v3179_v56  ;;  %v3807_v2 = vsel %vm874_vm3, %v17338_v58, 0 }
 0xe17   : > { %v3194_v36 = vmul.f32 %v17330_v59, %v3187_v60 }
 0xe19   : > { %v23428_v61 = vadd.f32 %v17331_v35, %v3194_v36 }
 0xe1b   : > { %v3519_v62 = vpack.c.bf16 %v23428_v61, %v23428_v61 }
 0xe1d   : > { %21114 = vmatmul.mubr.msk.bf16.vlgmr.msra.gmra.mxu1 %vm762_vm1, %v3519_v62 }
 0xe1e   : > { %21125 = vmatprep.mubr.msk.bf16.mxu1 %vm22526_vm0, %v22525_v1 }
 0xedd   : > { %v3575_v3 = vpop.f32.mrf.mxu1 }
 0xede   : > { %v3576_v11 = vadd.f32 %v17637_v63, %v3575_v3 }
 0xedf   : > { %v21115_v12 = vpop.f32.mrf.mxu1 }
 0xee0   : > { %v23438_v13 = vpack.c.bf16 %v3576_v11, %v3576_v11 }
 0xee1   : > { %v3578_v15 = vpop.f32.mrf.mxu1 }
 0xee2   : > { %3694 = vrot.lane.b32.xlu0 %v23438_v13, %s27143_s0  ;;  %3583 = vrot.lane.b32.xlu1 %v23438_v13, %s27144_s17 }
 0xee3   : > { %v21116_v16 = vpop.f32.mrf.mxu1 }
 0xee6   : > { %3692 = vrot.lane.b32.xlu0 %v23438_v13, %s27145_s24 }
 0xf54   : > { %v3584_v18 = vpop.permute.xlu1 %3583  ;;  %v3695_v20 = vpop.permute.xlu0 %3694 }
 0xf55   : > { %v3589_v19 = vsel %vm810_vm2, %v3584_v18, 0  ;;  %v3700_v21 = vsel %vm810_vm2, %v3695_v20, 0 }
 0xf56   : > { %21118 = vmatpush3.bf16.xpose.msra.mxu0 %v3589_v19 }
 0xf57   : > { %21129 = vmatprep.subr.bf16.mxu0 %v22525_v1 }
 0xf58   : > { %v3693_v22 = vpop.permute.xlu0 %3692 }
 0xf5d   : > { %21120 = vmatmul.mubr.msk.bf16.vlgmr.msra.gmra.mxu0 %vm810_vm2, %v23438_v13 }
 0xf5e   : > { %21130 = vmatpush3.bf16.xpose.msra.mxu0 %v3700_v21  ;;  %21131 = vmatprep.mubr.msk.bf16.mxu0 %vm22526_vm0, %v22525_v1 }
 0xf5f   : > { %21141 = vmatprep.subr.bf16.mxu0 %v22525_v1 }
 0xf65   : > { %21132 = vmatmul.mubr.msk.bf16.vlgmr.msra.gmra.mxu0 %vm810_vm2, %v3693_v22 }
 0xf66   : > { %21143 = vmatprep.mubr.msk.bf16.mxu0 %vm22526_vm0, %v22525_v1  ;;  %21142 = vmatpush3.bf16.msra.mxu0 %v3807_v2 }
 0xf67   : > { %21153 = vmatprep.subr.bf16.mxu0 %v22525_v1 }
0x101d   : > { %v3625_v25 = vpop.f32.mrf.mxu0 }
0x101e   : > { %v3631_v26 = vsel %vm810_vm2, %v3625_v25, -inf }
0x101f   : > { %3632 = vmax.xlane.f32.xlu0 %v3631_v26  ;;  %v21121_v27 = vpop.f32.mrf.mxu0 }
0x1021   : > { %v3628_v28 = vpop.f32.mrf.mxu0 }
0x1023   : > { %v21122_v31 = vpop.f32.mrf.mxu0 }
0x1025   : > { %v3736_v32 = vpop.f32.mrf.mxu0 }
0x1026   : > { %v3742_v33 = vsel %vm810_vm2, %v3736_v32, -inf }
0x1027   : > { %3743 = vmax.xlane.f32.xlu1 %v3742_v33  ;;  %v21133_v4 = vpop.f32.mrf.mxu0 }
0x1029   : > { %v3739_v37 = vpop.f32.mrf.mxu0 }
0x102b   : > { %v21134_v39 = vpop.f32.mrf.mxu0 }
0x1038   : > { %3754 = vrot.lane.b32.xlu1 %v23438_v13, %s27146_s30 }
0x103c   : > { %3895 = vrot.lane.b32.xlu1 %v23438_v13, %s27147_s16 }
0x10a8   : > { %v3633_v40 = vpop.xlane.xlu0 %3632 }
0x10a9   : > { %v3634_v41 = vsub.f32 %v3625_v25, %v3633_v40 }
0x10ab   : > { %v3635_v44 = vmul.f32 1.442695, %v3634_v41 }
0x10ad   : > { %22362 = vpow2.f32 %v3635_v44 }
0x10b0   : > { %v3744_v45 = vpop.xlane.xlu1 %3743 }
0x10b1   : > { %v3745_v46 = vsub.f32 %v3736_v32, %v3744_v45 }
0x10b3   : > { %v3746_v47 = vmul.f32 1.442695, %v3745_v46 }
0x10b4   : > { %v3755_v54 = vpop.permute.xlu1 %3754 }
0x10b5   : > { %22364 = vpow2.f32 %v3746_v47  ;;  %v3760_v57 = vsel %vm874_vm3, %v3755_v54, 0 }
0x10b8   : > { %v3896_v19 = vpop.permute.xlu1 %3895 }
0x10ba   : > { %v22363_v17 = vpop.eup %22362 }
0x10bb   : > { %v3637_v48 = vsel %vm810_vm2, %v22363_v17, 0.0 }
0x10bc   : > { %3638 = vadd.xlane.f32.xlu0 %v3637_v48 }
0x10c2   : > { %v22365_v49 = vpop.eup %22364 }
0x10c3   : > { %v3748_v7 = vsel %vm810_vm2, %v22365_v49, 0.0 }
0x10c4   : > { %3749 = vadd.xlane.f32.xlu0 %v3748_v7 }
0x10da   : > { %3643 = vrot.lane.b32.xlu0 %v23438_v13, %s27148_s22 }
0x10de   : > { %3897 = vrot.lane.b32.xlu0 %v23438_v13, %s27149_s21 }
0x1145   : > { %v3639_v50 = vpop.xlane.xlu0 %3638 }
0x1146   : > { %22366 = vrcp.f32 %v3639_v50 }
0x114d   : > { %v3750_v30 = vpop.xlane.xlu0 %3749 }
0x114e   : > { %22368 = vrcp.f32 %v3750_v30 }
0x1151   : > { %v3644_v51 = vpop.permute.xlu0 %3643 }
0x1152   : > { %v3649_v52 = vsel %vm874_vm3, %v3644_v51, 0 }
0x1153   : > { %v22367_v53 = vpop.eup %22366  ;;  %21124 = vmatpush3.bf16.msra.mxu1 %v3649_v52 }
0x1154   : > { %21135 = vmatprep.subr.bf16.mxu1 %v22525_v1  ;;  %v3641_v9 = vmul.f32 %v22367_v53, %v22363_v17 }
0x1155   : > { %v3898_v63 = vpop.permute.xlu0 %3897 }
0x1156   : > { %v3642_v56 = vpack.c.bf16 %v3641_v9, %v3641_v9  ;;  %v3903_v15 = vsel %vm810_vm2, %v3898_v63, 0  ;;  %v17339_v9 = vld [vmem:[%s27082_s3 + $0x18] sm:$0xf] }
0x1157   : > { %v4010_v54 = vsel %vm874_vm3, %v17339_v9, 0 }
0x1158   : > { %21126 = vmatmul.mubr.msk.bf16.vlgmr.msra.gmra.mxu1 %vm810_vm2, %v3642_v56 }
0x1159   : > { %21136 = vmatpush3.bf16.msra.mxu1 %v3760_v57  ;;  %21137 = vmatprep.mubr.msk.bf16.mxu1 %vm22526_vm0, %v22525_v1 }
0x115a   : > { %21147 = vmatprep.subr.bf16.mxu1 %v22525_v1 }
0x115b   : > { %v22369_v34 = vpop.eup %22368 }
0x115c   : > { %v3752_v42 = vmul.f32 %v22369_v34, %v22365_v49 }
0x115e   : > { %v3753_v0 = vpack.c.bf16 %v3752_v42, %v3752_v42 }
0x1160   : > { %21138 = vmatmul.mubr.msk.bf16.vlgmr.msra.gmra.mxu1 %vm810_vm2, %v3753_v0 }
0x1161   : > { %21149 = vmatprep.mubr.msk.bf16.mxu1 %vm22526_vm0, %v22525_v1  ;;  %21148 = vmatpush3.bf16.msra.mxu1 %v3853_v43 }
0x1162   : > { %21159 = vmatprep.subr.bf16.mxu1 %v22525_v1 }
0x1218   : > { %v3685_v59 = vpop.f32.mrf.mxu1 }
0x1219   : > { %v3691_v60 = vpack.c.bf16 %v3685_v59, %v3685_v59 }
0x121a   : > { %v21127_v35 = vpop.f32.mrf.mxu1 }
0x121b   : > { %21150 = vmatmul.mubr.msk.bf16.vlgmr.msra.gmra.mxu1 %vm810_vm2, %v3691_v60 }
0x121c   : > { %v3688_v36 = vpop.f32.mrf.mxu1  ;;  %21161 = vmatprep.mubr.msk.bf16.mxu1 %vm22526_vm0, %v22525_v1 }
0x121e   : > { %v21128_v62 = vpop.f32.mrf.mxu1 }
0x1220   : > { %v3796_v3 = vpop.f32.mrf.mxu1 }
0x1221   : > { %v3802_v11 = vpack.c.bf16 %v3796_v3, %v3796_v3 }
0x1222   : > { %v21139_v12 = vpop.f32.mrf.mxu1 }
0x1223   : > { %21144 = vmatmul.mubr.msk.bf16.vlgmr.msra.gmra.mxu0 %vm810_vm2, %v3802_v11  ;;  %v17340_v11 = vld [vmem:[%s27082_s3 + $0x1c] sm:$0xf] }
0x1224   : > { %21154 = vmatpush3.bf16.xpose.msra.mxu0 %v3903_v15  ;;  %v3799_v16 = vpop.f32.mrf.mxu1  ;;  %21155 = vmatprep.mubr.msk.bf16.mxu0 %vm22526_vm0, %v22525_v1  ;;  %v4168_v15 = vsel %vm874_vm3, %v17340_v11, 0 }
0x1225   : > { %21165 = vmatprep.subr.bf16.mxu0 %v22525_v1 }
0x1226   : > { %v21140_v18 = vpop.f32.mrf.mxu1 }
0x122b   : > { %21156 = vmatmul.mubr.msk.bf16.vlgmr.msra.gmra.mxu0 %vm810_vm2, %v3896_v19 }
0x122c   : > { %21167 = vmatprep.mubr.msk.bf16.mxu0 %vm22526_vm0, %v22525_v1  ;;  %21166 = vmatpush3.bf16.msra.mxu0 %v4010_v54 }
0x122d   : > { %21177 = vmatprep.subr.bf16.mxu0 %v22525_v1 }
0x12db   : > { %v3889_v20 = vpop.f32.mrf.mxu1 }
0x12dd   : > { %v21151_v21 = vpop.f32.mrf.mxu1 }
0x12df   : > { %v3892_v22 = vpop.f32.mrf.mxu1 }
0x12e1   : > { %v21152_v25 = vpop.f32.mrf.mxu1 }
0x12e3   : > { %v3843_v26 = vpop.f32.mrf.mxu0 }
0x12e4   : > { %v23500_v27 = vadd.f32 %v3889_v20, %v3843_v26 }
0x12e5   : > { %v21145_v28 = vpop.f32.mrf.mxu0 }
0x12e7   : > { %v3846_v31 = vpop.f32.mrf.mxu0 }
0x12e9   : > { %v21146_v32 = vpop.f32.mrf.mxu0 }
0x12eb   : > { %v3939_v33 = vpop.f32.mrf.mxu0 }
0x12ec   : > { %v3945_v4 = vsel %vm810_vm2, %v3939_v33, -inf }
0x12ed   : > { %3946 = vmax.xlane.f32.xlu0 %v3945_v4  ;;  %v21157_v37 = vpop.f32.mrf.mxu0  ;;  %v17653_v4 = vld [vmem:[%s27142_s4 + $0x1] ss:$0 sm:$0xff] }
0x12ef   : > { %v3942_v39 = vpop.f32.mrf.mxu0 }
0x12f1   : > { %v21158_v40 = vpop.f32.mrf.mxu0 }
0x1303   : > { %3957 = vrot.lane.b32.xlu0 %v23438_v13, %s27150_s27 }
0x1307   : > { %4053 = vrot.lane.b32.xlu0 %v23438_v13, %s27151_s15 }
0x1376   : > { %v3947_v41 = vpop.xlane.xlu0 %3946 }
0x1377   : > { %v3948_v44 = vsub.f32 %v3939_v33, %v3947_v41 }
0x1379   : > { %v3949_v45 = vmul.f32 1.442695, %v3948_v44 }
0x137a   : > { %v3958_v46 = vpop.permute.xlu0 %3957 }
0x137b   : > { %22370 = vpow2.f32 %v3949_v45  ;;  %v3963_v47 = vsel %vm874_vm3, %v3958_v46, 0 }
0x137c   : > { %21160 = vmatpush3.bf16.msra.mxu1 %v3963_v47 }
0x137d   : > { %21171 = vmatprep.subr.bf16.mxu1 %v22525_v1 }
0x137e   : > { %v4054_v53 = vpop.permute.xlu0 %4053 }
0x1388   : > { %v22371_v17 = vpop.eup %22370 }
0x1389   : > { %v3951_v48 = vsel %vm810_vm2, %v22371_v17, 0.0 }
0x138a   : > { %3952 = vadd.xlane.f32.xlu1 %v3951_v48 }
0x139b   : > { %4055 = vrot.lane.b32.xlu1 %v23438_v13, %s27152_s23 }
0x1413   : > { %v3953_v49 = vpop.xlane.xlu1 %3952 }
0x1414   : > { %22372 = vrcp.f32 %v3953_v49 }
0x1417   : > { %v4056_v30 = vpop.permute.xlu1 %4055 }
0x1418   : > { %v4061_v52 = vsel %vm810_vm2, %v4056_v30, 0  ;;  %v17360_v30 = vld [vmem:[%s27086_s7 + $0x180] sm:$0xff] }
0x1421   : > { %v22373_v7 = vpop.eup %22372 }
0x1422   : > { %v3955_v50 = vmul.f32 %v22373_v7, %v22371_v17 }
0x1424   : > { %v3956_v51 = vpack.c.bf16 %v3955_v50, %v3955_v50 }
0x1426   : > { %21162 = vmatmul.mubr.msk.bf16.vlgmr.msra.gmra.mxu1 %vm810_vm2, %v3956_v51  ;;  %v17368_v51 = vld [vmem:[%s27086_s7 + $0x1c0] sm:$0xff] }
0x1427   : > { %21172 = vmatpush3.bf16.xpose.msra.mxu1 %v4061_v52  ;;  %21173 = vmatprep.mubr.msk.bf16.mxu1 %vm22526_vm0, %v22525_v1  ;;  %v17673_v52 = vcombine.high %v17360_v30, %v17368_v51  ;;  %v17672_v9 = vcombine.low %v17360_v30, %v17368_v51 }
0x1428   : > { %21183 = vmatprep.subr.bf16.mxu1 %v22525_v1 }
0x142e   : > { %21174 = vmatmul.mubr.msk.bf16.vlgmr.msra.gmra.mxu1 %vm810_vm2, %v4054_v53  ;;  %v17369_v53 = vld [vmem:[%s27086_s7 + $0x1c8] sm:$0xff] }
0x142f   : > { %21185 = vmatprep.mubr.msk.bf16.mxu1 %vm22526_vm0, %v22525_v1  ;;  %21184 = vmatpush3.bf16.msra.mxu1 %v4168_v15 }
0x14e6   : > { %v3999_v56 = vpop.f32.mrf.mxu1 }
0x14e7   : > { %v4005_v57 = vpack.c.bf16 %v3999_v56, %v3999_v56 }
0x14e8   : > { %v21163_v34 = vpop.f32.mrf.mxu1 }
0x14e9   : > { %21168 = vmatmul.mubr.msk.bf16.vlgmr.msra.gmra.mxu0 %vm810_vm2, %v4005_v57  ;;  %v17344_v57 = vld [vmem:[%s27086_s7 + $0x100] sm:$0xff] }
0x14ea   : > { %v4002_v42 = vpop.f32.mrf.mxu1  ;;  %21179 = vmatprep.mubr.msk.bf16.mxu0 %vm22526_vm0, %v22525_v1  ;;  %v17352_v34 = vld [vmem:[%s27086_s7 + $0x140] sm:$0xff] }
0x14eb   : > { %v17345_v42 = vld [vmem:[%s27086_s7 + $0x108] sm:$0xff] }
0x14ec   : > { %v21164_v0 = vpop.f32.mrf.mxu1 }
0x14ed   : > { %v17657_v0 = vcombine.high %v17344_v57, %v17352_v34 }
0x14ee   : > { %v4097_v55 = vpop.f32.mrf.mxu1 }
0x14ef   : > { %v4103_v43 = vsel %vm810_vm2, %v4097_v55, -inf }
0x14f0   : > { %4104 = vmax.xlane.f32.xlu1 %v4103_v43  ;;  %v21175_v58 = vpop.f32.mrf.mxu1  ;;  %v17656_v43 = vcombine.low %v17344_v57, %v17352_v34 }
0x14f2   : > { %v4100_v2 = vpop.f32.mrf.mxu1 }
0x14f4   : > { %v21176_v59 = vpop.f32.mrf.mxu1 }
0x14f5   : > { %v17362_v59 = vld [vmem:[%s27086_s7 + $0x190] sm:$0xff] }
0x1579   : > { %v4105_v60 = vpop.xlane.xlu1 %4104 }
0x157a   : > { %v4106_v35 = vsub.f32 %v4097_v55, %v4105_v60  ;;  %v17353_v55 = vld [vmem:[%s27086_s7 + $0x148] sm:$0xff]  ;;  %v17370_v60 = vld [vmem:[%s27086_s7 + $0x1d0] sm:$0xff] }
0x157b   : > { %v17658_v58 = vcombine.low %v17345_v42, %v17353_v55  ;;  %v17659_v2 = vcombine.high %v17345_v42, %v17353_v55  ;;  %v17350_v42 = vld [vmem:[%s27086_s7 + $0x130] sm:$0xff]  ;;  %v17351_v55 = vld [vmem:[%s27086_s7 + $0x138] sm:$0xff] }
0x157c   : > { %v4107_v36 = vmul.f32 1.442695, %v4106_v35  ;;  %v17363_v35 = vld [vmem:[%s27086_s7 + $0x198] sm:$0xff] }
0x157e   : > { %22374 = vpow2.f32 %v4107_v36  ;;  %v17676_v36 = vcombine.low %v17362_v59, %v17370_v60 }
0x158b   : > { %v22375_v62 = vpop.eup %22374 }
0x158c   : > { %v4109_v63 = vsel %vm810_vm2, %v22375_v62, 0.0 }
0x158d   : > { %4110 = vadd.xlane.f32.xlu0 %v4109_v63  ;;  %v17371_v63 = vld [vmem:[%s27086_s7 + $0x1d8] sm:$0xff] }
0x158e   : > { %v17679_v11 = vcombine.high %v17363_v35, %v17371_v63 }
0x15a3   : > { %4115 = vrot.lane.b32.xlu0 %v23438_v13, %s27153_s14  ;;  %s27155_s14 = sld [smem:[#allocation15_spill]] }
0x15a9   : > { %v4046_v3 = vpop.f32.mrf.mxu0 }
0x15aa   : > { %v4052_v12 = vadd.f32 %v4046_v3, %v23500_v27  ;;  %v17678_v3 = vcombine.low %v17363_v35, %v17371_v63  ;;  %v21695_v63 = vld [vmem:[%s27088_s9 + $0x4f8] sm:$0xff]  }
0x15ab   : > { %v21169_v16 = vpop.f32.mrf.mxu0 }
0x15ad   : > { %v4049_v18 = vpop.f32.mrf.mxu0 }
0x15af   : > { %v21170_v19 = vpop.f32.mrf.mxu0 }
0x15b0   : > { %v17654_v19 = vld [vmem:[%s27084_s5 + $0x1] ss:$0 sm:$0xff] }
0x1616   : > { %v4111_v20 = vpop.xlane.xlu0 %4110 }
0x1617   : > { %22376 = vrcp.f32 %v4111_v20 }
0x161a   : > { %v4116_v21 = vpop.permute.xlu0 %4115 }
0x161b   : > { %v4121_v22 = vsel %vm874_vm3, %v4116_v21, 0  ;;  %v17655_v21 = vld [vmem:[%s27085_s6 + $0x1] ss:$0 sm:$0xff] }
0x161c   : > { %21178 = vmatpush3.bf16.msra.mxu0 %v4121_v22 }
0x161d   : > { %4504 = vmatprep.subr.bf16.mxu0 %v17673_v52  ;;  %v17374_v52 = vld [vmem:[%s27086_s7 + $0x1f0] sm:$0xff] }
0x1624   : > { %v22377_v13 = vpop.eup %22376 }
0x1625   : > { %v4113_v25 = vmul.f32 %v22377_v13, %v22375_v62  ;;  %v17677_v62 = vcombine.high %v17362_v59, %v17370_v60  ;;  %v17346_v13 = vld [vmem:[%s27086_s7 + $0x110] sm:$0xff] }
0x1627   : > { %v4114_v26 = vpack.c.bf16 %v4113_v25, %v4113_v25  ;;  %v17354_v25 = vld [vmem:[%s27086_s7 + $0x150] sm:$0xff] }
0x1629   : > { %21180 = vmatmul.mubr.msk.bf16.vlgmr.msra.gmra.mxu0 %vm810_vm2, %v4114_v26  ;;  %v17347_v26 = vld [vmem:[%s27086_s7 + $0x118] sm:$0xff] }
0x162a   : > { %4524 = vmatprep.mubr.bf16.mxu0 %v22538_v38  ;;  %4505 = vmatpush1.bf16.msra.mxu0 %v17672_v9  ;;  %v17375_v9 = vld [vmem:[%s27086_s7 + $0x1f8] sm:$0xff] }
0x162b   : > { %4506 = vmatprep.subr.bf16.mxu0 %v17657_v0  ;;  %v17358_v0 = vld [vmem:[%s27086_s7 + $0x170] sm:$0xff] }
0x162c   : > { %v17669_v59 = vcombine.high %v17350_v42, %v17358_v0  ;;  %v17668_v35 = vcombine.low %v17350_v42, %v17358_v0 }
0x162e   : > { %4507 = vmatpush1.bf16.msra.mxu0 %v17656_v43  ;;  %v17359_v43 = vld [vmem:[%s27086_s7 + $0x178] sm:$0xff] }
0x162f   : > { %4586 = vmatprep.subr.bf16.mxu0 %v17677_v62  ;;  %v17671_v60 = vcombine.high %v17351_v55, %v17359_v43  ;;  %v21694_v62 = vld [vmem:[%s27088_s9 + $0x478] sm:$0xff]  }
0x16e9   : > { %v4157_v27 = vpop.f32.mrf.mxu0 }
0x16ea   : > { %v4163_v28 = vpack.c.bf16 %v4157_v27, %v4157_v27  ;;  %v17355_v27 = vld [vmem:[%s27086_s7 + $0x158] sm:$0xff] }
0x16eb   : > { %v21181_v31 = vpop.f32.mrf.mxu0 }
0x16ec   : > { %21186 = vmatmul.mubr.msk.bf16.vlgmr.msra.gmra.mxu1 %vm810_vm2, %v4163_v28 }
0x16ed   : > { %v4160_v32 = vpop.f32.mrf.mxu0  ;;  %4565 = vmatprep.mubr.bf16.mxu1 %v22538_v38 }
0x16ee   : > { %v17661_v32 = vcombine.high %v17346_v13, %v17354_v25 }
0x16ef   : > { %v21182_v33 = vpop.f32.mrf.mxu0 }
0x16f0   : > { %v17663_v33 = vcombine.high %v17347_v26, %v17355_v27 }
0x17ac   : > { %v4204_v37 = vpop.f32.mrf.mxu1 }
0x17ad   : > { %v4210_v39 = vadd.f32 %v4204_v37, %v4052_v12  ;;  %v17372_v37 = vld [vmem:[%s27086_s7 + $0x1e0] sm:$0xff] }
0x17ae   : > { %v21187_v40 = vpop.f32.mrf.mxu1 }
0x17af   : > { %v4217_v41 = vadd.f32 %v17653_v4, %v4210_v39  ;;  %v17364_v4 = vld [vmem:[%s27086_s7 + $0x1a0] sm:$0xff]  ;;  %v17365_v39 = vld [vmem:[%s27086_s7 + $0x1a8] sm:$0xff] }
0x17b0   : > { %v4207_v44 = vpop.f32.mrf.mxu1  ;;  %v17373_v40 = vld [vmem:[%s27086_s7 + $0x1e8] sm:$0xff] }
0x17b1   : > { %v4218_v45 = vadd.f32 %v4217_v41, %v23428_v61  ;;  %v17361_v61 = vld [vmem:[%s27086_s7 + $0x188] sm:$0xff]  ;;  %v17660_v41 = vcombine.low %v17346_v13, %v17354_v25  ;;  %v17662_v44 = vcombine.low %v17347_v26, %v17355_v27  ;;  %v21706_v13 = vld [vmem:[%s27088_s9 + $0x460] sm:$0xff]  }
0x17b2   : > { %v21188_v46 = vpop.f32.mrf.mxu1  ;;  %v17674_v54 = vcombine.low %v17361_v61, %v17369_v53  ;;  %v17675_v56 = vcombine.high %v17361_v61, %v17369_v53  ;;  %v17366_v61 = vld [vmem:[%s27086_s7 + $0x1b0] sm:$0xff]  ;;  %v17367_v53 = vld [vmem:[%s27086_s7 + $0x1b8] sm:$0xff]  ;;  %v21707_v25 = vld [vmem:[%s27088_s9 + $0x4e0] sm:$0xff]  }
0x17b3   : > { %v4219_v47 = vsel %vm762_vm1, %v4218_v45, 0.0  ;;  %v17683_v46 = vcombine.high %v17365_v39, %v17373_v40  ;;  %v17685_v57 = vcombine.high %v17366_v61, %v17374_v52  ;;  %v17687_v34 = vcombine.high %v17367_v53, %v17375_v9  ;;  %v21708_v26 = vld [vmem:[%s27088_s9 + $0x420] sm:$0xff]  }
0x17b4   : > { %4220 = vadd.xlane.f32.xlu1 %v4219_v47  ;;  %4545 = vmatprep.subr.bf16.mxu1 %v17675_v56  ;;  %v17348_v47 = vld [vmem:[%s27086_s7 + $0x120] sm:$0xff] }
0x17b5   : > { %4546 = vmatpush1.bf16.msra.mxu1 %v17674_v54  ;;  %v21709_v27 = vld [vmem:[%s27088_s9 + $0x4a0] sm:$0xff]  }
0x17b6   : > { %4547 = vmatprep.subr.bf16.mxu1 %v17659_v2  ;;  %v17686_v2 = vcombine.low %v17367_v53, %v17375_v9 }
0x17b9   : > { %4548 = vmatpush1.bf16.msra.mxu1 %v17658_v58  ;;  %v17684_v58 = vcombine.low %v17366_v61, %v17374_v52 }
0x17ba   : > { %4627 = vmatprep.subr.bf16.mxu1 %v17679_v11  ;;  %v21697_v11 = vld [vmem:[%s27088_s9 + $0x4b8] sm:$0xff]  }
0x183d   : > { %v4221_v17 = vpop.xlane.xlu1 %4220 }
0x183e   : > { %v4222_v48 = vmul.f32 0.03125, %v4221_v17  ;;  %v17356_v17 = vld [vmem:[%s27086_s7 + $0x160] sm:$0xff] }
0x183f   : > { %v17665_v30 = vcombine.high %v17348_v47, %v17356_v17  ;;  %v17664_v54 = vcombine.low %v17348_v47, %v17356_v17  ;;  %v21721_v47 = vld [vmem:[%s27088_s9 + $0x488] sm:$0xff]   ;;  %v21722_v17 = vld [vmem:[%s27088_s9 + $0x440] sm:$0xff]  }
0x1840   : > { %v4223_v49 = vsub.f32 %v4218_v45, %v4222_v48  ;;  %v17681_v45 = vcombine.high %v17364_v4, %v17372_v37  ;;  %v17349_v48 = vld [vmem:[%s27086_s7 + $0x128] sm:$0xff] }
0x1842   : > { %v4224_v7 = vmul.f32 %v4223_v49, %v4223_v49 }
0x1844   : > { %v4225_v50 = vsel %vm762_vm1, %v4224_v7, 0.0  ;;  %v17680_v7 = vcombine.low %v17364_v4, %v17372_v37  ;;  %v21713_v4 = vld [vmem:[%s27088_s9 + $0x498] sm:$0xff]   ;;  %v21714_v37 = vld [vmem:[%s27088_s9 + $0x450] sm:$0xff]  }
0x1845   : > { %4226 = vadd.xlane.f32.xlu1 %v4225_v50  ;;  %v17682_v50 = vcombine.low %v17365_v39, %v17373_v40  ;;  %v21715_v39 = vld [vmem:[%s27088_s9 + $0x4d0] sm:$0xff]  }
0x1846   : > { %v21716_v40 = vld [vmem:[%s27088_s9 + $0x410] sm:$0xff]  }
0x18ce   : > { %v4227_v12 = vpop.xlane.xlu1 %4226 }
0x18cf   : > { %v4228_v15 = vmul.f32 0.03125, %v4227_v12  ;;  %v21698_v12 = vld [vmem:[%s27088_s9 + $0x470] sm:$0xff]  }
0x18d1   : > { %v4229_v16 = vadd.f32 1e-05, %v4228_v15  ;;  %v21699_v15 = vld [vmem:[%s27088_s9 + $0x4f0] sm:$0xff]  }
0x18d3   : > { %22378 = vrsqrt.f32 %v4229_v16  ;;  %v21700_v16 = vld [vmem:[%s27088_s9 + $0x430] sm:$0xff]  }
0x18e0   : > { %v22379_v18 = vpop.eup %22378 }
0x18e1   : > { %v4231_v20 = vmul.f32 %v22379_v18, %v4223_v49  ;;  %v17357_v49 = vld [vmem:[%s27086_s7 + $0x168] sm:$0xff]  ;;  %v21701_v18 = vld [vmem:[%s27088_s9 + $0x4b0] sm:$0xff]  }
0x18e2   : > { %v17667_v51 = vcombine.high %v17349_v48, %v17357_v49  ;;  %v17666_v56 = vcombine.low %v17349_v48, %v17357_v49  ;;  %v21723_v48 = vld [vmem:[%s27088_s9 + $0x4c0] sm:$0xff]  }
0x18e3   : > { %v4238_v22 = vmul.f32 %v17654_v19, %v4231_v20  ;;  %v21702_v19 = vld [vmem:[%s27088_s9 + $0x468] sm:$0xff]   ;;  %v21724_v49 = vld [vmem:[%s27088_s9 + $0x400] sm:$0xff]  }
0x18e4   : > { %v21703_v20 = vld [vmem:[%s27088_s9 + $0x4e8] sm:$0xff]  }
0x18e5   : > { %v23602_v28 = vadd.f32 %v17655_v21, %v4238_v22  ;;  %v21704_v21 = vld [vmem:[%s27088_s9 + $0x428] sm:$0xff]  }
0x18e6   : > { %v21705_v22 = vld [vmem:[%s27088_s9 + $0x4a8] sm:$0xff]  }
0x18e7   : > { %v23606_v31 = vpack.c.bf16 %v23602_v28, %v23602_v28 }
0x18e9   : > { %17688 = vmatmul.mubr.msk.bf16.vlgmr.msra.gmra.mxu0 %vm762_vm1, %v23606_v31  ;;  %17689 = vmatmul.mubr.msk.bf16.vlgmr.msra.gmra.mxu1 %vm762_vm1, %v23606_v31 }
0x18ea   : > { %4587 = vmatpush1.bf16.msra.mxu0 %v17676_v36  ;;  %4628 = vmatpush1.bf16.msra.mxu1 %v17678_v3  ;;  %v17670_v36 = vcombine.low %v17351_v55, %v17359_v43  ;;  %v21696_v3 = vld [vmem:[%s27088_s9 + $0x438] sm:$0xff]  }
0x18eb   : > { %4588 = vmatprep.subr.bf16.mxu0 %v17661_v32  ;;  %4629 = vmatprep.subr.bf16.mxu1 %v17663_v33  ;;  %v21711_v32 = vld [vmem:[%s27088_s9 + $0x4d8] sm:$0xff]  }
0x18ec   : > { %4606 = vmatprep.mubr.bf16.mxu0 %v22538_v38  ;;  %4647 = vmatprep.mubr.bf16.mxu1 %v22538_v38  ;;  %v21712_v33 = vld [vmem:[%s27088_s9 + $0x418] sm:$0xff]  }
0x18ee   : > { %4589 = vmatpush1.bf16.msra.mxu0 %v17660_v41  ;;  %4630 = vmatpush1.bf16.msra.mxu1 %v17662_v44  ;;  %v21717_v41 = vld [vmem:[%s27088_s9 + $0x490] sm:$0xff]   ;;  %v21718_v44 = vld [vmem:[%s27088_s9 + $0x448] sm:$0xff]  }
0x18ef   : > { %4668 = vmatprep.subr.bf16.mxu0 %v17681_v45  ;;  %4709 = vmatprep.subr.bf16.mxu1 %v17683_v46  ;;  %v21719_v45 = vld [vmem:[%s27088_s9 + $0x4c8] sm:$0xff]  }
0x18f0   : > { %v21720_v46 = vld [vmem:[%s27088_s9 + $0x408] sm:$0xff]  }
0x18f1   : > { %17690 = vmatmul.mubr.msk.bf16.vlgmr.msra.gmra.mxu0 %vm762_vm1, %v23606_v31  ;;  %17691 = vmatmul.mubr.msk.bf16.vlgmr.msra.gmra.mxu1 %vm762_vm1, %v23606_v31 }
0x18f2   : > { %4669 = vmatpush1.bf16.msra.mxu0 %v17680_v7  ;;  %4710 = vmatpush1.bf16.msra.mxu1 %v17682_v50  ;;  %v21725_v7 = vld [vmem:[%s27088_s9 + $0x480] sm:$0xff]   ;;  %v21726_v50 = vld [vmem:[%s27088_s9 + $0x578] sm:$0xff]  }
0x18f3   : > { %4670 = vmatprep.subr.bf16.mxu0 %v17665_v30  ;;  %4711 = vmatprep.subr.bf16.mxu1 %v17667_v51  ;;  %v21727_v30 = vld [vmem:[%s27088_s9 + $0x5f8] sm:$0xff]   ;;  %v23783_v51 = vld [vmem:[%s27087_s8 + $0x10] sm:$0xff] }
0x18f4   : > { %4688 = vmatprep.mubr.bf16.mxu0 %v22538_v38  ;;  %4729 = vmatprep.mubr.bf16.mxu1 %v22538_v38  ;;  %v4252_v61 = vrot.slane %v23783_v51, %v23031_v5  ;;  %v4260_v52 = vrot.slane %v23783_v51, %v23034_v6  ;;  %v4256_v53 = vrot.slane %v23783_v51, %v23042_v8 }
0x18f5   : > { %v4264_v9 = vrot.slane %v23783_v51, %v23045_v10 }
0x18f6   : > { %4671 = vmatpush1.bf16.msra.mxu0 %v17664_v54  ;;  %4712 = vmatpush1.bf16.msra.mxu1 %v17666_v56 }
0x18f7   : > { %4750 = vmatprep.subr.bf16.mxu0 %v17685_v57  ;;  %4791 = vmatprep.subr.bf16.mxu1 %v17687_v34 }
0x18f9   : > { %17692 = vmatmul.mubr.msk.bf16.vlgmr.msra.gmra.mxu0 %vm762_vm1, %v23606_v31  ;;  %17693 = vmatmul.mubr.msk.bf16.vlgmr.msra.gmra.mxu1 %vm762_vm1, %v23606_v31 }
0x18fa   : > { %4751 = vmatpush1.bf16.msra.mxu0 %v17684_v58  ;;  %4792 = vmatpush1.bf16.msra.mxu1 %v17686_v2 }
0x18fb   : > { %4752 = vmatprep.subr.bf16.mxu0 %v17669_v59  ;;  %4793 = vmatprep.subr.bf16.mxu1 %v17671_v60 }
0x18fc   : > { %4770 = vmatprep.mubr.bf16.mxu0 %v22538_v38  ;;  %4811 = vmatprep.mubr.bf16.mxu1 %v22538_v38 }
0x18fe   : > { %4753 = vmatpush1.bf16.msra.mxu0 %v17668_v35  ;;  %4794 = vmatpush1.bf16.msra.mxu1 %v17670_v36 }
0x18ff   : > { %20041 = vmatprep.subr.bf16.mxu0 %v21694_v62  ;;  %20063 = vmatprep.subr.bf16.mxu1 %v21695_v63 }
0x1901   : > { %17694 = vmatmul.mubr.msk.bf16.vlgmr.msra.gmra.mxu0 %vm762_vm1, %v23606_v31  ;;  %17695 = vmatmul.mubr.msk.bf16.vlgmr.msra.gmra.mxu1 %vm762_vm1, %v23606_v31  ;;  %v21710_v31 = vld [vmem:[%s27088_s9 + $0x458] sm:$0xff]  }
0x1902   : > { %20042 = vmatpush3.bf16.msra.mxu0 %v21696_v3  ;;  %20064 = vmatpush3.bf16.msra.mxu1 %v21697_v11 }
0x1903   : > { %20043 = vmatprep.subr.bf16.mxu0 %v21698_v12  ;;  %20065 = vmatprep.subr.bf16.mxu1 %v21699_v15  ;;  %v4272_v12 = vrot.slane %v23783_v51, %v23056_v23  ;;  %v4280_v15 = vrot.slane %v23783_v51, %v23059_v24 }
0x1906   : > { %20044 = vmatpush3.bf16.msra.mxu0 %v21700_v16  ;;  %20066 = vmatpush3.bf16.msra.mxu1 %v21701_v18  ;;  %v21728_v16 = vld [vmem:[%s27088_s9 + $0x538] sm:$0xff]  }
0x1907   : > { %20045 = vmatprep.subr.bf16.mxu0 %v21702_v19  ;;  %20067 = vmatprep.subr.bf16.mxu1 %v21703_v20  ;;  %v21729_v18 = vld [vmem:[%s27088_s9 + $0x5b8] sm:$0xff]  }
0x190a   : > { %20046 = vmatpush3.bf16.msra.mxu0 %v21704_v21  ;;  %20068 = vmatpush3.bf16.msra.mxu1 %v21705_v22 }
0x190b   : > { %20047 = vmatprep.subr.bf16.mxu0 %v21706_v13  ;;  %20069 = vmatprep.subr.bf16.mxu1 %v21707_v25  ;;  %v21730_v13 = vld [vmem:[%s27088_s9 + $0x570] sm:$0xff]  }
0x190c   : > { %v21731_v25 = vld [vmem:[%s27088_s9 + $0x5f0] sm:$0xff]  }
0x190e   : > { %20048 = vmatpush3.bf16.msra.mxu0 %v21708_v26  ;;  %20070 = vmatpush3.bf16.msra.mxu1 %v21709_v27 }
0x190f   : > { %20049 = vmatprep.subr.bf16.mxu0 %v21710_v31  ;;  %20071 = vmatprep.subr.bf16.mxu1 %v21711_v32 }
0x1912   : > { %20050 = vmatpush3.bf16.msra.mxu0 %v21712_v33  ;;  %20072 = vmatpush3.bf16.msra.mxu1 %v21713_v4  ;;  %v21732_v33 = vld [vmem:[%s27088_s9 + $0x530] sm:$0xff]  }
0x1913   : > { %20051 = vmatprep.subr.bf16.mxu0 %v21714_v37  ;;  %20073 = vmatprep.subr.bf16.mxu1 %v21715_v39  ;;  %v21733_v4 = vld [vmem:[%s27088_s9 + $0x5b0] sm:$0xff]  }
0x1916   : > { %20052 = vmatpush3.bf16.msra.mxu0 %v21716_v40  ;;  %20074 = vmatpush3.bf16.msra.mxu1 %v21717_v41  ;;  %v21734_v40 = vld [vmem:[%s27088_s9 + $0x568] sm:$0xff]  }
0x1917   : > { %20053 = vmatprep.subr.bf16.mxu0 %v21718_v44  ;;  %20075 = vmatprep.subr.bf16.mxu1 %v21719_v45  ;;  %v21735_v41 = vld [vmem:[%s27088_s9 + $0x5e8] sm:$0xff]  }
0x191a   : > { %20054 = vmatpush3.bf16.msra.mxu0 %v21720_v46  ;;  %20076 = vmatpush3.bf16.msra.mxu1 %v21721_v47 }
0x191b   : > { %20055 = vmatprep.subr.bf16.mxu0 %v21722_v17  ;;  %20077 = vmatprep.subr.bf16.mxu1 %v21723_v48 }
0x191e   : > { %20056 = vmatpush3.bf16.msra.mxu0 %v21724_v49  ;;  %20078 = vmatpush3.bf16.msra.mxu1 %v21725_v7  ;;  %v21736_v49 = vld [vmem:[%s27088_s9 + $0x528] sm:$0xff]  }
0x191f   : > { %20085 = vmatprep.subr.bf16.mxu0 %v21726_v50  ;;  %20107 = vmatprep.subr.bf16.mxu1 %v21727_v30  ;;  %v21737_v7 = vld [vmem:[%s27088_s9 + $0x5a8] sm:$0xff]  }
0x19a9   : > { %v4526_v54 = vpop.f32.mrf.mxu0  ;;  %v4567_v56 = vpop.f32.mrf.mxu1 }
0x19aa   : > { %v4527_v57 = vadd.f32 %v4526_v54, %v4252_v61  ;;  %v4568_v34 = vadd.f32 %v4567_v56, %v4260_v52  ;;  %v21738_v61 = vld [vmem:[%s27088_s9 + $0x560] sm:$0xff]  }
0x19ab   : > { %v4528_v42 = vpop.f32.mrf.mxu0  ;;  %v4569_v0 = vpop.f32.mrf.mxu1  ;;  %v21739_v52 = vld [vmem:[%s27088_s9 + $0x5e0] sm:$0xff]  }
0x19ac   : > { %v4529_v55 = vadd.f32 %v4528_v42, %v4256_v53  ;;  %v4570_v43 = vadd.f32 %v4569_v0, %v4264_v9  ;;  %v4820_v58 = vmax.f32 %v4527_v57, 0.0  ;;  %v4822_v2 = vmax.f32 %v4568_v34, 0.0  ;;  %v21740_v54 = vld [vmem:[%s27088_s9 + $0x520] sm:$0xff]   ;;  %v23850_v57 = vld [vmem:[%s27087_s8 + $0x18] sm:$0xff] }
0x19ad   : > { %v4530_v59 = vpop.f32.mrf.mxu0  ;;  %v4571_v60 = vpop.f32.mrf.mxu1  ;;  %v21741_v56 = vld [vmem:[%s27088_s9 + $0x5a0] sm:$0xff]   ;;  %v21742_v0 = vld [vmem:[%s27088_s9 + $0x558] sm:$0xff]  }
0x19ae   : > { %v4821_v35 = vmax.f32 %v4529_v55, 0.0  ;;  %v4823_v36 = vmax.f32 %v4570_v43, 0.0  ;;  %v4836_v19 = vpack.c.bf16 %v4820_v58, %v4820_v58  ;;  %v4838_v20 = vpack.c.bf16 %v4822_v2, %v4822_v2  ;;  %v21743_v55 = vld [vmem:[%s27088_s9 + $0x5d8] sm:$0xff]  }
0x19af   : > { %v4531_v62 = vpop.f32.mrf.mxu0  ;;  %v4572_v63 = vpop.f32.mrf.mxu1  ;;  %v4308_v43 = vrot.slane %v23850_v57, %v23110_v14  ;;  %v21744_v59 = vld [vmem:[%s27088_s9 + $0x518] sm:$0xff]  }
0x19b0   : > { %v4837_v3 = vpack.c.bf16 %v4821_v35, %v4821_v35  ;;  %v4839_v11 = vpack.c.bf16 %v4823_v36, %v4823_v36  ;;  %v21745_v60 = vld [vmem:[%s27088_s9 + $0x598] sm:$0xff]   ;;  %v21746_v62 = vld [vmem:[%s27088_s9 + $0x550] sm:$0xff]  }
0x19b1   : > { %v23803_v21 = vpop.f32.mrf.mxu0  ;;  %v23805_v22 = vpop.f32.mrf.mxu1  ;;  %v21747_v63 = vld [vmem:[%s27088_s9 + $0x5d0] sm:$0xff]  }
0x19b2   : > { %5658 = vmatprep.mubr.bf16.mxu0 %v4837_v3  ;;  %5698 = vmatprep.mubr.bf16.mxu1 %v4839_v11 }
0x19b3   : > { %v4610_v26 = vpop.f32.mrf.mxu0  ;;  %v4651_v27 = vpop.f32.mrf.mxu1  ;;  %5659 = vmatmul.mubr.bf16.vlgmr.msra.gmra.mxu0 %v4836_v19  ;;  %5699 = vmatmul.mubr.bf16.vlgmr.msra.gmra.mxu1 %v4838_v20  ;;  %v4276_v19 = vrot.slane %v23783_v51, %v23110_v14 }
0x19b4   : > { %v4611_v31 = vadd.f32 %v4610_v26, %v4272_v12  ;;  %v4652_v32 = vadd.f32 %v4651_v27, %v4280_v15  ;;  %20086 = vmatpush3.bf16.msra.mxu0 %v21728_v16  ;;  %20108 = vmatpush3.bf16.msra.mxu1 %v21729_v18  ;;  %v21748_v15 = vld [vmem:[%s27088_s9 + $0x510] sm:$0xff]   ;;  %v4268_v18 = vrot.slane %v23783_v51, %v23138_v29  ;;  %v21751_v26 = vld [vmem:[%s27088_s9 + $0x5c8] sm:$0xff]  }
0x19b5   : > { %v4612_v37 = vpop.f32.mrf.mxu0  ;;  %v4653_v39 = vpop.f32.mrf.mxu1  ;;  %20087 = vmatprep.subr.bf16.mxu0 %v21730_v13  ;;  %20109 = vmatprep.subr.bf16.mxu1 %v21731_v25  ;;  %v21749_v16 = vld [vmem:[%s27088_s9 + $0x590] sm:$0xff]   ;;  %v21750_v25 = vld [vmem:[%s27088_s9 + $0x548] sm:$0xff]   ;;  %v4288_v27 = vrot.slane %v23850_v57, %v23042_v8 }
0x19b6   : > { %v4825_v44 = vmax.f32 %v4611_v31, 0.0  ;;  %v4827_v45 = vmax.f32 %v4652_v32, 0.0  ;;  %v4296_v31 = vrot.slane %v23850_v57, %v23045_v10  ;;  %v4609_v37 = vadd.f32 %v23803_v21, %v4268_v18  ;;  %v21756_v21 = vld [vmem:[%s27088_s9 + $0x500] sm:$0xff]   ;;  %v21776_v18 = vld [vmem:[%s27088_s9 + $0x618] sm:$0xff]  }
0x19b7   : > { %v4613_v46 = vpop.f32.mrf.mxu0  ;;  %v4654_v47 = vpop.f32.mrf.mxu1  ;;  %v4650_v39 = vadd.f32 %v23805_v22, %v4276_v19  ;;  %v21757_v22 = vld [vmem:[%s27088_s9 + $0x580] sm:$0xff]   ;;  %v21777_v19 = vld [vmem:[%s27088_s9 + $0x698] sm:$0xff]  }
0x19b8   : > { %v4841_v17 = vpack.c.bf16 %v4825_v44, %v4825_v44  ;;  %v4843_v48 = vpack.c.bf16 %v4827_v45, %v4827_v45  ;;  %20088 = vmatpush3.bf16.msra.mxu0 %v21732_v33  ;;  %20110 = vmatpush3.bf16.msra.mxu1 %v21733_v4  ;;  %v21752_v33 = vld [vmem:[%s27088_s9 + $0x508] sm:$0xff]   ;;  %v4824_v46 = vmax.f32 %v4609_v37, 0.0 }
0x19b9   : > { %v23831_v50 = vpop.f32.mrf.mxu0  ;;  %v23833_v30 = vpop.f32.mrf.mxu1  ;;  %20089 = vmatprep.subr.bf16.mxu0 %v21734_v40  ;;  %20111 = vmatprep.subr.bf16.mxu1 %v21735_v41  ;;  %v21753_v4 = vld [vmem:[%s27088_s9 + $0x588] sm:$0xff]   ;;  %v21754_v40 = vld [vmem:[%s27088_s9 + $0x540] sm:$0xff]   ;;  %v4826_v47 = vmax.f32 %v4650_v39, 0.0 }
0x19ba   : > { %5738 = vmatprep.mubr.bf16.mxu0 %v4841_v17  ;;  %5778 = vmatprep.mubr.bf16.mxu1 %v4843_v48  ;;  %v21755_v41 = vld [vmem:[%s27088_s9 + $0x5c0] sm:$0xff]   ;;  %v21758_v17 = vld [vmem:[%s27088_s9 + $0x678] sm:$0xff]   ;;  %v21784_v37 = vld [vmem:[%s27088_s9 + $0x608] sm:$0xff]  }
0x19bb   : > { %v4692_v53 = vpop.f32.mrf.mxu0  ;;  %v4733_v9 = vpop.f32.mrf.mxu1  ;;  %v21759_v48 = vld [vmem:[%s27088_s9 + $0x6f8] sm:$0xff]  }
0x19bc   : > { %20090 = vmatpush3.bf16.msra.mxu0 %v21736_v49  ;;  %20112 = vmatpush3.bf16.msra.mxu1 %v21737_v7  ;;  %v4693_v44 = vadd.f32 %v4692_v53, %v4288_v27  ;;  %v4734_v45 = vadd.f32 %v4733_v9, %v4296_v31  ;;  %v4842_v53 = vpack.c.bf16 %v4826_v47, %v4826_v47  ;;  %v21761_v9 = vld [vmem:[%s27088_s9 + $0x6b8] sm:$0xff]   ;;  %v21781_v27 = vld [vmem:[%s27088_s9 + $0x690] sm:$0xff]   ;;  %v21782_v31 = vld [vmem:[%s27088_s9 + $0x648] sm:$0xff]  }
0x19bd   : > { %v4694_v34 = vpop.f32.mrf.mxu0  ;;  %v4735_v42 = vpop.f32.mrf.mxu1  ;;  %20091 = vmatprep.subr.bf16.mxu0 %v21738_v61  ;;  %20113 = vmatprep.subr.bf16.mxu1 %v21739_v52  ;;  %v21760_v61 = vld [vmem:[%s27088_s9 + $0x638] sm:$0xff]   ;;  %v4840_v52 = vpack.c.bf16 %v4824_v46, %v4824_v46 }
0x19be   : > { %v4829_v49 = vmax.f32 %v4693_v44, 0.0  ;;  %v4831_v7 = vmax.f32 %v4734_v45, 0.0  ;;  %v21763_v34 = vld [vmem:[%s27088_s9 + $0x6f0] sm:$0xff]   ;;  %v21787_v45 = vld [vmem:[%s27088_s9 + $0x6c0] sm:$0xff]   ;;  %v21790_v47 = vld [vmem:[%s27088_s9 + $0x778] sm:$0xff]  }
0x19bf   : > { %v4695_v58 = vpop.f32.mrf.mxu0  ;;  %v4736_v2 = vpop.f32.mrf.mxu1 }
0x19c0   : > { %20092 = vmatpush3.bf16.msra.mxu0 %v21740_v54  ;;  %20114 = vmatpush3.bf16.msra.mxu1 %v21741_v56  ;;  %v4845_v54 = vpack.c.bf16 %v4829_v49, %v4829_v49  ;;  %v21762_v56 = vld [vmem:[%s27088_s9 + $0x670] sm:$0xff]   ;;  %v4847_v42 = vpack.c.bf16 %v4831_v7, %v4831_v7  ;;  %v21767_v58 = vld [vmem:[%s27088_s9 + $0x6e8] sm:$0xff]   ;;  %v21792_v49 = vld [vmem:[%s27088_s9 + $0x738] sm:$0xff]  }
0x19c1   : > { %v23866_v35 = vpop.f32.mrf.mxu0  ;;  %v4813_v36 = vpop.f32.mrf.mxu1  ;;  %20093 = vmatprep.subr.bf16.mxu0 %v21742_v0  ;;  %20115 = vmatprep.subr.bf16.mxu1 %v21743_v55  ;;  %v21764_v0 = vld [vmem:[%s27088_s9 + $0x630] sm:$0xff]   ;;  %v21768_v2 = vld [vmem:[%s27088_s9 + $0x628] sm:$0xff]  }
0x19c2   : > { %v23874_v3 = vadd.f32 %v4813_v36, %v4308_v43  ;;  %v21765_v55 = vld [vmem:[%s27088_s9 + $0x6b0] sm:$0xff]   ;;  %v21766_v43 = vld [vmem:[%s27088_s9 + $0x668] sm:$0xff]   ;;  %v21771_v36 = vld [vmem:[%s27088_s9 + $0x6e0] sm:$0xff]  }
0x19c3   : > { %v23876_v11 = vpop.f32.mrf.mxu0  ;;  %v23878_v12 = vpop.f32.mrf.mxu1 }
0x19c4   : > { %20094 = vmatpush3.bf16.msra.mxu0 %v21744_v59  ;;  %20116 = vmatpush3.bf16.msra.mxu1 %v21745_v60  ;;  %v21769_v59 = vld [vmem:[%s27088_s9 + $0x6a8] sm:$0xff]   ;;  %v21770_v60 = vld [vmem:[%s27088_s9 + $0x660] sm:$0xff]  }
0x19c5   : > { %v4776_v20 = vpop.f32.mrf.mxu0  ;;  %v4817_v13 = vpop.f32.mrf.mxu1  ;;  %20095 = vmatprep.subr.bf16.mxu0 %v21746_v62  ;;  %20117 = vmatprep.subr.bf16.mxu1 %v21747_v63  ;;  %v21772_v62 = vld [vmem:[%s27088_s9 + $0x620] sm:$0xff]  }
0x19c6   : > { %v21773_v63 = vld [vmem:[%s27088_s9 + $0x6a0] sm:$0xff]   ;;  %v21778_v20 = vld [vmem:[%s27088_s9 + $0x650] sm:$0xff]  }
0x19c7   : > { %v4777_v32 = vpop.f32.mrf.mxu0  ;;  %v4818_v51 = vpop.f32.mrf.mxu1  ;;  %v21779_v13 = vld [vmem:[%s27088_s9 + $0x6d0] sm:$0xff]  }
0x19c8   : > { %20096 = vmatpush3.bf16.msra.mxu0 %v21748_v15  ;;  %20118 = vmatpush3.bf16.msra.mxu1 %v21749_v16  ;;  %v21774_v15 = vld [vmem:[%s27088_s9 + $0x658] sm:$0xff]   ;;  %v4292_v32 = vrot.slane %v23850_v57, %v23034_v6  ;;  %v21783_v51 = vld [vmem:[%s27088_s9 + $0x6c8] sm:$0xff]  }
0x19c9   : > { %20097 = vmatprep.subr.bf16.mxu0 %v21750_v25  ;;  %20119 = vmatprep.subr.bf16.mxu1 %v21751_v26  ;;  %v21775_v16 = vld [vmem:[%s27088_s9 + $0x6d8] sm:$0xff]   ;;  %v21780_v25 = vld [vmem:[%s27088_s9 + $0x610] sm:$0xff]   ;;  %v4284_v26 = vrot.slane %v23850_v57, %v23031_v5 }
0x19ca   : > { %v4732_v44 = vadd.f32 %v23833_v30, %v4292_v32  ;;  %v21789_v30 = vld [vmem:[%s27088_s9 + $0x680] sm:$0xff]   ;;  %v21817_v32 = vld [vmem:[%s27088_s9 + $0x788] sm:$0xff]  }
0x19cb   : > { %v4691_v39 = vadd.f32 %v23831_v50, %v4284_v26  ;;  %v21814_v26 = vld [vmem:[%s27088_s9 + $0x748] sm:$0xff]  }
0x19cc   : > { %20098 = vmatpush3.bf16.msra.mxu0 %v21752_v33  ;;  %20120 = vmatpush3.bf16.msra.mxu1 %v21753_v4  ;;  %v4304_v33 = vrot.slane %v23850_v57, %v23056_v23  ;;  %v4312_v4 = vrot.slane %v23850_v57, %v23059_v24 }
0x19cd   : > { %20099 = vmatprep.subr.bf16.mxu0 %v21754_v40  ;;  %20121 = vmatprep.subr.bf16.mxu1 %v21755_v41  ;;  %v21785_v40 = vld [vmem:[%s27088_s9 + $0x688] sm:$0xff]   ;;  %v21786_v41 = vld [vmem:[%s27088_s9 + $0x640] sm:$0xff]   ;;  %v4828_v46 = vmax.f32 %v4691_v39, 0.0  ;;  %v4834_v39 = vmax.f32 %v23874_v3, 0.0 }
0x19ce   : > { %v4816_v50 = vadd.f32 %v23878_v12, %v4312_v4  ;;  %v17696_v3 = vld [vmem:[%s27089_s10 + $0x1] ss:$0 sm:$0xff] }
0x19cf   : > { %v4844_v7 = vpack.c.bf16 %v4828_v46, %v4828_v46 }
0x19d0   : > { %20100 = vmatpush3.bf16.msra.mxu0 %v21756_v21  ;;  %20122 = vmatpush3.bf16.msra.mxu1 %v21757_v22  ;;  %v4775_v21 = vadd.f32 %v23876_v11, %v4304_v33  ;;  %v21788_v22 = vld [vmem:[%s27088_s9 + $0x600] sm:$0xff]   ;;  %v21791_v11 = vld [vmem:[%s27088_s9 + $0x7f8] sm:$0xff]  }
0x19d1   : > { %20129 = vmatprep.subr.bf16.mxu0 %v21758_v17  ;;  %20151 = vmatprep.subr.bf16.mxu1 %v21759_v48  ;;  %v4830_v17 = vmax.f32 %v4732_v44, 0.0  ;;  %v4835_v48 = vmax.f32 %v4816_v50, 0.0  ;;  %v21819_v33 = vld [vmem:[%s27088_s9 + $0x7c0] sm:$0xff]  }
0x19d2   : > { %v4833_v12 = vmax.f32 %v4775_v21, 0.0 }
0x19d3   : > { %5739 = vmatmul.mubr.bf16.vlgmr.msra.gmra.mxu0 %v4840_v52  ;;  %5779 = vmatmul.mubr.bf16.vlgmr.msra.gmra.mxu1 %v4842_v53  ;;  %v4846_v52 = vpack.c.bf16 %v4830_v17, %v4830_v17  ;;  %v21794_v53 = vld [vmem:[%s27088_s9 + $0x770] sm:$0xff]  }
0x19d4   : > { %20130 = vmatpush3.bf16.msra.mxu0 %v21760_v61  ;;  %5818 = vmatprep.mubr.bf16.mxu0 %v4845_v54  ;;  %v21793_v61 = vld [vmem:[%s27088_s9 + $0x7b8] sm:$0xff]   ;;  %v21795_v54 = vld [vmem:[%s27088_s9 + $0x7f0] sm:$0xff]  }
0x19d5   : > { %20152 = vmatpush3.bf16.msra.mxu1 %v21761_v9  ;;  %5858 = vmatprep.mubr.bf16.mxu1 %v4847_v42  ;;  %v4849_v9 = vpack.c.bf16 %v4833_v12, %v4833_v12  ;;  %v21797_v42 = vld [vmem:[%s27088_s9 + $0x7b0] sm:$0xff]  }
0x19d6   : > { %20131 = vmatprep.subr.bf16.mxu0 %v21762_v56  ;;  %20153 = vmatprep.subr.bf16.mxu1 %v21763_v34  ;;  %v4851_v56 = vpack.c.bf16 %v4835_v48, %v4835_v48  ;;  %v21796_v34 = vld [vmem:[%s27088_s9 + $0x730] sm:$0xff]  }
0x19d8   : > { %20132 = vmatpush3.bf16.msra.mxu0 %v21764_v0  ;;  %v21798_v0 = vld [vmem:[%s27088_s9 + $0x768] sm:$0xff]  }
0x19d9   : > { %20154 = vmatpush3.bf16.msra.mxu1 %v21765_v55  ;;  %20133 = vmatprep.subr.bf16.mxu0 %v21766_v43  ;;  %v21799_v55 = vld [vmem:[%s27088_s9 + $0x7e8] sm:$0xff]  }
0x19da   : > { %20155 = vmatprep.subr.bf16.mxu1 %v21767_v58  ;;  %v21800_v43 = vld [vmem:[%s27088_s9 + $0x728] sm:$0xff]  }
0x19db   : > { %v21801_v58 = vld [vmem:[%s27088_s9 + $0x7a8] sm:$0xff]  }
0x19dc   : > { %20134 = vmatpush3.bf16.msra.mxu0 %v21768_v2  ;;  %v21802_v2 = vld [vmem:[%s27088_s9 + $0x760] sm:$0xff]  }
0x19dd   : > { %20156 = vmatpush3.bf16.msra.mxu1 %v21769_v59  ;;  %20135 = vmatprep.subr.bf16.mxu0 %v21770_v60  ;;  %v21803_v59 = vld [vmem:[%s27088_s9 + $0x7e0] sm:$0xff]  }
0x19de   : > { %20157 = vmatprep.subr.bf16.mxu1 %v21771_v36  ;;  %v21804_v60 = vld [vmem:[%s27088_s9 + $0x720] sm:$0xff]  }
0x19df   : > { %v21805_v36 = vld [vmem:[%s27088_s9 + $0x7a0] sm:$0xff]  }
0x19e0   : > { %20136 = vmatpush3.bf16.msra.mxu0 %v21772_v62  ;;  %v21806_v62 = vld [vmem:[%s27088_s9 + $0x758] sm:$0xff]  }
0x19e1   : > { %20158 = vmatpush3.bf16.msra.mxu1 %v21773_v63  ;;  %20137 = vmatprep.subr.bf16.mxu0 %v21774_v15  ;;  %v21807_v63 = vld [vmem:[%s27088_s9 + $0x7d8] sm:$0xff]  }
0x19e2   : > { %20159 = vmatprep.subr.bf16.mxu1 %v21775_v16  ;;  %v21808_v15 = vld [vmem:[%s27088_s9 + $0x718] sm:$0xff]  }
0x19e3   : > { %v21809_v16 = vld [vmem:[%s27088_s9 + $0x798] sm:$0xff]  }
0x19e4   : > { %20138 = vmatpush3.bf16.msra.mxu0 %v21776_v18  ;;  %v21810_v18 = vld [vmem:[%s27088_s9 + $0x750] sm:$0xff]  }
0x19e5   : > { %20160 = vmatpush3.bf16.msra.mxu1 %v21777_v19  ;;  %20139 = vmatprep.subr.bf16.mxu0 %v21778_v20  ;;  %v21811_v19 = vld [vmem:[%s27088_s9 + $0x7d0] sm:$0xff]  }
0x19e6   : > { %20161 = vmatprep.subr.bf16.mxu1 %v21779_v13  ;;  %v21812_v20 = vld [vmem:[%s27088_s9 + $0x710] sm:$0xff]   ;;  %v4300_v13 = vrot.slane %v23850_v57, %v23138_v29  ;;  %v21816_v57 = vld [vmem:[%s27088_s9 + $0x708] sm:$0xff]  }
0x19e8   : > { %20140 = vmatpush3.bf16.msra.mxu0 %v21780_v25  ;;  %v21813_v25 = vld [vmem:[%s27088_s9 + $0x790] sm:$0xff]  }
0x19e9   : > { %20162 = vmatpush3.bf16.msra.mxu1 %v21781_v27  ;;  %20141 = vmatprep.subr.bf16.mxu0 %v21782_v31  ;;  %v21815_v27 = vld [vmem:[%s27088_s9 + $0x7c8] sm:$0xff]   ;;  %v4773_v31 = vadd.f32 %v23866_v35, %v4300_v13  ;;  %v21820_v35 = vld [vmem:[%s27088_s9 + $0x700] sm:$0xff]  }
0x19ea   : > { %20163 = vmatprep.subr.bf16.mxu1 %v21783_v51  ;;  %v21818_v51 = vld [vmem:[%s27088_s9 + $0x740] sm:$0xff]  }
0x19eb   : > { %v4832_v4 = vmax.f32 %v4773_v31, 0.0 }
0x19ec   : > { %20142 = vmatpush3.bf16.msra.mxu0 %v21784_v37  ;;  %v21821_v37 = vld [vmem:[%s27088_s9 + $0x780] sm:$0xff]  }
0x19ed   : > { %20164 = vmatpush3.bf16.msra.mxu1 %v21785_v40  ;;  %20143 = vmatprep.subr.bf16.mxu0 %v21786_v41  ;;  %v4848_v40 = vpack.c.bf16 %v4832_v4, %v4832_v4  ;;  %v4850_v41 = vpack.c.bf16 %v4834_v39, %v4834_v39 }
0x19ee   : > { %20165 = vmatprep.subr.bf16.mxu1 %v21787_v45 }
0x19f0   : > { %20144 = vmatpush3.bf16.msra.mxu0 %v21788_v22 }
0x19f1   : > { %20166 = vmatpush3.bf16.msra.mxu1 %v21789_v30  ;;  %20173 = vmatprep.subr.bf16.mxu0 %v21790_v47 }
0x19f2   : > { %20195 = vmatprep.subr.bf16.mxu1 %v21791_v11 }
0x19f3   : > { %5819 = vmatmul.mubr.bf16.vlgmr.msra.gmra.mxu0 %v4844_v7 }
0x19f4   : > { %5859 = vmatmul.mubr.bf16.vlgmr.msra.gmra.mxu1 %v4846_v52  ;;  %20174 = vmatpush3.bf16.msra.mxu0 %v21792_v49 }
0x19f5   : > { %5898 = vmatprep.mubr.bf16.mxu0 %v4849_v9  ;;  %20196 = vmatpush3.bf16.msra.mxu1 %v21793_v61 }
0x19f6   : > { %5938 = vmatprep.mubr.bf16.mxu1 %v4851_v56  ;;  %20175 = vmatprep.subr.bf16.mxu0 %v21794_v53 }
0x19f7   : > { %20197 = vmatprep.subr.bf16.mxu1 %v21795_v54 }
0x19f8   : > { %20176 = vmatpush3.bf16.msra.mxu0 %v21796_v34 }
0x19f9   : > { %20198 = vmatpush3.bf16.msra.mxu1 %v21797_v42  ;;  %20177 = vmatprep.subr.bf16.mxu0 %v21798_v0 }
0x19fa   : > { %20199 = vmatprep.subr.bf16.mxu1 %v21799_v55 }
0x19fc   : > { %20178 = vmatpush3.bf16.msra.mxu0 %v21800_v43 }
0x19fd   : > { %20200 = vmatpush3.bf16.msra.mxu1 %v21801_v58  ;;  %20179 = vmatprep.subr.bf16.mxu0 %v21802_v2 }
0x19fe   : > { %20201 = vmatprep.subr.bf16.mxu1 %v21803_v59 }
0x1a00   : > { %20180 = vmatpush3.bf16.msra.mxu0 %v21804_v60 }
0x1a01   : > { %20202 = vmatpush3.bf16.msra.mxu1 %v21805_v36  ;;  %20181 = vmatprep.subr.bf16.mxu0 %v21806_v62 }
0x1a02   : > { %20203 = vmatprep.subr.bf16.mxu1 %v21807_v63 }
0x1a04   : > { %20182 = vmatpush3.bf16.msra.mxu0 %v21808_v15 }
0x1a05   : > { %20204 = vmatpush3.bf16.msra.mxu1 %v21809_v16  ;;  %20183 = vmatprep.subr.bf16.mxu0 %v21810_v18 }
0x1a06   : > { %20205 = vmatprep.subr.bf16.mxu1 %v21811_v19 }
0x1a08   : > { %20184 = vmatpush3.bf16.msra.mxu0 %v21812_v20 }
0x1a09   : > { %20206 = vmatpush3.bf16.msra.mxu1 %v21813_v25  ;;  %20185 = vmatprep.subr.bf16.mxu0 %v21814_v26 }
0x1a0a   : > { %20207 = vmatprep.subr.bf16.mxu1 %v21815_v27 }
0x1a0c   : > { %20186 = vmatpush3.bf16.msra.mxu0 %v21816_v57 }
0x1a0d   : > { %20208 = vmatpush3.bf16.msra.mxu1 %v21817_v32  ;;  %20187 = vmatprep.subr.bf16.mxu0 %v21818_v51 }
0x1a0e   : > { %20209 = vmatprep.subr.bf16.mxu1 %v21819_v33 }
0x1a10   : > { %20188 = vmatpush3.bf16.msra.mxu0 %v21820_v35 }
0x1a11   : > { %20210 = vmatpush3.bf16.msra.mxu1 %v21821_v37  ;;  %21189 = vmatprep.subr.bf16.mxu0 %v22525_v1 }
0x1a12   : > { %21197 = vmatprep.subr.bf16.mxu1 %v22525_v1 }
0x1a13   : > { %5899 = vmatmul.mubr.bf16.vlgmr.msra.gmra.mxu0 %v4848_v40 }
0x1a14   : > { %5939 = vmatmul.mubr.bf16.vlgmr.msra.gmra.mxu1 %v4850_v41  ;;  %21193 = vmatprep.mubr.msk.bf16.mxu0 %vm22526_vm0, %v22525_v1 }
0x1a15   : > { %21199 = vmatprep.mubr.msk.bf16.mxu1 %vm22526_vm0, %v22525_v1 }
0x1a73   : > { %v20057_v44 = vpop.f32.mrf.mxu0  ;;  %v20079_v45 = vpop.f32.mrf.mxu1 }
0x1a75   : > { %v20058_v21 = vpop.f32.mrf.mxu0  ;;  %v20080_v50 = vpop.f32.mrf.mxu1 }
0x1a76   : > { %v20059_v22 = vadd.f32 %v20058_v21, %v20057_v44  ;;  %v20081_v46 = vadd.f32 %v20080_v50, %v20079_v45  ;;  %v21822_v21 = vld [vmem:[%s27080_s1 + $0x28] sm:$0xff]   ;;  %v21823_v50 = vld [vmem:[%s27080_s1 + $0x20] sm:$0xff]  }
0x1a77   : > { %v20060_v30 = vpop.f32.mrf.mxu0  ;;  %v20082_v47 = vpop.f32.mrf.mxu1  ;;  %21190 = vmatpush3.bf16.msra.mxu0 %v21822_v21 }
0x1a78   : > { %v5661_v17 = vadd.f32 %v20059_v22, %v17696_v3  ;;  %21191 = vmatprep.subr.bf16.mxu0 %v22525_v1  ;;  %v17825_v47 = vld [vmem:[%s27090_s11 + $0x1] ss:$0 sm:$0xff] }
0x1a79   : > { %v20061_v11 = vpop.f32.mrf.mxu0  ;;  %v20083_v12 = vpop.f32.mrf.mxu1 }
0x1a7a   : > { %v5701_v48 = vadd.f32 %v20081_v46, %v5661_v17  ;;  %v17826_v11 = vld [vmem:[%s27091_s12 + $0x1] ss:$0 sm:$0xff] }
0x1a7b   : > { %21192 = vmatpush3.bf16.msra.mxu0 %v21823_v50 }
0x1a7c   : > { %21203 = vmatprep.subr.bf16.mxu0 %v22525_v1 }
0x1a93   : > { %v20101_v49 = vpop.f32.mrf.mxu0  ;;  %v20123_v7 = vpop.f32.mrf.mxu1 }
0x1a95   : > { %v20102_v61 = vpop.f32.mrf.mxu0  ;;  %v20124_v52 = vpop.f32.mrf.mxu1 }
0x1a96   : > { %v20103_v60 = vadd.f32 %v20102_v61, %v20101_v49  ;;  %v20125_v62 = vadd.f32 %v20124_v52, %v20123_v7  ;;  %v18132_v7 = vld [vmem:[%s27081_s2 + $0x2] ss:$0 sm:$0xff] }
0x1a97   : > { %v20104_v53 = vpop.f32.mrf.mxu0  ;;  %v20126_v9 = vpop.f32.mrf.mxu1 }
0x1a98   : > { %v5741_v36 = vadd.f32 %v20103_v60, %v5701_v48 }
0x1a99   : > { %v20105_v54 = vpop.f32.mrf.mxu0  ;;  %v20127_v56 = vpop.f32.mrf.mxu1 }
0x1a9a   : > { %v5781_v15 = vadd.f32 %v20125_v62, %v5741_v36 }
0x1ab3   : > { %v20145_v34 = vpop.f32.mrf.mxu0 }
0x1ab4   : > { %v20167_v42 = vpop.f32.mrf.mxu1 }
0x1ab5   : > { %v20146_v0 = vpop.f32.mrf.mxu0 }
0x1ab6   : > { %v20168_v55 = vpop.f32.mrf.mxu1  ;;  %v20147_v63 = vadd.f32 %v20146_v0, %v20145_v34 }
0x1ab7   : > { %v20148_v43 = vpop.f32.mrf.mxu0  ;;  %v20169_v19 = vadd.f32 %v20168_v55, %v20167_v42 }
0x1ab8   : > { %v20170_v58 = vpop.f32.mrf.mxu1  ;;  %v5821_v16 = vadd.f32 %v20147_v63, %v5781_v15 }
0x1ab9   : > { %v20149_v2 = vpop.f32.mrf.mxu0 }
0x1aba   : > { %v20171_v59 = vpop.f32.mrf.mxu1  ;;  %v5861_v25 = vadd.f32 %v20169_v19, %v5821_v16 }
0x1ad3   : > { %v20189_v18 = vpop.f32.mrf.mxu0 }
0x1ad4   : > { %v20211_v20 = vpop.f32.mrf.mxu1 }
0x1ad5   : > { %v20190_v13 = vpop.f32.mrf.mxu0 }
0x1ad6   : > { %v20191_v26 = vadd.f32 %v20190_v13, %v20189_v18  ;;  %v20212_v27 = vpop.f32.mrf.mxu1 }
0x1ad7   : > { %v20192_v57 = vpop.f32.mrf.mxu0  ;;  %v20213_v32 = vadd.f32 %v20212_v27, %v20211_v20 }
0x1ad8   : > { %v5901_v31 = vadd.f32 %v20191_v26, %v5861_v25  ;;  %v20214_v51 = vpop.f32.mrf.mxu1 }
0x1ad9   : > { %v20193_v33 = vpop.f32.mrf.mxu0 }
0x1ada   : > { %v5941_v35 = vadd.f32 %v20213_v32, %v5901_v31  ;;  %v20215_v4 = vpop.f32.mrf.mxu1 }
0x1adc   : > { %v5946_v37 = vadd.f32 %v5941_v35, %v23602_v28 }
0x1ade   : > { %v5947_v39 = vsel %vm762_vm1, %v5946_v37, 0.0 }
0x1adf   : > { %5948 = vadd.xlane.f32.xlu1 %v5947_v39 }
0x1b68   : > { %v5949_v40 = vpop.xlane.xlu1 %5948 }
0x1b69   : > { %v5950_v41 = vmul.f32 0.03125, %v5949_v40 }
0x1b6b   : > { %v5951_v44 = vsub.f32 %v5946_v37, %v5950_v41 }
0x1b6d   : > { %v5952_v45 = vmul.f32 %v5951_v44, %v5951_v44 }
0x1b6f   : > { %v5953_v3 = vsel %vm762_vm1, %v5952_v45, 0.0 }
0x1b70   : > { %5954 = vadd.xlane.f32.xlu1 %v5953_v3 }
0x1bf9   : > { %v5955_v28 = vpop.xlane.xlu1 %5954 }
0x1bfa   : > { %v5956_v22 = vmul.f32 0.03125, %v5955_v28  ;;  %v17832_v28 = vld [vmem:[%s27082_s3 + $0x20] sm:$0xf] }
0x1bfc   : > { %v5957_v46 = vadd.f32 1e-05, %v5956_v22  ;;  %v6625_v22 = vsel %vm874_vm3, %v17832_v28, 0 }
0x1bfe   : > { %22380 = vrsqrt.f32 %v5957_v46  ;;  %v17833_v46 = vld [vmem:[%s27082_s3 + $0x24] sm:$0xf] }
0x1c0b   : > { %v22381_v30 = vpop.eup %22380 }
0x1c0c   : > { %v5959_v17 = vmul.f32 %v22381_v30, %v5951_v44  ;;  %v6579_v30 = vsel %vm874_vm3, %v17833_v46, 0 }
0x1c0e   : > { %v5966_v12 = vmul.f32 %v17825_v47, %v5959_v17 }
0x1c10   : > { %v24154_v48 = vadd.f32 %v17826_v11, %v5966_v12 }
0x1c12   : > { %v6291_v49 = vpack.c.bf16 %v24154_v48, %v24154_v48 }
0x1c14   : > { %21194 = vmatmul.mubr.msk.bf16.vlgmr.msra.gmra.mxu0 %vm762_vm1, %v6291_v49 }
0x1c15   : > { %21205 = vmatprep.mubr.msk.bf16.mxu0 %vm22526_vm0, %v22525_v1 }
0x1cd4   : > { %v6347_v61 = vpop.f32.mrf.mxu0 }
0x1cd5   : > { %v6348_v52 = vadd.f32 %v18132_v7, %v6347_v61 }
0x1cd6   : > { %v21195_v53 = vpop.f32.mrf.mxu0 }
0x1cd7   : > { %v24164_v9 = vpack.c.bf16 %v6348_v52, %v6348_v52 }
0x1cd8   : > { %v6350_v54 = vpop.f32.mrf.mxu0 }
0x1cd9   : > { %6466 = vrot.lane.b32.xlu0 %v24164_v9, %s27143_s0  ;;  %6355 = vrot.lane.b32.xlu1 %v24164_v9, %s27144_s17 }
0x1cda   : > { %v21196_v56 = vpop.f32.mrf.mxu0 }
0x1cdd   : > { %6464 = vrot.lane.b32.xlu0 %v24164_v9, %s27145_s24 }
0x1d4b   : > { %v6356_v34 = vpop.permute.xlu1 %6355  ;;  %v6467_v0 = vpop.permute.xlu0 %6466 }
0x1d4c   : > { %v6361_v42 = vsel %vm810_vm2, %v6356_v34, 0  ;;  %v6472_v55 = vsel %vm810_vm2, %v6467_v0, 0 }
0x1d4d   : > { %21198 = vmatpush3.bf16.xpose.msra.mxu1 %v6361_v42 }
0x1d4e   : > { %21209 = vmatprep.subr.bf16.mxu1 %v22525_v1 }
0x1d4f   : > { %v6465_v43 = vpop.permute.xlu0 %6464 }
0x1d54   : > { %21200 = vmatmul.mubr.msk.bf16.vlgmr.msra.gmra.mxu1 %vm810_vm2, %v24164_v9 }
0x1d55   : > { %21210 = vmatpush3.bf16.xpose.msra.mxu1 %v6472_v55  ;;  %21211 = vmatprep.mubr.msk.bf16.mxu1 %vm22526_vm0, %v22525_v1 }
0x1d56   : > { %21221 = vmatprep.subr.bf16.mxu1 %v22525_v1 }
0x1d5c   : > { %21212 = vmatmul.mubr.msk.bf16.vlgmr.msra.gmra.mxu1 %vm810_vm2, %v6465_v43 }
0x1d5d   : > { %21223 = vmatprep.mubr.msk.bf16.mxu1 %vm22526_vm0, %v22525_v1  ;;  %21222 = vmatpush3.bf16.msra.mxu1 %v6579_v30 }
0x1d5e   : > { %21233 = vmatprep.subr.bf16.mxu1 %v22525_v1 }
0x1e14   : > { %v6397_v58 = vpop.f32.mrf.mxu1 }
0x1e15   : > { %v6403_v2 = vsel %vm810_vm2, %v6397_v58, -inf }
0x1e16   : > { %6404 = vmax.xlane.f32.xlu0 %v6403_v2  ;;  %v21201_v59 = vpop.f32.mrf.mxu1 }
0x1e18   : > { %v6400_v60 = vpop.f32.mrf.mxu1 }
0x1e1a   : > { %v21202_v36 = vpop.f32.mrf.mxu1 }
0x1e1c   : > { %v6508_v62 = vpop.f32.mrf.mxu1 }
0x1e1d   : > { %v6514_v63 = vsel %vm810_vm2, %v6508_v62, -inf }
0x1e1e   : > { %6515 = vmax.xlane.f32.xlu1 %v6514_v63  ;;  %v21213_v15 = vpop.f32.mrf.mxu1 }
0x1e20   : > { %v6511_v16 = vpop.f32.mrf.mxu1 }
0x1e22   : > { %v21214_v18 = vpop.f32.mrf.mxu1 }
0x1e2f   : > { %6526 = vrot.lane.b32.xlu1 %v24164_v9, %s27146_s30 }
0x1e33   : > { %6669 = vrot.lane.b32.xlu1 %v24164_v9, %s27149_s21 }
0x1e9f   : > { %v6405_v19 = vpop.xlane.xlu0 %6404 }
0x1ea0   : > { %v6406_v20 = vsub.f32 %v6397_v58, %v6405_v19 }
0x1ea2   : > { %v6407_v13 = vmul.f32 1.442695, %v6406_v20 }
0x1ea4   : > { %22382 = vpow2.f32 %v6407_v13 }
0x1ea7   : > { %v6516_v25 = vpop.xlane.xlu1 %6515 }
0x1ea8   : > { %v6517_v26 = vsub.f32 %v6508_v62, %v6516_v25 }
0x1eaa   : > { %v6518_v27 = vmul.f32 1.442695, %v6517_v26 }
0x1eab   : > { %v6527_v41 = vpop.permute.xlu1 %6526 }
0x1eac   : > { %22384 = vpow2.f32 %v6518_v27  ;;  %v6532_v45 = vsel %vm874_vm3, %v6527_v41, 0 }
0x1eaf   : > { %v6670_v7 = vpop.permute.xlu1 %6669 }
0x1eb0   : > { %v6675_v54 = vsel %vm810_vm2, %v6670_v7, 0 }
0x1eb1   : > { %v22383_v57 = vpop.eup %22382 }
0x1eb2   : > { %v6409_v31 = vsel %vm810_vm2, %v22383_v57, 0.0 }
0x1eb3   : > { %6410 = vadd.xlane.f32.xlu0 %v6409_v31 }
0x1eb9   : > { %v22385_v32 = vpop.eup %22384 }
0x1eba   : > { %v6520_v51 = vsel %vm810_vm2, %v22385_v32, 0.0 }
0x1ebb   : > { %6521 = vadd.xlane.f32.xlu0 %v6520_v51 }
0x1ed1   : > { %6415 = vrot.lane.b32.xlu0 %v24164_v9, %s27148_s22 }
0x1ed5   : > { %6667 = vrot.lane.b32.xlu0 %v24164_v9, %s27147_s16 }
0x1f3c   : > { %v6411_v33 = vpop.xlane.xlu0 %6410 }
0x1f3d   : > { %22386 = vrcp.f32 %v6411_v33 }
0x1f44   : > { %v6522_v35 = vpop.xlane.xlu0 %6521 }
0x1f45   : > { %22388 = vrcp.f32 %v6522_v35 }
0x1f48   : > { %v6416_v4 = vpop.permute.xlu0 %6415 }
0x1f49   : > { %v6421_v37 = vsel %vm874_vm3, %v6416_v4, 0 }
0x1f4a   : > { %v22387_v39 = vpop.eup %22386  ;;  %21204 = vmatpush3.bf16.msra.mxu0 %v6421_v37 }
0x1f4b   : > { %v6413_v40 = vmul.f32 %v22387_v39, %v22383_v57  ;;  %21215 = vmatprep.subr.bf16.mxu0 %v22525_v1 }
0x1f4c   : > { %v6668_v42 = vpop.permute.xlu0 %6667 }
0x1f4d   : > { %v6414_v44 = vpack.c.bf16 %v6413_v40, %v6413_v40  ;;  %v17834_v40 = vld [vmem:[%s27082_s3 + $0x28] sm:$0xf] }
0x1f4e   : > { %v6782_v41 = vsel %vm874_vm3, %v17834_v40, 0 }
0x1f4f   : > { %21206 = vmatmul.mubr.msk.bf16.vlgmr.msra.gmra.mxu0 %vm810_vm2, %v6414_v44 }
0x1f50   : > { %21216 = vmatpush3.bf16.msra.mxu0 %v6532_v45  ;;  %21217 = vmatprep.mubr.msk.bf16.mxu0 %vm22526_vm0, %v22525_v1 }
0x1f51   : > { %21227 = vmatprep.subr.bf16.mxu0 %v22525_v1 }
0x1f52   : > { %v22389_v3 = vpop.eup %22388 }
0x1f53   : > { %v6524_v21 = vmul.f32 %v22389_v3, %v22385_v32 }
0x1f55   : > { %v6525_v50 = vpack.c.bf16 %v6524_v21, %v6524_v21 }
0x1f57   : > { %21218 = vmatmul.mubr.msk.bf16.vlgmr.msra.gmra.mxu0 %vm810_vm2, %v6525_v50 }
0x1f58   : > { %21229 = vmatprep.mubr.msk.bf16.mxu0 %vm22526_vm0, %v22525_v1  ;;  %21228 = vmatpush3.bf16.msra.mxu0 %v6625_v22 }
0x1f59   : > { %21239 = vmatprep.subr.bf16.mxu0 %v22525_v1 }
0x200f   : > { %v6457_v47 = vpop.f32.mrf.mxu0 }
0x2010   : > { %v6463_v17 = vpack.c.bf16 %v6457_v47, %v6457_v47 }
0x2011   : > { %v21207_v11 = vpop.f32.mrf.mxu0 }
0x2012   : > { %21230 = vmatmul.mubr.msk.bf16.vlgmr.msra.gmra.mxu0 %vm810_vm2, %v6463_v17 }
0x2013   : > { %v6460_v12 = vpop.f32.mrf.mxu0  ;;  %21241 = vmatprep.mubr.msk.bf16.mxu0 %vm22526_vm0, %v22525_v1 }
0x2015   : > { %v21208_v49 = vpop.f32.mrf.mxu0 }
0x2017   : > { %v6568_v61 = vpop.f32.mrf.mxu0 }
0x2018   : > { %v6574_v52 = vpack.c.bf16 %v6568_v61, %v6568_v61 }
0x2019   : > { %v21219_v53 = vpop.f32.mrf.mxu0 }
0x201a   : > { %21224 = vmatmul.mubr.msk.bf16.vlgmr.msra.gmra.mxu1 %vm810_vm2, %v6574_v52 }
0x201b   : > { %21234 = vmatpush3.bf16.xpose.msra.mxu1 %v6675_v54  ;;  %v6571_v56 = vpop.f32.mrf.mxu0  ;;  %21235 = vmatprep.mubr.msk.bf16.mxu1 %vm22526_vm0, %v22525_v1  ;;  %v17835_v54 = vld [vmem:[%s27082_s3 + $0x2c] sm:$0xf] }
0x201c   : > { %21245 = vmatprep.subr.bf16.mxu1 %v22525_v1 }
0x201d   : > { %v21220_v34 = vpop.f32.mrf.mxu0 }
0x2022   : > { %21236 = vmatmul.mubr.msk.bf16.vlgmr.msra.gmra.mxu1 %vm810_vm2, %v6668_v42 }
0x2023   : > { %21247 = vmatprep.mubr.msk.bf16.mxu1 %vm22526_vm0, %v22525_v1  ;;  %21246 = vmatpush3.bf16.msra.mxu1 %v6782_v41 }
0x2024   : > { %21257 = vmatprep.subr.bf16.mxu1 %v22525_v1 }
0x20d2   : > { %v6661_v0 = vpop.f32.mrf.mxu0 }
0x20d4   : > { %v21231_v55 = vpop.f32.mrf.mxu0 }
0x20d6   : > { %v6664_v43 = vpop.f32.mrf.mxu0 }
0x20d8   : > { %v21232_v58 = vpop.f32.mrf.mxu0 }
0x20da   : > { %v6615_v2 = vpop.f32.mrf.mxu1 }
0x20db   : > { %v24226_v59 = vadd.f32 %v6661_v0, %v6615_v2 }
0x20dc   : > { %v21225_v60 = vpop.f32.mrf.mxu1 }
0x20de   : > { %v6618_v36 = vpop.f32.mrf.mxu1 }
0x20e0   : > { %v21226_v62 = vpop.f32.mrf.mxu1 }
0x20e2   : > { %v6711_v63 = vpop.f32.mrf.mxu1 }
0x20e3   : > { %v6717_v15 = vsel %vm810_vm2, %v6711_v63, -inf }
0x20e4   : > { %6718 = vmax.xlane.f32.xlu1 %v6717_v15  ;;  %v21237_v16 = vpop.f32.mrf.mxu1  ;;  %v18148_v15 = vld [vmem:[%s27155_s14 + $0x2] ss:$0 sm:$0xff]  ;;  %s27157_s14 = sld [smem:[#allocation15_spill]] }
0x20e6   : > { %v6714_v18 = vpop.f32.mrf.mxu1 }
0x20e8   : > { %v21238_v19 = vpop.f32.mrf.mxu1 }
0x20f5   : > { %6827 = vrot.lane.b32.xlu1 %v24164_v9, %s27152_s23 }
0x20f9   : > { %6825 = vrot.lane.b32.xlu1 %v24164_v9, %s27151_s15 }
0x216d   : > { %v6719_v20 = vpop.xlane.xlu1 %6718 }
0x216e   : > { %v6720_v13 = vsub.f32 %v6711_v63, %v6719_v20 }
0x2170   : > { %v6721_v25 = vmul.f32 1.442695, %v6720_v13 }
0x2171   : > { %v6828_v35 = vpop.permute.xlu1 %6827 }
0x2172   : > { %22390 = vpow2.f32 %v6721_v25  ;;  %v6833_v37 = vsel %vm810_vm2, %v6828_v35, 0  ;;  %v17855_v35 = vld [vmem:[%s27086_s7 + $0x280] sm:$0xff] }
0x2175   : > { %v6826_v39 = vpop.permute.xlu1 %6825 }
0x217f   : > { %v22391_v26 = vpop.eup %22390 }
0x2180   : > { %v6723_v27 = vsel %vm810_vm2, %v22391_v26, 0.0 }
0x2181   : > { %6724 = vadd.xlane.f32.xlu0 %v6723_v27 }
0x2197   : > { %6729 = vrot.lane.b32.xlu0 %v24164_v9, %s27150_s27 }
0x220a   : > { %v6725_v57 = vpop.xlane.xlu0 %6724 }
0x220b   : > { %22392 = vrcp.f32 %v6725_v57 }
0x220e   : > { %v6730_v31 = vpop.permute.xlu0 %6729 }
0x220f   : > { %v6735_v32 = vsel %vm874_vm3, %v6730_v31, 0 }
0x2210   : > { %21240 = vmatpush3.bf16.msra.mxu0 %v6735_v32 }
0x2211   : > { %21251 = vmatprep.subr.bf16.mxu0 %v22525_v1 }
0x2218   : > { %v22393_v51 = vpop.eup %22392 }
0x2219   : > { %v6727_v33 = vmul.f32 %v22393_v51, %v22391_v26 }
0x221b   : > { %v6728_v4 = vpack.c.bf16 %v6727_v33, %v6727_v33 }
0x221d   : > { %21242 = vmatmul.mubr.msk.bf16.vlgmr.msra.gmra.mxu0 %vm810_vm2, %v6728_v4  ;;  %v17863_v4 = vld [vmem:[%s27086_s7 + $0x2c0] sm:$0xff] }
0x221e   : > { %21252 = vmatpush3.bf16.xpose.msra.mxu0 %v6833_v37  ;;  %21253 = vmatprep.mubr.msk.bf16.mxu0 %vm22526_vm0, %v22525_v1  ;;  %v18168_v37 = vcombine.high %v17855_v35, %v17863_v4  ;;  %v18167_v40 = vcombine.low %v17855_v35, %v17863_v4 }
0x221f   : > { %21263 = vmatprep.subr.bf16.mxu0 %v22525_v1 }
0x2225   : > { %21254 = vmatmul.mubr.msk.bf16.vlgmr.msra.gmra.mxu0 %vm810_vm2, %v6826_v39  ;;  %v17864_v39 = vld [vmem:[%s27086_s7 + $0x2c8] sm:$0xff] }
0x2226   : > { %21265 = vmatprep.mubr.msk.bf16.mxu0 %vm22526_vm0, %v22525_v1 }
0x22dd   : > { %v6771_v44 = vpop.f32.mrf.mxu0 }
0x22de   : > { %v6777_v45 = vpack.c.bf16 %v6771_v44, %v6771_v44 }
0x22df   : > { %v21243_v3 = vpop.f32.mrf.mxu0 }
0x22e0   : > { %21248 = vmatmul.mubr.msk.bf16.vlgmr.msra.gmra.mxu1 %vm810_vm2, %v6777_v45  ;;  %v17839_v45 = vld [vmem:[%s27086_s7 + $0x200] sm:$0xff] }
0x22e1   : > { %v6774_v21 = vpop.f32.mrf.mxu0  ;;  %21259 = vmatprep.mubr.msk.bf16.mxu1 %vm22526_vm0, %v22525_v1  ;;  %v17847_v3 = vld [vmem:[%s27086_s7 + $0x240] sm:$0xff] }
0x22e2   : > { %v17840_v21 = vld [vmem:[%s27086_s7 + $0x208] sm:$0xff] }
0x22e3   : > { %v21244_v50 = vpop.f32.mrf.mxu0 }
0x22e4   : > { %v18152_v50 = vcombine.high %v17839_v45, %v17847_v3 }
0x22e5   : > { %v6869_v28 = vpop.f32.mrf.mxu0 }
0x22e6   : > { %v6875_v22 = vsel %vm810_vm2, %v6869_v28, -inf }
0x22e7   : > { %6876 = vmax.xlane.f32.xlu0 %v6875_v22  ;;  %v21255_v46 = vpop.f32.mrf.mxu0  ;;  %v18151_v22 = vcombine.low %v17839_v45, %v17847_v3 }
0x22e9   : > { %v6872_v30 = vpop.f32.mrf.mxu0 }
0x22eb   : > { %v21256_v47 = vpop.f32.mrf.mxu0 }
0x22ec   : > { %v17857_v47 = vld [vmem:[%s27086_s7 + $0x290] sm:$0xff] }
0x22fd   : > { %6887 = vrot.lane.b32.xlu0 %v24164_v9, %s27154_s25  ;;  %v6940_v9 = vsel %vm874_vm3, %v17835_v54, 0 }
0x22fe   : > { %21264 = vmatpush3.bf16.msra.mxu0 %v6940_v9 }
0x2370   : > { %v6877_v17 = vpop.xlane.xlu0 %6876 }
0x2371   : > { %v6878_v11 = vsub.f32 %v6869_v28, %v6877_v17  ;;  %v17848_v28 = vld [vmem:[%s27086_s7 + $0x248] sm:$0xff]  ;;  %v17865_v17 = vld [vmem:[%s27086_s7 + $0x2d0] sm:$0xff] }
0x2372   : > { %v18153_v46 = vcombine.low %v17840_v21, %v17848_v28  ;;  %v18154_v30 = vcombine.high %v17840_v21, %v17848_v28  ;;  %v17845_v21 = vld [vmem:[%s27086_s7 + $0x230] sm:$0xff]  ;;  %v17846_v28 = vld [vmem:[%s27086_s7 + $0x238] sm:$0xff] }
0x2373   : > { %v6879_v12 = vmul.f32 1.442695, %v6878_v11  ;;  %v17858_v11 = vld [vmem:[%s27086_s7 + $0x298] sm:$0xff] }
0x2374   : > { %v6888_v49 = vpop.permute.xlu0 %6887 }
0x2375   : > { %22394 = vpow2.f32 %v6879_v12  ;;  %v6893_v7 = vsel %vm874_vm3, %v6888_v49, 0  ;;  %v18171_v12 = vcombine.low %v17857_v47, %v17865_v17  ;;  %v18172_v49 = vcombine.high %v17857_v47, %v17865_v17 }
0x2376   : > { %21258 = vmatpush3.bf16.msra.mxu1 %v6893_v7  ;;  %v17866_v7 = vld [vmem:[%s27086_s7 + $0x2d8] sm:$0xff] }
0x2377   : > { %7276 = vmatprep.subr.bf16.mxu1 %v18168_v37  ;;  %v17869_v37 = vld [vmem:[%s27086_s7 + $0x2f0] sm:$0xff] }
0x2382   : > { %v22395_v61 = vpop.eup %22394 }
0x2383   : > { %v6881_v52 = vsel %vm810_vm2, %v22395_v61, 0.0 }
0x2384   : > { %6882 = vadd.xlane.f32.xlu1 %v6881_v52  ;;  %v18174_v52 = vcombine.high %v17858_v11, %v17866_v7 }
0x23a0   : > { %v6818_v53 = vpop.f32.mrf.mxu1 }
0x23a1   : > { %v6824_v56 = vadd.f32 %v6818_v53, %v24226_v59 }
0x23a2   : > { %v21249_v34 = vpop.f32.mrf.mxu1 }
0x23a3   : > { %v18149_v34 = vld [vmem:[%s27084_s5 + $0x2] ss:$0 sm:$0xff] }
0x23a4   : > { %v6821_v42 = vpop.f32.mrf.mxu1 }
0x23a6   : > { %v21250_v0 = vpop.f32.mrf.mxu1 }
0x23a7   : > { %v18150_v0 = vld [vmem:[%s27085_s6 + $0x2] ss:$0 sm:$0xff] }
0x240d   : > { %v6883_v55 = vpop.xlane.xlu1 %6882 }
0x240e   : > { %22396 = vrcp.f32 %v6883_v55 }
0x241b   : > { %v22397_v43 = vpop.eup %22396 }
0x241c   : > { %v6885_v58 = vmul.f32 %v22397_v43, %v22395_v61  ;;  %v18173_v61 = vcombine.low %v17858_v11, %v17866_v7  ;;  %v17841_v43 = vld [vmem:[%s27086_s7 + $0x210] sm:$0xff]  ;;  %v21825_v7 = vld [vmem:[%s27088_s9 + $0x8f8] sm:$0xff]  }
0x241e   : > { %v6886_v2 = vpack.c.bf16 %v6885_v58, %v6885_v58  ;;  %v17849_v58 = vld [vmem:[%s27086_s7 + $0x250] sm:$0xff] }
0x2420   : > { %21260 = vmatmul.mubr.msk.bf16.vlgmr.msra.gmra.mxu1 %vm810_vm2, %v6886_v2  ;;  %v17842_v2 = vld [vmem:[%s27086_s7 + $0x218] sm:$0xff] }
0x2421   : > { %7296 = vmatprep.mubr.bf16.mxu1 %v22538_v38  ;;  %7277 = vmatpush1.bf16.msra.mxu1 %v18167_v40  ;;  %v17870_v40 = vld [vmem:[%s27086_s7 + $0x2f8] sm:$0xff] }
0x2422   : > { %7278 = vmatprep.subr.bf16.mxu1 %v18152_v50  ;;  %v17853_v50 = vld [vmem:[%s27086_s7 + $0x270] sm:$0xff] }
0x2423   : > { %v18164_v47 = vcombine.high %v17845_v21, %v17853_v50  ;;  %v18163_v11 = vcombine.low %v17845_v21, %v17853_v50 }
0x2425   : > { %7279 = vmatpush1.bf16.msra.mxu1 %v18151_v22  ;;  %v17854_v22 = vld [vmem:[%s27086_s7 + $0x278] sm:$0xff] }
0x2426   : > { %7358 = vmatprep.subr.bf16.mxu1 %v18172_v49  ;;  %v18166_v17 = vcombine.high %v17846_v28, %v17854_v22  ;;  %v21824_v49 = vld [vmem:[%s27088_s9 + $0x878] sm:$0xff]  }
0x24e0   : > { %v6929_v60 = vpop.f32.mrf.mxu1 }
0x24e1   : > { %v6935_v36 = vpack.c.bf16 %v6929_v60, %v6929_v60  ;;  %v17850_v60 = vld [vmem:[%s27086_s7 + $0x258] sm:$0xff] }
0x24e2   : > { %v21261_v62 = vpop.f32.mrf.mxu1 }
0x24e3   : > { %21266 = vmatmul.mubr.msk.bf16.vlgmr.msra.gmra.mxu0 %vm810_vm2, %v6935_v36 }
0x24e4   : > { %v6932_v59 = vpop.f32.mrf.mxu1  ;;  %7337 = vmatprep.mubr.bf16.mxu0 %v22538_v38 }
0x24e5   : > { %v18156_v59 = vcombine.high %v17841_v43, %v17849_v58 }
0x24e6   : > { %v21262_v63 = vpop.f32.mrf.mxu1 }
0x24e7   : > { %v18158_v63 = vcombine.high %v17842_v2, %v17850_v60 }
0x25a3   : > { %v6976_v16 = vpop.f32.mrf.mxu0 }
0x25a4   : > { %v6982_v18 = vadd.f32 %v6976_v16, %v6824_v56  ;;  %v17867_v16 = vld [vmem:[%s27086_s7 + $0x2e0] sm:$0xff] }
0x25a5   : > { %v21267_v19 = vpop.f32.mrf.mxu0 }
0x25a6   : > { %v6989_v20 = vadd.f32 %v18148_v15, %v6982_v18  ;;  %v17859_v15 = vld [vmem:[%s27086_s7 + $0x2a0] sm:$0xff]  ;;  %v17860_v18 = vld [vmem:[%s27086_s7 + $0x2a8] sm:$0xff] }
0x25a7   : > { %v6979_v13 = vpop.f32.mrf.mxu0  ;;  %v17868_v19 = vld [vmem:[%s27086_s7 + $0x2e8] sm:$0xff] }
0x25a8   : > { %v6990_v25 = vadd.f32 %v6989_v20, %v24154_v48  ;;  %v17856_v48 = vld [vmem:[%s27086_s7 + $0x288] sm:$0xff]  ;;  %v18155_v20 = vcombine.low %v17841_v43, %v17849_v58  ;;  %v18157_v13 = vcombine.low %v17842_v2, %v17850_v60  ;;  %v21836_v43 = vld [vmem:[%s27088_s9 + $0x860] sm:$0xff]  }
0x25a9   : > { %v21268_v26 = vpop.f32.mrf.mxu0  ;;  %v18169_v41 = vcombine.low %v17856_v48, %v17864_v39  ;;  %v18170_v44 = vcombine.high %v17856_v48, %v17864_v39  ;;  %v17861_v48 = vld [vmem:[%s27086_s7 + $0x2b0] sm:$0xff]  ;;  %v17862_v39 = vld [vmem:[%s27086_s7 + $0x2b8] sm:$0xff]  ;;  %v21837_v58 = vld [vmem:[%s27088_s9 + $0x8e0] sm:$0xff]  }
0x25aa   : > { %v6991_v27 = vsel %vm762_vm1, %v6990_v25, 0.0  ;;  %v18178_v26 = vcombine.high %v17860_v18, %v17868_v19  ;;  %v18180_v45 = vcombine.high %v17861_v48, %v17869_v37  ;;  %v18182_v3 = vcombine.high %v17862_v39, %v17870_v40  ;;  %v21838_v2 = vld [vmem:[%s27088_s9 + $0x820] sm:$0xff]  }
0x25ab   : > { %6992 = vadd.xlane.f32.xlu1 %v6991_v27  ;;  %7317 = vmatprep.subr.bf16.mxu0 %v18170_v44  ;;  %v17843_v27 = vld [vmem:[%s27086_s7 + $0x220] sm:$0xff] }
0x25ac   : > { %7318 = vmatpush1.bf16.msra.mxu0 %v18169_v41  ;;  %v21839_v60 = vld [vmem:[%s27088_s9 + $0x8a0] sm:$0xff]  }
0x25ad   : > { %7319 = vmatprep.subr.bf16.mxu0 %v18154_v30  ;;  %v18181_v30 = vcombine.low %v17862_v39, %v17870_v40 }
0x25b0   : > { %7320 = vmatpush1.bf16.msra.mxu0 %v18153_v46  ;;  %v18179_v46 = vcombine.low %v17861_v48, %v17869_v37 }
0x25b1   : > { %7399 = vmatprep.subr.bf16.mxu0 %v18174_v52  ;;  %v21827_v52 = vld [vmem:[%s27088_s9 + $0x8b8] sm:$0xff]  }
0x2634   : > { %v6993_v57 = vpop.xlane.xlu1 %6992 }
0x2635   : > { %v6994_v31 = vmul.f32 0.03125, %v6993_v57  ;;  %v17851_v57 = vld [vmem:[%s27086_s7 + $0x260] sm:$0xff] }
0x2636   : > { %v18160_v35 = vcombine.high %v17843_v27, %v17851_v57  ;;  %v18159_v41 = vcombine.low %v17843_v27, %v17851_v57  ;;  %v21851_v27 = vld [vmem:[%s27088_s9 + $0x888] sm:$0xff]   ;;  %v21852_v57 = vld [vmem:[%s27088_s9 + $0x840] sm:$0xff]  }
0x2637   : > { %v6995_v32 = vsub.f32 %v6990_v25, %v6994_v31  ;;  %v18176_v25 = vcombine.high %v17859_v15, %v17867_v16  ;;  %v17844_v31 = vld [vmem:[%s27086_s7 + $0x228] sm:$0xff] }
0x2639   : > { %v6996_v51 = vmul.f32 %v6995_v32, %v6995_v32 }
0x263b   : > { %v6997_v33 = vsel %vm762_vm1, %v6996_v51, 0.0  ;;  %v18175_v51 = vcombine.low %v17859_v15, %v17867_v16  ;;  %v21843_v15 = vld [vmem:[%s27088_s9 + $0x898] sm:$0xff]   ;;  %v21844_v16 = vld [vmem:[%s27088_s9 + $0x850] sm:$0xff]  }
0x263c   : > { %6998 = vadd.xlane.f32.xlu1 %v6997_v33  ;;  %v18177_v33 = vcombine.low %v17860_v18, %v17868_v19  ;;  %v21845_v18 = vld [vmem:[%s27088_s9 + $0x8d0] sm:$0xff]  }
0x263d   : > { %v21846_v19 = vld [vmem:[%s27088_s9 + $0x810] sm:$0xff]  }
0x26c5   : > { %v6999_v53 = vpop.xlane.xlu1 %6998 }
0x26c6   : > { %v7000_v54 = vmul.f32 0.03125, %v6999_v53  ;;  %v21828_v53 = vld [vmem:[%s27088_s9 + $0x870] sm:$0xff]  }
0x26c8   : > { %v7001_v56 = vadd.f32 1e-05, %v7000_v54  ;;  %v21829_v54 = vld [vmem:[%s27088_s9 + $0x8f0] sm:$0xff]  }
0x26ca   : > { %22398 = vrsqrt.f32 %v7001_v56  ;;  %v21830_v56 = vld [vmem:[%s27088_s9 + $0x830] sm:$0xff]  }
0x26d7   : > { %v22399_v9 = vpop.eup %22398 }
0x26d8   : > { %v7003_v42 = vmul.f32 %v22399_v9, %v6995_v32  ;;  %v17852_v32 = vld [vmem:[%s27086_s7 + $0x268] sm:$0xff]  ;;  %v21831_v9 = vld [vmem:[%s27088_s9 + $0x8b0] sm:$0xff]  }
0x26d9   : > { %v18162_v4 = vcombine.high %v17844_v31, %v17852_v32  ;;  %v18161_v44 = vcombine.low %v17844_v31, %v17852_v32  ;;  %v21853_v31 = vld [vmem:[%s27088_s9 + $0x8c0] sm:$0xff]  }
0x26da   : > { %v7010_v55 = vmul.f32 %v18149_v34, %v7003_v42  ;;  %v21832_v34 = vld [vmem:[%s27088_s9 + $0x868] sm:$0xff]   ;;  %v21854_v32 = vld [vmem:[%s27088_s9 + $0x800] sm:$0xff]  }
0x26db   : > { %v21833_v42 = vld [vmem:[%s27088_s9 + $0x8e8] sm:$0xff]  }
0x26dc   : > { %v24328_v36 = vadd.f32 %v18150_v0, %v7010_v55  ;;  %v21834_v0 = vld [vmem:[%s27088_s9 + $0x828] sm:$0xff]  }
0x26dd   : > { %v21835_v55 = vld [vmem:[%s27088_s9 + $0x8a8] sm:$0xff]  }
0x26de   : > { %v24332_v62 = vpack.c.bf16 %v24328_v36, %v24328_v36 }
0x26e0   : > { %18183 = vmatmul.mubr.msk.bf16.vlgmr.msra.gmra.mxu1 %vm762_vm1, %v24332_v62  ;;  %18184 = vmatmul.mubr.msk.bf16.vlgmr.msra.gmra.mxu0 %vm762_vm1, %v24332_v62 }
0x26e1   : > { %7359 = vmatpush1.bf16.msra.mxu1 %v18171_v12  ;;  %7400 = vmatpush1.bf16.msra.mxu0 %v18173_v61  ;;  %v18165_v12 = vcombine.low %v17846_v28, %v17854_v22  ;;  %v21826_v61 = vld [vmem:[%s27088_s9 + $0x838] sm:$0xff]  }
0x26e2   : > { %7360 = vmatprep.subr.bf16.mxu1 %v18156_v59  ;;  %7401 = vmatprep.subr.bf16.mxu0 %v18158_v63  ;;  %v21841_v59 = vld [vmem:[%s27088_s9 + $0x8d8] sm:$0xff]  }
0x26e3   : > { %7378 = vmatprep.mubr.bf16.mxu1 %v22538_v38  ;;  %7419 = vmatprep.mubr.bf16.mxu0 %v22538_v38  ;;  %v21842_v63 = vld [vmem:[%s27088_s9 + $0x818] sm:$0xff]  }
0x26e5   : > { %7361 = vmatpush1.bf16.msra.mxu1 %v18155_v20  ;;  %7402 = vmatpush1.bf16.msra.mxu0 %v18157_v13  ;;  %v21847_v20 = vld [vmem:[%s27088_s9 + $0x890] sm:$0xff]   ;;  %v21848_v13 = vld [vmem:[%s27088_s9 + $0x848] sm:$0xff]  }
0x26e6   : > { %7440 = vmatprep.subr.bf16.mxu1 %v18176_v25  ;;  %7481 = vmatprep.subr.bf16.mxu0 %v18178_v26  ;;  %v21849_v25 = vld [vmem:[%s27088_s9 + $0x8c8] sm:$0xff]  }
0x26e7   : > { %v21850_v26 = vld [vmem:[%s27088_s9 + $0x808] sm:$0xff]  }
0x26e8   : > { %18185 = vmatmul.mubr.msk.bf16.vlgmr.msra.gmra.mxu1 %vm762_vm1, %v24332_v62  ;;  %18186 = vmatmul.mubr.msk.bf16.vlgmr.msra.gmra.mxu0 %vm762_vm1, %v24332_v62 }
0x26e9   : > { %7441 = vmatpush1.bf16.msra.mxu1 %v18175_v51  ;;  %7482 = vmatpush1.bf16.msra.mxu0 %v18177_v33  ;;  %v21855_v51 = vld [vmem:[%s27088_s9 + $0x880] sm:$0xff]   ;;  %v21856_v33 = vld [vmem:[%s27088_s9 + $0x978] sm:$0xff]  }
0x26ea   : > { %7442 = vmatprep.subr.bf16.mxu1 %v18160_v35  ;;  %7483 = vmatprep.subr.bf16.mxu0 %v18162_v4  ;;  %v21857_v35 = vld [vmem:[%s27088_s9 + $0x9f8] sm:$0xff]   ;;  %v24509_v4 = vld [vmem:[%s27087_s8 + $0x20] sm:$0xff] }
0x26eb   : > { %7460 = vmatprep.mubr.bf16.mxu1 %v22538_v38  ;;  %7501 = vmatprep.mubr.bf16.mxu0 %v22538_v38  ;;  %v7024_v48 = vrot.slane %v24509_v4, %v23031_v5  ;;  %v7032_v37 = vrot.slane %v24509_v4, %v23034_v6  ;;  %v7028_v39 = vrot.slane %v24509_v4, %v23042_v8 }
0x26ec   : > { %v7036_v40 = vrot.slane %v24509_v4, %v23045_v10 }
0x26ed   : > { %7443 = vmatpush1.bf16.msra.mxu1 %v18159_v41  ;;  %7484 = vmatpush1.bf16.msra.mxu0 %v18161_v44 }
0x26ee   : > { %7522 = vmatprep.subr.bf16.mxu1 %v18180_v45  ;;  %7563 = vmatprep.subr.bf16.mxu0 %v18182_v3 }
0x26f0   : > { %18187 = vmatmul.mubr.msk.bf16.vlgmr.msra.gmra.mxu1 %vm762_vm1, %v24332_v62  ;;  %18188 = vmatmul.mubr.msk.bf16.vlgmr.msra.gmra.mxu0 %vm762_vm1, %v24332_v62 }
0x26f1   : > { %7523 = vmatpush1.bf16.msra.mxu1 %v18179_v46  ;;  %7564 = vmatpush1.bf16.msra.mxu0 %v18181_v30 }
0x26f2   : > { %7524 = vmatprep.subr.bf16.mxu1 %v18164_v47  ;;  %7565 = vmatprep.subr.bf16.mxu0 %v18166_v17 }
0x26f3   : > { %7542 = vmatprep.mubr.bf16.mxu1 %v22538_v38  ;;  %7583 = vmatprep.mubr.bf16.mxu0 %v22538_v38 }
0x26f5   : > { %7525 = vmatpush1.bf16.msra.mxu1 %v18163_v11  ;;  %7566 = vmatpush1.bf16.msra.mxu0 %v18165_v12 }
0x26f6   : > { %20244 = vmatprep.subr.bf16.mxu1 %v21824_v49  ;;  %20266 = vmatprep.subr.bf16.mxu0 %v21825_v7 }
0x26f8   : > { %18189 = vmatmul.mubr.msk.bf16.vlgmr.msra.gmra.mxu1 %vm762_vm1, %v24332_v62  ;;  %18190 = vmatmul.mubr.msk.bf16.vlgmr.msra.gmra.mxu0 %vm762_vm1, %v24332_v62  ;;  %v21840_v62 = vld [vmem:[%s27088_s9 + $0x858] sm:$0xff]  }
0x26f9   : > { %20245 = vmatpush3.bf16.msra.mxu1 %v21826_v61  ;;  %20267 = vmatpush3.bf16.msra.mxu0 %v21827_v52 }
0x26fa   : > { %20246 = vmatprep.subr.bf16.mxu1 %v21828_v53  ;;  %20268 = vmatprep.subr.bf16.mxu0 %v21829_v54  ;;  %v7044_v53 = vrot.slane %v24509_v4, %v23056_v23  ;;  %v7052_v54 = vrot.slane %v24509_v4, %v23059_v24 }
0x26fd   : > { %20247 = vmatpush3.bf16.msra.mxu1 %v21830_v56  ;;  %20269 = vmatpush3.bf16.msra.mxu0 %v21831_v9  ;;  %v21858_v56 = vld [vmem:[%s27088_s9 + $0x938] sm:$0xff]  }
0x26fe   : > { %20248 = vmatprep.subr.bf16.mxu1 %v21832_v34  ;;  %20270 = vmatprep.subr.bf16.mxu0 %v21833_v42  ;;  %v21859_v9 = vld [vmem:[%s27088_s9 + $0x9b8] sm:$0xff]  }
0x2701   : > { %20249 = vmatpush3.bf16.msra.mxu1 %v21834_v0  ;;  %20271 = vmatpush3.bf16.msra.mxu0 %v21835_v55 }
0x2702   : > { %20250 = vmatprep.subr.bf16.mxu1 %v21836_v43  ;;  %20272 = vmatprep.subr.bf16.mxu0 %v21837_v58  ;;  %v21860_v43 = vld [vmem:[%s27088_s9 + $0x970] sm:$0xff]  }
0x2703   : > { %v21861_v58 = vld [vmem:[%s27088_s9 + $0x9f0] sm:$0xff]  }
0x2705   : > { %20251 = vmatpush3.bf16.msra.mxu1 %v21838_v2  ;;  %20273 = vmatpush3.bf16.msra.mxu0 %v21839_v60 }
0x2706   : > { %20252 = vmatprep.subr.bf16.mxu1 %v21840_v62  ;;  %20274 = vmatprep.subr.bf16.mxu0 %v21841_v59 }
0x2709   : > { %20253 = vmatpush3.bf16.msra.mxu1 %v21842_v63  ;;  %20275 = vmatpush3.bf16.msra.mxu0 %v21843_v15  ;;  %v21862_v63 = vld [vmem:[%s27088_s9 + $0x930] sm:$0xff]  }
0x270a   : > { %20254 = vmatprep.subr.bf16.mxu1 %v21844_v16  ;;  %20276 = vmatprep.subr.bf16.mxu0 %v21845_v18  ;;  %v21863_v15 = vld [vmem:[%s27088_s9 + $0x9b0] sm:$0xff]  }
0x270d   : > { %20255 = vmatpush3.bf16.msra.mxu1 %v21846_v19  ;;  %20277 = vmatpush3.bf16.msra.mxu0 %v21847_v20  ;;  %v21864_v19 = vld [vmem:[%s27088_s9 + $0x968] sm:$0xff]  }
0x270e   : > { %20256 = vmatprep.subr.bf16.mxu1 %v21848_v13  ;;  %20278 = vmatprep.subr.bf16.mxu0 %v21849_v25  ;;  %v21865_v20 = vld [vmem:[%s27088_s9 + $0x9e8] sm:$0xff]  }
0x2711   : > { %20257 = vmatpush3.bf16.msra.mxu1 %v21850_v26  ;;  %20279 = vmatpush3.bf16.msra.mxu0 %v21851_v27 }
0x2712   : > { %20258 = vmatprep.subr.bf16.mxu1 %v21852_v57  ;;  %20280 = vmatprep.subr.bf16.mxu0 %v21853_v31 }
0x2715   : > { %20259 = vmatpush3.bf16.msra.mxu1 %v21854_v32  ;;  %20281 = vmatpush3.bf16.msra.mxu0 %v21855_v51  ;;  %v21866_v32 = vld [vmem:[%s27088_s9 + $0x928] sm:$0xff]  }
0x2716   : > { %20288 = vmatprep.subr.bf16.mxu1 %v21856_v33  ;;  %20310 = vmatprep.subr.bf16.mxu0 %v21857_v35  ;;  %v21867_v51 = vld [vmem:[%s27088_s9 + $0x9a8] sm:$0xff]  }
0x27a0   : > { %v7298_v41 = vpop.f32.mrf.mxu1  ;;  %v7339_v44 = vpop.f32.mrf.mxu0 }
0x27a1   : > { %v7299_v45 = vadd.f32 %v7298_v41, %v7024_v48  ;;  %v7340_v3 = vadd.f32 %v7339_v44, %v7032_v37  ;;  %v21868_v48 = vld [vmem:[%s27088_s9 + $0x960] sm:$0xff]  }
0x27a2   : > { %v7300_v21 = vpop.f32.mrf.mxu1  ;;  %v7341_v50 = vpop.f32.mrf.mxu0  ;;  %v21869_v37 = vld [vmem:[%s27088_s9 + $0x9e0] sm:$0xff]  }
0x27a3   : > { %v7301_v28 = vadd.f32 %v7300_v21, %v7028_v39  ;;  %v7342_v22 = vadd.f32 %v7341_v50, %v7036_v40  ;;  %v7592_v46 = vmax.f32 %v7299_v45, 0.0  ;;  %v7594_v30 = vmax.f32 %v7340_v3, 0.0  ;;  %v21870_v41 = vld [vmem:[%s27088_s9 + $0x920] sm:$0xff]   ;;  %v24576_v45 = vld [vmem:[%s27087_s8 + $0x28] sm:$0xff]  ;;  %v21872_v50 = vld [vmem:[%s27088_s9 + $0x958] sm:$0xff]  }
0x27a4   : > { %v7302_v47 = vpop.f32.mrf.mxu1  ;;  %v7343_v17 = vpop.f32.mrf.mxu0  ;;  %v21871_v44 = vld [vmem:[%s27088_s9 + $0x9a0] sm:$0xff]  }
0x27a5   : > { %v7593_v11 = vmax.f32 %v7301_v28, 0.0  ;;  %v7595_v12 = vmax.f32 %v7342_v22, 0.0  ;;  %v7608_v34 = vpack.c.bf16 %v7592_v46, %v7592_v46  ;;  %v7610_v42 = vpack.c.bf16 %v7594_v30, %v7594_v30  ;;  %v21873_v28 = vld [vmem:[%s27088_s9 + $0x9d8] sm:$0xff]  }
0x27a6   : > { %v7303_v49 = vpop.f32.mrf.mxu1  ;;  %v7344_v7 = vpop.f32.mrf.mxu0  ;;  %v7080_v22 = vrot.slane %v24576_v45, %v23110_v14  ;;  %v21874_v47 = vld [vmem:[%s27088_s9 + $0x918] sm:$0xff]  }
0x27a7   : > { %v7609_v61 = vpack.c.bf16 %v7593_v11, %v7593_v11  ;;  %v7611_v52 = vpack.c.bf16 %v7595_v12, %v7595_v12  ;;  %v21875_v17 = vld [vmem:[%s27088_s9 + $0x998] sm:$0xff]   ;;  %v21876_v49 = vld [vmem:[%s27088_s9 + $0x950] sm:$0xff]  }
0x27a8   : > { %v24529_v0 = vpop.f32.mrf.mxu1  ;;  %v24531_v55 = vpop.f32.mrf.mxu0  ;;  %v21877_v7 = vld [vmem:[%s27088_s9 + $0x9d0] sm:$0xff]  }
0x27a9   : > { %8430 = vmatprep.mubr.bf16.mxu1 %v7609_v61  ;;  %8470 = vmatprep.mubr.bf16.mxu0 %v7611_v52 }
0x27aa   : > { %v7382_v2 = vpop.f32.mrf.mxu1  ;;  %v7423_v60 = vpop.f32.mrf.mxu0  ;;  %8431 = vmatmul.mubr.bf16.vlgmr.msra.gmra.mxu1 %v7608_v34  ;;  %8471 = vmatmul.mubr.bf16.vlgmr.msra.gmra.mxu0 %v7610_v42  ;;  %v7048_v34 = vrot.slane %v24509_v4, %v23110_v14 }
0x27ab   : > { %v7383_v62 = vadd.f32 %v7382_v2, %v7044_v53  ;;  %v7424_v59 = vadd.f32 %v7423_v60, %v7052_v54  ;;  %20289 = vmatpush3.bf16.msra.mxu1 %v21858_v56  ;;  %20311 = vmatpush3.bf16.msra.mxu0 %v21859_v9  ;;  %v21878_v54 = vld [vmem:[%s27088_s9 + $0x910] sm:$0xff]   ;;  %v7040_v9 = vrot.slane %v24509_v4, %v23138_v29  ;;  %v21881_v2 = vld [vmem:[%s27088_s9 + $0x9c8] sm:$0xff]  }
0x27ac   : > { %v7384_v16 = vpop.f32.mrf.mxu1  ;;  %v7425_v18 = vpop.f32.mrf.mxu0  ;;  %20290 = vmatprep.subr.bf16.mxu1 %v21860_v43  ;;  %20312 = vmatprep.subr.bf16.mxu0 %v21861_v58  ;;  %v21879_v56 = vld [vmem:[%s27088_s9 + $0x990] sm:$0xff]   ;;  %v21880_v58 = vld [vmem:[%s27088_s9 + $0x948] sm:$0xff]   ;;  %v7060_v60 = vrot.slane %v24576_v45, %v23042_v8 }
0x27ad   : > { %v7597_v13 = vmax.f32 %v7383_v62, 0.0  ;;  %v7599_v25 = vmax.f32 %v7424_v59, 0.0  ;;  %v7068_v62 = vrot.slane %v24576_v45, %v23045_v10  ;;  %v7381_v16 = vadd.f32 %v24529_v0, %v7040_v9  ;;  %v21886_v0 = vld [vmem:[%s27088_s9 + $0x900] sm:$0xff]   ;;  %v21906_v9 = vld [vmem:[%s27088_s9 + $0xa18] sm:$0xff]  }
0x27ae   : > { %v7385_v26 = vpop.f32.mrf.mxu1  ;;  %v7426_v27 = vpop.f32.mrf.mxu0  ;;  %v7422_v18 = vadd.f32 %v24531_v55, %v7048_v34  ;;  %v21887_v55 = vld [vmem:[%s27088_s9 + $0x980] sm:$0xff]   ;;  %v21907_v34 = vld [vmem:[%s27088_s9 + $0xa98] sm:$0xff]  }
0x27af   : > { %v7613_v57 = vpack.c.bf16 %v7597_v13, %v7597_v13  ;;  %v7615_v31 = vpack.c.bf16 %v7599_v25, %v7599_v25  ;;  %20291 = vmatpush3.bf16.msra.mxu1 %v21862_v63  ;;  %20313 = vmatpush3.bf16.msra.mxu0 %v21863_v15  ;;  %v21882_v63 = vld [vmem:[%s27088_s9 + $0x908] sm:$0xff]   ;;  %v7596_v26 = vmax.f32 %v7381_v16, 0.0 }
0x27b0   : > { %v24557_v33 = vpop.f32.mrf.mxu1  ;;  %v24559_v35 = vpop.f32.mrf.mxu0  ;;  %20292 = vmatprep.subr.bf16.mxu1 %v21864_v19  ;;  %20314 = vmatprep.subr.bf16.mxu0 %v21865_v20  ;;  %v21883_v15 = vld [vmem:[%s27088_s9 + $0x988] sm:$0xff]   ;;  %v21884_v19 = vld [vmem:[%s27088_s9 + $0x940] sm:$0xff]   ;;  %v7598_v27 = vmax.f32 %v7422_v18, 0.0 }
0x27b1   : > { %8510 = vmatprep.mubr.bf16.mxu1 %v7613_v57  ;;  %8550 = vmatprep.mubr.bf16.mxu0 %v7615_v31  ;;  %v21885_v20 = vld [vmem:[%s27088_s9 + $0x9c0] sm:$0xff]   ;;  %v21888_v57 = vld [vmem:[%s27088_s9 + $0xa78] sm:$0xff]   ;;  %v21914_v16 = vld [vmem:[%s27088_s9 + $0xa08] sm:$0xff]  }
0x27b2   : > { %v7464_v39 = vpop.f32.mrf.mxu1  ;;  %v7505_v40 = vpop.f32.mrf.mxu0  ;;  %v21889_v31 = vld [vmem:[%s27088_s9 + $0xaf8] sm:$0xff]  }
0x27b3   : > { %20293 = vmatpush3.bf16.msra.mxu1 %v21866_v32  ;;  %20315 = vmatpush3.bf16.msra.mxu0 %v21867_v51  ;;  %v7465_v13 = vadd.f32 %v7464_v39, %v7060_v60  ;;  %v7506_v25 = vadd.f32 %v7505_v40, %v7068_v62  ;;  %v7614_v39 = vpack.c.bf16 %v7598_v27, %v7598_v27  ;;  %v21891_v40 = vld [vmem:[%s27088_s9 + $0xab8] sm:$0xff]   ;;  %v21911_v60 = vld [vmem:[%s27088_s9 + $0xa90] sm:$0xff]   ;;  %v21912_v62 = vld [vmem:[%s27088_s9 + $0xa48] sm:$0xff]  }
0x27b4   : > { %v7466_v3 = vpop.f32.mrf.mxu1  ;;  %v7507_v21 = vpop.f32.mrf.mxu0  ;;  %20294 = vmatprep.subr.bf16.mxu1 %v21868_v48  ;;  %20316 = vmatprep.subr.bf16.mxu0 %v21869_v37  ;;  %v21890_v48 = vld [vmem:[%s27088_s9 + $0xa38] sm:$0xff]   ;;  %v7612_v37 = vpack.c.bf16 %v7596_v26, %v7596_v26 }
0x27b5   : > { %v7601_v32 = vmax.f32 %v7465_v13, 0.0  ;;  %v7603_v51 = vmax.f32 %v7506_v25, 0.0  ;;  %v21893_v3 = vld [vmem:[%s27088_s9 + $0xaf0] sm:$0xff]   ;;  %v21917_v25 = vld [vmem:[%s27088_s9 + $0xac0] sm:$0xff]   ;;  %v21920_v27 = vld [vmem:[%s27088_s9 + $0xb78] sm:$0xff]  }
0x27b6   : > { %v7467_v46 = vpop.f32.mrf.mxu1  ;;  %v7508_v30 = vpop.f32.mrf.mxu0 }
0x27b7   : > { %20295 = vmatpush3.bf16.msra.mxu1 %v21870_v41  ;;  %20317 = vmatpush3.bf16.msra.mxu0 %v21871_v44  ;;  %v7617_v41 = vpack.c.bf16 %v7601_v32, %v7601_v32  ;;  %v21892_v44 = vld [vmem:[%s27088_s9 + $0xa70] sm:$0xff]   ;;  %v7619_v21 = vpack.c.bf16 %v7603_v51, %v7603_v51  ;;  %v21897_v46 = vld [vmem:[%s27088_s9 + $0xae8] sm:$0xff]   ;;  %v21922_v32 = vld [vmem:[%s27088_s9 + $0xb38] sm:$0xff]  }
0x27b8   : > { %v24592_v11 = vpop.f32.mrf.mxu1  ;;  %v7585_v12 = vpop.f32.mrf.mxu0  ;;  %20296 = vmatprep.subr.bf16.mxu1 %v21872_v50  ;;  %20318 = vmatprep.subr.bf16.mxu0 %v21873_v28  ;;  %v21894_v50 = vld [vmem:[%s27088_s9 + $0xa30] sm:$0xff]   ;;  %v21898_v30 = vld [vmem:[%s27088_s9 + $0xa28] sm:$0xff]  }
0x27b9   : > { %v24600_v61 = vadd.f32 %v7585_v12, %v7080_v22  ;;  %v21895_v28 = vld [vmem:[%s27088_s9 + $0xab0] sm:$0xff]   ;;  %v21896_v22 = vld [vmem:[%s27088_s9 + $0xa68] sm:$0xff]   ;;  %v21901_v12 = vld [vmem:[%s27088_s9 + $0xae0] sm:$0xff]  }
0x27ba   : > { %v24602_v52 = vpop.f32.mrf.mxu1  ;;  %v24604_v53 = vpop.f32.mrf.mxu0 }
0x27bb   : > { %20297 = vmatpush3.bf16.msra.mxu1 %v21874_v47  ;;  %20319 = vmatpush3.bf16.msra.mxu0 %v21875_v17  ;;  %v21899_v47 = vld [vmem:[%s27088_s9 + $0xaa8] sm:$0xff]   ;;  %v21900_v17 = vld [vmem:[%s27088_s9 + $0xa60] sm:$0xff]  }
0x27bc   : > { %v7548_v42 = vpop.f32.mrf.mxu1  ;;  %v7589_v43 = vpop.f32.mrf.mxu0  ;;  %20298 = vmatprep.subr.bf16.mxu1 %v21876_v49  ;;  %20320 = vmatprep.subr.bf16.mxu0 %v21877_v7  ;;  %v21902_v49 = vld [vmem:[%s27088_s9 + $0xa20] sm:$0xff]  }
0x27bd   : > { %v21903_v7 = vld [vmem:[%s27088_s9 + $0xaa0] sm:$0xff]   ;;  %v21908_v42 = vld [vmem:[%s27088_s9 + $0xa50] sm:$0xff]  }
0x27be   : > { %v7549_v59 = vpop.f32.mrf.mxu1  ;;  %v7590_v4 = vpop.f32.mrf.mxu0  ;;  %v21909_v43 = vld [vmem:[%s27088_s9 + $0xad0] sm:$0xff]  }
0x27bf   : > { %20299 = vmatpush3.bf16.msra.mxu1 %v21878_v54  ;;  %20321 = vmatpush3.bf16.msra.mxu0 %v21879_v56  ;;  %v21904_v54 = vld [vmem:[%s27088_s9 + $0xa58] sm:$0xff]   ;;  %v7064_v59 = vrot.slane %v24576_v45, %v23034_v6  ;;  %v21913_v4 = vld [vmem:[%s27088_s9 + $0xac8] sm:$0xff]  }
0x27c0   : > { %20300 = vmatprep.subr.bf16.mxu1 %v21880_v58  ;;  %20322 = vmatprep.subr.bf16.mxu0 %v21881_v2  ;;  %v21905_v56 = vld [vmem:[%s27088_s9 + $0xad8] sm:$0xff]   ;;  %v21910_v58 = vld [vmem:[%s27088_s9 + $0xa10] sm:$0xff]   ;;  %v7056_v2 = vrot.slane %v24576_v45, %v23031_v5 }
0x27c1   : > { %v7504_v13 = vadd.f32 %v24559_v35, %v7064_v59  ;;  %v21919_v35 = vld [vmem:[%s27088_s9 + $0xa80] sm:$0xff]   ;;  %v21947_v59 = vld [vmem:[%s27088_s9 + $0xb88] sm:$0xff]  }
0x27c2   : > { %v7463_v18 = vadd.f32 %v24557_v33, %v7056_v2  ;;  %v21944_v2 = vld [vmem:[%s27088_s9 + $0xb48] sm:$0xff]  }
0x27c3   : > { %20301 = vmatpush3.bf16.msra.mxu1 %v21882_v63  ;;  %20323 = vmatpush3.bf16.msra.mxu0 %v21883_v15  ;;  %v7076_v63 = vrot.slane %v24576_v45, %v23056_v23  ;;  %v7084_v15 = vrot.slane %v24576_v45, %v23059_v24 }
0x27c4   : > { %20302 = vmatprep.subr.bf16.mxu1 %v21884_v19  ;;  %20324 = vmatprep.subr.bf16.mxu0 %v21885_v20  ;;  %v21915_v19 = vld [vmem:[%s27088_s9 + $0xa88] sm:$0xff]   ;;  %v21916_v20 = vld [vmem:[%s27088_s9 + $0xa40] sm:$0xff]   ;;  %v7600_v26 = vmax.f32 %v7463_v18, 0.0  ;;  %v7606_v18 = vmax.f32 %v24600_v61, 0.0 }
0x27c5   : > { %v7588_v33 = vadd.f32 %v24604_v53, %v7084_v15  ;;  %v18191_v61 = vld [vmem:[%s27089_s10 + $0x2] ss:$0 sm:$0xff] }
0x27c6   : > { %v7616_v51 = vpack.c.bf16 %v7600_v26, %v7600_v26 }
0x27c7   : > { %20303 = vmatpush3.bf16.msra.mxu1 %v21886_v0  ;;  %20325 = vmatpush3.bf16.msra.mxu0 %v21887_v55  ;;  %v7547_v0 = vadd.f32 %v24602_v52, %v7076_v63  ;;  %v21918_v55 = vld [vmem:[%s27088_s9 + $0xa00] sm:$0xff]   ;;  %v21921_v52 = vld [vmem:[%s27088_s9 + $0xbf8] sm:$0xff]  }
0x27c8   : > { %20332 = vmatprep.subr.bf16.mxu1 %v21888_v57  ;;  %20354 = vmatprep.subr.bf16.mxu0 %v21889_v31  ;;  %v7602_v57 = vmax.f32 %v7504_v13, 0.0  ;;  %v7607_v31 = vmax.f32 %v7588_v33, 0.0  ;;  %v21949_v63 = vld [vmem:[%s27088_s9 + $0xbc0] sm:$0xff]  }
0x27c9   : > { %v7605_v53 = vmax.f32 %v7547_v0, 0.0 }
0x27ca   : > { %8511 = vmatmul.mubr.bf16.vlgmr.msra.gmra.mxu1 %v7612_v37  ;;  %8551 = vmatmul.mubr.bf16.vlgmr.msra.gmra.mxu0 %v7614_v39  ;;  %v7618_v37 = vpack.c.bf16 %v7602_v57, %v7602_v57  ;;  %v21924_v39 = vld [vmem:[%s27088_s9 + $0xb70] sm:$0xff]  }
0x27cb   : > { %20333 = vmatpush3.bf16.msra.mxu1 %v21890_v48  ;;  %8590 = vmatprep.mubr.bf16.mxu1 %v7617_v41  ;;  %v21923_v48 = vld [vmem:[%s27088_s9 + $0xbb8] sm:$0xff]   ;;  %v21925_v41 = vld [vmem:[%s27088_s9 + $0xbf0] sm:$0xff]  }
0x27cc   : > { %20355 = vmatpush3.bf16.msra.mxu0 %v21891_v40  ;;  %8630 = vmatprep.mubr.bf16.mxu0 %v7619_v21  ;;  %v7621_v40 = vpack.c.bf16 %v7605_v53, %v7605_v53  ;;  %v21927_v21 = vld [vmem:[%s27088_s9 + $0xbb0] sm:$0xff]  }
0x27cd   : > { %20334 = vmatprep.subr.bf16.mxu1 %v21892_v44  ;;  %20356 = vmatprep.subr.bf16.mxu0 %v21893_v3  ;;  %v7623_v44 = vpack.c.bf16 %v7607_v31, %v7607_v31  ;;  %v21926_v3 = vld [vmem:[%s27088_s9 + $0xb30] sm:$0xff]  }
0x27cf   : > { %20335 = vmatpush3.bf16.msra.mxu1 %v21894_v50  ;;  %v21928_v50 = vld [vmem:[%s27088_s9 + $0xb68] sm:$0xff]  }
0x27d0   : > { %20357 = vmatpush3.bf16.msra.mxu0 %v21895_v28  ;;  %20336 = vmatprep.subr.bf16.mxu1 %v21896_v22  ;;  %v21929_v28 = vld [vmem:[%s27088_s9 + $0xbe8] sm:$0xff]  }
0x27d1   : > { %20358 = vmatprep.subr.bf16.mxu0 %v21897_v46  ;;  %v21930_v22 = vld [vmem:[%s27088_s9 + $0xb28] sm:$0xff]  }
0x27d2   : > { %v21931_v46 = vld [vmem:[%s27088_s9 + $0xba8] sm:$0xff]  }
0x27d3   : > { %20337 = vmatpush3.bf16.msra.mxu1 %v21898_v30  ;;  %v21932_v30 = vld [vmem:[%s27088_s9 + $0xb60] sm:$0xff]  }
0x27d4   : > { %20359 = vmatpush3.bf16.msra.mxu0 %v21899_v47  ;;  %20338 = vmatprep.subr.bf16.mxu1 %v21900_v17  ;;  %v21933_v47 = vld [vmem:[%s27088_s9 + $0xbe0] sm:$0xff]  }
0x27d5   : > { %20360 = vmatprep.subr.bf16.mxu0 %v21901_v12  ;;  %v21934_v17 = vld [vmem:[%s27088_s9 + $0xb20] sm:$0xff]  }
0x27d6   : > { %v21935_v12 = vld [vmem:[%s27088_s9 + $0xba0] sm:$0xff]  }
0x27d7   : > { %20339 = vmatpush3.bf16.msra.mxu1 %v21902_v49  ;;  %v21936_v49 = vld [vmem:[%s27088_s9 + $0xb58] sm:$0xff]  }
0x27d8   : > { %20361 = vmatpush3.bf16.msra.mxu0 %v21903_v7  ;;  %20340 = vmatprep.subr.bf16.mxu1 %v21904_v54  ;;  %v21937_v7 = vld [vmem:[%s27088_s9 + $0xbd8] sm:$0xff]  }
0x27d9   : > { %20362 = vmatprep.subr.bf16.mxu0 %v21905_v56  ;;  %v21938_v54 = vld [vmem:[%s27088_s9 + $0xb18] sm:$0xff]  }
0x27da   : > { %v21939_v56 = vld [vmem:[%s27088_s9 + $0xb98] sm:$0xff]  }
0x27db   : > { %20341 = vmatpush3.bf16.msra.mxu1 %v21906_v9  ;;  %v21940_v9 = vld [vmem:[%s27088_s9 + $0xb50] sm:$0xff]  }
0x27dc   : > { %20363 = vmatpush3.bf16.msra.mxu0 %v21907_v34  ;;  %20342 = vmatprep.subr.bf16.mxu1 %v21908_v42  ;;  %v21941_v34 = vld [vmem:[%s27088_s9 + $0xbd0] sm:$0xff]  }
0x27dd   : > { %20364 = vmatprep.subr.bf16.mxu0 %v21909_v43  ;;  %v21942_v42 = vld [vmem:[%s27088_s9 + $0xb10] sm:$0xff]   ;;  %v7072_v43 = vrot.slane %v24576_v45, %v23138_v29  ;;  %v21946_v45 = vld [vmem:[%s27088_s9 + $0xb08] sm:$0xff]  }
0x27df   : > { %20343 = vmatpush3.bf16.msra.mxu1 %v21910_v58  ;;  %v21943_v58 = vld [vmem:[%s27088_s9 + $0xb90] sm:$0xff]  }
0x27e0   : > { %20365 = vmatpush3.bf16.msra.mxu0 %v21911_v60  ;;  %20344 = vmatprep.subr.bf16.mxu1 %v21912_v62  ;;  %v21945_v60 = vld [vmem:[%s27088_s9 + $0xbc8] sm:$0xff]   ;;  %v7545_v62 = vadd.f32 %v24592_v11, %v7072_v43  ;;  %v21950_v11 = vld [vmem:[%s27088_s9 + $0xb00] sm:$0xff]  }
0x27e1   : > { %20366 = vmatprep.subr.bf16.mxu0 %v21913_v4  ;;  %v21948_v4 = vld [vmem:[%s27088_s9 + $0xb40] sm:$0xff]  }
0x27e2   : > { %v7604_v15 = vmax.f32 %v7545_v62, 0.0 }
0x27e3   : > { %20345 = vmatpush3.bf16.msra.mxu1 %v21914_v16  ;;  %v21951_v16 = vld [vmem:[%s27088_s9 + $0xb80] sm:$0xff]  }
0x27e4   : > { %20367 = vmatpush3.bf16.msra.mxu0 %v21915_v19  ;;  %20346 = vmatprep.subr.bf16.mxu1 %v21916_v20  ;;  %v7620_v19 = vpack.c.bf16 %v7604_v15, %v7604_v15  ;;  %v7622_v20 = vpack.c.bf16 %v7606_v18, %v7606_v18 }
0x27e5   : > { %20368 = vmatprep.subr.bf16.mxu0 %v21917_v25 }
0x27e7   : > { %20347 = vmatpush3.bf16.msra.mxu1 %v21918_v55 }
0x27e8   : > { %20369 = vmatpush3.bf16.msra.mxu0 %v21919_v35  ;;  %20376 = vmatprep.subr.bf16.mxu1 %v21920_v27 }
0x27e9   : > { %20398 = vmatprep.subr.bf16.mxu0 %v21921_v52 }
0x27ea   : > { %8591 = vmatmul.mubr.bf16.vlgmr.msra.gmra.mxu1 %v7616_v51 }
0x27eb   : > { %8631 = vmatmul.mubr.bf16.vlgmr.msra.gmra.mxu0 %v7618_v37  ;;  %20377 = vmatpush3.bf16.msra.mxu1 %v21922_v32 }
0x27ec   : > { %8670 = vmatprep.mubr.bf16.mxu1 %v7621_v40  ;;  %20399 = vmatpush3.bf16.msra.mxu0 %v21923_v48 }
0x27ed   : > { %8710 = vmatprep.mubr.bf16.mxu0 %v7623_v44  ;;  %20378 = vmatprep.subr.bf16.mxu1 %v21924_v39 }
0x27ee   : > { %20400 = vmatprep.subr.bf16.mxu0 %v21925_v41 }
0x27ef   : > { %20379 = vmatpush3.bf16.msra.mxu1 %v21926_v3 }
0x27f0   : > { %20401 = vmatpush3.bf16.msra.mxu0 %v21927_v21  ;;  %20380 = vmatprep.subr.bf16.mxu1 %v21928_v50 }
0x27f1   : > { %20402 = vmatprep.subr.bf16.mxu0 %v21929_v28 }
0x27f3   : > { %20381 = vmatpush3.bf16.msra.mxu1 %v21930_v22 }
0x27f4   : > { %20403 = vmatpush3.bf16.msra.mxu0 %v21931_v46  ;;  %20382 = vmatprep.subr.bf16.mxu1 %v21932_v30 }
0x27f5   : > { %20404 = vmatprep.subr.bf16.mxu0 %v21933_v47 }
0x27f7   : > { %20383 = vmatpush3.bf16.msra.mxu1 %v21934_v17 }
0x27f8   : > { %20405 = vmatpush3.bf16.msra.mxu0 %v21935_v12  ;;  %20384 = vmatprep.subr.bf16.mxu1 %v21936_v49 }
0x27f9   : > { %20406 = vmatprep.subr.bf16.mxu0 %v21937_v7 }
0x27fb   : > { %20385 = vmatpush3.bf16.msra.mxu1 %v21938_v54 }
0x27fc   : > { %20407 = vmatpush3.bf16.msra.mxu0 %v21939_v56  ;;  %20386 = vmatprep.subr.bf16.mxu1 %v21940_v9 }
0x27fd   : > { %20408 = vmatprep.subr.bf16.mxu0 %v21941_v34 }
0x27ff   : > { %20387 = vmatpush3.bf16.msra.mxu1 %v21942_v42 }
0x2800   : > { %20409 = vmatpush3.bf16.msra.mxu0 %v21943_v58  ;;  %20388 = vmatprep.subr.bf16.mxu1 %v21944_v2 }
0x2801   : > { %20410 = vmatprep.subr.bf16.mxu0 %v21945_v60 }
0x2803   : > { %20389 = vmatpush3.bf16.msra.mxu1 %v21946_v45 }
0x2804   : > { %20411 = vmatpush3.bf16.msra.mxu0 %v21947_v59  ;;  %20390 = vmatprep.subr.bf16.mxu1 %v21948_v4 }
0x2805   : > { %20412 = vmatprep.subr.bf16.mxu0 %v21949_v63 }
0x2807   : > { %20391 = vmatpush3.bf16.msra.mxu1 %v21950_v11 }
0x2808   : > { %20413 = vmatpush3.bf16.msra.mxu0 %v21951_v16  ;;  %21269 = vmatprep.subr.bf16.mxu1 %v22525_v1 }
0x2809   : > { %21277 = vmatprep.subr.bf16.mxu0 %v22525_v1 }
0x280a   : > { %8671 = vmatmul.mubr.bf16.vlgmr.msra.gmra.mxu1 %v7620_v19 }
0x280b   : > { %8711 = vmatmul.mubr.bf16.vlgmr.msra.gmra.mxu0 %v7622_v20  ;;  %21273 = vmatprep.mubr.msk.bf16.mxu1 %vm22526_vm0, %v22525_v1 }
0x280c   : > { %21279 = vmatprep.mubr.msk.bf16.mxu0 %vm22526_vm0, %v22525_v1 }
0x286a   : > { %v20260_v13 = vpop.f32.mrf.mxu1  ;;  %v20282_v25 = vpop.f32.mrf.mxu0 }
0x286c   : > { %v20261_v0 = vpop.f32.mrf.mxu1  ;;  %v20283_v33 = vpop.f32.mrf.mxu0 }
0x286d   : > { %v20262_v55 = vadd.f32 %v20261_v0, %v20260_v13  ;;  %v20284_v26 = vadd.f32 %v20283_v33, %v20282_v25  ;;  %v21952_v0 = vld [vmem:[%s27080_s1 + $0x38] sm:$0xff]   ;;  %v21953_v33 = vld [vmem:[%s27080_s1 + $0x30] sm:$0xff]  }
0x286e   : > { %v20263_v35 = vpop.f32.mrf.mxu1  ;;  %v20285_v27 = vpop.f32.mrf.mxu0  ;;  %21270 = vmatpush3.bf16.msra.mxu1 %v21952_v0 }
0x286f   : > { %v8433_v57 = vadd.f32 %v20262_v55, %v18191_v61  ;;  %21271 = vmatprep.subr.bf16.mxu1 %v22525_v1  ;;  %v18320_v27 = vld [vmem:[%s27090_s11 + $0x2] ss:$0 sm:$0xff] }
0x2870   : > { %v20264_v52 = vpop.f32.mrf.mxu1  ;;  %v20286_v53 = vpop.f32.mrf.mxu0 }
0x2871   : > { %v8473_v31 = vadd.f32 %v20284_v26, %v8433_v57  ;;  %v18321_v52 = vld [vmem:[%s27091_s12 + $0x2] ss:$0 sm:$0xff] }
0x2872   : > { %21272 = vmatpush3.bf16.msra.mxu1 %v21953_v33 }
0x2873   : > { %21283 = vmatprep.subr.bf16.mxu1 %v22525_v1 }
0x288a   : > { %v20304_v32 = vpop.f32.mrf.mxu1  ;;  %v20326_v51 = vpop.f32.mrf.mxu0 }
0x288c   : > { %v20305_v48 = vpop.f32.mrf.mxu1  ;;  %v20327_v37 = vpop.f32.mrf.mxu0 }
0x288d   : > { %v20306_v17 = vadd.f32 %v20305_v48, %v20304_v32  ;;  %v20328_v49 = vadd.f32 %v20327_v37, %v20326_v51  ;;  %v18627_v51 = vld [vmem:[%s27081_s2 + $0x3] ss:$0 sm:$0xff] }
0x288e   : > { %v20307_v39 = vpop.f32.mrf.mxu1  ;;  %v20329_v40 = vpop.f32.mrf.mxu0 }
0x288f   : > { %v8513_v12 = vadd.f32 %v20306_v17, %v8473_v31 }
0x2890   : > { %v20308_v41 = vpop.f32.mrf.mxu1  ;;  %v20330_v44 = vpop.f32.mrf.mxu0 }
0x2891   : > { %v8553_v54 = vadd.f32 %v20328_v49, %v8513_v12 }
0x28aa   : > { %v20348_v3 = vpop.f32.mrf.mxu1 }
0x28ab   : > { %v20370_v21 = vpop.f32.mrf.mxu0 }
0x28ac   : > { %v20349_v50 = vpop.f32.mrf.mxu1 }
0x28ad   : > { %v20371_v28 = vpop.f32.mrf.mxu0  ;;  %v20350_v7 = vadd.f32 %v20349_v50, %v20348_v3 }
0x28ae   : > { %v20351_v22 = vpop.f32.mrf.mxu1  ;;  %v20372_v34 = vadd.f32 %v20371_v28, %v20370_v21 }
0x28af   : > { %v20373_v46 = vpop.f32.mrf.mxu0  ;;  %v8593_v56 = vadd.f32 %v20350_v7, %v8553_v54 }
0x28b0   : > { %v20352_v30 = vpop.f32.mrf.mxu1 }
0x28b1   : > { %v20374_v47 = vpop.f32.mrf.mxu0  ;;  %v8633_v58 = vadd.f32 %v20372_v34, %v8593_v56 }
0x28ca   : > { %v20392_v9 = vpop.f32.mrf.mxu1 }
0x28cb   : > { %v20414_v42 = vpop.f32.mrf.mxu0 }
0x28cc   : > { %v20393_v43 = vpop.f32.mrf.mxu1 }
0x28cd   : > { %v20394_v2 = vadd.f32 %v20393_v43, %v20392_v9  ;;  %v20415_v60 = vpop.f32.mrf.mxu0 }
0x28ce   : > { %v20395_v45 = vpop.f32.mrf.mxu1  ;;  %v20416_v59 = vadd.f32 %v20415_v60, %v20414_v42 }
0x28cf   : > { %v8673_v62 = vadd.f32 %v20394_v2, %v8633_v58  ;;  %v20417_v4 = vpop.f32.mrf.mxu0 }
0x28d0   : > { %v20396_v63 = vpop.f32.mrf.mxu1 }
0x28d1   : > { %v8713_v11 = vadd.f32 %v20416_v59, %v8673_v62  ;;  %v20418_v15 = vpop.f32.mrf.mxu0 }
0x28d3   : > { %v8718_v16 = vadd.f32 %v8713_v11, %v24328_v36 }
0x28d5   : > { %v8719_v18 = vsel %vm762_vm1, %v8718_v16, 0.0 }
0x28d6   : > { %8720 = vadd.xlane.f32.xlu1 %v8719_v18 }
0x295f   : > { %v8721_v19 = vpop.xlane.xlu1 %8720 }
0x2960   : > { %v8722_v20 = vmul.f32 0.03125, %v8721_v19 }
0x2962   : > { %v8723_v13 = vsub.f32 %v8718_v16, %v8722_v20 }
0x2964   : > { %v8724_v25 = vmul.f32 %v8723_v13, %v8723_v13 }
0x2966   : > { %v8725_v61 = vsel %vm762_vm1, %v8724_v25, 0.0 }
0x2967   : > { %8726 = vadd.xlane.f32.xlu1 %v8725_v61 }
0x29f0   : > { %v8727_v36 = vpop.xlane.xlu1 %8726 }
0x29f1   : > { %v8728_v55 = vmul.f32 0.03125, %v8727_v36  ;;  %v18327_v36 = vld [vmem:[%s27082_s3 + $0x30] sm:$0xf] }
0x29f3   : > { %v8729_v26 = vadd.f32 1e-05, %v8728_v55  ;;  %v9397_v55 = vsel %vm874_vm3, %v18327_v36, 0 }
0x29f5   : > { %22400 = vrsqrt.f32 %v8729_v26  ;;  %v18328_v26 = vld [vmem:[%s27082_s3 + $0x34] sm:$0xf] }
0x2a02   : > { %v22401_v35 = vpop.eup %22400 }
0x2a03   : > { %v8731_v57 = vmul.f32 %v22401_v35, %v8723_v13  ;;  %v9351_v35 = vsel %vm874_vm3, %v18328_v26, 0 }
0x2a05   : > { %v8738_v53 = vmul.f32 %v18320_v27, %v8731_v57 }
0x2a07   : > { %v24880_v31 = vadd.f32 %v18321_v52, %v8738_v53 }
0x2a09   : > { %v9063_v32 = vpack.c.bf16 %v24880_v31, %v24880_v31 }
0x2a0b   : > { %21274 = vmatmul.mubr.msk.bf16.vlgmr.msra.gmra.mxu1 %vm762_vm1, %v9063_v32 }
0x2a0c   : > { %21285 = vmatprep.mubr.msk.bf16.mxu1 %vm22526_vm0, %v22525_v1 }
0x2acb   : > { %v9119_v48 = vpop.f32.mrf.mxu1 }
0x2acc   : > { %v9120_v37 = vadd.f32 %v18627_v51, %v9119_v48 }
0x2acd   : > { %v21275_v39 = vpop.f32.mrf.mxu1 }
0x2ace   : > { %v24890_v40 = vpack.c.bf16 %v9120_v37, %v9120_v37 }
0x2acf   : > { %v9122_v41 = vpop.f32.mrf.mxu1 }
0x2ad0   : > { %9238 = vrot.lane.b32.xlu0 %v24890_v40, %s27143_s0  ;;  %9127 = vrot.lane.b32.xlu1 %v24890_v40, %s27144_s17 }
0x2ad1   : > { %v21276_v44 = vpop.f32.mrf.mxu1 }
0x2ad4   : > { %9236 = vrot.lane.b32.xlu0 %v24890_v40, %s27145_s24 }
0x2b42   : > { %v9128_v3 = vpop.permute.xlu1 %9127  ;;  %v9239_v50 = vpop.permute.xlu0 %9238 }
0x2b43   : > { %v9133_v21 = vsel %vm810_vm2, %v9128_v3, 0  ;;  %v9244_v28 = vsel %vm810_vm2, %v9239_v50, 0 }
0x2b44   : > { %21278 = vmatpush3.bf16.xpose.msra.mxu0 %v9133_v21 }
0x2b45   : > { %21289 = vmatprep.subr.bf16.mxu0 %v22525_v1 }
0x2b46   : > { %v9237_v22 = vpop.permute.xlu0 %9236 }
0x2b4b   : > { %21280 = vmatmul.mubr.msk.bf16.vlgmr.msra.gmra.mxu0 %vm810_vm2, %v24890_v40 }
0x2b4c   : > { %21290 = vmatpush3.bf16.xpose.msra.mxu0 %v9244_v28  ;;  %21291 = vmatprep.mubr.msk.bf16.mxu0 %vm22526_vm0, %v22525_v1 }
0x2b4d   : > { %21301 = vmatprep.subr.bf16.mxu0 %v22525_v1 }
0x2b53   : > { %21292 = vmatmul.mubr.msk.bf16.vlgmr.msra.gmra.mxu0 %vm810_vm2, %v9237_v22 }
0x2b54   : > { %21303 = vmatprep.mubr.msk.bf16.mxu0 %vm22526_vm0, %v22525_v1  ;;  %21302 = vmatpush3.bf16.msra.mxu0 %v9351_v35 }
0x2b55   : > { %21313 = vmatprep.subr.bf16.mxu0 %v22525_v1 }
0x2c0b   : > { %v9169_v46 = vpop.f32.mrf.mxu0 }
0x2c0c   : > { %v9175_v30 = vsel %vm810_vm2, %v9169_v46, -inf }
0x2c0d   : > { %9176 = vmax.xlane.f32.xlu0 %v9175_v30  ;;  %v21281_v47 = vpop.f32.mrf.mxu0 }
0x2c0f   : > { %v9172_v17 = vpop.f32.mrf.mxu0 }
0x2c11   : > { %v21282_v12 = vpop.f32.mrf.mxu0 }
0x2c13   : > { %v9280_v49 = vpop.f32.mrf.mxu0 }
0x2c14   : > { %v9286_v7 = vsel %vm810_vm2, %v9280_v49, -inf }
0x2c15   : > { %9287 = vmax.xlane.f32.xlu1 %v9286_v7  ;;  %v21293_v54 = vpop.f32.mrf.mxu0 }
0x2c17   : > { %v9283_v56 = vpop.f32.mrf.mxu0 }
0x2c19   : > { %v21294_v9 = vpop.f32.mrf.mxu0 }
0x2c26   : > { %9298 = vrot.lane.b32.xlu1 %v24890_v40, %s27146_s30 }
0x2c2a   : > { %9439 = vrot.lane.b32.xlu1 %v24890_v40, %s27147_s16 }
0x2c96   : > { %v9177_v34 = vpop.xlane.xlu0 %9176 }
0x2c97   : > { %v9178_v42 = vsub.f32 %v9169_v46, %v9177_v34 }
0x2c99   : > { %v9179_v43 = vmul.f32 1.442695, %v9178_v42 }
0x2c9b   : > { %22402 = vpow2.f32 %v9179_v43 }
0x2c9e   : > { %v9288_v58 = vpop.xlane.xlu1 %9287 }
0x2c9f   : > { %v9289_v2 = vsub.f32 %v9280_v49, %v9288_v58 }
0x2ca1   : > { %v9290_v60 = vmul.f32 1.442695, %v9289_v2 }
0x2ca2   : > { %v9299_v20 = vpop.permute.xlu1 %9298 }
0x2ca3   : > { %22404 = vpow2.f32 %v9290_v60  ;;  %v9304_v25 = vsel %vm874_vm3, %v9299_v20, 0 }
0x2ca6   : > { %v9440_v21 = vpop.permute.xlu1 %9439 }
0x2ca8   : > { %v22403_v45 = vpop.eup %22402 }
0x2ca9   : > { %v9181_v62 = vsel %vm810_vm2, %v22403_v45, 0.0 }
0x2caa   : > { %9182 = vadd.xlane.f32.xlu0 %v9181_v62 }
0x2cb0   : > { %v22405_v59 = vpop.eup %22404 }
0x2cb1   : > { %v9292_v4 = vsel %vm810_vm2, %v22405_v59, 0.0 }
0x2cb2   : > { %9293 = vadd.xlane.f32.xlu0 %v9292_v4 }
0x2cc8   : > { %9187 = vrot.lane.b32.xlu0 %v24890_v40, %s27148_s22 }
0x2ccc   : > { %9441 = vrot.lane.b32.xlu0 %v24890_v40, %s27149_s21 }
0x2d33   : > { %v9183_v63 = vpop.xlane.xlu0 %9182 }
0x2d34   : > { %22406 = vrcp.f32 %v9183_v63 }
0x2d3b   : > { %v9294_v11 = vpop.xlane.xlu0 %9293 }
0x2d3c   : > { %22408 = vrcp.f32 %v9294_v11 }
0x2d3f   : > { %v9188_v15 = vpop.permute.xlu0 %9187 }
0x2d40   : > { %v9193_v16 = vsel %vm874_vm3, %v9188_v15, 0 }
0x2d41   : > { %v22407_v18 = vpop.eup %22406  ;;  %21284 = vmatpush3.bf16.msra.mxu1 %v9193_v16 }
0x2d42   : > { %v9185_v19 = vmul.f32 %v22407_v18, %v22403_v45  ;;  %21295 = vmatprep.subr.bf16.mxu1 %v22525_v1 }
0x2d43   : > { %v9442_v51 = vpop.permute.xlu0 %9441 }
0x2d44   : > { %v9186_v13 = vpack.c.bf16 %v9185_v19, %v9185_v19  ;;  %v9447_v41 = vsel %vm810_vm2, %v9442_v51, 0  ;;  %v18329_v19 = vld [vmem:[%s27082_s3 + $0x38] sm:$0xf] }
0x2d45   : > { %v9554_v20 = vsel %vm874_vm3, %v18329_v19, 0 }
0x2d46   : > { %21286 = vmatmul.mubr.msk.bf16.vlgmr.msra.gmra.mxu1 %vm810_vm2, %v9186_v13 }
0x2d47   : > { %21296 = vmatpush3.bf16.msra.mxu1 %v9304_v25  ;;  %21297 = vmatprep.mubr.msk.bf16.mxu1 %vm22526_vm0, %v22525_v1 }
0x2d48   : > { %21307 = vmatprep.subr.bf16.mxu1 %v22525_v1 }
0x2d49   : > { %v22409_v61 = vpop.eup %22408 }
0x2d4a   : > { %v9296_v0 = vmul.f32 %v22409_v61, %v22405_v59 }
0x2d4c   : > { %v9297_v33 = vpack.c.bf16 %v9296_v0, %v9296_v0 }
0x2d4e   : > { %21298 = vmatmul.mubr.msk.bf16.vlgmr.msra.gmra.mxu1 %vm810_vm2, %v9297_v33 }
0x2d4f   : > { %21309 = vmatprep.mubr.msk.bf16.mxu1 %vm22526_vm0, %v22525_v1  ;;  %21308 = vmatpush3.bf16.msra.mxu1 %v9397_v55 }
0x2d50   : > { %21319 = vmatprep.subr.bf16.mxu1 %v22525_v1 }
0x2e06   : > { %v9229_v27 = vpop.f32.mrf.mxu1 }
0x2e07   : > { %v9235_v57 = vpack.c.bf16 %v9229_v27, %v9229_v27 }
0x2e08   : > { %v21287_v52 = vpop.f32.mrf.mxu1 }
0x2e09   : > { %21310 = vmatmul.mubr.msk.bf16.vlgmr.msra.gmra.mxu1 %vm810_vm2, %v9235_v57 }
0x2e0a   : > { %v9232_v53 = vpop.f32.mrf.mxu1  ;;  %21321 = vmatprep.mubr.msk.bf16.mxu1 %vm22526_vm0, %v22525_v1 }
0x2e0c   : > { %v21288_v32 = vpop.f32.mrf.mxu1 }
0x2e0e   : > { %v9340_v48 = vpop.f32.mrf.mxu1 }
0x2e0f   : > { %v9346_v37 = vpack.c.bf16 %v9340_v48, %v9340_v48 }
0x2e10   : > { %v21299_v39 = vpop.f32.mrf.mxu1 }
0x2e11   : > { %21304 = vmatmul.mubr.msk.bf16.vlgmr.msra.gmra.mxu0 %vm810_vm2, %v9346_v37  ;;  %v18330_v37 = vld [vmem:[%s27082_s3 + $0x3c] sm:$0xf] }
0x2e12   : > { %21314 = vmatpush3.bf16.xpose.msra.mxu0 %v9447_v41  ;;  %v9343_v44 = vpop.f32.mrf.mxu1  ;;  %21315 = vmatprep.mubr.msk.bf16.mxu0 %vm22526_vm0, %v22525_v1  ;;  %v9712_v41 = vsel %vm874_vm3, %v18330_v37, 0 }
0x2e13   : > { %21325 = vmatprep.subr.bf16.mxu0 %v22525_v1 }
0x2e14   : > { %v21300_v3 = vpop.f32.mrf.mxu1 }
0x2e19   : > { %21316 = vmatmul.mubr.msk.bf16.vlgmr.msra.gmra.mxu0 %vm810_vm2, %v9440_v21 }
0x2e1a   : > { %21327 = vmatprep.mubr.msk.bf16.mxu0 %vm22526_vm0, %v22525_v1  ;;  %21326 = vmatpush3.bf16.msra.mxu0 %v9554_v20 }
0x2e1b   : > { %21337 = vmatprep.subr.bf16.mxu0 %v22525_v1 }
0x2ec9   : > { %v9433_v50 = vpop.f32.mrf.mxu1 }
0x2ecb   : > { %v21311_v28 = vpop.f32.mrf.mxu1 }
0x2ecd   : > { %v9436_v22 = vpop.f32.mrf.mxu1 }
0x2ecf   : > { %v21312_v46 = vpop.f32.mrf.mxu1 }
0x2ed1   : > { %v9387_v30 = vpop.f32.mrf.mxu0 }
0x2ed2   : > { %v24952_v47 = vadd.f32 %v9433_v50, %v9387_v30 }
0x2ed3   : > { %v21305_v17 = vpop.f32.mrf.mxu0 }
0x2ed5   : > { %v9390_v12 = vpop.f32.mrf.mxu0 }
0x2ed7   : > { %v21306_v49 = vpop.f32.mrf.mxu0 }
0x2ed9   : > { %v9483_v7 = vpop.f32.mrf.mxu0 }
0x2eda   : > { %v9489_v54 = vsel %vm810_vm2, %v9483_v7, -inf }
0x2edb   : > { %9490 = vmax.xlane.f32.xlu0 %v9489_v54  ;;  %v21317_v56 = vpop.f32.mrf.mxu0  ;;  %v18643_v54 = vld [vmem:[%s27157_s14 + $0x3] ss:$0 sm:$0xff]  ;;  %s27159_s14 = sld [smem:[#allocation15_spill]] }
0x2edd   : > { %v9486_v9 = vpop.f32.mrf.mxu0 }
0x2edf   : > { %v21318_v34 = vpop.f32.mrf.mxu0 }
0x2ef1   : > { %9501 = vrot.lane.b32.xlu0 %v24890_v40, %s27150_s27 }
0x2ef5   : > { %9597 = vrot.lane.b32.xlu0 %v24890_v40, %s27151_s15 }
0x2f64   : > { %v9491_v42 = vpop.xlane.xlu0 %9490 }
0x2f65   : > { %v9492_v43 = vsub.f32 %v9483_v7, %v9491_v42 }
0x2f67   : > { %v9493_v58 = vmul.f32 1.442695, %v9492_v43 }
0x2f68   : > { %v9502_v2 = vpop.permute.xlu0 %9501 }
0x2f69   : > { %22410 = vpow2.f32 %v9493_v58  ;;  %v9507_v60 = vsel %vm874_vm3, %v9502_v2, 0 }
0x2f6a   : > { %21320 = vmatpush3.bf16.msra.mxu1 %v9507_v60 }
0x2f6b   : > { %21331 = vmatprep.subr.bf16.mxu1 %v22525_v1 }
0x2f6c   : > { %v9598_v18 = vpop.permute.xlu0 %9597 }
0x2f76   : > { %v22411_v45 = vpop.eup %22410 }
0x2f77   : > { %v9495_v62 = vsel %vm810_vm2, %v22411_v45, 0.0 }
0x2f78   : > { %9496 = vadd.xlane.f32.xlu1 %v9495_v62 }
0x2f89   : > { %9599 = vrot.lane.b32.xlu1 %v24890_v40, %s27152_s23 }
0x3001   : > { %v9497_v59 = vpop.xlane.xlu1 %9496 }
0x3002   : > { %22412 = vrcp.f32 %v9497_v59 }
0x3005   : > { %v9600_v11 = vpop.permute.xlu1 %9599 }
0x3006   : > { %v9605_v16 = vsel %vm810_vm2, %v9600_v11, 0  ;;  %v18350_v11 = vld [vmem:[%s27086_s7 + $0x380] sm:$0xff] }
0x300f   : > { %v22413_v4 = vpop.eup %22412 }
0x3010   : > { %v9499_v63 = vmul.f32 %v22413_v4, %v22411_v45 }
0x3012   : > { %v9500_v15 = vpack.c.bf16 %v9499_v63, %v9499_v63 }
0x3014   : > { %21322 = vmatmul.mubr.msk.bf16.vlgmr.msra.gmra.mxu1 %vm810_vm2, %v9500_v15  ;;  %v18358_v15 = vld [vmem:[%s27086_s7 + $0x3c0] sm:$0xff] }
0x3015   : > { %21332 = vmatpush3.bf16.xpose.msra.mxu1 %v9605_v16  ;;  %21333 = vmatprep.mubr.msk.bf16.mxu1 %vm22526_vm0, %v22525_v1  ;;  %v18663_v16 = vcombine.high %v18350_v11, %v18358_v15  ;;  %v18662_v19 = vcombine.low %v18350_v11, %v18358_v15 }
0x3016   : > { %21343 = vmatprep.subr.bf16.mxu1 %v22525_v1 }
0x301c   : > { %21334 = vmatmul.mubr.msk.bf16.vlgmr.msra.gmra.mxu1 %vm810_vm2, %v9598_v18  ;;  %v18359_v18 = vld [vmem:[%s27086_s7 + $0x3c8] sm:$0xff] }
0x301d   : > { %21345 = vmatprep.mubr.msk.bf16.mxu1 %vm22526_vm0, %v22525_v1  ;;  %21344 = vmatpush3.bf16.msra.mxu1 %v9712_v41 }
0x30d4   : > { %v9543_v13 = vpop.f32.mrf.mxu1 }
0x30d5   : > { %v9549_v25 = vpack.c.bf16 %v9543_v13, %v9543_v13 }
0x30d6   : > { %v21323_v61 = vpop.f32.mrf.mxu1 }
0x30d7   : > { %21328 = vmatmul.mubr.msk.bf16.vlgmr.msra.gmra.mxu0 %vm810_vm2, %v9549_v25  ;;  %v18334_v25 = vld [vmem:[%s27086_s7 + $0x300] sm:$0xff] }
0x30d8   : > { %v9546_v0 = vpop.f32.mrf.mxu1  ;;  %21339 = vmatprep.mubr.msk.bf16.mxu0 %vm22526_vm0, %v22525_v1  ;;  %v18342_v61 = vld [vmem:[%s27086_s7 + $0x340] sm:$0xff] }
0x30d9   : > { %v18335_v0 = vld [vmem:[%s27086_s7 + $0x308] sm:$0xff] }
0x30da   : > { %v21324_v33 = vpop.f32.mrf.mxu1 }
0x30db   : > { %v18647_v33 = vcombine.high %v18334_v25, %v18342_v61 }
0x30dc   : > { %v9641_v36 = vpop.f32.mrf.mxu1 }
0x30dd   : > { %v9647_v55 = vsel %vm810_vm2, %v9641_v36, -inf }
0x30de   : > { %9648 = vmax.xlane.f32.xlu1 %v9647_v55  ;;  %v21335_v26 = vpop.f32.mrf.mxu1  ;;  %v18646_v55 = vcombine.low %v18334_v25, %v18342_v61 }
0x30e0   : > { %v9644_v35 = vpop.f32.mrf.mxu1 }
0x30e2   : > { %v21336_v27 = vpop.f32.mrf.mxu1 }
0x30e3   : > { %v18352_v27 = vld [vmem:[%s27086_s7 + $0x390] sm:$0xff] }
0x3167   : > { %v9649_v57 = vpop.xlane.xlu1 %9648 }
0x3168   : > { %v9650_v52 = vsub.f32 %v9641_v36, %v9649_v57  ;;  %v18343_v36 = vld [vmem:[%s27086_s7 + $0x348] sm:$0xff]  ;;  %v18360_v57 = vld [vmem:[%s27086_s7 + $0x3d0] sm:$0xff] }
0x3169   : > { %v18648_v26 = vcombine.low %v18335_v0, %v18343_v36  ;;  %v18649_v35 = vcombine.high %v18335_v0, %v18343_v36  ;;  %v18340_v0 = vld [vmem:[%s27086_s7 + $0x330] sm:$0xff]  ;;  %v18341_v36 = vld [vmem:[%s27086_s7 + $0x338] sm:$0xff] }
0x316a   : > { %v9651_v53 = vmul.f32 1.442695, %v9650_v52  ;;  %v18353_v52 = vld [vmem:[%s27086_s7 + $0x398] sm:$0xff] }
0x316c   : > { %22414 = vpow2.f32 %v9651_v53  ;;  %v18666_v53 = vcombine.low %v18352_v27, %v18360_v57 }
0x3179   : > { %v22415_v32 = vpop.eup %22414 }
0x317a   : > { %v9653_v51 = vsel %vm810_vm2, %v22415_v32, 0.0 }
0x317b   : > { %9654 = vadd.xlane.f32.xlu0 %v9653_v51  ;;  %v18361_v51 = vld [vmem:[%s27086_s7 + $0x3d8] sm:$0xff] }
0x317c   : > { %v18669_v37 = vcombine.high %v18353_v52, %v18361_v51 }
0x3191   : > { %9659 = vrot.lane.b32.xlu0 %v24890_v40, %s27156_s19 }
0x3197   : > { %v9590_v48 = vpop.f32.mrf.mxu0 }
0x3198   : > { %v9596_v39 = vadd.f32 %v9590_v48, %v24952_v47  ;;  %v18668_v48 = vcombine.low %v18353_v52, %v18361_v51  ;;  %v21955_v51 = vld [vmem:[%s27088_s9 + $0xcf8] sm:$0xff]  }
0x3199   : > { %v21329_v44 = vpop.f32.mrf.mxu0 }
0x319b   : > { %v9593_v3 = vpop.f32.mrf.mxu0 }
0x319d   : > { %v21330_v21 = vpop.f32.mrf.mxu0 }
0x319e   : > { %v18644_v21 = vld [vmem:[%s27084_s5 + $0x3] ss:$0 sm:$0xff] }
0x3204   : > { %v9655_v50 = vpop.xlane.xlu0 %9654 }
0x3205   : > { %22416 = vrcp.f32 %v9655_v50 }
0x3208   : > { %v9660_v28 = vpop.permute.xlu0 %9659 }
0x3209   : > { %v9665_v22 = vsel %vm874_vm3, %v9660_v28, 0  ;;  %v18645_v28 = vld [vmem:[%s27085_s6 + $0x3] ss:$0 sm:$0xff] }
0x320a   : > { %21338 = vmatpush3.bf16.msra.mxu0 %v9665_v22 }
0x320b   : > { %10048 = vmatprep.subr.bf16.mxu0 %v18663_v16  ;;  %v18364_v16 = vld [vmem:[%s27086_s7 + $0x3f0] sm:$0xff] }
0x3212   : > { %v22417_v40 = vpop.eup %22416 }
0x3213   : > { %v9657_v46 = vmul.f32 %v22417_v40, %v22415_v32  ;;  %v18667_v32 = vcombine.high %v18352_v27, %v18360_v57  ;;  %v18336_v40 = vld [vmem:[%s27086_s7 + $0x310] sm:$0xff] }
0x3215   : > { %v9658_v30 = vpack.c.bf16 %v9657_v46, %v9657_v46  ;;  %v18344_v46 = vld [vmem:[%s27086_s7 + $0x350] sm:$0xff] }
0x3217   : > { %21340 = vmatmul.mubr.msk.bf16.vlgmr.msra.gmra.mxu0 %vm810_vm2, %v9658_v30  ;;  %v18337_v30 = vld [vmem:[%s27086_s7 + $0x318] sm:$0xff] }
0x3218   : > { %10068 = vmatprep.mubr.bf16.mxu0 %v22538_v38  ;;  %10049 = vmatpush1.bf16.msra.mxu0 %v18662_v19  ;;  %v18365_v19 = vld [vmem:[%s27086_s7 + $0x3f8] sm:$0xff] }
0x3219   : > { %10050 = vmatprep.subr.bf16.mxu0 %v18647_v33  ;;  %v18348_v33 = vld [vmem:[%s27086_s7 + $0x370] sm:$0xff] }
0x321a   : > { %v18659_v27 = vcombine.high %v18340_v0, %v18348_v33  ;;  %v18658_v52 = vcombine.low %v18340_v0, %v18348_v33 }
0x321c   : > { %10051 = vmatpush1.bf16.msra.mxu0 %v18646_v55  ;;  %v18349_v55 = vld [vmem:[%s27086_s7 + $0x378] sm:$0xff] }
0x321d   : > { %10130 = vmatprep.subr.bf16.mxu0 %v18667_v32  ;;  %v18661_v57 = vcombine.high %v18341_v36, %v18349_v55  ;;  %v21954_v32 = vld [vmem:[%s27088_s9 + $0xc78] sm:$0xff]  }
0x32d7   : > { %v9701_v47 = vpop.f32.mrf.mxu0 }
0x32d8   : > { %v9707_v17 = vpack.c.bf16 %v9701_v47, %v9701_v47  ;;  %v18345_v47 = vld [vmem:[%s27086_s7 + $0x358] sm:$0xff] }
0x32d9   : > { %v21341_v12 = vpop.f32.mrf.mxu0 }
0x32da   : > { %21346 = vmatmul.mubr.msk.bf16.vlgmr.msra.gmra.mxu1 %vm810_vm2, %v9707_v17 }
0x32db   : > { %v9704_v49 = vpop.f32.mrf.mxu0  ;;  %10109 = vmatprep.mubr.bf16.mxu1 %v22538_v38 }
0x32dc   : > { %v18651_v49 = vcombine.high %v18336_v40, %v18344_v46 }
0x32dd   : > { %v21342_v7 = vpop.f32.mrf.mxu0 }
0x32de   : > { %v18653_v7 = vcombine.high %v18337_v30, %v18345_v47 }
0x339a   : > { %v9748_v56 = vpop.f32.mrf.mxu1 }
0x339b   : > { %v9754_v9 = vadd.f32 %v9748_v56, %v9596_v39  ;;  %v18362_v56 = vld [vmem:[%s27086_s7 + $0x3e0] sm:$0xff] }
0x339c   : > { %v21347_v34 = vpop.f32.mrf.mxu1 }
0x339d   : > { %v9761_v42 = vadd.f32 %v18643_v54, %v9754_v9  ;;  %v18354_v54 = vld [vmem:[%s27086_s7 + $0x3a0] sm:$0xff]  ;;  %v18355_v9 = vld [vmem:[%s27086_s7 + $0x3a8] sm:$0xff] }
0x339e   : > { %v9751_v43 = vpop.f32.mrf.mxu1  ;;  %v18363_v34 = vld [vmem:[%s27086_s7 + $0x3e8] sm:$0xff] }
0x339f   : > { %v9762_v58 = vadd.f32 %v9761_v42, %v24880_v31  ;;  %v18351_v31 = vld [vmem:[%s27086_s7 + $0x388] sm:$0xff]  ;;  %v18650_v42 = vcombine.low %v18336_v40, %v18344_v46  ;;  %v18652_v43 = vcombine.low %v18337_v30, %v18345_v47  ;;  %v21966_v40 = vld [vmem:[%s27088_s9 + $0xc60] sm:$0xff]  }
0x33a0   : > { %v21348_v2 = vpop.f32.mrf.mxu1  ;;  %v18664_v20 = vcombine.low %v18351_v31, %v18359_v18  ;;  %v18665_v13 = vcombine.high %v18351_v31, %v18359_v18  ;;  %v18356_v31 = vld [vmem:[%s27086_s7 + $0x3b0] sm:$0xff]  ;;  %v18357_v18 = vld [vmem:[%s27086_s7 + $0x3b8] sm:$0xff]  ;;  %v21967_v46 = vld [vmem:[%s27088_s9 + $0xce0] sm:$0xff]  }
0x33a1   : > { %v9763_v60 = vsel %vm762_vm1, %v9762_v58, 0.0  ;;  %v18673_v2 = vcombine.high %v18355_v9, %v18363_v34  ;;  %v18675_v25 = vcombine.high %v18356_v31, %v18364_v16  ;;  %v18677_v61 = vcombine.high %v18357_v18, %v18365_v19  ;;  %v21968_v30 = vld [vmem:[%s27088_s9 + $0xc20] sm:$0xff]  }
0x33a2   : > { %9764 = vadd.xlane.f32.xlu1 %v9763_v60  ;;  %10089 = vmatprep.subr.bf16.mxu1 %v18665_v13  ;;  %v18338_v60 = vld [vmem:[%s27086_s7 + $0x320] sm:$0xff] }
0x33a3   : > { %10090 = vmatpush1.bf16.msra.mxu1 %v18664_v20  ;;  %v21969_v47 = vld [vmem:[%s27088_s9 + $0xca0] sm:$0xff]  }
0x33a4   : > { %10091 = vmatprep.subr.bf16.mxu1 %v18649_v35  ;;  %v18676_v35 = vcombine.low %v18357_v18, %v18365_v19 }
0x33a7   : > { %10092 = vmatpush1.bf16.msra.mxu1 %v18648_v26  ;;  %v18674_v26 = vcombine.low %v18356_v31, %v18364_v16 }
0x33a8   : > { %10171 = vmatprep.subr.bf16.mxu1 %v18669_v37  ;;  %v21957_v37 = vld [vmem:[%s27088_s9 + $0xcb8] sm:$0xff]  }
0x342b   : > { %v9765_v45 = vpop.xlane.xlu1 %9764 }
0x342c   : > { %v9766_v62 = vmul.f32 0.03125, %v9765_v45  ;;  %v18346_v45 = vld [vmem:[%s27086_s7 + $0x360] sm:$0xff] }
0x342d   : > { %v18655_v11 = vcombine.high %v18338_v60, %v18346_v45  ;;  %v18654_v20 = vcombine.low %v18338_v60, %v18346_v45  ;;  %v21981_v60 = vld [vmem:[%s27088_s9 + $0xc88] sm:$0xff]   ;;  %v21982_v45 = vld [vmem:[%s27088_s9 + $0xc40] sm:$0xff]  }
0x342e   : > { %v9767_v59 = vsub.f32 %v9762_v58, %v9766_v62  ;;  %v18671_v58 = vcombine.high %v18354_v54, %v18362_v56  ;;  %v18339_v62 = vld [vmem:[%s27086_s7 + $0x328] sm:$0xff] }
0x3430   : > { %v9768_v4 = vmul.f32 %v9767_v59, %v9767_v59 }
0x3432   : > { %v9769_v63 = vsel %vm762_vm1, %v9768_v4, 0.0  ;;  %v18670_v4 = vcombine.low %v18354_v54, %v18362_v56  ;;  %v21973_v54 = vld [vmem:[%s27088_s9 + $0xc98] sm:$0xff]   ;;  %v21974_v56 = vld [vmem:[%s27088_s9 + $0xc50] sm:$0xff]  }
0x3433   : > { %9770 = vadd.xlane.f32.xlu1 %v9769_v63  ;;  %v18672_v63 = vcombine.low %v18355_v9, %v18363_v34  ;;  %v21975_v9 = vld [vmem:[%s27088_s9 + $0xcd0] sm:$0xff]  }
0x3434   : > { %v21976_v34 = vld [vmem:[%s27088_s9 + $0xc10] sm:$0xff]  }
0x34bc   : > { %v9771_v39 = vpop.xlane.xlu1 %9770 }
0x34bd   : > { %v9772_v41 = vmul.f32 0.03125, %v9771_v39  ;;  %v21958_v39 = vld [vmem:[%s27088_s9 + $0xc70] sm:$0xff]  }
0x34bf   : > { %v9773_v44 = vadd.f32 1e-05, %v9772_v41  ;;  %v21959_v41 = vld [vmem:[%s27088_s9 + $0xcf0] sm:$0xff]  }
0x34c1   : > { %22418 = vrsqrt.f32 %v9773_v44  ;;  %v21960_v44 = vld [vmem:[%s27088_s9 + $0xc30] sm:$0xff]  }
0x34ce   : > { %v22419_v3 = vpop.eup %22418 }
0x34cf   : > { %v9775_v50 = vmul.f32 %v22419_v3, %v9767_v59  ;;  %v18347_v59 = vld [vmem:[%s27086_s7 + $0x368] sm:$0xff]  ;;  %v21961_v3 = vld [vmem:[%s27088_s9 + $0xcb0] sm:$0xff]  }
0x34d0   : > { %v18657_v15 = vcombine.high %v18339_v62, %v18347_v59  ;;  %v18656_v13 = vcombine.low %v18339_v62, %v18347_v59  ;;  %v21983_v62 = vld [vmem:[%s27088_s9 + $0xcc0] sm:$0xff]  }
0x34d1   : > { %v9782_v22 = vmul.f32 %v18644_v21, %v9775_v50  ;;  %v21962_v21 = vld [vmem:[%s27088_s9 + $0xc68] sm:$0xff]   ;;  %v21984_v59 = vld [vmem:[%s27088_s9 + $0xc00] sm:$0xff]  }
0x34d2   : > { %v21963_v50 = vld [vmem:[%s27088_s9 + $0xce8] sm:$0xff]  }
0x34d3   : > { %v25054_v17 = vadd.f32 %v18645_v28, %v9782_v22  ;;  %v21964_v28 = vld [vmem:[%s27088_s9 + $0xc28] sm:$0xff]  }
0x34d4   : > { %v21965_v22 = vld [vmem:[%s27088_s9 + $0xca8] sm:$0xff]  }
0x34d5   : > { %v25058_v12 = vpack.c.bf16 %v25054_v17, %v25054_v17 }
0x34d7   : > { %18678 = vmatmul.mubr.msk.bf16.vlgmr.msra.gmra.mxu0 %vm762_vm1, %v25058_v12  ;;  %18679 = vmatmul.mubr.msk.bf16.vlgmr.msra.gmra.mxu1 %vm762_vm1, %v25058_v12 }
0x34d8   : > { %10131 = vmatpush1.bf16.msra.mxu0 %v18666_v53  ;;  %10172 = vmatpush1.bf16.msra.mxu1 %v18668_v48  ;;  %v18660_v53 = vcombine.low %v18341_v36, %v18349_v55  ;;  %v21956_v48 = vld [vmem:[%s27088_s9 + $0xc38] sm:$0xff]  }
0x34d9   : > { %10132 = vmatprep.subr.bf16.mxu0 %v18651_v49  ;;  %10173 = vmatprep.subr.bf16.mxu1 %v18653_v7  ;;  %v21971_v49 = vld [vmem:[%s27088_s9 + $0xcd8] sm:$0xff]  }
0x34da   : > { %10150 = vmatprep.mubr.bf16.mxu0 %v22538_v38  ;;  %10191 = vmatprep.mubr.bf16.mxu1 %v22538_v38  ;;  %v21972_v7 = vld [vmem:[%s27088_s9 + $0xc18] sm:$0xff]  }
0x34dc   : > { %10133 = vmatpush1.bf16.msra.mxu0 %v18650_v42  ;;  %10174 = vmatpush1.bf16.msra.mxu1 %v18652_v43  ;;  %v21977_v42 = vld [vmem:[%s27088_s9 + $0xc90] sm:$0xff]   ;;  %v21978_v43 = vld [vmem:[%s27088_s9 + $0xc48] sm:$0xff]  }
0x34dd   : > { %10212 = vmatprep.subr.bf16.mxu0 %v18671_v58  ;;  %10253 = vmatprep.subr.bf16.mxu1 %v18673_v2  ;;  %v21979_v58 = vld [vmem:[%s27088_s9 + $0xcc8] sm:$0xff]  }
0x34de   : > { %v21980_v2 = vld [vmem:[%s27088_s9 + $0xc08] sm:$0xff]  }
0x34df   : > { %18680 = vmatmul.mubr.msk.bf16.vlgmr.msra.gmra.mxu0 %vm762_vm1, %v25058_v12  ;;  %18681 = vmatmul.mubr.msk.bf16.vlgmr.msra.gmra.mxu1 %vm762_vm1, %v25058_v12 }
0x34e0   : > { %10213 = vmatpush1.bf16.msra.mxu0 %v18670_v4  ;;  %10254 = vmatpush1.bf16.msra.mxu1 %v18672_v63  ;;  %v21985_v4 = vld [vmem:[%s27088_s9 + $0xc80] sm:$0xff]   ;;  %v21986_v63 = vld [vmem:[%s27088_s9 + $0xd78] sm:$0xff]  }
0x34e1   : > { %10214 = vmatprep.subr.bf16.mxu0 %v18655_v11  ;;  %10255 = vmatprep.subr.bf16.mxu1 %v18657_v15  ;;  %v21987_v11 = vld [vmem:[%s27088_s9 + $0xdf8] sm:$0xff]   ;;  %v25235_v15 = vld [vmem:[%s27087_s8 + $0x30] sm:$0xff] }
0x34e2   : > { %10232 = vmatprep.mubr.bf16.mxu0 %v22538_v38  ;;  %10273 = vmatprep.mubr.bf16.mxu1 %v22538_v38  ;;  %v9796_v31 = vrot.slane %v25235_v15, %v23031_v5  ;;  %v9804_v16 = vrot.slane %v25235_v15, %v23034_v6  ;;  %v9800_v18 = vrot.slane %v25235_v15, %v23042_v8 }
0x34e3   : > { %v9808_v19 = vrot.slane %v25235_v15, %v23045_v10 }
0x34e4   : > { %10215 = vmatpush1.bf16.msra.mxu0 %v18654_v20  ;;  %10256 = vmatpush1.bf16.msra.mxu1 %v18656_v13 }
0x34e5   : > { %10294 = vmatprep.subr.bf16.mxu0 %v18675_v25  ;;  %10335 = vmatprep.subr.bf16.mxu1 %v18677_v61 }
0x34e7   : > { %18682 = vmatmul.mubr.msk.bf16.vlgmr.msra.gmra.mxu0 %vm762_vm1, %v25058_v12  ;;  %18683 = vmatmul.mubr.msk.bf16.vlgmr.msra.gmra.mxu1 %vm762_vm1, %v25058_v12 }
0x34e8   : > { %10295 = vmatpush1.bf16.msra.mxu0 %v18674_v26  ;;  %10336 = vmatpush1.bf16.msra.mxu1 %v18676_v35 }
0x34e9   : > { %10296 = vmatprep.subr.bf16.mxu0 %v18659_v27  ;;  %10337 = vmatprep.subr.bf16.mxu1 %v18661_v57 }
0x34ea   : > { %10314 = vmatprep.mubr.bf16.mxu0 %v22538_v38  ;;  %10355 = vmatprep.mubr.bf16.mxu1 %v22538_v38 }
0x34ec   : > { %10297 = vmatpush1.bf16.msra.mxu0 %v18658_v52  ;;  %10338 = vmatpush1.bf16.msra.mxu1 %v18660_v53 }
0x34ed   : > { %20447 = vmatprep.subr.bf16.mxu0 %v21954_v32  ;;  %20469 = vmatprep.subr.bf16.mxu1 %v21955_v51 }
0x34ef   : > { %18684 = vmatmul.mubr.msk.bf16.vlgmr.msra.gmra.mxu0 %vm762_vm1, %v25058_v12  ;;  %18685 = vmatmul.mubr.msk.bf16.vlgmr.msra.gmra.mxu1 %vm762_vm1, %v25058_v12  ;;  %v21970_v12 = vld [vmem:[%s27088_s9 + $0xc58] sm:$0xff]  }
0x34f0   : > { %20448 = vmatpush3.bf16.msra.mxu0 %v21956_v48  ;;  %20470 = vmatpush3.bf16.msra.mxu1 %v21957_v37 }
0x34f1   : > { %20449 = vmatprep.subr.bf16.mxu0 %v21958_v39  ;;  %20471 = vmatprep.subr.bf16.mxu1 %v21959_v41  ;;  %v9816_v39 = vrot.slane %v25235_v15, %v23056_v23  ;;  %v9824_v41 = vrot.slane %v25235_v15, %v23059_v24 }
0x34f4   : > { %20450 = vmatpush3.bf16.msra.mxu0 %v21960_v44  ;;  %20472 = vmatpush3.bf16.msra.mxu1 %v21961_v3  ;;  %v21988_v44 = vld [vmem:[%s27088_s9 + $0xd38] sm:$0xff]  }
0x34f5   : > { %20451 = vmatprep.subr.bf16.mxu0 %v21962_v21  ;;  %20473 = vmatprep.subr.bf16.mxu1 %v21963_v50  ;;  %v21989_v3 = vld [vmem:[%s27088_s9 + $0xdb8] sm:$0xff]  }
0x34f8   : > { %20452 = vmatpush3.bf16.msra.mxu0 %v21964_v28  ;;  %20474 = vmatpush3.bf16.msra.mxu1 %v21965_v22 }
0x34f9   : > { %20453 = vmatprep.subr.bf16.mxu0 %v21966_v40  ;;  %20475 = vmatprep.subr.bf16.mxu1 %v21967_v46  ;;  %v21990_v40 = vld [vmem:[%s27088_s9 + $0xd70] sm:$0xff]  }
0x34fa   : > { %v21991_v46 = vld [vmem:[%s27088_s9 + $0xdf0] sm:$0xff]  }
0x34fc   : > { %20454 = vmatpush3.bf16.msra.mxu0 %v21968_v30  ;;  %20476 = vmatpush3.bf16.msra.mxu1 %v21969_v47 }
0x34fd   : > { %20455 = vmatprep.subr.bf16.mxu0 %v21970_v12  ;;  %20477 = vmatprep.subr.bf16.mxu1 %v21971_v49 }
0x3500   : > { %20456 = vmatpush3.bf16.msra.mxu0 %v21972_v7  ;;  %20478 = vmatpush3.bf16.msra.mxu1 %v21973_v54  ;;  %v21992_v7 = vld [vmem:[%s27088_s9 + $0xd30] sm:$0xff]  }
0x3501   : > { %20457 = vmatprep.subr.bf16.mxu0 %v21974_v56  ;;  %20479 = vmatprep.subr.bf16.mxu1 %v21975_v9  ;;  %v21993_v54 = vld [vmem:[%s27088_s9 + $0xdb0] sm:$0xff]  }
0x3504   : > { %20458 = vmatpush3.bf16.msra.mxu0 %v21976_v34  ;;  %20480 = vmatpush3.bf16.msra.mxu1 %v21977_v42  ;;  %v21994_v34 = vld [vmem:[%s27088_s9 + $0xd68] sm:$0xff]  }
0x3505   : > { %20459 = vmatprep.subr.bf16.mxu0 %v21978_v43  ;;  %20481 = vmatprep.subr.bf16.mxu1 %v21979_v58  ;;  %v21995_v42 = vld [vmem:[%s27088_s9 + $0xde8] sm:$0xff]  }
0x3508   : > { %20460 = vmatpush3.bf16.msra.mxu0 %v21980_v2  ;;  %20482 = vmatpush3.bf16.msra.mxu1 %v21981_v60 }
0x3509   : > { %20461 = vmatprep.subr.bf16.mxu0 %v21982_v45  ;;  %20483 = vmatprep.subr.bf16.mxu1 %v21983_v62 }
0x350c   : > { %20462 = vmatpush3.bf16.msra.mxu0 %v21984_v59  ;;  %20484 = vmatpush3.bf16.msra.mxu1 %v21985_v4  ;;  %v21996_v59 = vld [vmem:[%s27088_s9 + $0xd28] sm:$0xff]  }
0x350d   : > { %20491 = vmatprep.subr.bf16.mxu0 %v21986_v63  ;;  %20513 = vmatprep.subr.bf16.mxu1 %v21987_v11  ;;  %v21997_v4 = vld [vmem:[%s27088_s9 + $0xda8] sm:$0xff]  }
0x3597   : > { %v10070_v20 = vpop.f32.mrf.mxu0  ;;  %v10111_v13 = vpop.f32.mrf.mxu1 }
0x3598   : > { %v10071_v25 = vadd.f32 %v10070_v20, %v9796_v31  ;;  %v10112_v61 = vadd.f32 %v10111_v13, %v9804_v16  ;;  %v21998_v31 = vld [vmem:[%s27088_s9 + $0xd60] sm:$0xff]  }
0x3599   : > { %v10072_v0 = vpop.f32.mrf.mxu0  ;;  %v10113_v33 = vpop.f32.mrf.mxu1  ;;  %v21999_v16 = vld [vmem:[%s27088_s9 + $0xde0] sm:$0xff]  }
0x359a   : > { %v10073_v36 = vadd.f32 %v10072_v0, %v9800_v18  ;;  %v10114_v55 = vadd.f32 %v10113_v33, %v9808_v19  ;;  %v10364_v26 = vmax.f32 %v10071_v25, 0.0  ;;  %v10366_v35 = vmax.f32 %v10112_v61, 0.0  ;;  %v22000_v20 = vld [vmem:[%s27088_s9 + $0xd20] sm:$0xff]   ;;  %v25302_v25 = vld [vmem:[%s27087_s8 + $0x38] sm:$0xff] }
0x359b   : > { %v10074_v27 = vpop.f32.mrf.mxu0  ;;  %v10115_v57 = vpop.f32.mrf.mxu1  ;;  %v22001_v13 = vld [vmem:[%s27088_s9 + $0xda0] sm:$0xff]   ;;  %v22002_v33 = vld [vmem:[%s27088_s9 + $0xd58] sm:$0xff]  }
0x359c   : > { %v10365_v52 = vmax.f32 %v10073_v36, 0.0  ;;  %v10367_v53 = vmax.f32 %v10114_v55, 0.0  ;;  %v10380_v21 = vpack.c.bf16 %v10364_v26, %v10364_v26  ;;  %v10382_v50 = vpack.c.bf16 %v10366_v35, %v10366_v35  ;;  %v22003_v36 = vld [vmem:[%s27088_s9 + $0xdd8] sm:$0xff]  }
0x359d   : > { %v10075_v32 = vpop.f32.mrf.mxu0  ;;  %v10116_v51 = vpop.f32.mrf.mxu1  ;;  %v9852_v55 = vrot.slane %v25302_v25, %v23110_v14  ;;  %v22004_v27 = vld [vmem:[%s27088_s9 + $0xd18] sm:$0xff]  }
0x359e   : > { %v10381_v48 = vpack.c.bf16 %v10365_v52, %v10365_v52  ;;  %v10383_v37 = vpack.c.bf16 %v10367_v53, %v10367_v53  ;;  %v22005_v57 = vld [vmem:[%s27088_s9 + $0xd98] sm:$0xff]   ;;  %v22006_v32 = vld [vmem:[%s27088_s9 + $0xd50] sm:$0xff]  }
0x359f   : > { %v25255_v28 = vpop.f32.mrf.mxu0  ;;  %v25257_v22 = vpop.f32.mrf.mxu1  ;;  %v22007_v51 = vld [vmem:[%s27088_s9 + $0xdd0] sm:$0xff]  }
0x35a0   : > { %11202 = vmatprep.mubr.bf16.mxu0 %v10381_v48  ;;  %11242 = vmatprep.mubr.bf16.mxu1 %v10383_v37 }
0x35a1   : > { %v10154_v30 = vpop.f32.mrf.mxu0  ;;  %v10195_v47 = vpop.f32.mrf.mxu1  ;;  %11203 = vmatmul.mubr.bf16.vlgmr.msra.gmra.mxu0 %v10380_v21  ;;  %11243 = vmatmul.mubr.bf16.vlgmr.msra.gmra.mxu1 %v10382_v50  ;;  %v9820_v21 = vrot.slane %v25235_v15, %v23110_v14 }
0x35a2   : > { %v10155_v12 = vadd.f32 %v10154_v30, %v9816_v39  ;;  %v10196_v49 = vadd.f32 %v10195_v47, %v9824_v41  ;;  %20492 = vmatpush3.bf16.msra.mxu0 %v21988_v44  ;;  %20514 = vmatpush3.bf16.msra.mxu1 %v21989_v3  ;;  %v22008_v41 = vld [vmem:[%s27088_s9 + $0xd10] sm:$0xff]   ;;  %v9812_v3 = vrot.slane %v25235_v15, %v23138_v29  ;;  %v22011_v30 = vld [vmem:[%s27088_s9 + $0xdc8] sm:$0xff]  }
0x35a3   : > { %v10156_v56 = vpop.f32.mrf.mxu0  ;;  %v10197_v9 = vpop.f32.mrf.mxu1  ;;  %20493 = vmatprep.subr.bf16.mxu0 %v21990_v40  ;;  %20515 = vmatprep.subr.bf16.mxu1 %v21991_v46  ;;  %v22009_v44 = vld [vmem:[%s27088_s9 + $0xd90] sm:$0xff]   ;;  %v22010_v46 = vld [vmem:[%s27088_s9 + $0xd48] sm:$0xff]   ;;  %v9832_v47 = vrot.slane %v25302_v25, %v23042_v8 }
0x35a4   : > { %v10369_v43 = vmax.f32 %v10155_v12, 0.0  ;;  %v10371_v58 = vmax.f32 %v10196_v49, 0.0  ;;  %v9840_v12 = vrot.slane %v25302_v25, %v23045_v10  ;;  %v10153_v56 = vadd.f32 %v25255_v28, %v9812_v3  ;;  %v22016_v28 = vld [vmem:[%s27088_s9 + $0xd00] sm:$0xff]   ;;  %v22036_v3 = vld [vmem:[%s27088_s9 + $0xe18] sm:$0xff]  }
0x35a5   : > { %v10157_v2 = vpop.f32.mrf.mxu0  ;;  %v10198_v60 = vpop.f32.mrf.mxu1  ;;  %v10194_v9 = vadd.f32 %v25257_v22, %v9820_v21  ;;  %v22017_v22 = vld [vmem:[%s27088_s9 + $0xd80] sm:$0xff]   ;;  %v22037_v21 = vld [vmem:[%s27088_s9 + $0xe98] sm:$0xff]  }
0x35a6   : > { %v10385_v45 = vpack.c.bf16 %v10369_v43, %v10369_v43  ;;  %v10387_v62 = vpack.c.bf16 %v10371_v58, %v10371_v58  ;;  %20494 = vmatpush3.bf16.msra.mxu0 %v21992_v7  ;;  %20516 = vmatpush3.bf16.msra.mxu1 %v21993_v54  ;;  %v22012_v7 = vld [vmem:[%s27088_s9 + $0xd08] sm:$0xff]   ;;  %v10368_v2 = vmax.f32 %v10153_v56, 0.0 }
0x35a7   : > { %v25283_v63 = vpop.f32.mrf.mxu0  ;;  %v25285_v11 = vpop.f32.mrf.mxu1  ;;  %20495 = vmatprep.subr.bf16.mxu0 %v21994_v34  ;;  %20517 = vmatprep.subr.bf16.mxu1 %v21995_v42  ;;  %v22013_v54 = vld [vmem:[%s27088_s9 + $0xd88] sm:$0xff]   ;;  %v22014_v34 = vld [vmem:[%s27088_s9 + $0xd40] sm:$0xff]   ;;  %v10370_v60 = vmax.f32 %v10194_v9, 0.0 }
0x35a8   : > { %11282 = vmatprep.mubr.bf16.mxu0 %v10385_v45  ;;  %11322 = vmatprep.mubr.bf16.mxu1 %v10387_v62  ;;  %v22015_v42 = vld [vmem:[%s27088_s9 + $0xdc0] sm:$0xff]   ;;  %v22018_v45 = vld [vmem:[%s27088_s9 + $0xe78] sm:$0xff]   ;;  %v22044_v56 = vld [vmem:[%s27088_s9 + $0xe08] sm:$0xff]  }
0x35a9   : > { %v10236_v18 = vpop.f32.mrf.mxu0  ;;  %v10277_v19 = vpop.f32.mrf.mxu1  ;;  %v22019_v62 = vld [vmem:[%s27088_s9 + $0xef8] sm:$0xff]  }
0x35aa   : > { %20496 = vmatpush3.bf16.msra.mxu0 %v21996_v59  ;;  %20518 = vmatpush3.bf16.msra.mxu1 %v21997_v4  ;;  %v10237_v43 = vadd.f32 %v10236_v18, %v9832_v47  ;;  %v10278_v58 = vadd.f32 %v10277_v19, %v9840_v12  ;;  %v10386_v18 = vpack.c.bf16 %v10370_v60, %v10370_v60  ;;  %v22021_v19 = vld [vmem:[%s27088_s9 + $0xeb8] sm:$0xff]   ;;  %v22041_v47 = vld [vmem:[%s27088_s9 + $0xe90] sm:$0xff]   ;;  %v22042_v12 = vld [vmem:[%s27088_s9 + $0xe48] sm:$0xff]  }
0x35ab   : > { %v10238_v61 = vpop.f32.mrf.mxu0  ;;  %v10279_v0 = vpop.f32.mrf.mxu1  ;;  %20497 = vmatprep.subr.bf16.mxu0 %v21998_v31  ;;  %20519 = vmatprep.subr.bf16.mxu1 %v21999_v16  ;;  %v22020_v31 = vld [vmem:[%s27088_s9 + $0xe38] sm:$0xff]   ;;  %v10384_v16 = vpack.c.bf16 %v10368_v2, %v10368_v2 }
0x35ac   : > { %v10373_v59 = vmax.f32 %v10237_v43, 0.0  ;;  %v10375_v4 = vmax.f32 %v10278_v58, 0.0  ;;  %v22023_v61 = vld [vmem:[%s27088_s9 + $0xef0] sm:$0xff]   ;;  %v22047_v58 = vld [vmem:[%s27088_s9 + $0xec0] sm:$0xff]   ;;  %v22050_v60 = vld [vmem:[%s27088_s9 + $0xf78] sm:$0xff]  }
0x35ad   : > { %v10239_v26 = vpop.f32.mrf.mxu0  ;;  %v10280_v35 = vpop.f32.mrf.mxu1 }
0x35ae   : > { %20498 = vmatpush3.bf16.msra.mxu0 %v22000_v20  ;;  %20520 = vmatpush3.bf16.msra.mxu1 %v22001_v13  ;;  %v10389_v20 = vpack.c.bf16 %v10373_v59, %v10373_v59  ;;  %v22022_v13 = vld [vmem:[%s27088_s9 + $0xe70] sm:$0xff]   ;;  %v10391_v0 = vpack.c.bf16 %v10375_v4, %v10375_v4  ;;  %v22027_v26 = vld [vmem:[%s27088_s9 + $0xee8] sm:$0xff]   ;;  %v22052_v59 = vld [vmem:[%s27088_s9 + $0xf38] sm:$0xff]  }
0x35af   : > { %v25318_v52 = vpop.f32.mrf.mxu0  ;;  %v10357_v53 = vpop.f32.mrf.mxu1  ;;  %20499 = vmatprep.subr.bf16.mxu0 %v22002_v33  ;;  %20521 = vmatprep.subr.bf16.mxu1 %v22003_v36  ;;  %v22024_v33 = vld [vmem:[%s27088_s9 + $0xe30] sm:$0xff]   ;;  %v22028_v35 = vld [vmem:[%s27088_s9 + $0xe28] sm:$0xff]  }
0x35b0   : > { %v25326_v48 = vadd.f32 %v10357_v53, %v9852_v55  ;;  %v22025_v36 = vld [vmem:[%s27088_s9 + $0xeb0] sm:$0xff]   ;;  %v22026_v55 = vld [vmem:[%s27088_s9 + $0xe68] sm:$0xff]   ;;  %v22031_v53 = vld [vmem:[%s27088_s9 + $0xee0] sm:$0xff]  }
0x35b1   : > { %v25328_v37 = vpop.f32.mrf.mxu0  ;;  %v25330_v39 = vpop.f32.mrf.mxu1 }
0x35b2   : > { %20500 = vmatpush3.bf16.msra.mxu0 %v22004_v27  ;;  %20522 = vmatpush3.bf16.msra.mxu1 %v22005_v57  ;;  %v22029_v27 = vld [vmem:[%s27088_s9 + $0xea8] sm:$0xff]   ;;  %v22030_v57 = vld [vmem:[%s27088_s9 + $0xe60] sm:$0xff]  }
0x35b3   : > { %v10320_v50 = vpop.f32.mrf.mxu0  ;;  %v10361_v40 = vpop.f32.mrf.mxu1  ;;  %20501 = vmatprep.subr.bf16.mxu0 %v22006_v32  ;;  %20523 = vmatprep.subr.bf16.mxu1 %v22007_v51  ;;  %v22032_v32 = vld [vmem:[%s27088_s9 + $0xe20] sm:$0xff]  }
0x35b4   : > { %v22033_v51 = vld [vmem:[%s27088_s9 + $0xea0] sm:$0xff]   ;;  %v22038_v50 = vld [vmem:[%s27088_s9 + $0xe50] sm:$0xff]  }
0x35b5   : > { %v10321_v49 = vpop.f32.mrf.mxu0  ;;  %v10362_v15 = vpop.f32.mrf.mxu1  ;;  %v22039_v40 = vld [vmem:[%s27088_s9 + $0xed0] sm:$0xff]  }
0x35b6   : > { %20502 = vmatpush3.bf16.msra.mxu0 %v22008_v41  ;;  %20524 = vmatpush3.bf16.msra.mxu1 %v22009_v44  ;;  %v22034_v41 = vld [vmem:[%s27088_s9 + $0xe58] sm:$0xff]   ;;  %v9836_v49 = vrot.slane %v25302_v25, %v23034_v6  ;;  %v22043_v15 = vld [vmem:[%s27088_s9 + $0xec8] sm:$0xff]  }
0x35b7   : > { %20503 = vmatprep.subr.bf16.mxu0 %v22010_v46  ;;  %20525 = vmatprep.subr.bf16.mxu1 %v22011_v30  ;;  %v22035_v44 = vld [vmem:[%s27088_s9 + $0xed8] sm:$0xff]   ;;  %v22040_v46 = vld [vmem:[%s27088_s9 + $0xe10] sm:$0xff]   ;;  %v9828_v30 = vrot.slane %v25302_v25, %v23031_v5 }
0x35b8   : > { %v10276_v43 = vadd.f32 %v25285_v11, %v9836_v49  ;;  %v22049_v11 = vld [vmem:[%s27088_s9 + $0xe80] sm:$0xff]   ;;  %v22077_v49 = vld [vmem:[%s27088_s9 + $0xf88] sm:$0xff]  }
0x35b9   : > { %v10235_v9 = vadd.f32 %v25283_v63, %v9828_v30  ;;  %v22074_v30 = vld [vmem:[%s27088_s9 + $0xf48] sm:$0xff]  }
0x35ba   : > { %20504 = vmatpush3.bf16.msra.mxu0 %v22012_v7  ;;  %20526 = vmatpush3.bf16.msra.mxu1 %v22013_v54  ;;  %v9848_v7 = vrot.slane %v25302_v25, %v23056_v23  ;;  %v9856_v54 = vrot.slane %v25302_v25, %v23059_v24 }
0x35bb   : > { %20505 = vmatprep.subr.bf16.mxu0 %v22014_v34  ;;  %20527 = vmatprep.subr.bf16.mxu1 %v22015_v42  ;;  %v22045_v34 = vld [vmem:[%s27088_s9 + $0xe88] sm:$0xff]   ;;  %v22046_v42 = vld [vmem:[%s27088_s9 + $0xe40] sm:$0xff]   ;;  %v10372_v2 = vmax.f32 %v10235_v9, 0.0  ;;  %v10378_v9 = vmax.f32 %v25326_v48, 0.0 }
0x35bc   : > { %v10360_v63 = vadd.f32 %v25330_v39, %v9856_v54  ;;  %v18686_v48 = vld [vmem:[%s27089_s10 + $0x3] ss:$0 sm:$0xff] }
0x35bd   : > { %v10388_v4 = vpack.c.bf16 %v10372_v2, %v10372_v2 }
0x35be   : > { %20506 = vmatpush3.bf16.msra.mxu0 %v22016_v28  ;;  %20528 = vmatpush3.bf16.msra.mxu1 %v22017_v22  ;;  %v10319_v28 = vadd.f32 %v25328_v37, %v9848_v7  ;;  %v22048_v22 = vld [vmem:[%s27088_s9 + $0xe00] sm:$0xff]   ;;  %v22051_v37 = vld [vmem:[%s27088_s9 + $0xff8] sm:$0xff]  }
0x35bf   : > { %20535 = vmatprep.subr.bf16.mxu0 %v22018_v45  ;;  %20557 = vmatprep.subr.bf16.mxu1 %v22019_v62  ;;  %v10374_v45 = vmax.f32 %v10276_v43, 0.0  ;;  %v10379_v62 = vmax.f32 %v10360_v63, 0.0  ;;  %v22079_v7 = vld [vmem:[%s27088_s9 + $0xfc0] sm:$0xff]  }
0x35c0   : > { %v10377_v39 = vmax.f32 %v10319_v28, 0.0 }
0x35c1   : > { %11283 = vmatmul.mubr.bf16.vlgmr.msra.gmra.mxu0 %v10384_v16  ;;  %11323 = vmatmul.mubr.bf16.vlgmr.msra.gmra.mxu1 %v10386_v18  ;;  %v10390_v16 = vpack.c.bf16 %v10374_v45, %v10374_v45  ;;  %v22054_v18 = vld [vmem:[%s27088_s9 + $0xf70] sm:$0xff]  }
0x35c2   : > { %20536 = vmatpush3.bf16.msra.mxu0 %v22020_v31  ;;  %11362 = vmatprep.mubr.bf16.mxu0 %v10389_v20  ;;  %v22053_v31 = vld [vmem:[%s27088_s9 + $0xfb8] sm:$0xff]   ;;  %v22055_v20 = vld [vmem:[%s27088_s9 + $0xff0] sm:$0xff]  }
0x35c3   : > { %20558 = vmatpush3.bf16.msra.mxu1 %v22021_v19  ;;  %11402 = vmatprep.mubr.bf16.mxu1 %v10391_v0  ;;  %v10393_v19 = vpack.c.bf16 %v10377_v39, %v10377_v39  ;;  %v22057_v0 = vld [vmem:[%s27088_s9 + $0xfb0] sm:$0xff]  }
0x35c4   : > { %20537 = vmatprep.subr.bf16.mxu0 %v22022_v13  ;;  %20559 = vmatprep.subr.bf16.mxu1 %v22023_v61  ;;  %v10395_v13 = vpack.c.bf16 %v10379_v62, %v10379_v62  ;;  %v22056_v61 = vld [vmem:[%s27088_s9 + $0xf30] sm:$0xff]  }
0x35c6   : > { %20538 = vmatpush3.bf16.msra.mxu0 %v22024_v33  ;;  %v22058_v33 = vld [vmem:[%s27088_s9 + $0xf68] sm:$0xff]  }
0x35c7   : > { %20560 = vmatpush3.bf16.msra.mxu1 %v22025_v36  ;;  %20539 = vmatprep.subr.bf16.mxu0 %v22026_v55  ;;  %v22059_v36 = vld [vmem:[%s27088_s9 + $0xfe8] sm:$0xff]  }
0x35c8   : > { %20561 = vmatprep.subr.bf16.mxu1 %v22027_v26  ;;  %v22060_v55 = vld [vmem:[%s27088_s9 + $0xf28] sm:$0xff]  }
0x35c9   : > { %v22061_v26 = vld [vmem:[%s27088_s9 + $0xfa8] sm:$0xff]  }
0x35ca   : > { %20540 = vmatpush3.bf16.msra.mxu0 %v22028_v35  ;;  %v22062_v35 = vld [vmem:[%s27088_s9 + $0xf60] sm:$0xff]  }
0x35cb   : > { %20562 = vmatpush3.bf16.msra.mxu1 %v22029_v27  ;;  %20541 = vmatprep.subr.bf16.mxu0 %v22030_v57  ;;  %v22063_v27 = vld [vmem:[%s27088_s9 + $0xfe0] sm:$0xff]  }
0x35cc   : > { %20563 = vmatprep.subr.bf16.mxu1 %v22031_v53  ;;  %v22064_v57 = vld [vmem:[%s27088_s9 + $0xf20] sm:$0xff]  }
0x35cd   : > { %v22065_v53 = vld [vmem:[%s27088_s9 + $0xfa0] sm:$0xff]  }
0x35ce   : > { %20542 = vmatpush3.bf16.msra.mxu0 %v22032_v32  ;;  %v22066_v32 = vld [vmem:[%s27088_s9 + $0xf58] sm:$0xff]  }
0x35cf   : > { %20564 = vmatpush3.bf16.msra.mxu1 %v22033_v51  ;;  %20543 = vmatprep.subr.bf16.mxu0 %v22034_v41  ;;  %v22067_v51 = vld [vmem:[%s27088_s9 + $0xfd8] sm:$0xff]  }
0x35d0   : > { %20565 = vmatprep.subr.bf16.mxu1 %v22035_v44  ;;  %v22068_v41 = vld [vmem:[%s27088_s9 + $0xf18] sm:$0xff]  }
0x35d1   : > { %v22069_v44 = vld [vmem:[%s27088_s9 + $0xf98] sm:$0xff]  }
0x35d2   : > { %20544 = vmatpush3.bf16.msra.mxu0 %v22036_v3  ;;  %v22070_v3 = vld [vmem:[%s27088_s9 + $0xf50] sm:$0xff]  }
0x35d3   : > { %20566 = vmatpush3.bf16.msra.mxu1 %v22037_v21  ;;  %20545 = vmatprep.subr.bf16.mxu0 %v22038_v50  ;;  %v22071_v21 = vld [vmem:[%s27088_s9 + $0xfd0] sm:$0xff]  }
0x35d4   : > { %20567 = vmatprep.subr.bf16.mxu1 %v22039_v40  ;;  %v22072_v50 = vld [vmem:[%s27088_s9 + $0xf10] sm:$0xff]   ;;  %v9844_v40 = vrot.slane %v25302_v25, %v23138_v29  ;;  %v22076_v25 = vld [vmem:[%s27088_s9 + $0xf08] sm:$0xff]  }
0x35d6   : > { %20546 = vmatpush3.bf16.msra.mxu0 %v22040_v46  ;;  %v22073_v46 = vld [vmem:[%s27088_s9 + $0xf90] sm:$0xff]  }
0x35d7   : > { %20568 = vmatpush3.bf16.msra.mxu1 %v22041_v47  ;;  %20547 = vmatprep.subr.bf16.mxu0 %v22042_v12  ;;  %v22075_v47 = vld [vmem:[%s27088_s9 + $0xfc8] sm:$0xff]   ;;  %v10317_v12 = vadd.f32 %v25318_v52, %v9844_v40  ;;  %v22080_v52 = vld [vmem:[%s27088_s9 + $0xf00] sm:$0xff]  }
0x35d8   : > { %20569 = vmatprep.subr.bf16.mxu1 %v22043_v15  ;;  %v22078_v15 = vld [vmem:[%s27088_s9 + $0xf40] sm:$0xff]  }
0x35d9   : > { %v10376_v54 = vmax.f32 %v10317_v12, 0.0 }
0x35da   : > { %20548 = vmatpush3.bf16.msra.mxu0 %v22044_v56  ;;  %v22081_v56 = vld [vmem:[%s27088_s9 + $0xf80] sm:$0xff]  }
0x35db   : > { %20570 = vmatpush3.bf16.msra.mxu1 %v22045_v34  ;;  %20549 = vmatprep.subr.bf16.mxu0 %v22046_v42  ;;  %v10392_v34 = vpack.c.bf16 %v10376_v54, %v10376_v54  ;;  %v10394_v42 = vpack.c.bf16 %v10378_v9, %v10378_v9 }
0x35dc   : > { %20571 = vmatprep.subr.bf16.mxu1 %v22047_v58 }
0x35de   : > { %20550 = vmatpush3.bf16.msra.mxu0 %v22048_v22 }
0x35df   : > { %20572 = vmatpush3.bf16.msra.mxu1 %v22049_v11  ;;  %20579 = vmatprep.subr.bf16.mxu0 %v22050_v60 }
0x35e0   : > { %20601 = vmatprep.subr.bf16.mxu1 %v22051_v37 }
0x35e1   : > { %11363 = vmatmul.mubr.bf16.vlgmr.msra.gmra.mxu0 %v10388_v4 }
0x35e2   : > { %11403 = vmatmul.mubr.bf16.vlgmr.msra.gmra.mxu1 %v10390_v16  ;;  %20580 = vmatpush3.bf16.msra.mxu0 %v22052_v59 }
0x35e3   : > { %11442 = vmatprep.mubr.bf16.mxu0 %v10393_v19  ;;  %20602 = vmatpush3.bf16.msra.mxu1 %v22053_v31 }
0x35e4   : > { %11482 = vmatprep.mubr.bf16.mxu1 %v10395_v13  ;;  %20581 = vmatprep.subr.bf16.mxu0 %v22054_v18 }
0x35e5   : > { %20603 = vmatprep.subr.bf16.mxu1 %v22055_v20 }
0x35e6   : > { %20582 = vmatpush3.bf16.msra.mxu0 %v22056_v61 }
0x35e7   : > { %20604 = vmatpush3.bf16.msra.mxu1 %v22057_v0  ;;  %20583 = vmatprep.subr.bf16.mxu0 %v22058_v33 }
0x35e8   : > { %20605 = vmatprep.subr.bf16.mxu1 %v22059_v36 }
0x35ea   : > { %20584 = vmatpush3.bf16.msra.mxu0 %v22060_v55 }
0x35eb   : > { %20606 = vmatpush3.bf16.msra.mxu1 %v22061_v26  ;;  %20585 = vmatprep.subr.bf16.mxu0 %v22062_v35 }
0x35ec   : > { %20607 = vmatprep.subr.bf16.mxu1 %v22063_v27 }
0x35ee   : > { %20586 = vmatpush3.bf16.msra.mxu0 %v22064_v57 }
0x35ef   : > { %20608 = vmatpush3.bf16.msra.mxu1 %v22065_v53  ;;  %20587 = vmatprep.subr.bf16.mxu0 %v22066_v32 }
0x35f0   : > { %20609 = vmatprep.subr.bf16.mxu1 %v22067_v51 }
0x35f2   : > { %20588 = vmatpush3.bf16.msra.mxu0 %v22068_v41 }
0x35f3   : > { %20610 = vmatpush3.bf16.msra.mxu1 %v22069_v44  ;;  %20589 = vmatprep.subr.bf16.mxu0 %v22070_v3 }
0x35f4   : > { %20611 = vmatprep.subr.bf16.mxu1 %v22071_v21 }
0x35f6   : > { %20590 = vmatpush3.bf16.msra.mxu0 %v22072_v50 }
0x35f7   : > { %20612 = vmatpush3.bf16.msra.mxu1 %v22073_v46  ;;  %20591 = vmatprep.subr.bf16.mxu0 %v22074_v30 }
0x35f8   : > { %20613 = vmatprep.subr.bf16.mxu1 %v22075_v47 }
0x35fa   : > { %20592 = vmatpush3.bf16.msra.mxu0 %v22076_v25 }
0x35fb   : > { %20614 = vmatpush3.bf16.msra.mxu1 %v22077_v49  ;;  %20593 = vmatprep.subr.bf16.mxu0 %v22078_v15 }
0x35fc   : > { %20615 = vmatprep.subr.bf16.mxu1 %v22079_v7 }
0x35fe   : > { %20594 = vmatpush3.bf16.msra.mxu0 %v22080_v52 }
0x35ff   : > { %20616 = vmatpush3.bf16.msra.mxu1 %v22081_v56  ;;  %21349 = vmatprep.subr.bf16.mxu0 %v22525_v1 }
0x3600   : > { %21357 = vmatprep.subr.bf16.mxu1 %v22525_v1 }
0x3601   : > { %11443 = vmatmul.mubr.bf16.vlgmr.msra.gmra.mxu0 %v10392_v34 }
0x3602   : > { %11483 = vmatmul.mubr.bf16.vlgmr.msra.gmra.mxu1 %v10394_v42  ;;  %21353 = vmatprep.mubr.msk.bf16.mxu0 %vm22526_vm0, %v22525_v1 }
0x3603   : > { %21359 = vmatprep.mubr.msk.bf16.mxu1 %vm22526_vm0, %v22525_v1 }
0x3661   : > { %v20463_v43 = vpop.f32.mrf.mxu0  ;;  %v20485_v58 = vpop.f32.mrf.mxu1 }
0x3663   : > { %v20464_v28 = vpop.f32.mrf.mxu0  ;;  %v20486_v63 = vpop.f32.mrf.mxu1 }
0x3664   : > { %v20465_v22 = vadd.f32 %v20464_v28, %v20463_v43  ;;  %v20487_v2 = vadd.f32 %v20486_v63, %v20485_v58  ;;  %v22082_v28 = vld [vmem:[%s27080_s1 + $0x48] sm:$0xff]   ;;  %v22083_v63 = vld [vmem:[%s27080_s1 + $0x40] sm:$0xff]  }
0x3665   : > { %v20466_v11 = vpop.f32.mrf.mxu0  ;;  %v20488_v60 = vpop.f32.mrf.mxu1  ;;  %21350 = vmatpush3.bf16.msra.mxu0 %v22082_v28 }
0x3666   : > { %v11205_v45 = vadd.f32 %v20465_v22, %v18686_v48  ;;  %21351 = vmatprep.subr.bf16.mxu0 %v22525_v1  ;;  %v18815_v60 = vld [vmem:[%s27090_s11 + $0x3] ss:$0 sm:$0xff] }
0x3667   : > { %v20467_v37 = vpop.f32.mrf.mxu0  ;;  %v20489_v39 = vpop.f32.mrf.mxu1 }
0x3668   : > { %v11245_v62 = vadd.f32 %v20487_v2, %v11205_v45  ;;  %v18816_v37 = vld [vmem:[%s27091_s12 + $0x3] ss:$0 sm:$0xff] }
0x3669   : > { %21352 = vmatpush3.bf16.msra.mxu0 %v22083_v63 }
0x366a   : > { %21363 = vmatprep.subr.bf16.mxu0 %v22525_v1 }
0x3681   : > { %v20507_v59 = vpop.f32.mrf.mxu0  ;;  %v20529_v4 = vpop.f32.mrf.mxu1 }
0x3683   : > { %v20508_v31 = vpop.f32.mrf.mxu0  ;;  %v20530_v16 = vpop.f32.mrf.mxu1 }
0x3684   : > { %v20509_v57 = vadd.f32 %v20508_v31, %v20507_v59  ;;  %v20531_v32 = vadd.f32 %v20530_v16, %v20529_v4  ;;  %v19122_v4 = vld [vmem:[%s27081_s2 + $0x4] ss:$0 sm:$0xff] }
0x3685   : > { %v20510_v18 = vpop.f32.mrf.mxu0  ;;  %v20532_v19 = vpop.f32.mrf.mxu1 }
0x3686   : > { %v11285_v53 = vadd.f32 %v20509_v57, %v11245_v62 }
0x3687   : > { %v20511_v20 = vpop.f32.mrf.mxu0  ;;  %v20533_v13 = vpop.f32.mrf.mxu1 }
0x3688   : > { %v11325_v41 = vadd.f32 %v20531_v32, %v11285_v53 }
0x36a1   : > { %v20551_v61 = vpop.f32.mrf.mxu0 }
0x36a2   : > { %v20573_v0 = vpop.f32.mrf.mxu1 }
0x36a3   : > { %v20552_v33 = vpop.f32.mrf.mxu0 }
0x36a4   : > { %v20574_v36 = vpop.f32.mrf.mxu1  ;;  %v20553_v51 = vadd.f32 %v20552_v33, %v20551_v61 }
0x36a5   : > { %v20554_v55 = vpop.f32.mrf.mxu0  ;;  %v20575_v21 = vadd.f32 %v20574_v36, %v20573_v0 }
0x36a6   : > { %v20576_v26 = vpop.f32.mrf.mxu1  ;;  %v11365_v44 = vadd.f32 %v20553_v51, %v11325_v41 }
0x36a7   : > { %v20555_v35 = vpop.f32.mrf.mxu0 }
0x36a8   : > { %v20577_v27 = vpop.f32.mrf.mxu1  ;;  %v11405_v46 = vadd.f32 %v20575_v21, %v11365_v44 }
0x36c1   : > { %v20595_v3 = vpop.f32.mrf.mxu0 }
0x36c2   : > { %v20617_v50 = vpop.f32.mrf.mxu1 }
0x36c3   : > { %v20596_v40 = vpop.f32.mrf.mxu0 }
0x36c4   : > { %v20597_v30 = vadd.f32 %v20596_v40, %v20595_v3  ;;  %v20618_v47 = vpop.f32.mrf.mxu1 }
0x36c5   : > { %v20598_v25 = vpop.f32.mrf.mxu0  ;;  %v20619_v49 = vadd.f32 %v20618_v47, %v20617_v50 }
0x36c6   : > { %v11445_v12 = vadd.f32 %v20597_v30, %v11405_v46  ;;  %v20620_v15 = vpop.f32.mrf.mxu1 }
0x36c7   : > { %v20599_v7 = vpop.f32.mrf.mxu0 }
0x36c8   : > { %v11485_v52 = vadd.f32 %v20619_v49, %v11445_v12  ;;  %v20621_v54 = vpop.f32.mrf.mxu1 }
0x36ca   : > { %v11490_v56 = vadd.f32 %v11485_v52, %v25054_v17 }
0x36cc   : > { %v11491_v9 = vsel %vm762_vm1, %v11490_v56, 0.0 }
0x36cd   : > { %11492 = vadd.xlane.f32.xlu1 %v11491_v9 }
0x3756   : > { %v11493_v34 = vpop.xlane.xlu1 %11492 }
0x3757   : > { %v11494_v42 = vmul.f32 0.03125, %v11493_v34 }
0x3759   : > { %v11495_v43 = vsub.f32 %v11490_v56, %v11494_v42 }
0x375b   : > { %v11496_v58 = vmul.f32 %v11495_v43, %v11495_v43 }
0x375d   : > { %v11497_v48 = vsel %vm762_vm1, %v11496_v58, 0.0 }
0x375e   : > { %11498 = vadd.xlane.f32.xlu1 %v11497_v48 }
0x37e7   : > { %v11499_v17 = vpop.xlane.xlu1 %11498 }
0x37e8   : > { %v11500_v22 = vmul.f32 0.03125, %v11499_v17  ;;  %v18822_v17 = vld [vmem:[%s27082_s3 + $0x40] sm:$0xf] }
0x37ea   : > { %v11501_v2 = vadd.f32 1e-05, %v11500_v22  ;;  %v12169_v22 = vsel %vm874_vm3, %v18822_v17, 0 }
0x37ec   : > { %22420 = vrsqrt.f32 %v11501_v2  ;;  %v18823_v2 = vld [vmem:[%s27082_s3 + $0x44] sm:$0xf] }
0x37f9   : > { %v22421_v11 = vpop.eup %22420 }
0x37fa   : > { %v11503_v45 = vmul.f32 %v22421_v11, %v11495_v43  ;;  %v12123_v11 = vsel %vm874_vm3, %v18823_v2, 0 }
0x37fc   : > { %v11510_v39 = vmul.f32 %v18815_v60, %v11503_v45 }
0x37fe   : > { %v25606_v62 = vadd.f32 %v18816_v37, %v11510_v39 }
0x3800   : > { %v11835_v59 = vpack.c.bf16 %v25606_v62, %v25606_v62 }
0x3802   : > { %21354 = vmatmul.mubr.msk.bf16.vlgmr.msra.gmra.mxu0 %vm762_vm1, %v11835_v59 }
0x3803   : > { %21365 = vmatprep.mubr.msk.bf16.mxu0 %vm22526_vm0, %v22525_v1 }
0x38c2   : > { %v11891_v31 = vpop.f32.mrf.mxu0 }
0x38c3   : > { %v11892_v16 = vadd.f32 %v19122_v4, %v11891_v31 }
0x38c4   : > { %v21355_v18 = vpop.f32.mrf.mxu0 }
0x38c5   : > { %v25616_v19 = vpack.c.bf16 %v11892_v16, %v11892_v16 }
0x38c6   : > { %v11894_v20 = vpop.f32.mrf.mxu0 }
0x38c7   : > { %12010 = vrot.lane.b32.xlu0 %v25616_v19, %s27143_s0  ;;  %11899 = vrot.lane.b32.xlu1 %v25616_v19, %s27144_s17 }
0x38c8   : > { %v21356_v13 = vpop.f32.mrf.mxu0 }
0x38cb   : > { %12008 = vrot.lane.b32.xlu0 %v25616_v19, %s27145_s24 }
0x3939   : > { %v11900_v61 = vpop.permute.xlu1 %11899  ;;  %v12011_v33 = vpop.permute.xlu0 %12010 }
0x393a   : > { %v11905_v0 = vsel %vm810_vm2, %v11900_v61, 0  ;;  %v12016_v36 = vsel %vm810_vm2, %v12011_v33, 0 }
0x393b   : > { %21358 = vmatpush3.bf16.xpose.msra.mxu1 %v11905_v0 }
0x393c   : > { %21369 = vmatprep.subr.bf16.mxu1 %v22525_v1 }
0x393d   : > { %v12009_v55 = vpop.permute.xlu0 %12008 }
0x3942   : > { %21360 = vmatmul.mubr.msk.bf16.vlgmr.msra.gmra.mxu1 %vm810_vm2, %v25616_v19 }
0x3943   : > { %21370 = vmatpush3.bf16.xpose.msra.mxu1 %v12016_v36  ;;  %21371 = vmatprep.mubr.msk.bf16.mxu1 %vm22526_vm0, %v22525_v1 }
0x3944   : > { %21381 = vmatprep.subr.bf16.mxu1 %v22525_v1 }
0x394a   : > { %21372 = vmatmul.mubr.msk.bf16.vlgmr.msra.gmra.mxu1 %vm810_vm2, %v12009_v55 }
0x394b   : > { %21383 = vmatprep.mubr.msk.bf16.mxu1 %vm22526_vm0, %v22525_v1  ;;  %21382 = vmatpush3.bf16.msra.mxu1 %v12123_v11 }
0x394c   : > { %21393 = vmatprep.subr.bf16.mxu1 %v22525_v1 }
0x3a02   : > { %v11941_v26 = vpop.f32.mrf.mxu1 }
0x3a03   : > { %v11947_v35 = vsel %vm810_vm2, %v11941_v26, -inf }
0x3a04   : > { %11948 = vmax.xlane.f32.xlu0 %v11947_v35  ;;  %v21361_v27 = vpop.f32.mrf.mxu1 }
0x3a06   : > { %v11944_v57 = vpop.f32.mrf.mxu1 }
0x3a08   : > { %v21362_v53 = vpop.f32.mrf.mxu1 }
0x3a0a   : > { %v12052_v32 = vpop.f32.mrf.mxu1 }
0x3a0b   : > { %v12058_v51 = vsel %vm810_vm2, %v12052_v32, -inf }
0x3a0c   : > { %12059 = vmax.xlane.f32.xlu1 %v12058_v51  ;;  %v21373_v41 = vpop.f32.mrf.mxu1 }
0x3a0e   : > { %v12055_v44 = vpop.f32.mrf.mxu1 }
0x3a10   : > { %v21374_v3 = vpop.f32.mrf.mxu1 }
0x3a1d   : > { %12070 = vrot.lane.b32.xlu1 %v25616_v19, %s27146_s30 }
0x3a21   : > { %12213 = vrot.lane.b32.xlu1 %v25616_v19, %s27149_s21 }
0x3a8d   : > { %v11949_v21 = vpop.xlane.xlu0 %11948 }
0x3a8e   : > { %v11950_v50 = vsub.f32 %v11941_v26, %v11949_v21 }
0x3a90   : > { %v11951_v40 = vmul.f32 1.442695, %v11950_v50 }
0x3a92   : > { %22422 = vpow2.f32 %v11951_v40 }
0x3a95   : > { %v12060_v46 = vpop.xlane.xlu1 %12059 }
0x3a96   : > { %v12061_v30 = vsub.f32 %v12052_v32, %v12060_v46 }
0x3a98   : > { %v12062_v47 = vmul.f32 1.442695, %v12061_v30 }
0x3a99   : > { %v12071_v42 = vpop.permute.xlu1 %12070 }
0x3a9a   : > { %22424 = vpow2.f32 %v12062_v47  ;;  %v12076_v58 = vsel %vm874_vm3, %v12071_v42, 0 }
0x3a9d   : > { %v12214_v4 = vpop.permute.xlu1 %12213 }
0x3a9e   : > { %v12219_v20 = vsel %vm810_vm2, %v12214_v4, 0 }
0x3a9f   : > { %v22423_v25 = vpop.eup %22422 }
0x3aa0   : > { %v11953_v12 = vsel %vm810_vm2, %v22423_v25, 0.0 }
0x3aa1   : > { %11954 = vadd.xlane.f32.xlu0 %v11953_v12 }
0x3aa7   : > { %v22425_v49 = vpop.eup %22424 }
0x3aa8   : > { %v12064_v15 = vsel %vm810_vm2, %v22425_v49, 0.0 }
0x3aa9   : > { %12065 = vadd.xlane.f32.xlu0 %v12064_v15 }
0x3abf   : > { %11959 = vrot.lane.b32.xlu0 %v25616_v19, %s27148_s22 }
0x3ac3   : > { %12211 = vrot.lane.b32.xlu0 %v25616_v19, %s27147_s16 }
0x3b2a   : > { %v11955_v7 = vpop.xlane.xlu0 %11954 }
0x3b2b   : > { %22426 = vrcp.f32 %v11955_v7 }
0x3b32   : > { %v12066_v52 = vpop.xlane.xlu0 %12065 }
0x3b33   : > { %22428 = vrcp.f32 %v12066_v52 }
0x3b36   : > { %v11960_v54 = vpop.permute.xlu0 %11959 }
0x3b37   : > { %v11965_v56 = vsel %vm874_vm3, %v11960_v54, 0 }
0x3b38   : > { %v22427_v9 = vpop.eup %22426  ;;  %21364 = vmatpush3.bf16.msra.mxu0 %v11965_v56 }
0x3b39   : > { %v11957_v34 = vmul.f32 %v22427_v9, %v22423_v25  ;;  %21375 = vmatprep.subr.bf16.mxu0 %v22525_v1 }
0x3b3a   : > { %v12212_v0 = vpop.permute.xlu0 %12211 }
0x3b3b   : > { %v11958_v43 = vpack.c.bf16 %v11957_v34, %v11957_v34  ;;  %v18824_v34 = vld [vmem:[%s27082_s3 + $0x48] sm:$0xf] }
0x3b3c   : > { %v12326_v42 = vsel %vm874_vm3, %v18824_v34, 0 }
0x3b3d   : > { %21366 = vmatmul.mubr.msk.bf16.vlgmr.msra.gmra.mxu0 %vm810_vm2, %v11958_v43 }
0x3b3e   : > { %21376 = vmatpush3.bf16.msra.mxu0 %v12076_v58  ;;  %21377 = vmatprep.mubr.msk.bf16.mxu0 %vm22526_vm0, %v22525_v1 }
0x3b3f   : > { %21387 = vmatprep.subr.bf16.mxu0 %v22525_v1 }
0x3b40   : > { %v22429_v48 = vpop.eup %22428 }
0x3b41   : > { %v12068_v28 = vmul.f32 %v22429_v48, %v22425_v49 }
0x3b43   : > { %v12069_v63 = vpack.c.bf16 %v12068_v28, %v12068_v28 }
0x3b45   : > { %21378 = vmatmul.mubr.msk.bf16.vlgmr.msra.gmra.mxu0 %vm810_vm2, %v12069_v63 }
0x3b46   : > { %21389 = vmatprep.mubr.msk.bf16.mxu0 %vm22526_vm0, %v22525_v1  ;;  %21388 = vmatpush3.bf16.msra.mxu0 %v12169_v22 }
0x3b47   : > { %21399 = vmatprep.subr.bf16.mxu0 %v22525_v1 }
0x3bfd   : > { %v12001_v60 = vpop.f32.mrf.mxu0 }
0x3bfe   : > { %v12007_v45 = vpack.c.bf16 %v12001_v60, %v12001_v60 }
0x3bff   : > { %v21367_v37 = vpop.f32.mrf.mxu0 }
0x3c00   : > { %21390 = vmatmul.mubr.msk.bf16.vlgmr.msra.gmra.mxu0 %vm810_vm2, %v12007_v45 }
0x3c01   : > { %v12004_v39 = vpop.f32.mrf.mxu0  ;;  %21401 = vmatprep.mubr.msk.bf16.mxu0 %vm22526_vm0, %v22525_v1 }
0x3c03   : > { %v21368_v59 = vpop.f32.mrf.mxu0 }
0x3c05   : > { %v12112_v31 = vpop.f32.mrf.mxu0 }
0x3c06   : > { %v12118_v16 = vpack.c.bf16 %v12112_v31, %v12112_v31 }
0x3c07   : > { %v21379_v18 = vpop.f32.mrf.mxu0 }
0x3c08   : > { %21384 = vmatmul.mubr.msk.bf16.vlgmr.msra.gmra.mxu1 %vm810_vm2, %v12118_v16 }
0x3c09   : > { %21394 = vmatpush3.bf16.xpose.msra.mxu1 %v12219_v20  ;;  %v12115_v13 = vpop.f32.mrf.mxu0  ;;  %21395 = vmatprep.mubr.msk.bf16.mxu1 %vm22526_vm0, %v22525_v1  ;;  %v18825_v20 = vld [vmem:[%s27082_s3 + $0x4c] sm:$0xf] }
0x3c0a   : > { %21405 = vmatprep.subr.bf16.mxu1 %v22525_v1 }
0x3c0b   : > { %v21380_v61 = vpop.f32.mrf.mxu0 }
0x3c10   : > { %21396 = vmatmul.mubr.msk.bf16.vlgmr.msra.gmra.mxu1 %vm810_vm2, %v12212_v0 }
0x3c11   : > { %21407 = vmatprep.mubr.msk.bf16.mxu1 %vm22526_vm0, %v22525_v1  ;;  %21406 = vmatpush3.bf16.msra.mxu1 %v12326_v42 }
0x3c12   : > { %21417 = vmatprep.subr.bf16.mxu1 %v22525_v1 }
0x3cc0   : > { %v12205_v33 = vpop.f32.mrf.mxu0 }
0x3cc2   : > { %v21391_v36 = vpop.f32.mrf.mxu0 }
0x3cc4   : > { %v12208_v55 = vpop.f32.mrf.mxu0 }
0x3cc6   : > { %v21392_v26 = vpop.f32.mrf.mxu0 }
0x3cc8   : > { %v12159_v35 = vpop.f32.mrf.mxu1 }
0x3cc9   : > { %v25678_v27 = vadd.f32 %v12205_v33, %v12159_v35 }
0x3cca   : > { %v21385_v57 = vpop.f32.mrf.mxu1 }
0x3ccc   : > { %v12162_v53 = vpop.f32.mrf.mxu1 }
0x3cce   : > { %v21386_v32 = vpop.f32.mrf.mxu1 }
0x3cd0   : > { %v12255_v51 = vpop.f32.mrf.mxu1 }
0x3cd1   : > { %v12261_v41 = vsel %vm810_vm2, %v12255_v51, -inf }
0x3cd2   : > { %12262 = vmax.xlane.f32.xlu1 %v12261_v41  ;;  %v21397_v44 = vpop.f32.mrf.mxu1  ;;  %v19138_v41 = vld [vmem:[%s27159_s14 + $0x4] ss:$0 sm:$0xff]  ;;  %s27161_s14 = sld [smem:[#allocation15_spill]] }
0x3cd4   : > { %v12258_v3 = vpop.f32.mrf.mxu1 }
0x3cd6   : > { %v21398_v21 = vpop.f32.mrf.mxu1 }
0x3ce3   : > { %12371 = vrot.lane.b32.xlu1 %v25616_v19, %s27152_s23 }
0x3ce7   : > { %12369 = vrot.lane.b32.xlu1 %v25616_v19, %s27151_s15 }
0x3d5b   : > { %v12263_v50 = vpop.xlane.xlu1 %12262 }
0x3d5c   : > { %v12264_v40 = vsub.f32 %v12255_v51, %v12263_v50 }
0x3d5e   : > { %v12265_v46 = vmul.f32 1.442695, %v12264_v40 }
0x3d5f   : > { %v12372_v52 = vpop.permute.xlu1 %12371 }
0x3d60   : > { %22430 = vpow2.f32 %v12265_v46  ;;  %v12377_v56 = vsel %vm810_vm2, %v12372_v52, 0  ;;  %v18845_v52 = vld [vmem:[%s27086_s7 + $0x480] sm:$0xff] }
0x3d63   : > { %v12370_v9 = vpop.permute.xlu1 %12369 }
0x3d6d   : > { %v22431_v30 = vpop.eup %22430 }
0x3d6e   : > { %v12267_v47 = vsel %vm810_vm2, %v22431_v30, 0.0 }
0x3d6f   : > { %12268 = vadd.xlane.f32.xlu0 %v12267_v47 }
0x3d85   : > { %12273 = vrot.lane.b32.xlu0 %v25616_v19, %s27150_s27 }
0x3df8   : > { %v12269_v25 = vpop.xlane.xlu0 %12268 }
0x3df9   : > { %22432 = vrcp.f32 %v12269_v25 }
0x3dfc   : > { %v12274_v12 = vpop.permute.xlu0 %12273 }
0x3dfd   : > { %v12279_v49 = vsel %vm874_vm3, %v12274_v12, 0 }
0x3dfe   : > { %21400 = vmatpush3.bf16.msra.mxu0 %v12279_v49 }
0x3dff   : > { %21411 = vmatprep.subr.bf16.mxu0 %v22525_v1 }
0x3e06   : > { %v22433_v15 = vpop.eup %22432 }
0x3e07   : > { %v12271_v7 = vmul.f32 %v22433_v15, %v22431_v30 }
0x3e09   : > { %v12272_v54 = vpack.c.bf16 %v12271_v7, %v12271_v7 }
0x3e0b   : > { %21402 = vmatmul.mubr.msk.bf16.vlgmr.msra.gmra.mxu0 %vm810_vm2, %v12272_v54  ;;  %v18853_v54 = vld [vmem:[%s27086_s7 + $0x4c0] sm:$0xff] }
0x3e0c   : > { %21412 = vmatpush3.bf16.xpose.msra.mxu0 %v12377_v56  ;;  %21413 = vmatprep.mubr.msk.bf16.mxu0 %vm22526_vm0, %v22525_v1  ;;  %v19158_v56 = vcombine.high %v18845_v52, %v18853_v54  ;;  %v19157_v34 = vcombine.low %v18845_v52, %v18853_v54 }
0x3e0d   : > { %21423 = vmatprep.subr.bf16.mxu0 %v22525_v1 }
0x3e13   : > { %21414 = vmatmul.mubr.msk.bf16.vlgmr.msra.gmra.mxu0 %vm810_vm2, %v12370_v9  ;;  %v18854_v9 = vld [vmem:[%s27086_s7 + $0x4c8] sm:$0xff] }
0x3e14   : > { %21425 = vmatprep.mubr.msk.bf16.mxu0 %vm22526_vm0, %v22525_v1 }
0x3ecb   : > { %v12315_v43 = vpop.f32.mrf.mxu0 }
0x3ecc   : > { %v12321_v58 = vpack.c.bf16 %v12315_v43, %v12315_v43 }
0x3ecd   : > { %v21403_v48 = vpop.f32.mrf.mxu0 }
0x3ece   : > { %21408 = vmatmul.mubr.msk.bf16.vlgmr.msra.gmra.mxu1 %vm810_vm2, %v12321_v58  ;;  %v18829_v58 = vld [vmem:[%s27086_s7 + $0x400] sm:$0xff] }
0x3ecf   : > { %v12318_v28 = vpop.f32.mrf.mxu0  ;;  %21419 = vmatprep.mubr.msk.bf16.mxu1 %vm22526_vm0, %v22525_v1  ;;  %v18837_v48 = vld [vmem:[%s27086_s7 + $0x440] sm:$0xff] }
0x3ed0   : > { %v18830_v28 = vld [vmem:[%s27086_s7 + $0x408] sm:$0xff] }
0x3ed1   : > { %v21404_v63 = vpop.f32.mrf.mxu0 }
0x3ed2   : > { %v19142_v63 = vcombine.high %v18829_v58, %v18837_v48 }
0x3ed3   : > { %v12413_v17 = vpop.f32.mrf.mxu0 }
0x3ed4   : > { %v12419_v22 = vsel %vm810_vm2, %v12413_v17, -inf }
0x3ed5   : > { %12420 = vmax.xlane.f32.xlu0 %v12419_v22  ;;  %v21415_v2 = vpop.f32.mrf.mxu0  ;;  %v19141_v22 = vcombine.low %v18829_v58, %v18837_v48 }
0x3ed7   : > { %v12416_v11 = vpop.f32.mrf.mxu0 }
0x3ed9   : > { %v21416_v60 = vpop.f32.mrf.mxu0 }
0x3eda   : > { %v18847_v60 = vld [vmem:[%s27086_s7 + $0x490] sm:$0xff] }
0x3eeb   : > { %12431 = vrot.lane.b32.xlu0 %v25616_v19, %s27158_s26  ;;  %v12484_v19 = vsel %vm874_vm3, %v18825_v20, 0 }
0x3eec   : > { %21424 = vmatpush3.bf16.msra.mxu0 %v12484_v19 }
0x3f5e   : > { %v12421_v45 = vpop.xlane.xlu0 %12420 }
0x3f5f   : > { %v12422_v37 = vsub.f32 %v12413_v17, %v12421_v45  ;;  %v18838_v17 = vld [vmem:[%s27086_s7 + $0x448] sm:$0xff]  ;;  %v18855_v45 = vld [vmem:[%s27086_s7 + $0x4d0] sm:$0xff] }
0x3f60   : > { %v19143_v2 = vcombine.low %v18830_v28, %v18838_v17  ;;  %v19144_v11 = vcombine.high %v18830_v28, %v18838_v17  ;;  %v18835_v28 = vld [vmem:[%s27086_s7 + $0x430] sm:$0xff]  ;;  %v18836_v17 = vld [vmem:[%s27086_s7 + $0x438] sm:$0xff] }
0x3f61   : > { %v12423_v39 = vmul.f32 1.442695, %v12422_v37  ;;  %v18848_v37 = vld [vmem:[%s27086_s7 + $0x498] sm:$0xff] }
0x3f62   : > { %v12432_v59 = vpop.permute.xlu0 %12431 }
0x3f63   : > { %22434 = vpow2.f32 %v12423_v39  ;;  %v12437_v4 = vsel %vm874_vm3, %v12432_v59, 0  ;;  %v19161_v39 = vcombine.low %v18847_v60, %v18855_v45  ;;  %v19162_v59 = vcombine.high %v18847_v60, %v18855_v45 }
0x3f64   : > { %21418 = vmatpush3.bf16.msra.mxu1 %v12437_v4  ;;  %v18856_v4 = vld [vmem:[%s27086_s7 + $0x4d8] sm:$0xff] }
0x3f65   : > { %12820 = vmatprep.subr.bf16.mxu1 %v19158_v56  ;;  %v18859_v56 = vld [vmem:[%s27086_s7 + $0x4f0] sm:$0xff] }
0x3f70   : > { %v22435_v31 = vpop.eup %22434 }
0x3f71   : > { %v12425_v16 = vsel %vm810_vm2, %v22435_v31, 0.0 }
0x3f72   : > { %12426 = vadd.xlane.f32.xlu1 %v12425_v16  ;;  %v19164_v16 = vcombine.high %v18848_v37, %v18856_v4 }
0x3f8e   : > { %v12362_v18 = vpop.f32.mrf.mxu1 }
0x3f8f   : > { %v12368_v13 = vadd.f32 %v12362_v18, %v25678_v27 }
0x3f90   : > { %v21409_v61 = vpop.f32.mrf.mxu1 }
0x3f91   : > { %v19139_v61 = vld [vmem:[%s27084_s5 + $0x4] ss:$0 sm:$0xff] }
0x3f92   : > { %v12365_v0 = vpop.f32.mrf.mxu1 }
0x3f94   : > { %v21410_v33 = vpop.f32.mrf.mxu1 }
0x3f95   : > { %v19140_v33 = vld [vmem:[%s27085_s6 + $0x4] ss:$0 sm:$0xff] }
0x3ffb   : > { %v12427_v36 = vpop.xlane.xlu1 %12426 }
0x3ffc   : > { %22436 = vrcp.f32 %v12427_v36 }
0x4009   : > { %v22437_v55 = vpop.eup %22436 }
0x400a   : > { %v12429_v26 = vmul.f32 %v22437_v55, %v22435_v31  ;;  %v19163_v31 = vcombine.low %v18848_v37, %v18856_v4  ;;  %v18831_v55 = vld [vmem:[%s27086_s7 + $0x410] sm:$0xff]  ;;  %v22085_v4 = vld [vmem:[%s27088_s9 + $0x10f8] sm:$0xff]  }
0x400c   : > { %v12430_v35 = vpack.c.bf16 %v12429_v26, %v12429_v26  ;;  %v18839_v26 = vld [vmem:[%s27086_s7 + $0x450] sm:$0xff] }
0x400e   : > { %21420 = vmatmul.mubr.msk.bf16.vlgmr.msra.gmra.mxu1 %vm810_vm2, %v12430_v35  ;;  %v18832_v35 = vld [vmem:[%s27086_s7 + $0x418] sm:$0xff] }
0x400f   : > { %12840 = vmatprep.mubr.bf16.mxu1 %v22538_v38  ;;  %12821 = vmatpush1.bf16.msra.mxu1 %v19157_v34  ;;  %v18860_v34 = vld [vmem:[%s27086_s7 + $0x4f8] sm:$0xff] }
0x4010   : > { %12822 = vmatprep.subr.bf16.mxu1 %v19142_v63  ;;  %v18843_v63 = vld [vmem:[%s27086_s7 + $0x470] sm:$0xff] }
0x4011   : > { %v19154_v60 = vcombine.high %v18835_v28, %v18843_v63  ;;  %v19153_v37 = vcombine.low %v18835_v28, %v18843_v63 }
0x4013   : > { %12823 = vmatpush1.bf16.msra.mxu1 %v19141_v22  ;;  %v18844_v22 = vld [vmem:[%s27086_s7 + $0x478] sm:$0xff] }
0x4014   : > { %12902 = vmatprep.subr.bf16.mxu1 %v19162_v59  ;;  %v19156_v45 = vcombine.high %v18836_v17, %v18844_v22  ;;  %v22084_v59 = vld [vmem:[%s27088_s9 + $0x1078] sm:$0xff]  }
0x40ce   : > { %v12473_v57 = vpop.f32.mrf.mxu1 }
0x40cf   : > { %v12479_v53 = vpack.c.bf16 %v12473_v57, %v12473_v57  ;;  %v18840_v57 = vld [vmem:[%s27086_s7 + $0x458] sm:$0xff] }
0x40d0   : > { %v21421_v32 = vpop.f32.mrf.mxu1 }
0x40d1   : > { %21426 = vmatmul.mubr.msk.bf16.vlgmr.msra.gmra.mxu0 %vm810_vm2, %v12479_v53 }
0x40d2   : > { %v12476_v27 = vpop.f32.mrf.mxu1  ;;  %12881 = vmatprep.mubr.bf16.mxu0 %v22538_v38 }
0x40d3   : > { %v19146_v27 = vcombine.high %v18831_v55, %v18839_v26 }
0x40d4   : > { %v21422_v51 = vpop.f32.mrf.mxu1 }
0x40d5   : > { %v19148_v51 = vcombine.high %v18832_v35, %v18840_v57 }
0x4191   : > { %v12520_v44 = vpop.f32.mrf.mxu0 }
0x4192   : > { %v12526_v3 = vadd.f32 %v12520_v44, %v12368_v13  ;;  %v18857_v44 = vld [vmem:[%s27086_s7 + $0x4e0] sm:$0xff] }
0x4193   : > { %v21427_v21 = vpop.f32.mrf.mxu0 }
0x4194   : > { %v12533_v50 = vadd.f32 %v19138_v41, %v12526_v3  ;;  %v18849_v41 = vld [vmem:[%s27086_s7 + $0x4a0] sm:$0xff]  ;;  %v18850_v3 = vld [vmem:[%s27086_s7 + $0x4a8] sm:$0xff] }
0x4195   : > { %v12523_v40 = vpop.f32.mrf.mxu0  ;;  %v18858_v21 = vld [vmem:[%s27086_s7 + $0x4e8] sm:$0xff] }
0x4196   : > { %v12534_v46 = vadd.f32 %v12533_v50, %v25606_v62  ;;  %v18846_v62 = vld [vmem:[%s27086_s7 + $0x488] sm:$0xff]  ;;  %v19145_v50 = vcombine.low %v18831_v55, %v18839_v26  ;;  %v19147_v40 = vcombine.low %v18832_v35, %v18840_v57  ;;  %v22096_v55 = vld [vmem:[%s27088_s9 + $0x1060] sm:$0xff]  }
0x4197   : > { %v21428_v30 = vpop.f32.mrf.mxu0  ;;  %v19159_v42 = vcombine.low %v18846_v62, %v18854_v9  ;;  %v19160_v43 = vcombine.high %v18846_v62, %v18854_v9  ;;  %v18851_v62 = vld [vmem:[%s27086_s7 + $0x4b0] sm:$0xff]  ;;  %v18852_v9 = vld [vmem:[%s27086_s7 + $0x4b8] sm:$0xff]  ;;  %v22097_v26 = vld [vmem:[%s27088_s9 + $0x10e0] sm:$0xff]  }
0x4198   : > { %v12535_v47 = vsel %vm762_vm1, %v12534_v46, 0.0  ;;  %v19168_v30 = vcombine.high %v18850_v3, %v18858_v21  ;;  %v19170_v58 = vcombine.high %v18851_v62, %v18859_v56  ;;  %v19172_v48 = vcombine.high %v18852_v9, %v18860_v34  ;;  %v22098_v35 = vld [vmem:[%s27088_s9 + $0x1020] sm:$0xff]  }
0x4199   : > { %12536 = vadd.xlane.f32.xlu1 %v12535_v47  ;;  %12861 = vmatprep.subr.bf16.mxu0 %v19160_v43  ;;  %v18833_v47 = vld [vmem:[%s27086_s7 + $0x420] sm:$0xff] }
0x419a   : > { %12862 = vmatpush1.bf16.msra.mxu0 %v19159_v42  ;;  %v22099_v57 = vld [vmem:[%s27088_s9 + $0x10a0] sm:$0xff]  }
0x419b   : > { %12863 = vmatprep.subr.bf16.mxu0 %v19144_v11  ;;  %v19171_v11 = vcombine.low %v18852_v9, %v18860_v34 }
0x419e   : > { %12864 = vmatpush1.bf16.msra.mxu0 %v19143_v2  ;;  %v19169_v2 = vcombine.low %v18851_v62, %v18859_v56 }
0x419f   : > { %12943 = vmatprep.subr.bf16.mxu0 %v19164_v16  ;;  %v22087_v16 = vld [vmem:[%s27088_s9 + $0x10b8] sm:$0xff]  }
0x4222   : > { %v12537_v25 = vpop.xlane.xlu1 %12536 }
0x4223   : > { %v12538_v12 = vmul.f32 0.03125, %v12537_v25  ;;  %v18841_v25 = vld [vmem:[%s27086_s7 + $0x460] sm:$0xff] }
0x4224   : > { %v19150_v52 = vcombine.high %v18833_v47, %v18841_v25  ;;  %v19149_v42 = vcombine.low %v18833_v47, %v18841_v25  ;;  %v22111_v47 = vld [vmem:[%s27088_s9 + $0x1088] sm:$0xff]   ;;  %v22112_v25 = vld [vmem:[%s27088_s9 + $0x1040] sm:$0xff]  }
0x4225   : > { %v12539_v49 = vsub.f32 %v12534_v46, %v12538_v12  ;;  %v19166_v46 = vcombine.high %v18849_v41, %v18857_v44  ;;  %v18834_v12 = vld [vmem:[%s27086_s7 + $0x428] sm:$0xff] }
0x4227   : > { %v12540_v15 = vmul.f32 %v12539_v49, %v12539_v49 }
0x4229   : > { %v12541_v7 = vsel %vm762_vm1, %v12540_v15, 0.0  ;;  %v19165_v15 = vcombine.low %v18849_v41, %v18857_v44  ;;  %v22103_v41 = vld [vmem:[%s27088_s9 + $0x1098] sm:$0xff]   ;;  %v22104_v44 = vld [vmem:[%s27088_s9 + $0x1050] sm:$0xff]  }
0x422a   : > { %12542 = vadd.xlane.f32.xlu1 %v12541_v7  ;;  %v19167_v7 = vcombine.low %v18850_v3, %v18858_v21  ;;  %v22105_v3 = vld [vmem:[%s27088_s9 + $0x10d0] sm:$0xff]  }
0x422b   : > { %v22106_v21 = vld [vmem:[%s27088_s9 + $0x1010] sm:$0xff]  }
0x42b3   : > { %v12543_v18 = vpop.xlane.xlu1 %12542 }
0x42b4   : > { %v12544_v20 = vmul.f32 0.03125, %v12543_v18  ;;  %v22088_v18 = vld [vmem:[%s27088_s9 + $0x1070] sm:$0xff]  }
0x42b6   : > { %v12545_v13 = vadd.f32 1e-05, %v12544_v20  ;;  %v22089_v20 = vld [vmem:[%s27088_s9 + $0x10f0] sm:$0xff]  }
0x42b8   : > { %22438 = vrsqrt.f32 %v12545_v13  ;;  %v22090_v13 = vld [vmem:[%s27088_s9 + $0x1030] sm:$0xff]  }
0x42c5   : > { %v22439_v19 = vpop.eup %22438 }
0x42c6   : > { %v12547_v0 = vmul.f32 %v22439_v19, %v12539_v49  ;;  %v18842_v49 = vld [vmem:[%s27086_s7 + $0x468] sm:$0xff]  ;;  %v22091_v19 = vld [vmem:[%s27088_s9 + $0x10b0] sm:$0xff]  }
0x42c7   : > { %v19152_v54 = vcombine.high %v18834_v12, %v18842_v49  ;;  %v19151_v43 = vcombine.low %v18834_v12, %v18842_v49  ;;  %v22113_v12 = vld [vmem:[%s27088_s9 + $0x10c0] sm:$0xff]  }
0x42c8   : > { %v12554_v36 = vmul.f32 %v19139_v61, %v12547_v0  ;;  %v22092_v61 = vld [vmem:[%s27088_s9 + $0x1068] sm:$0xff]   ;;  %v22114_v49 = vld [vmem:[%s27088_s9 + $0x1000] sm:$0xff]  }
0x42c9   : > { %v22093_v0 = vld [vmem:[%s27088_s9 + $0x10e8] sm:$0xff]  }
0x42ca   : > { %v25780_v53 = vadd.f32 %v19140_v33, %v12554_v36  ;;  %v22094_v33 = vld [vmem:[%s27088_s9 + $0x1028] sm:$0xff]  }
0x42cb   : > { %v22095_v36 = vld [vmem:[%s27088_s9 + $0x10a8] sm:$0xff]  }
0x42cc   : > { %v25784_v32 = vpack.c.bf16 %v25780_v53, %v25780_v53 }
0x42ce   : > { %19173 = vmatmul.mubr.msk.bf16.vlgmr.msra.gmra.mxu1 %vm762_vm1, %v25784_v32  ;;  %19174 = vmatmul.mubr.msk.bf16.vlgmr.msra.gmra.mxu0 %vm762_vm1, %v25784_v32 }
0x42cf   : > { %12903 = vmatpush1.bf16.msra.mxu1 %v19161_v39  ;;  %12944 = vmatpush1.bf16.msra.mxu0 %v19163_v31  ;;  %v19155_v39 = vcombine.low %v18836_v17, %v18844_v22  ;;  %v22086_v31 = vld [vmem:[%s27088_s9 + $0x1038] sm:$0xff]  }
0x42d0   : > { %12904 = vmatprep.subr.bf16.mxu1 %v19146_v27  ;;  %12945 = vmatprep.subr.bf16.mxu0 %v19148_v51  ;;  %v22101_v27 = vld [vmem:[%s27088_s9 + $0x10d8] sm:$0xff]  }
0x42d1   : > { %12922 = vmatprep.mubr.bf16.mxu1 %v22538_v38  ;;  %12963 = vmatprep.mubr.bf16.mxu0 %v22538_v38  ;;  %v22102_v51 = vld [vmem:[%s27088_s9 + $0x1018] sm:$0xff]  }
0x42d3   : > { %12905 = vmatpush1.bf16.msra.mxu1 %v19145_v50  ;;  %12946 = vmatpush1.bf16.msra.mxu0 %v19147_v40  ;;  %v22107_v50 = vld [vmem:[%s27088_s9 + $0x1090] sm:$0xff]   ;;  %v22108_v40 = vld [vmem:[%s27088_s9 + $0x1048] sm:$0xff]  }
0x42d4   : > { %12984 = vmatprep.subr.bf16.mxu1 %v19166_v46  ;;  %13025 = vmatprep.subr.bf16.mxu0 %v19168_v30  ;;  %v22109_v46 = vld [vmem:[%s27088_s9 + $0x10c8] sm:$0xff]  }
0x42d5   : > { %v22110_v30 = vld [vmem:[%s27088_s9 + $0x1008] sm:$0xff]  }
0x42d6   : > { %19175 = vmatmul.mubr.msk.bf16.vlgmr.msra.gmra.mxu1 %vm762_vm1, %v25784_v32  ;;  %19176 = vmatmul.mubr.msk.bf16.vlgmr.msra.gmra.mxu0 %vm762_vm1, %v25784_v32 }
0x42d7   : > { %12985 = vmatpush1.bf16.msra.mxu1 %v19165_v15  ;;  %13026 = vmatpush1.bf16.msra.mxu0 %v19167_v7  ;;  %v22115_v15 = vld [vmem:[%s27088_s9 + $0x1080] sm:$0xff]   ;;  %v22116_v7 = vld [vmem:[%s27088_s9 + $0x1178] sm:$0xff]  }
0x42d8   : > { %12986 = vmatprep.subr.bf16.mxu1 %v19150_v52  ;;  %13027 = vmatprep.subr.bf16.mxu0 %v19152_v54  ;;  %v22117_v52 = vld [vmem:[%s27088_s9 + $0x11f8] sm:$0xff]   ;;  %v25961_v54 = vld [vmem:[%s27087_s8 + $0x40] sm:$0xff] }
0x42d9   : > { %13004 = vmatprep.mubr.bf16.mxu1 %v22538_v38  ;;  %13045 = vmatprep.mubr.bf16.mxu0 %v22538_v38  ;;  %v12568_v62 = vrot.slane %v25961_v54, %v23031_v5  ;;  %v12576_v56 = vrot.slane %v25961_v54, %v23034_v6  ;;  %v12572_v9 = vrot.slane %v25961_v54, %v23042_v8 }
0x42da   : > { %v12580_v34 = vrot.slane %v25961_v54, %v23045_v10 }
0x42db   : > { %12987 = vmatpush1.bf16.msra.mxu1 %v19149_v42  ;;  %13028 = vmatpush1.bf16.msra.mxu0 %v19151_v43 }
0x42dc   : > { %13066 = vmatprep.subr.bf16.mxu1 %v19170_v58  ;;  %13107 = vmatprep.subr.bf16.mxu0 %v19172_v48 }
0x42de   : > { %19177 = vmatmul.mubr.msk.bf16.vlgmr.msra.gmra.mxu1 %vm762_vm1, %v25784_v32  ;;  %19178 = vmatmul.mubr.msk.bf16.vlgmr.msra.gmra.mxu0 %vm762_vm1, %v25784_v32 }
0x42df   : > { %13067 = vmatpush1.bf16.msra.mxu1 %v19169_v2  ;;  %13108 = vmatpush1.bf16.msra.mxu0 %v19171_v11 }
0x42e0   : > { %13068 = vmatprep.subr.bf16.mxu1 %v19154_v60  ;;  %13109 = vmatprep.subr.bf16.mxu0 %v19156_v45 }
0x42e1   : > { %13086 = vmatprep.mubr.bf16.mxu1 %v22538_v38  ;;  %13127 = vmatprep.mubr.bf16.mxu0 %v22538_v38 }
0x42e3   : > { %13069 = vmatpush1.bf16.msra.mxu1 %v19153_v37  ;;  %13110 = vmatpush1.bf16.msra.mxu0 %v19155_v39 }
0x42e4   : > { %20650 = vmatprep.subr.bf16.mxu1 %v22084_v59  ;;  %20672 = vmatprep.subr.bf16.mxu0 %v22085_v4 }
0x42e6   : > { %19179 = vmatmul.mubr.msk.bf16.vlgmr.msra.gmra.mxu1 %vm762_vm1, %v25784_v32  ;;  %19180 = vmatmul.mubr.msk.bf16.vlgmr.msra.gmra.mxu0 %vm762_vm1, %v25784_v32  ;;  %v22100_v32 = vld [vmem:[%s27088_s9 + $0x1058] sm:$0xff]  }
0x42e7   : > { %20651 = vmatpush3.bf16.msra.mxu1 %v22086_v31  ;;  %20673 = vmatpush3.bf16.msra.mxu0 %v22087_v16 }
0x42e8   : > { %20652 = vmatprep.subr.bf16.mxu1 %v22088_v18  ;;  %20674 = vmatprep.subr.bf16.mxu0 %v22089_v20  ;;  %v12588_v18 = vrot.slane %v25961_v54, %v23056_v23  ;;  %v12596_v20 = vrot.slane %v25961_v54, %v23059_v24 }
0x42eb   : > { %20653 = vmatpush3.bf16.msra.mxu1 %v22090_v13  ;;  %20675 = vmatpush3.bf16.msra.mxu0 %v22091_v19  ;;  %v22118_v13 = vld [vmem:[%s27088_s9 + $0x1138] sm:$0xff]  }
0x42ec   : > { %20654 = vmatprep.subr.bf16.mxu1 %v22092_v61  ;;  %20676 = vmatprep.subr.bf16.mxu0 %v22093_v0  ;;  %v22119_v19 = vld [vmem:[%s27088_s9 + $0x11b8] sm:$0xff]  }
0x42ef   : > { %20655 = vmatpush3.bf16.msra.mxu1 %v22094_v33  ;;  %20677 = vmatpush3.bf16.msra.mxu0 %v22095_v36 }
0x42f0   : > { %20656 = vmatprep.subr.bf16.mxu1 %v22096_v55  ;;  %20678 = vmatprep.subr.bf16.mxu0 %v22097_v26  ;;  %v22120_v55 = vld [vmem:[%s27088_s9 + $0x1170] sm:$0xff]  }
0x42f1   : > { %v22121_v26 = vld [vmem:[%s27088_s9 + $0x11f0] sm:$0xff]  }
0x42f3   : > { %20657 = vmatpush3.bf16.msra.mxu1 %v22098_v35  ;;  %20679 = vmatpush3.bf16.msra.mxu0 %v22099_v57 }
0x42f4   : > { %20658 = vmatprep.subr.bf16.mxu1 %v22100_v32  ;;  %20680 = vmatprep.subr.bf16.mxu0 %v22101_v27 }
0x42f7   : > { %20659 = vmatpush3.bf16.msra.mxu1 %v22102_v51  ;;  %20681 = vmatpush3.bf16.msra.mxu0 %v22103_v41  ;;  %v22122_v51 = vld [vmem:[%s27088_s9 + $0x1130] sm:$0xff]  }
0x42f8   : > { %20660 = vmatprep.subr.bf16.mxu1 %v22104_v44  ;;  %20682 = vmatprep.subr.bf16.mxu0 %v22105_v3  ;;  %v22123_v41 = vld [vmem:[%s27088_s9 + $0x11b0] sm:$0xff]  }
0x42fb   : > { %20661 = vmatpush3.bf16.msra.mxu1 %v22106_v21  ;;  %20683 = vmatpush3.bf16.msra.mxu0 %v22107_v50  ;;  %v22124_v21 = vld [vmem:[%s27088_s9 + $0x1168] sm:$0xff]  }
0x42fc   : > { %20662 = vmatprep.subr.bf16.mxu1 %v22108_v40  ;;  %20684 = vmatprep.subr.bf16.mxu0 %v22109_v46  ;;  %v22125_v50 = vld [vmem:[%s27088_s9 + $0x11e8] sm:$0xff]  }
0x42ff   : > { %20663 = vmatpush3.bf16.msra.mxu1 %v22110_v30  ;;  %20685 = vmatpush3.bf16.msra.mxu0 %v22111_v47 }
0x4300   : > { %20664 = vmatprep.subr.bf16.mxu1 %v22112_v25  ;;  %20686 = vmatprep.subr.bf16.mxu0 %v22113_v12 }
0x4303   : > { %20665 = vmatpush3.bf16.msra.mxu1 %v22114_v49  ;;  %20687 = vmatpush3.bf16.msra.mxu0 %v22115_v15  ;;  %v22126_v49 = vld [vmem:[%s27088_s9 + $0x1128] sm:$0xff]  }
0x4304   : > { %20694 = vmatprep.subr.bf16.mxu1 %v22116_v7  ;;  %20716 = vmatprep.subr.bf16.mxu0 %v22117_v52  ;;  %v22127_v15 = vld [vmem:[%s27088_s9 + $0x11a8] sm:$0xff]  }
0x438e   : > { %v12842_v42 = vpop.f32.mrf.mxu1  ;;  %v12883_v43 = vpop.f32.mrf.mxu0 }
0x438f   : > { %v12843_v58 = vadd.f32 %v12842_v42, %v12568_v62  ;;  %v12884_v48 = vadd.f32 %v12883_v43, %v12576_v56  ;;  %v22128_v62 = vld [vmem:[%s27088_s9 + $0x1160] sm:$0xff]  }
0x4390   : > { %v12844_v28 = vpop.f32.mrf.mxu1  ;;  %v12885_v63 = vpop.f32.mrf.mxu0  ;;  %v22129_v56 = vld [vmem:[%s27088_s9 + $0x11e0] sm:$0xff]  }
0x4391   : > { %v12845_v17 = vadd.f32 %v12844_v28, %v12572_v9  ;;  %v12886_v22 = vadd.f32 %v12885_v63, %v12580_v34  ;;  %v13136_v2 = vmax.f32 %v12843_v58, 0.0  ;;  %v13138_v11 = vmax.f32 %v12884_v48, 0.0  ;;  %v22130_v42 = vld [vmem:[%s27088_s9 + $0x1120] sm:$0xff]   ;;  %v26028_v58 = vld [vmem:[%s27087_s8 + $0x48] sm:$0xff]  ;;  %v22132_v63 = vld [vmem:[%s27088_s9 + $0x1158] sm:$0xff]  }
0x4392   : > { %v12846_v60 = vpop.f32.mrf.mxu1  ;;  %v12887_v45 = vpop.f32.mrf.mxu0  ;;  %v22131_v43 = vld [vmem:[%s27088_s9 + $0x11a0] sm:$0xff]  }
0x4393   : > { %v13137_v37 = vmax.f32 %v12845_v17, 0.0  ;;  %v13139_v39 = vmax.f32 %v12886_v22, 0.0  ;;  %v13152_v61 = vpack.c.bf16 %v13136_v2, %v13136_v2  ;;  %v13154_v0 = vpack.c.bf16 %v13138_v11, %v13138_v11  ;;  %v22133_v17 = vld [vmem:[%s27088_s9 + $0x11d8] sm:$0xff]  }
0x4394   : > { %v12847_v59 = vpop.f32.mrf.mxu1  ;;  %v12888_v4 = vpop.f32.mrf.mxu0  ;;  %v12624_v22 = vrot.slane %v26028_v58, %v23110_v14  ;;  %v22134_v60 = vld [vmem:[%s27088_s9 + $0x1118] sm:$0xff]  }
0x4395   : > { %v13153_v31 = vpack.c.bf16 %v13137_v37, %v13137_v37  ;;  %v13155_v16 = vpack.c.bf16 %v13139_v39, %v13139_v39  ;;  %v22135_v45 = vld [vmem:[%s27088_s9 + $0x1198] sm:$0xff]   ;;  %v22136_v59 = vld [vmem:[%s27088_s9 + $0x1150] sm:$0xff]  }
0x4396   : > { %v25981_v33 = vpop.f32.mrf.mxu1  ;;  %v25983_v36 = vpop.f32.mrf.mxu0  ;;  %v22137_v4 = vld [vmem:[%s27088_s9 + $0x11d0] sm:$0xff]  }
0x4397   : > { %13974 = vmatprep.mubr.bf16.mxu1 %v13153_v31  ;;  %14014 = vmatprep.mubr.bf16.mxu0 %v13155_v16 }
0x4398   : > { %v12926_v35 = vpop.f32.mrf.mxu1  ;;  %v12967_v57 = vpop.f32.mrf.mxu0  ;;  %13975 = vmatmul.mubr.bf16.vlgmr.msra.gmra.mxu1 %v13152_v61  ;;  %14015 = vmatmul.mubr.bf16.vlgmr.msra.gmra.mxu0 %v13154_v0  ;;  %v12592_v61 = vrot.slane %v25961_v54, %v23110_v14 }
0x4399   : > { %v12927_v32 = vadd.f32 %v12926_v35, %v12588_v18  ;;  %v12968_v27 = vadd.f32 %v12967_v57, %v12596_v20  ;;  %20695 = vmatpush3.bf16.msra.mxu1 %v22118_v13  ;;  %20717 = vmatpush3.bf16.msra.mxu0 %v22119_v19  ;;  %v22138_v20 = vld [vmem:[%s27088_s9 + $0x1110] sm:$0xff]   ;;  %v12584_v19 = vrot.slane %v25961_v54, %v23138_v29  ;;  %v22141_v35 = vld [vmem:[%s27088_s9 + $0x11c8] sm:$0xff]  }
0x439a   : > { %v12928_v44 = vpop.f32.mrf.mxu1  ;;  %v12969_v3 = vpop.f32.mrf.mxu0  ;;  %20696 = vmatprep.subr.bf16.mxu1 %v22120_v55  ;;  %20718 = vmatprep.subr.bf16.mxu0 %v22121_v26  ;;  %v22139_v13 = vld [vmem:[%s27088_s9 + $0x1190] sm:$0xff]   ;;  %v22140_v26 = vld [vmem:[%s27088_s9 + $0x1148] sm:$0xff]   ;;  %v12604_v57 = vrot.slane %v26028_v58, %v23042_v8 }
0x439b   : > { %v13141_v40 = vmax.f32 %v12927_v32, 0.0  ;;  %v13143_v46 = vmax.f32 %v12968_v27, 0.0  ;;  %v12612_v32 = vrot.slane %v26028_v58, %v23045_v10  ;;  %v12925_v44 = vadd.f32 %v25981_v33, %v12584_v19  ;;  %v22146_v33 = vld [vmem:[%s27088_s9 + $0x1100] sm:$0xff]   ;;  %v22166_v19 = vld [vmem:[%s27088_s9 + $0x1218] sm:$0xff]  }
0x439c   : > { %v12929_v30 = vpop.f32.mrf.mxu1  ;;  %v12970_v47 = vpop.f32.mrf.mxu0  ;;  %v12966_v3 = vadd.f32 %v25983_v36, %v12592_v61  ;;  %v22147_v36 = vld [vmem:[%s27088_s9 + $0x1180] sm:$0xff]   ;;  %v22167_v61 = vld [vmem:[%s27088_s9 + $0x1298] sm:$0xff]  }
0x439d   : > { %v13157_v25 = vpack.c.bf16 %v13141_v40, %v13141_v40  ;;  %v13159_v12 = vpack.c.bf16 %v13143_v46, %v13143_v46  ;;  %20697 = vmatpush3.bf16.msra.mxu1 %v22122_v51  ;;  %20719 = vmatpush3.bf16.msra.mxu0 %v22123_v41  ;;  %v22142_v51 = vld [vmem:[%s27088_s9 + $0x1108] sm:$0xff]   ;;  %v13140_v30 = vmax.f32 %v12925_v44, 0.0 }
0x439e   : > { %v26009_v7 = vpop.f32.mrf.mxu1  ;;  %v26011_v52 = vpop.f32.mrf.mxu0  ;;  %20698 = vmatprep.subr.bf16.mxu1 %v22124_v21  ;;  %20720 = vmatprep.subr.bf16.mxu0 %v22125_v50  ;;  %v22143_v41 = vld [vmem:[%s27088_s9 + $0x1188] sm:$0xff]   ;;  %v22144_v21 = vld [vmem:[%s27088_s9 + $0x1140] sm:$0xff]   ;;  %v13142_v47 = vmax.f32 %v12966_v3, 0.0 }
0x439f   : > { %14054 = vmatprep.mubr.bf16.mxu1 %v13157_v25  ;;  %14094 = vmatprep.mubr.bf16.mxu0 %v13159_v12  ;;  %v22145_v50 = vld [vmem:[%s27088_s9 + $0x11c0] sm:$0xff]   ;;  %v22148_v25 = vld [vmem:[%s27088_s9 + $0x1278] sm:$0xff]   ;;  %v22174_v44 = vld [vmem:[%s27088_s9 + $0x1208] sm:$0xff]  }
0x43a0   : > { %v13008_v9 = vpop.f32.mrf.mxu1  ;;  %v13049_v34 = vpop.f32.mrf.mxu0  ;;  %v22149_v12 = vld [vmem:[%s27088_s9 + $0x12f8] sm:$0xff]  }
0x43a1   : > { %20699 = vmatpush3.bf16.msra.mxu1 %v22126_v49  ;;  %20721 = vmatpush3.bf16.msra.mxu0 %v22127_v15  ;;  %v13009_v40 = vadd.f32 %v13008_v9, %v12604_v57  ;;  %v13050_v46 = vadd.f32 %v13049_v34, %v12612_v32  ;;  %v13158_v9 = vpack.c.bf16 %v13142_v47, %v13142_v47  ;;  %v22151_v34 = vld [vmem:[%s27088_s9 + $0x12b8] sm:$0xff]   ;;  %v22171_v57 = vld [vmem:[%s27088_s9 + $0x1290] sm:$0xff]   ;;  %v22172_v32 = vld [vmem:[%s27088_s9 + $0x1248] sm:$0xff]  }
0x43a2   : > { %v13010_v48 = vpop.f32.mrf.mxu1  ;;  %v13051_v28 = vpop.f32.mrf.mxu0  ;;  %20700 = vmatprep.subr.bf16.mxu1 %v22128_v62  ;;  %20722 = vmatprep.subr.bf16.mxu0 %v22129_v56  ;;  %v22150_v62 = vld [vmem:[%s27088_s9 + $0x1238] sm:$0xff]   ;;  %v13156_v56 = vpack.c.bf16 %v13140_v30, %v13140_v30 }
0x43a3   : > { %v13145_v49 = vmax.f32 %v13009_v40, 0.0  ;;  %v13147_v15 = vmax.f32 %v13050_v46, 0.0  ;;  %v22153_v48 = vld [vmem:[%s27088_s9 + $0x12f0] sm:$0xff]   ;;  %v22177_v46 = vld [vmem:[%s27088_s9 + $0x12c0] sm:$0xff]   ;;  %v22180_v47 = vld [vmem:[%s27088_s9 + $0x1378] sm:$0xff]  }
0x43a4   : > { %v13011_v2 = vpop.f32.mrf.mxu1  ;;  %v13052_v11 = vpop.f32.mrf.mxu0 }
0x43a5   : > { %20701 = vmatpush3.bf16.msra.mxu1 %v22130_v42  ;;  %20723 = vmatpush3.bf16.msra.mxu0 %v22131_v43  ;;  %v13161_v42 = vpack.c.bf16 %v13145_v49, %v13145_v49  ;;  %v22152_v43 = vld [vmem:[%s27088_s9 + $0x1270] sm:$0xff]   ;;  %v13163_v28 = vpack.c.bf16 %v13147_v15, %v13147_v15  ;;  %v22157_v2 = vld [vmem:[%s27088_s9 + $0x12e8] sm:$0xff]   ;;  %v22182_v49 = vld [vmem:[%s27088_s9 + $0x1338] sm:$0xff]  }
0x43a6   : > { %v26044_v37 = vpop.f32.mrf.mxu1  ;;  %v13129_v39 = vpop.f32.mrf.mxu0  ;;  %20702 = vmatprep.subr.bf16.mxu1 %v22132_v63  ;;  %20724 = vmatprep.subr.bf16.mxu0 %v22133_v17  ;;  %v22154_v63 = vld [vmem:[%s27088_s9 + $0x1230] sm:$0xff]   ;;  %v22158_v11 = vld [vmem:[%s27088_s9 + $0x1228] sm:$0xff]  }
0x43a7   : > { %v26052_v31 = vadd.f32 %v13129_v39, %v12624_v22  ;;  %v22155_v17 = vld [vmem:[%s27088_s9 + $0x12b0] sm:$0xff]   ;;  %v22156_v22 = vld [vmem:[%s27088_s9 + $0x1268] sm:$0xff]   ;;  %v22161_v39 = vld [vmem:[%s27088_s9 + $0x12e0] sm:$0xff]  }
0x43a8   : > { %v26054_v16 = vpop.f32.mrf.mxu1  ;;  %v26056_v18 = vpop.f32.mrf.mxu0 }
0x43a9   : > { %20703 = vmatpush3.bf16.msra.mxu1 %v22134_v60  ;;  %20725 = vmatpush3.bf16.msra.mxu0 %v22135_v45  ;;  %v22159_v60 = vld [vmem:[%s27088_s9 + $0x12a8] sm:$0xff]   ;;  %v22160_v45 = vld [vmem:[%s27088_s9 + $0x1260] sm:$0xff]  }
0x43aa   : > { %v13092_v0 = vpop.f32.mrf.mxu1  ;;  %v13133_v55 = vpop.f32.mrf.mxu0  ;;  %20704 = vmatprep.subr.bf16.mxu1 %v22136_v59  ;;  %20726 = vmatprep.subr.bf16.mxu0 %v22137_v4  ;;  %v22162_v59 = vld [vmem:[%s27088_s9 + $0x1220] sm:$0xff]  }
0x43ab   : > { %v22163_v4 = vld [vmem:[%s27088_s9 + $0x12a0] sm:$0xff]   ;;  %v22168_v0 = vld [vmem:[%s27088_s9 + $0x1250] sm:$0xff]  }
0x43ac   : > { %v13093_v27 = vpop.f32.mrf.mxu1  ;;  %v13134_v54 = vpop.f32.mrf.mxu0  ;;  %v22169_v55 = vld [vmem:[%s27088_s9 + $0x12d0] sm:$0xff]  }
0x43ad   : > { %20705 = vmatpush3.bf16.msra.mxu1 %v22138_v20  ;;  %20727 = vmatpush3.bf16.msra.mxu0 %v22139_v13  ;;  %v22164_v20 = vld [vmem:[%s27088_s9 + $0x1258] sm:$0xff]   ;;  %v12608_v27 = vrot.slane %v26028_v58, %v23034_v6  ;;  %v22173_v54 = vld [vmem:[%s27088_s9 + $0x12c8] sm:$0xff]  }
0x43ae   : > { %20706 = vmatprep.subr.bf16.mxu1 %v22140_v26  ;;  %20728 = vmatprep.subr.bf16.mxu0 %v22141_v35  ;;  %v22165_v13 = vld [vmem:[%s27088_s9 + $0x12d8] sm:$0xff]   ;;  %v22170_v26 = vld [vmem:[%s27088_s9 + $0x1210] sm:$0xff]   ;;  %v12600_v35 = vrot.slane %v26028_v58, %v23031_v5 }
0x43af   : > { %v13048_v40 = vadd.f32 %v26011_v52, %v12608_v27  ;;  %v22179_v52 = vld [vmem:[%s27088_s9 + $0x1280] sm:$0xff]   ;;  %v22207_v27 = vld [vmem:[%s27088_s9 + $0x1388] sm:$0xff]  }
0x43b0   : > { %v13007_v3 = vadd.f32 %v26009_v7, %v12600_v35  ;;  %v22204_v35 = vld [vmem:[%s27088_s9 + $0x1348] sm:$0xff]  }
0x43b1   : > { %20707 = vmatpush3.bf16.msra.mxu1 %v22142_v51  ;;  %20729 = vmatpush3.bf16.msra.mxu0 %v22143_v41  ;;  %v12620_v51 = vrot.slane %v26028_v58, %v23056_v23  ;;  %v12628_v41 = vrot.slane %v26028_v58, %v23059_v24 }
0x43b2   : > { %20708 = vmatprep.subr.bf16.mxu1 %v22144_v21  ;;  %20730 = vmatprep.subr.bf16.mxu0 %v22145_v50  ;;  %v22175_v21 = vld [vmem:[%s27088_s9 + $0x1288] sm:$0xff]   ;;  %v22176_v50 = vld [vmem:[%s27088_s9 + $0x1240] sm:$0xff]   ;;  %v13144_v30 = vmax.f32 %v13007_v3, 0.0  ;;  %v13150_v3 = vmax.f32 %v26052_v31, 0.0 }
0x43b3   : > { %v13132_v7 = vadd.f32 %v26056_v18, %v12628_v41  ;;  %v19181_v31 = vld [vmem:[%s27089_s10 + $0x4] ss:$0 sm:$0xff] }
0x43b4   : > { %v13160_v15 = vpack.c.bf16 %v13144_v30, %v13144_v30 }
0x43b5   : > { %20709 = vmatpush3.bf16.msra.mxu1 %v22146_v33  ;;  %20731 = vmatpush3.bf16.msra.mxu0 %v22147_v36  ;;  %v13091_v33 = vadd.f32 %v26054_v16, %v12620_v51  ;;  %v22178_v36 = vld [vmem:[%s27088_s9 + $0x1200] sm:$0xff]   ;;  %v22181_v16 = vld [vmem:[%s27088_s9 + $0x13f8] sm:$0xff]  }
0x43b6   : > { %20738 = vmatprep.subr.bf16.mxu1 %v22148_v25  ;;  %20760 = vmatprep.subr.bf16.mxu0 %v22149_v12  ;;  %v13146_v25 = vmax.f32 %v13048_v40, 0.0  ;;  %v13151_v12 = vmax.f32 %v13132_v7, 0.0  ;;  %v22209_v51 = vld [vmem:[%s27088_s9 + $0x13c0] sm:$0xff]  }
0x43b7   : > { %v13149_v18 = vmax.f32 %v13091_v33, 0.0 }
0x43b8   : > { %14055 = vmatmul.mubr.bf16.vlgmr.msra.gmra.mxu1 %v13156_v56  ;;  %14095 = vmatmul.mubr.bf16.vlgmr.msra.gmra.mxu0 %v13158_v9  ;;  %v13162_v56 = vpack.c.bf16 %v13146_v25, %v13146_v25  ;;  %v22184_v9 = vld [vmem:[%s27088_s9 + $0x1370] sm:$0xff]  }
0x43b9   : > { %20739 = vmatpush3.bf16.msra.mxu1 %v22150_v62  ;;  %14134 = vmatprep.mubr.bf16.mxu1 %v13161_v42  ;;  %v22183_v62 = vld [vmem:[%s27088_s9 + $0x13b8] sm:$0xff]   ;;  %v22185_v42 = vld [vmem:[%s27088_s9 + $0x13f0] sm:$0xff]  }
0x43ba   : > { %20761 = vmatpush3.bf16.msra.mxu0 %v22151_v34  ;;  %14174 = vmatprep.mubr.bf16.mxu0 %v13163_v28  ;;  %v13165_v34 = vpack.c.bf16 %v13149_v18, %v13149_v18  ;;  %v22187_v28 = vld [vmem:[%s27088_s9 + $0x13b0] sm:$0xff]  }
0x43bb   : > { %20740 = vmatprep.subr.bf16.mxu1 %v22152_v43  ;;  %20762 = vmatprep.subr.bf16.mxu0 %v22153_v48  ;;  %v13167_v43 = vpack.c.bf16 %v13151_v12, %v13151_v12  ;;  %v22186_v48 = vld [vmem:[%s27088_s9 + $0x1330] sm:$0xff]  }
0x43bd   : > { %20741 = vmatpush3.bf16.msra.mxu1 %v22154_v63  ;;  %v22188_v63 = vld [vmem:[%s27088_s9 + $0x1368] sm:$0xff]  }
0x43be   : > { %20763 = vmatpush3.bf16.msra.mxu0 %v22155_v17  ;;  %20742 = vmatprep.subr.bf16.mxu1 %v22156_v22  ;;  %v22189_v17 = vld [vmem:[%s27088_s9 + $0x13e8] sm:$0xff]  }
0x43bf   : > { %20764 = vmatprep.subr.bf16.mxu0 %v22157_v2  ;;  %v22190_v22 = vld [vmem:[%s27088_s9 + $0x1328] sm:$0xff]  }
0x43c0   : > { %v22191_v2 = vld [vmem:[%s27088_s9 + $0x13a8] sm:$0xff]  }
0x43c1   : > { %20743 = vmatpush3.bf16.msra.mxu1 %v22158_v11  ;;  %v22192_v11 = vld [vmem:[%s27088_s9 + $0x1360] sm:$0xff]  }
0x43c2   : > { %20765 = vmatpush3.bf16.msra.mxu0 %v22159_v60  ;;  %20744 = vmatprep.subr.bf16.mxu1 %v22160_v45  ;;  %v22193_v60 = vld [vmem:[%s27088_s9 + $0x13e0] sm:$0xff]  }
0x43c3   : > { %20766 = vmatprep.subr.bf16.mxu0 %v22161_v39  ;;  %v22194_v45 = vld [vmem:[%s27088_s9 + $0x1320] sm:$0xff]  }
0x43c4   : > { %v22195_v39 = vld [vmem:[%s27088_s9 + $0x13a0] sm:$0xff]  }
0x43c5   : > { %20745 = vmatpush3.bf16.msra.mxu1 %v22162_v59  ;;  %v22196_v59 = vld [vmem:[%s27088_s9 + $0x1358] sm:$0xff]  }
0x43c6   : > { %20767 = vmatpush3.bf16.msra.mxu0 %v22163_v4  ;;  %20746 = vmatprep.subr.bf16.mxu1 %v22164_v20  ;;  %v22197_v4 = vld [vmem:[%s27088_s9 + $0x13d8] sm:$0xff]  }
0x43c7   : > { %20768 = vmatprep.subr.bf16.mxu0 %v22165_v13  ;;  %v22198_v20 = vld [vmem:[%s27088_s9 + $0x1318] sm:$0xff]  }
0x43c8   : > { %v22199_v13 = vld [vmem:[%s27088_s9 + $0x1398] sm:$0xff]  }
0x43c9   : > { %20747 = vmatpush3.bf16.msra.mxu1 %v22166_v19  ;;  %v22200_v19 = vld [vmem:[%s27088_s9 + $0x1350] sm:$0xff]  }
0x43ca   : > { %20769 = vmatpush3.bf16.msra.mxu0 %v22167_v61  ;;  %20748 = vmatprep.subr.bf16.mxu1 %v22168_v0  ;;  %v22201_v61 = vld [vmem:[%s27088_s9 + $0x13d0] sm:$0xff]  }
0x43cb   : > { %20770 = vmatprep.subr.bf16.mxu0 %v22169_v55  ;;  %v22202_v0 = vld [vmem:[%s27088_s9 + $0x1310] sm:$0xff]   ;;  %v12616_v55 = vrot.slane %v26028_v58, %v23138_v29  ;;  %v22206_v58 = vld [vmem:[%s27088_s9 + $0x1308] sm:$0xff]  }
0x43cd   : > { %20749 = vmatpush3.bf16.msra.mxu1 %v22170_v26  ;;  %v22203_v26 = vld [vmem:[%s27088_s9 + $0x1390] sm:$0xff]  }
0x43ce   : > { %20771 = vmatpush3.bf16.msra.mxu0 %v22171_v57  ;;  %20750 = vmatprep.subr.bf16.mxu1 %v22172_v32  ;;  %v22205_v57 = vld [vmem:[%s27088_s9 + $0x13c8] sm:$0xff]   ;;  %v13089_v32 = vadd.f32 %v26044_v37, %v12616_v55  ;;  %v22210_v37 = vld [vmem:[%s27088_s9 + $0x1300] sm:$0xff]  }
0x43cf   : > { %20772 = vmatprep.subr.bf16.mxu0 %v22173_v54  ;;  %v22208_v54 = vld [vmem:[%s27088_s9 + $0x1340] sm:$0xff]  }
0x43d0   : > { %v13148_v41 = vmax.f32 %v13089_v32, 0.0 }
0x43d1   : > { %20751 = vmatpush3.bf16.msra.mxu1 %v22174_v44  ;;  %v22211_v44 = vld [vmem:[%s27088_s9 + $0x1380] sm:$0xff]  }
0x43d2   : > { %20773 = vmatpush3.bf16.msra.mxu0 %v22175_v21  ;;  %20752 = vmatprep.subr.bf16.mxu1 %v22176_v50  ;;  %v13164_v21 = vpack.c.bf16 %v13148_v41, %v13148_v41  ;;  %v13166_v50 = vpack.c.bf16 %v13150_v3, %v13150_v3 }
0x43d3   : > { %20774 = vmatprep.subr.bf16.mxu0 %v22177_v46 }
0x43d5   : > { %20753 = vmatpush3.bf16.msra.mxu1 %v22178_v36 }
0x43d6   : > { %20775 = vmatpush3.bf16.msra.mxu0 %v22179_v52  ;;  %20782 = vmatprep.subr.bf16.mxu1 %v22180_v47 }
0x43d7   : > { %20804 = vmatprep.subr.bf16.mxu0 %v22181_v16 }
0x43d8   : > { %14135 = vmatmul.mubr.bf16.vlgmr.msra.gmra.mxu1 %v13160_v15 }
0x43d9   : > { %14175 = vmatmul.mubr.bf16.vlgmr.msra.gmra.mxu0 %v13162_v56  ;;  %20783 = vmatpush3.bf16.msra.mxu1 %v22182_v49 }
0x43da   : > { %14214 = vmatprep.mubr.bf16.mxu1 %v13165_v34  ;;  %20805 = vmatpush3.bf16.msra.mxu0 %v22183_v62 }
0x43db   : > { %14254 = vmatprep.mubr.bf16.mxu0 %v13167_v43  ;;  %20784 = vmatprep.subr.bf16.mxu1 %v22184_v9 }
0x43dc   : > { %20806 = vmatprep.subr.bf16.mxu0 %v22185_v42 }
0x43dd   : > { %20785 = vmatpush3.bf16.msra.mxu1 %v22186_v48 }
0x43de   : > { %20807 = vmatpush3.bf16.msra.mxu0 %v22187_v28  ;;  %20786 = vmatprep.subr.bf16.mxu1 %v22188_v63 }
0x43df   : > { %20808 = vmatprep.subr.bf16.mxu0 %v22189_v17 }
0x43e1   : > { %20787 = vmatpush3.bf16.msra.mxu1 %v22190_v22 }
0x43e2   : > { %20809 = vmatpush3.bf16.msra.mxu0 %v22191_v2  ;;  %20788 = vmatprep.subr.bf16.mxu1 %v22192_v11 }
0x43e3   : > { %20810 = vmatprep.subr.bf16.mxu0 %v22193_v60 }
0x43e5   : > { %20789 = vmatpush3.bf16.msra.mxu1 %v22194_v45 }
0x43e6   : > { %20811 = vmatpush3.bf16.msra.mxu0 %v22195_v39  ;;  %20790 = vmatprep.subr.bf16.mxu1 %v22196_v59 }
0x43e7   : > { %20812 = vmatprep.subr.bf16.mxu0 %v22197_v4 }
0x43e9   : > { %20791 = vmatpush3.bf16.msra.mxu1 %v22198_v20 }
0x43ea   : > { %20813 = vmatpush3.bf16.msra.mxu0 %v22199_v13  ;;  %20792 = vmatprep.subr.bf16.mxu1 %v22200_v19 }
0x43eb   : > { %20814 = vmatprep.subr.bf16.mxu0 %v22201_v61 }
0x43ed   : > { %20793 = vmatpush3.bf16.msra.mxu1 %v22202_v0 }
0x43ee   : > { %20815 = vmatpush3.bf16.msra.mxu0 %v22203_v26  ;;  %20794 = vmatprep.subr.bf16.mxu1 %v22204_v35 }
0x43ef   : > { %20816 = vmatprep.subr.bf16.mxu0 %v22205_v57 }
0x43f1   : > { %20795 = vmatpush3.bf16.msra.mxu1 %v22206_v58 }
0x43f2   : > { %20817 = vmatpush3.bf16.msra.mxu0 %v22207_v27  ;;  %20796 = vmatprep.subr.bf16.mxu1 %v22208_v54 }
0x43f3   : > { %20818 = vmatprep.subr.bf16.mxu0 %v22209_v51 }
0x43f5   : > { %20797 = vmatpush3.bf16.msra.mxu1 %v22210_v37 }
0x43f6   : > { %20819 = vmatpush3.bf16.msra.mxu0 %v22211_v44  ;;  %21429 = vmatprep.subr.bf16.mxu1 %v22525_v1 }
0x43f7   : > { %21437 = vmatprep.subr.bf16.mxu0 %v22525_v1 }
0x43f8   : > { %14215 = vmatmul.mubr.bf16.vlgmr.msra.gmra.mxu1 %v13164_v21 }
0x43f9   : > { %14255 = vmatmul.mubr.bf16.vlgmr.msra.gmra.mxu0 %v13166_v50  ;;  %21433 = vmatprep.mubr.msk.bf16.mxu1 %vm22526_vm0, %v22525_v1 }
0x43fa   : > { %21439 = vmatprep.mubr.msk.bf16.mxu0 %vm22526_vm0, %v22525_v1 }
0x4458   : > { %v20666_v40 = vpop.f32.mrf.mxu1  ;;  %v20688_v46 = vpop.f32.mrf.mxu0 }
0x445a   : > { %v20667_v33 = vpop.f32.mrf.mxu1  ;;  %v20689_v7 = vpop.f32.mrf.mxu0 }
0x445b   : > { %v20668_v36 = vadd.f32 %v20667_v33, %v20666_v40  ;;  %v20690_v30 = vadd.f32 %v20689_v7, %v20688_v46  ;;  %v22212_v33 = vld [vmem:[%s27080_s1 + $0x58] sm:$0xff]   ;;  %v22213_v7 = vld [vmem:[%s27080_s1 + $0x50] sm:$0xff]  }
0x445c   : > { %v20669_v52 = vpop.f32.mrf.mxu1  ;;  %v20691_v47 = vpop.f32.mrf.mxu0  ;;  %21430 = vmatpush3.bf16.msra.mxu1 %v22212_v33 }
0x445d   : > { %v13977_v25 = vadd.f32 %v20668_v36, %v19181_v31  ;;  %21431 = vmatprep.subr.bf16.mxu1 %v22525_v1  ;;  %v19310_v47 = vld [vmem:[%s27090_s11 + $0x4] ss:$0 sm:$0xff] }
0x445e   : > { %v20670_v16 = vpop.f32.mrf.mxu1  ;;  %v20692_v18 = vpop.f32.mrf.mxu0 }
0x445f   : > { %v14017_v12 = vadd.f32 %v20690_v30, %v13977_v25  ;;  %v19311_v16 = vld [vmem:[%s27091_s12 + $0x4] ss:$0 sm:$0xff] }
0x4460   : > { %21432 = vmatpush3.bf16.msra.mxu1 %v22213_v7 }
0x4461   : > { %21443 = vmatprep.subr.bf16.mxu1 %v22525_v1 }
0x4478   : > { %v20710_v49 = vpop.f32.mrf.mxu1  ;;  %v20732_v15 = vpop.f32.mrf.mxu0 }
0x447a   : > { %v20711_v62 = vpop.f32.mrf.mxu1  ;;  %v20733_v56 = vpop.f32.mrf.mxu0 }
0x447b   : > { %v20712_v45 = vadd.f32 %v20711_v62, %v20710_v49  ;;  %v20734_v59 = vadd.f32 %v20733_v56, %v20732_v15  ;;  %v19617_v15 = vld [vmem:[%s27081_s2 + $0x5] ss:$0 sm:$0xff] }
0x447c   : > { %v20713_v9 = vpop.f32.mrf.mxu1  ;;  %v20735_v34 = vpop.f32.mrf.mxu0 }
0x447d   : > { %v14057_v39 = vadd.f32 %v20712_v45, %v14017_v12 }
0x447e   : > { %v20714_v42 = vpop.f32.mrf.mxu1  ;;  %v20736_v43 = vpop.f32.mrf.mxu0 }
0x447f   : > { %v14097_v20 = vadd.f32 %v20734_v59, %v14057_v39 }
0x4498   : > { %v20754_v48 = vpop.f32.mrf.mxu1 }
0x4499   : > { %v20776_v28 = vpop.f32.mrf.mxu0 }
0x449a   : > { %v20755_v63 = vpop.f32.mrf.mxu1 }
0x449b   : > { %v20777_v17 = vpop.f32.mrf.mxu0  ;;  %v20756_v4 = vadd.f32 %v20755_v63, %v20754_v48 }
0x449c   : > { %v20757_v22 = vpop.f32.mrf.mxu1  ;;  %v20778_v61 = vadd.f32 %v20777_v17, %v20776_v28 }
0x449d   : > { %v20779_v2 = vpop.f32.mrf.mxu0  ;;  %v14137_v13 = vadd.f32 %v20756_v4, %v14097_v20 }
0x449e   : > { %v20758_v11 = vpop.f32.mrf.mxu1 }
0x449f   : > { %v20780_v60 = vpop.f32.mrf.mxu0  ;;  %v14177_v26 = vadd.f32 %v20778_v61, %v14137_v13 }
0x44b8   : > { %v20798_v19 = vpop.f32.mrf.mxu1 }
0x44b9   : > { %v20820_v0 = vpop.f32.mrf.mxu0 }
0x44ba   : > { %v20799_v55 = vpop.f32.mrf.mxu1 }
0x44bb   : > { %v20800_v35 = vadd.f32 %v20799_v55, %v20798_v19  ;;  %v20821_v57 = vpop.f32.mrf.mxu0 }
0x44bc   : > { %v20801_v58 = vpop.f32.mrf.mxu1  ;;  %v20822_v27 = vadd.f32 %v20821_v57, %v20820_v0 }
0x44bd   : > { %v14217_v32 = vadd.f32 %v20800_v35, %v14177_v26  ;;  %v20823_v54 = vpop.f32.mrf.mxu0 }
0x44be   : > { %v20802_v51 = vpop.f32.mrf.mxu1 }
0x44bf   : > { %v14257_v37 = vadd.f32 %v20822_v27, %v14217_v32  ;;  %v20824_v41 = vpop.f32.mrf.mxu0 }
0x44c1   : > { %v14262_v44 = vadd.f32 %v14257_v37, %v25780_v53 }
0x44c3   : > { %v14263_v3 = vsel %vm762_vm1, %v14262_v44, 0.0 }
0x44c4   : > { %14264 = vadd.xlane.f32.xlu1 %v14263_v3 }
0x454d   : > { %v14265_v21 = vpop.xlane.xlu1 %14264 }
0x454e   : > { %v14266_v50 = vmul.f32 0.03125, %v14265_v21 }
0x4550   : > { %v14267_v40 = vsub.f32 %v14262_v44, %v14266_v50 }
0x4552   : > { %v14268_v46 = vmul.f32 %v14267_v40, %v14267_v40 }
0x4554   : > { %v14269_v31 = vsel %vm762_vm1, %v14268_v46, 0.0 }
0x4555   : > { %14270 = vadd.xlane.f32.xlu1 %v14269_v31 }
0x45de   : > { %v14271_v53 = vpop.xlane.xlu1 %14270 }
0x45df   : > { %v14272_v36 = vmul.f32 0.03125, %v14271_v53  ;;  %v19317_v53 = vld [vmem:[%s27082_s3 + $0x50] sm:$0xf] }
0x45e1   : > { %v14273_v30 = vadd.f32 1e-05, %v14272_v36  ;;  %v14941_v36 = vsel %vm874_vm3, %v19317_v53, 0 }
0x45e3   : > { %22440 = vrsqrt.f32 %v14273_v30  ;;  %v19318_v30 = vld [vmem:[%s27082_s3 + $0x54] sm:$0xf] }
0x45f0   : > { %v22441_v52 = vpop.eup %22440 }
0x45f1   : > { %v14275_v25 = vmul.f32 %v22441_v52, %v14267_v40  ;;  %v14895_v52 = vsel %vm874_vm3, %v19318_v30, 0 }
0x45f3   : > { %v14282_v18 = vmul.f32 %v19310_v47, %v14275_v25 }
0x45f5   : > { %v26332_v12 = vadd.f32 %v19311_v16, %v14282_v18 }
0x45f7   : > { %v14607_v49 = vpack.c.bf16 %v26332_v12, %v26332_v12 }
0x45f9   : > { %21434 = vmatmul.mubr.msk.bf16.vlgmr.msra.gmra.mxu1 %vm762_vm1, %v14607_v49 }
0x45fa   : > { %21445 = vmatprep.mubr.msk.bf16.mxu1 %vm22526_vm0, %v22525_v1 }
0x46b9   : > { %v14663_v62 = vpop.f32.mrf.mxu1 }
0x46ba   : > { %v14664_v56 = vadd.f32 %v19617_v15, %v14663_v62 }
0x46bb   : > { %v21435_v9 = vpop.f32.mrf.mxu1 }
0x46bc   : > { %v26342_v34 = vpack.c.bf16 %v14664_v56, %v14664_v56 }
0x46bd   : > { %v14666_v42 = vpop.f32.mrf.mxu1 }
0x46be   : > { %14782 = vrot.lane.b32.xlu0 %v26342_v34, %s27143_s0  ;;  %14671 = vrot.lane.b32.xlu1 %v26342_v34, %s27144_s17  ;;  %s22539_s0 = smov [#allocation2]  }
0x46bf   : > { %v21436_v43 = vpop.f32.mrf.mxu1  ;;  %s22467_s17 = sshll.u32 %s22539_s0, 4  ;;  %s22468_s17 = int_to_ptr.vmem [resolvable:$false] %s22467_s17 }
0x46c2   : > { %14780 = vrot.lane.b32.xlu0 %v26342_v34, %s27145_s24  ;;  %s27162_s24 = sld [smem:[#allocation6_spill]] }
0x4730   : > { %v14672_v48 = vpop.permute.xlu1 %14671  ;;  %v14783_v63 = vpop.permute.xlu0 %14782 }
0x4731   : > { %v14677_v28 = vsel %vm810_vm2, %v14672_v48, 0  ;;  %v14788_v17 = vsel %vm810_vm2, %v14783_v63, 0 }
0x4732   : > { %21438 = vmatpush3.bf16.xpose.msra.mxu0 %v14677_v28 }
0x4733   : > { %21449 = vmatprep.subr.bf16.mxu0 %v22525_v1 }
0x4734   : > { %v14781_v22 = vpop.permute.xlu0 %14780 }
0x4739   : > { %21440 = vmatmul.mubr.msk.bf16.vlgmr.msra.gmra.mxu0 %vm810_vm2, %v26342_v34 }
0x473a   : > { %21450 = vmatpush3.bf16.xpose.msra.mxu0 %v14788_v17  ;;  %21451 = vmatprep.mubr.msk.bf16.mxu0 %vm22526_vm0, %v22525_v1 }
0x473b   : > { %21461 = vmatprep.subr.bf16.mxu0 %v22525_v1 }
0x4741   : > { %21452 = vmatmul.mubr.msk.bf16.vlgmr.msra.gmra.mxu0 %vm810_vm2, %v14781_v22 }
0x4742   : > { %21463 = vmatprep.mubr.msk.bf16.mxu0 %vm22526_vm0, %v22525_v1  ;;  %21462 = vmatpush3.bf16.msra.mxu0 %v14895_v52 }
0x4743   : > { %21473 = vmatprep.subr.bf16.mxu0 %v22525_v1 }
0x47f9   : > { %v14713_v2 = vpop.f32.mrf.mxu0 }
0x47fa   : > { %v14719_v11 = vsel %vm810_vm2, %v14713_v2, -inf }
0x47fb   : > { %14720 = vmax.xlane.f32.xlu0 %v14719_v11  ;;  %v21441_v60 = vpop.f32.mrf.mxu0 }
0x47fd   : > { %v14716_v45 = vpop.f32.mrf.mxu0 }
0x47ff   : > { %v21442_v39 = vpop.f32.mrf.mxu0 }
0x4801   : > { %v14824_v59 = vpop.f32.mrf.mxu0 }
0x4802   : > { %v14830_v4 = vsel %vm810_vm2, %v14824_v59, -inf }
0x4803   : > { %14831 = vmax.xlane.f32.xlu1 %v14830_v4  ;;  %v21453_v20 = vpop.f32.mrf.mxu0 }
0x4805   : > { %v14827_v13 = vpop.f32.mrf.mxu0 }
0x4807   : > { %v21454_v19 = vpop.f32.mrf.mxu0 }
0x4814   : > { %14842 = vrot.lane.b32.xlu1 %v26342_v34, %s27146_s30  ;;  %s27163_s30 = sld [smem:[#allocation9_spill]] }
0x4818   : > { %14983 = vrot.lane.b32.xlu1 %v26342_v34, %s27147_s16  ;;  %s429_s16 = sand.u32 1, %s27162_s24   ;;  %s22469_s24 = scalar_lea.vmem %s22468_s17, 256 }
0x4819   : > { %s17064_s29 = scalar_lea.sflag [#allocation3], %s429_s16 }
0x4884   : > { %v14721_v61 = vpop.xlane.xlu0 %14720 }
0x4885   : > { %v14722_v0 = vsub.f32 %v14713_v2, %v14721_v61 }
0x4887   : > { %v14723_v55 = vmul.f32 1.442695, %v14722_v0 }
0x4889   : > { %22442 = vpow2.f32 %v14723_v55 }
0x488c   : > { %v14832_v26 = vpop.xlane.xlu1 %14831 }
0x488d   : > { %v14833_v35 = vsub.f32 %v14824_v59, %v14832_v26 }
0x488f   : > { %v14834_v57 = vmul.f32 1.442695, %v14833_v35 }
0x4890   : > { %v14843_v50 = vpop.permute.xlu1 %14842 }
0x4891   : > { %22444 = vpow2.f32 %v14834_v57  ;;  %v14848_v46 = vsel %vm874_vm3, %v14843_v50, 0 }
0x4894   : > { %v14984_v28 = vpop.permute.xlu1 %14983 }
0x4896   : > { %v22443_v58 = vpop.eup %22442 }
0x4897   : > { %v14725_v32 = vsel %vm810_vm2, %v22443_v58, 0.0 }
0x4898   : > { %14726 = vadd.xlane.f32.xlu0 %v14725_v32 }
0x489e   : > { %v22445_v27 = vpop.eup %22444 }
0x489f   : > { %v14836_v54 = vsel %vm810_vm2, %v22445_v27, 0.0 }
0x48a0   : > { %14837 = vadd.xlane.f32.xlu0 %v14836_v54 }
0x48b6   : > { %14731 = vrot.lane.b32.xlu0 %v26342_v34, %s27148_s22  ;;  %s17140_s22 = sshll.u32 %s429_s16, 3 }
0x48b7   : > { %s431_s28 = scalar_lea.vmem [#allocation2], %s17140_s22 }
0x48b8   : > { %s17077_s19 = sshll.u32 %s431_s28, 4  ;;  %s17078_s19 = int_to_ptr.vmem [resolvable:$true] %s17077_s19 }
0x48b9   : > { %s22463_s20 = scalar_lea.vmem %s17078_s19, 128  ;;  %p22470_p0 = scmp.lt.s32.totalorder %s17078_s19, %s22468_s17 }
0x48ba   : > { %14985 = vrot.lane.b32.xlu0 %v26342_v34, %s27149_s21  ;;  %s27160_s21 = smov 40   ;;  %p22464_p11 = scmp.ne.s32.totalorder %s17078_s19, %s22463_s20 }
0x48bb   : > { %p22471_p1 = scmp.lt.s32.totalorder %s22469_s24, %s22463_s20 }
0x48bc   : > { %p22465_p12 = pnand %p22464_p11, %p22648_p5 }
0x48bd   : > { %p22472_p2 = por %p22471_p1, %p22470_p0 }
0x48be   : > { %p22466_p13 = pneg %p22465_p12 }
0x48c0   : > { %p22473_p3 = pnand %p22472_p2, %p22466_p13 }
0x4921   : > { %v14727_v51 = vpop.xlane.xlu0 %14726 }
0x4922   : > { %22446 = vrcp.f32 %v14727_v51 }
0x4929   : > { %v14838_v37 = vpop.xlane.xlu0 %14837 }
0x492a   : > { %22448 = vrcp.f32 %v14838_v37 }
0x492d   : > { %v14732_v41 = vpop.permute.xlu0 %14731 }
0x492e   : > { %v14737_v44 = vsel %vm874_vm3, %v14732_v41, 0 }
0x492f   : > { %v22447_v3 = vpop.eup %22446  ;;  %21444 = vmatpush3.bf16.msra.mxu1 %v14737_v44 }
0x4930   : > { %v14729_v21 = vmul.f32 %v22447_v3, %v22443_v58  ;;  %21455 = vmatprep.subr.bf16.mxu1 %v22525_v1 }
0x4931   : > { %v14986_v15 = vpop.permute.xlu0 %14985 }
0x4932   : > { %v14730_v40 = vpack.c.bf16 %v14729_v21, %v14729_v21  ;;  %v14991_v42 = vsel %vm810_vm2, %v14986_v15, 0  ;;  %v19319_v21 = vld [vmem:[%s27082_s3 + $0x58] sm:$0xf] }
0x4933   : > { %v15098_v50 = vsel %vm874_vm3, %v19319_v21, 0 }
0x4934   : > { %21446 = vmatmul.mubr.msk.bf16.vlgmr.msra.gmra.mxu1 %vm810_vm2, %v14730_v40 }
0x4935   : > { %21456 = vmatpush3.bf16.msra.mxu1 %v14848_v46  ;;  %21457 = vmatprep.mubr.msk.bf16.mxu1 %vm22526_vm0, %v22525_v1 }
0x4936   : > { %21467 = vmatprep.subr.bf16.mxu1 %v22525_v1 }
0x4937   : > { %v22449_v31 = vpop.eup %22448 }
0x4938   : > { %v14840_v33 = vmul.f32 %v22449_v31, %v22445_v27 }
0x493a   : > { %v14841_v7 = vpack.c.bf16 %v14840_v33, %v14840_v33 }
0x493c   : > { %21458 = vmatmul.mubr.msk.bf16.vlgmr.msra.gmra.mxu1 %vm810_vm2, %v14841_v7 }
0x493d   : > { %21469 = vmatprep.mubr.msk.bf16.mxu1 %vm22526_vm0, %v22525_v1  ;;  %21468 = vmatpush3.bf16.msra.mxu1 %v14941_v36 }
0x493e   : > { %21479 = vmatprep.subr.bf16.mxu1 %v22525_v1 }
0x49f4   : > { %v14773_v47 = vpop.f32.mrf.mxu1 }
0x49f5   : > { %v14779_v25 = vpack.c.bf16 %v14773_v47, %v14773_v47 }
0x49f6   : > { %v21447_v16 = vpop.f32.mrf.mxu1 }
0x49f7   : > { %21470 = vmatmul.mubr.msk.bf16.vlgmr.msra.gmra.mxu1 %vm810_vm2, %v14779_v25 }
0x49f8   : > { %v14776_v18 = vpop.f32.mrf.mxu1  ;;  %21481 = vmatprep.mubr.msk.bf16.mxu1 %vm22526_vm0, %v22525_v1 }
0x49fa   : > { %v21448_v49 = vpop.f32.mrf.mxu1 }
0x49fc   : > { %v14884_v62 = vpop.f32.mrf.mxu1 }
0x49fd   : > { %v14890_v56 = vpack.c.bf16 %v14884_v62, %v14884_v62  ;;  %v19320_v62 = vld [vmem:[%s27082_s3 + $0x5c] sm:$0xf] }
0x49fe   : > { %v21459_v9 = vpop.f32.mrf.mxu1 }
0x49ff   : > { %21464 = vmatmul.mubr.msk.bf16.vlgmr.msra.gmra.mxu0 %vm810_vm2, %v14890_v56  ;;  %v15256_v9 = vsel %vm874_vm3, %v19320_v62, 0 }
0x4a00   : > { %21474 = vmatpush3.bf16.xpose.msra.mxu0 %v14991_v42  ;;  %v14887_v43 = vpop.f32.mrf.mxu1  ;;  %21475 = vmatprep.mubr.msk.bf16.mxu0 %vm22526_vm0, %v22525_v1 }
0x4a01   : > { %21485 = vmatprep.subr.bf16.mxu0 %v22525_v1 }
0x4a02   : > { %v21460_v48 = vpop.f32.mrf.mxu1 }
0x4a07   : > { %21476 = vmatmul.mubr.msk.bf16.vlgmr.msra.gmra.mxu0 %vm810_vm2, %v14984_v28 }
0x4a08   : > { %21487 = vmatprep.mubr.msk.bf16.mxu0 %vm22526_vm0, %v22525_v1  ;;  %21486 = vmatpush3.bf16.msra.mxu0 %v15098_v50 }
0x4a09   : > { %21497 = vmatprep.subr.bf16.mxu0 %v22525_v1 }
0x4ab7   : > { %v14977_v63 = vpop.f32.mrf.mxu1 }
0x4ab9   : > { %v21471_v17 = vpop.f32.mrf.mxu1 }
0x4abb   : > { %v14980_v22 = vpop.f32.mrf.mxu1 }
0x4abd   : > { %v21472_v2 = vpop.f32.mrf.mxu1 }
0x4abf   : > { %v14931_v11 = vpop.f32.mrf.mxu0 }
0x4ac0   : > { %v26404_v60 = vadd.f32 %v14977_v63, %v14931_v11 }
0x4ac1   : > { %v21465_v45 = vpop.f32.mrf.mxu0 }
0x4ac3   : > { %v14934_v39 = vpop.f32.mrf.mxu0 }
0x4ac5   : > { %v21466_v59 = vpop.f32.mrf.mxu0 }
0x4ac7   : > { %v15027_v4 = vpop.f32.mrf.mxu0 }
0x4ac8   : > { %v15033_v20 = vsel %vm810_vm2, %v15027_v4, -inf }
0x4ac9   : > { %15034 = vmax.xlane.f32.xlu0 %v15033_v20  ;;  %v21477_v13 = vpop.f32.mrf.mxu0 }
0x4acb   : > { %v15030_v19 = vpop.f32.mrf.mxu0 }
0x4acd   : > { %v21478_v61 = vpop.f32.mrf.mxu0 }
0x4adf   : > { %15045 = vrot.lane.b32.xlu0 %v26342_v34, %s27150_s27 }
0x4ae3   : > { %15141 = vrot.lane.b32.xlu0 %v26342_v34, %s27151_s15 }
0x4b52   : > { %v15035_v0 = vpop.xlane.xlu0 %15034 }
0x4b53   : > { %v15036_v55 = vsub.f32 %v15027_v4, %v15035_v0  ;;  %v19633_v4 = vld [vmem:[%s27161_s14 + $0x5] ss:$0 sm:$0xff]  ;;  %s19808_s14 = sshll.u32 %s27163_s30, 7 }
0x4b54   : > { %s17075_s4 = scalar_lea.hbm %s27165_s18, %s19808_s14 }
0x4b55   : > { %v15037_v26 = vmul.f32 1.442695, %v15036_v55 }
0x4b56   : > { %v15046_v35 = vpop.permute.xlu0 %15045 }
0x4b57   : > { %22450 = vpow2.f32 %v15037_v26  ;;  %v15051_v57 = vsel %vm874_vm3, %v15046_v35, 0 }
0x4b58   : > { %21480 = vmatpush3.bf16.msra.mxu1 %v15051_v57 }
0x4b59   : > { %21491 = vmatprep.subr.bf16.mxu1 %v22525_v1 }
0x4b5a   : > { %v15142_v3 = vpop.permute.xlu0 %15141 }
0x4b64   : > { %v22451_v58 = vpop.eup %22450 }
0x4b65   : > { %v15039_v32 = vsel %vm810_vm2, %v22451_v58, 0.0 }
0x4b66   : > { %15040 = vadd.xlane.f32.xlu1 %v15039_v32 }
0x4b77   : > { %15143 = vrot.lane.b32.xlu1 %v26342_v34, %s27152_s23 }
0x4bef   : > { %v15041_v27 = vpop.xlane.xlu1 %15040 }
0x4bf0   : > { %22452 = vrcp.f32 %v15041_v27 }
0x4bf3   : > { %v15144_v37 = vpop.permute.xlu1 %15143 }
0x4bf4   : > { %v15149_v44 = vsel %vm810_vm2, %v15144_v37, 0  ;;  %v19348_v37 = vld [vmem:[%s27086_s7 + $0x5c0] sm:$0xff] }
0x4bfd   : > { %v22453_v54 = vpop.eup %22452 }
0x4bfe   : > { %v15043_v51 = vmul.f32 %v22453_v54, %v22451_v58 }
0x4c00   : > { %v15044_v41 = vpack.c.bf16 %v15043_v51, %v15043_v51  ;;  %v19340_v51 = vld [vmem:[%s27086_s7 + $0x580] sm:$0xff] }
0x4c02   : > { %21482 = vmatmul.mubr.msk.bf16.vlgmr.msra.gmra.mxu1 %vm810_vm2, %v15044_v41  ;;  %v19653_v41 = vcombine.high %v19340_v51, %v19348_v37 }
0x4c03   : > { %21492 = vmatpush3.bf16.xpose.msra.mxu1 %v15149_v44  ;;  %21493 = vmatprep.mubr.msk.bf16.mxu1 %vm22526_vm0, %v22525_v1  ;;  %v19349_v44 = vld [vmem:[%s27086_s7 + $0x5c8] sm:$0xff] }
0x4c04   : > { %21503 = vmatprep.subr.bf16.mxu1 %v22525_v1 }
0x4c0a   : > { %21494 = vmatmul.mubr.msk.bf16.vlgmr.msra.gmra.mxu1 %vm810_vm2, %v15142_v3  ;;  %v19652_v3 = vcombine.low %v19340_v51, %v19348_v37  ;;  %v19346_v37 = vld [vmem:[%s27086_s7 + $0x5b0] sm:$0xff] }
0x4c0b   : > { %21505 = vmatprep.mubr.msk.bf16.mxu1 %vm22526_vm0, %v22525_v1  ;;  %21504 = vmatpush3.bf16.msra.mxu1 %v15256_v9 }
0x4cc2   : > { %v15087_v40 = vpop.f32.mrf.mxu1 }
0x4cc3   : > { %v15093_v46 = vpack.c.bf16 %v15087_v40, %v15087_v40  ;;  %v19324_v40 = vld [vmem:[%s27086_s7 + $0x500] sm:$0xff] }
0x4cc4   : > { %v21483_v31 = vpop.f32.mrf.mxu1 }
0x4cc5   : > { %21488 = vmatmul.mubr.msk.bf16.vlgmr.msra.gmra.mxu0 %vm810_vm2, %v15093_v46  ;;  %v19332_v46 = vld [vmem:[%s27086_s7 + $0x540] sm:$0xff]  ;;  %v19325_v31 = vld [vmem:[%s27086_s7 + $0x508] sm:$0xff] }
0x4cc6   : > { %v15090_v33 = vpop.f32.mrf.mxu1  ;;  %21499 = vmatprep.mubr.msk.bf16.mxu0 %vm22526_vm0, %v22525_v1 }
0x4cc7   : > { %v19637_v33 = vcombine.high %v19324_v40, %v19332_v46 }
0x4cc8   : > { %v21484_v7 = vpop.f32.mrf.mxu1 }
0x4cc9   : > { %v19333_v7 = vld [vmem:[%s27086_s7 + $0x548] sm:$0xff] }
0x4cca   : > { %v15185_v53 = vpop.f32.mrf.mxu1 }
0x4ccb   : > { %v15191_v36 = vsel %vm810_vm2, %v15185_v53, -inf }
0x4ccc   : > { %15192 = vmax.xlane.f32.xlu1 %v15191_v36  ;;  %v21495_v30 = vpop.f32.mrf.mxu1  ;;  %v19638_v36 = vcombine.low %v19325_v31, %v19333_v7 }
0x4ccd   : > { %v19639_v30 = vcombine.high %v19325_v31, %v19333_v7  ;;  %v19338_v31 = vld [vmem:[%s27086_s7 + $0x570] sm:$0xff]  ;;  %v19339_v7 = vld [vmem:[%s27086_s7 + $0x578] sm:$0xff] }
0x4cce   : > { %v15188_v52 = vpop.f32.mrf.mxu1 }
0x4ccf   : > { %v19342_v52 = vld [vmem:[%s27086_s7 + $0x590] sm:$0xff] }
0x4cd0   : > { %v21496_v47 = vpop.f32.mrf.mxu1 }
0x4cd1   : > { %v19350_v47 = vld [vmem:[%s27086_s7 + $0x5d0] sm:$0xff] }
0x4d55   : > { %v15193_v25 = vpop.xlane.xlu1 %15192 }
0x4d56   : > { %v15194_v16 = vsub.f32 %v15185_v53, %v15193_v25  ;;  %v19636_v53 = vcombine.low %v19324_v40, %v19332_v46  ;;  %v19343_v25 = vld [vmem:[%s27086_s7 + $0x598] sm:$0xff]  ;;  %v19330_v46 = vld [vmem:[%s27086_s7 + $0x530] sm:$0xff] }
0x4d58   : > { %v15195_v18 = vmul.f32 1.442695, %v15194_v16  ;;  %v19656_v16 = vcombine.low %v19342_v52, %v19350_v47 }
0x4d5a   : > { %22454 = vpow2.f32 %v15195_v18  ;;  %v19657_v18 = vcombine.high %v19342_v52, %v19350_v47  ;;  %v19648_v47 = vcombine.low %v19330_v46, %v19338_v31 }
0x4d67   : > { %v22455_v49 = vpop.eup %22454 }
0x4d68   : > { %v15197_v15 = vsel %vm810_vm2, %v22455_v49, 0.0 }
0x4d69   : > { %15198 = vadd.xlane.f32.xlu0 %v15197_v15 }
0x4d7f   : > { %15203 = vrot.lane.b32.xlu0 %v26342_v34, %s27160_s21 }
0x4d85   : > { %v15134_v1 = vpop.f32.mrf.mxu0 }
0x4d86   : > { %v15140_v56 = vadd.f32 %v15134_v1, %v26404_v60 }
0x4d87   : > { %v21489_v42 = vpop.f32.mrf.mxu0 }
0x4d89   : > { %v15137_v43 = vpop.f32.mrf.mxu0 }
0x4d8a   : > { %v19634_v43 = vld [vmem:[%s27084_s5 + $0x5] ss:$0 sm:$0xff] }
0x4d8b   : > { %v21490_v48 = vpop.f32.mrf.mxu0 }
0x4df2   : > { %v15199_v28 = vpop.xlane.xlu0 %15198 }
0x4df3   : > { %22456 = vrcp.f32 %v15199_v28  ;;  %v19635_v28 = vld [vmem:[%s27085_s6 + $0x5] ss:$0 sm:$0xff] }
0x4df6   : > { %v15204_v63 = vpop.permute.xlu0 %15203 }
0x4df7   : > { %v15209_v17 = vsel %vm874_vm3, %v15204_v63, 0 }
0x4df8   : > { %21498 = vmatpush3.bf16.msra.mxu0 %v15209_v17  ;;  %v19326_v17 = vld [vmem:[%s27086_s7 + $0x510] sm:$0xff] }
0x4df9   : > { %15592 = vmatprep.subr.bf16.mxu0 %v19653_v41  ;;  %v19347_v41 = vld [vmem:[%s27086_s7 + $0x5b8] sm:$0xff] }
0x4e00   : > { %v22457_v34 = vpop.eup %22456 }
0x4e01   : > { %v15201_v22 = vmul.f32 %v22457_v34, %v22455_v49  ;;  %v19351_v49 = vld [vmem:[%s27086_s7 + $0x5d8] sm:$0xff]  ;;  %v19334_v34 = vld [vmem:[%s27086_s7 + $0x550] sm:$0xff] }
0x4e02   : > { %v19658_v15 = vcombine.low %v19343_v25, %v19351_v49  ;;  %v19659_v1 = vcombine.high %v19343_v25, %v19351_v49  ;;  %v22216_v49 = vld [vmem:[%s27088_s9 + $0x1438] sm:$0xff]  }
0x4e03   : > { %v15202_v2 = vpack.c.bf16 %v15201_v22, %v15201_v22  ;;  %v19327_v22 = vld [vmem:[%s27086_s7 + $0x518] sm:$0xff] }
0x4e05   : > { %21500 = vmatmul.mubr.msk.bf16.vlgmr.msra.gmra.mxu0 %vm810_vm2, %v15202_v2  ;;  %v19335_v2 = vld [vmem:[%s27086_s7 + $0x558] sm:$0xff] }
0x4e06   : > { %15612 = vmatprep.mubr.bf16.mxu0 %v22538_v38  ;;  %15593 = vmatpush1.bf16.msra.mxu0 %v19652_v3 }
0x4e07   : > { %15594 = vmatprep.subr.bf16.mxu0 %v19637_v33  ;;  %v19331_v33 = vld [vmem:[%s27086_s7 + $0x538] sm:$0xff] }
0x4e08   : > { %v19651_v52 = vcombine.high %v19331_v33, %v19339_v7  ;;  %v19650_v25 = vcombine.low %v19331_v33, %v19339_v7 }
0x4e0a   : > { %15595 = vmatpush1.bf16.msra.mxu0 %v19636_v53 }
0x4e0b   : > { %15674 = vmatprep.subr.bf16.mxu0 %v19657_v18  ;;  %v22215_v18 = vld [vmem:[%s27088_s9 + $0x14f8] sm:$0xff]  }
0x4ec5   : > { %v15245_v11 = vpop.f32.mrf.mxu0 }
0x4ec6   : > { %v15251_v60 = vpack.c.bf16 %v15245_v11, %v15245_v11 }
0x4ec7   : > { %v21501_v45 = vpop.f32.mrf.mxu0 }
0x4ec8   : > { %21506 = vmatmul.mubr.msk.bf16.vlgmr.msra.gmra.mxu1 %vm810_vm2, %v15251_v60  ;;  %v19641_v45 = vcombine.high %v19326_v17, %v19334_v34 }
0x4ec9   : > { %v15248_v39 = vpop.f32.mrf.mxu0  ;;  %15653 = vmatprep.mubr.bf16.mxu1 %v22538_v38 }
0x4eca   : > { %v19643_v39 = vcombine.high %v19327_v22, %v19335_v2 }
0x4ecb   : > { %v21502_v59 = vpop.f32.mrf.mxu0 }
0x4ecc   : > { %v19344_v59 = vld [vmem:[%s27086_s7 + $0x5a0] sm:$0xff] }
0x4f88   : > { %v15292_v20 = vpop.f32.mrf.mxu1 }
0x4f89   : > { %v15298_v13 = vadd.f32 %v15292_v20, %v15140_v56  ;;  %v19345_v20 = vld [vmem:[%s27086_s7 + $0x5a8] sm:$0xff] }
0x4f8a   : > { %v21507_v19 = vpop.f32.mrf.mxu1 }
0x4f8b   : > { %v15305_v61 = vadd.f32 %v19633_v4, %v15298_v13  ;;  %v19352_v4 = vld [vmem:[%s27086_s7 + $0x5e0] sm:$0xff]  ;;  %v19353_v13 = vld [vmem:[%s27086_s7 + $0x5e8] sm:$0xff]  ;;  %v19640_v19 = vcombine.low %v19326_v17, %v19334_v34 }
0x4f8c   : > { %v15295_v0 = vpop.f32.mrf.mxu1  ;;  %v22228_v17 = vld [vmem:[%s27088_s9 + $0x1420] sm:$0xff]  }
0x4f8d   : > { %v15306_v55 = vadd.f32 %v15305_v61, %v26332_v12  ;;  %v19341_v12 = vld [vmem:[%s27086_s7 + $0x588] sm:$0xff]  ;;  %v19642_v61 = vcombine.low %v19327_v22, %v19335_v2  ;;  %v19661_v0 = vcombine.high %v19344_v59, %v19352_v4  ;;  %v22229_v34 = vld [vmem:[%s27088_s9 + $0x14a0] sm:$0xff]   ;;  %v22230_v22 = vld [vmem:[%s27088_s9 + $0x1458] sm:$0xff]  }
0x4f8e   : > { %v21508_v26 = vpop.f32.mrf.mxu1  ;;  %v19654_v21 = vcombine.low %v19341_v12, %v19349_v44  ;;  %v19655_v50 = vcombine.high %v19341_v12, %v19349_v44  ;;  %v19354_v12 = vld [vmem:[%s27086_s7 + $0x5f0] sm:$0xff]  ;;  %v19355_v44 = vld [vmem:[%s27086_s7 + $0x5f8] sm:$0xff] }
0x4f8f   : > { %v15307_v35 = vsel %vm762_vm1, %v15306_v55, 0.0  ;;  %v19328_v26 = vld [vmem:[%s27086_s7 + $0x520] sm:$0xff]  ;;  %v19667_v40 = vcombine.high %v19347_v41, %v19355_v44  ;;  %v19664_v53 = vcombine.low %v19346_v37, %v19354_v12  ;;  %v22231_v2 = vld [vmem:[%s27088_s9 + $0x14d8] sm:$0xff]  }
0x4f90   : > { %15308 = vadd.xlane.f32.xlu1 %v15307_v35  ;;  %15633 = vmatprep.subr.bf16.mxu1 %v19655_v50  ;;  %v19336_v35 = vld [vmem:[%s27086_s7 + $0x560] sm:$0xff]  ;;  %v19665_v50 = vcombine.high %v19346_v37, %v19354_v12 }
0x4f91   : > { %15634 = vmatpush1.bf16.msra.mxu1 %v19654_v21  ;;  %v19644_v3 = vcombine.low %v19328_v26, %v19336_v35 }
0x4f92   : > { %15635 = vmatprep.subr.bf16.mxu1 %v19639_v30  ;;  %v19649_v30 = vcombine.high %v19330_v46, %v19338_v31 }
0x4f95   : > { %15636 = vmatpush1.bf16.msra.mxu1 %v19638_v36  ;;  %v19666_v36 = vcombine.low %v19347_v41, %v19355_v44 }
0x4f96   : > { %15715 = vmatprep.subr.bf16.mxu1 %v19659_v1  ;;  %v22218_v1 = vld [vmem:[%s27088_s9 + $0x1470] sm:$0xff]  }
0x5019   : > { %v15309_v57 = vpop.xlane.xlu1 %15308 }
0x501a   : > { %v15310_v58 = vmul.f32 0.03125, %v15309_v57  ;;  %v19329_v57 = vld [vmem:[%s27086_s7 + $0x528] sm:$0xff] }
0x501c   : > { %v15311_v32 = vsub.f32 %v15306_v55, %v15310_v58  ;;  %v19663_v55 = vcombine.high %v19345_v20, %v19353_v13  ;;  %v19337_v58 = vld [vmem:[%s27086_s7 + $0x568] sm:$0xff] }
0x501d   : > { %v19647_v51 = vcombine.high %v19329_v57, %v19337_v58  ;;  %v19646_v21 = vcombine.low %v19329_v57, %v19337_v58  ;;  %v22245_v57 = vld [vmem:[%s27088_s9 + $0x1480] sm:$0xff]   ;;  %v22246_v58 = vld [vmem:[%s27088_s9 + $0x1578] sm:$0xff]  }
0x501e   : > { %v15312_v27 = vmul.f32 %v15311_v32, %v15311_v32 }
0x5020   : > { %v15313_v54 = vsel %vm762_vm1, %v15312_v27, 0.0  ;;  %v19662_v27 = vcombine.low %v19345_v20, %v19353_v13  ;;  %v22237_v20 = vld [vmem:[%s27088_s9 + $0x1490] sm:$0xff]   ;;  %v22238_v13 = vld [vmem:[%s27088_s9 + $0x1448] sm:$0xff]  }
0x5021   : > { %15314 = vadd.xlane.f32.xlu1 %v15313_v54  ;;  %v19645_v54 = vcombine.high %v19328_v26, %v19336_v35  ;;  %v22243_v26 = vld [vmem:[%s27088_s9 + $0x14c0] sm:$0xff]  }
0x5022   : > { %v22244_v35 = vld [vmem:[%s27088_s9 + $0x1400] sm:$0xff]  }
0x50aa   : > { %v15315_v62 = vpop.xlane.xlu1 %15314 }
0x50ab   : > { %v15316_v56 = vmul.f32 0.03125, %v15315_v62  ;;  %v22220_v62 = vld [vmem:[%s27088_s9 + $0x1430] sm:$0xff]  }
0x50ad   : > { %v15317_v9 = vadd.f32 1e-05, %v15316_v56  ;;  %v22221_v56 = vld [vmem:[%s27088_s9 + $0x14b0] sm:$0xff]  }
0x50af   : > { %22458 = vrsqrt.f32 %v15317_v9  ;;  %v22222_v9 = vld [vmem:[%s27088_s9 + $0x1468] sm:$0xff]  }
0x50bc   : > { %v22459_v42 = vpop.eup %22458 }
0x50bd   : > { %v15319_v48 = vmul.f32 %v22459_v42, %v15311_v32  ;;  %v19660_v32 = vcombine.low %v19344_v59, %v19352_v4  ;;  %v22223_v42 = vld [vmem:[%s27088_s9 + $0x14e8] sm:$0xff]   ;;  %v22235_v59 = vld [vmem:[%s27088_s9 + $0x14d0] sm:$0xff]  }
0x50be   : > { %v22236_v4 = vld [vmem:[%s27088_s9 + $0x1410] sm:$0xff]  }
0x50bf   : > { %v15326_v63 = vmul.f32 %v19634_v43, %v15319_v48  ;;  %v22224_v43 = vld [vmem:[%s27088_s9 + $0x1428] sm:$0xff]  }
0x50c0   : > { %v22225_v48 = vld [vmem:[%s27088_s9 + $0x14a8] sm:$0xff]  }
0x50c1   : > { %v26506_v11 = vadd.f32 %v19635_v28, %v15326_v63  ;;  %v22226_v28 = vld [vmem:[%s27088_s9 + $0x1460] sm:$0xff]  }
0x50c2   : > { %v22227_v63 = vld [vmem:[%s27088_s9 + $0x14e0] sm:$0xff]  }
0x50c3   : > { %v26510_v60 = vpack.c.bf16 %v26506_v11, %v26506_v11 }
0x50c5   : > { %19668 = vmatmul.mubr.msk.bf16.vlgmr.msra.gmra.mxu0 %vm762_vm1, %v26510_v60  ;;  %19669 = vmatmul.mubr.msk.bf16.vlgmr.msra.gmra.mxu1 %vm762_vm1, %v26510_v60 }
0x50c6   : > { %15675 = vmatpush1.bf16.msra.mxu0 %v19656_v16  ;;  %15716 = vmatpush1.bf16.msra.mxu1 %v19658_v15  ;;  %v22214_v16 = vld [vmem:[%s27088_s9 + $0x1478] sm:$0xff]  }
0x50c7   : > { %15676 = vmatprep.subr.bf16.mxu0 %v19641_v45  ;;  %15717 = vmatprep.subr.bf16.mxu1 %v19643_v39  ;;  %v22217_v15 = vld [vmem:[%s27088_s9 + $0x14b8] sm:$0xff]   ;;  %v22234_v39 = vld [vmem:[%s27088_s9 + $0x1450] sm:$0xff]  }
0x50c8   : > { %15694 = vmatprep.mubr.bf16.mxu0 %v22538_v38  ;;  %15735 = vmatprep.mubr.bf16.mxu1 %v22538_v38  ;;  %v22233_v45 = vld [vmem:[%s27088_s9 + $0x1498] sm:$0xff]  }
0x50ca   : > { %15677 = vmatpush1.bf16.msra.mxu0 %v19640_v19  ;;  %15718 = vmatpush1.bf16.msra.mxu1 %v19642_v61  ;;  %v22239_v19 = vld [vmem:[%s27088_s9 + $0x14c8] sm:$0xff]  }
0x50cb   : > { %15756 = vmatprep.subr.bf16.mxu0 %v19661_v0  ;;  %15797 = vmatprep.subr.bf16.mxu1 %v19663_v55  ;;  %v22240_v61 = vld [vmem:[%s27088_s9 + $0x1408] sm:$0xff]   ;;  %v22242_v55 = vld [vmem:[%s27088_s9 + $0x1440] sm:$0xff]  }
0x50cc   : > { %v22241_v0 = vld [vmem:[%s27088_s9 + $0x1488] sm:$0xff]  }
0x50cd   : > { %19670 = vmatmul.mubr.msk.bf16.vlgmr.msra.gmra.mxu0 %vm762_vm1, %v26510_v60  ;;  %19671 = vmatmul.mubr.msk.bf16.vlgmr.msra.gmra.mxu1 %vm762_vm1, %v26510_v60 }
0x50ce   : > { %15757 = vmatpush1.bf16.msra.mxu0 %v19660_v32  ;;  %15798 = vmatpush1.bf16.msra.mxu1 %v19662_v27  ;;  %v22247_v32 = vld [vmem:[%s27088_s9 + $0x15f8] sm:$0xff]   ;;  %v26687_v27 = vld [vmem:[%s27087_s8 + $0x50] sm:$0xff] }
0x50cf   : > { %15758 = vmatprep.subr.bf16.mxu0 %v19645_v54  ;;  %15799 = vmatprep.subr.bf16.mxu1 %v19647_v51  ;;  %v15340_v54 = vrot.slane %v26687_v27, %v23031_v5  ;;  %v15348_v51 = vrot.slane %v26687_v27, %v23034_v6  ;;  %v15344_v37 = vrot.slane %v26687_v27, %v23042_v8 }
0x50d0   : > { %15776 = vmatprep.mubr.bf16.mxu0 %v22538_v38  ;;  %15817 = vmatprep.mubr.bf16.mxu1 %v22538_v38  ;;  %v15352_v12 = vrot.slane %v26687_v27, %v23045_v10 }
0x50d2   : > { %15759 = vmatpush1.bf16.msra.mxu0 %v19644_v3  ;;  %15800 = vmatpush1.bf16.msra.mxu1 %v19646_v21 }
0x50d3   : > { %15838 = vmatprep.subr.bf16.mxu0 %v19665_v50  ;;  %15879 = vmatprep.subr.bf16.mxu1 %v19667_v40 }
0x50d5   : > { %19672 = vmatmul.mubr.msk.bf16.vlgmr.msra.gmra.mxu0 %vm762_vm1, %v26510_v60  ;;  %19673 = vmatmul.mubr.msk.bf16.vlgmr.msra.gmra.mxu1 %vm762_vm1, %v26510_v60 }
0x50d6   : > { %15839 = vmatpush1.bf16.msra.mxu0 %v19664_v53  ;;  %15880 = vmatpush1.bf16.msra.mxu1 %v19666_v36 }
0x50d7   : > { %15840 = vmatprep.subr.bf16.mxu0 %v19649_v30  ;;  %15881 = vmatprep.subr.bf16.mxu1 %v19651_v52 }
0x50d8   : > { %15858 = vmatprep.mubr.bf16.mxu0 %v22538_v38  ;;  %15899 = vmatprep.mubr.bf16.mxu1 %v22538_v38  ;;  %v22219_v38 = vld [vmem:[%s27088_s9 + $0x14f0] sm:$0xff]  }
0x50da   : > { %15841 = vmatpush1.bf16.msra.mxu0 %v19648_v47  ;;  %15882 = vmatpush1.bf16.msra.mxu1 %v19650_v25 }
0x50db   : > { %20853 = vmatprep.subr.bf16.mxu0 %v22214_v16  ;;  %20875 = vmatprep.subr.bf16.mxu1 %v22215_v18 }
0x50dd   : > { %19674 = vmatmul.mubr.msk.bf16.vlgmr.msra.gmra.mxu0 %vm762_vm1, %v26510_v60  ;;  %19675 = vmatmul.mubr.msk.bf16.vlgmr.msra.gmra.mxu1 %vm762_vm1, %v26510_v60  ;;  %v22232_v60 = vld [vmem:[%s27088_s9 + $0x1418] sm:$0xff]  }
0x50de   : > { %20854 = vmatpush3.bf16.msra.mxu0 %v22216_v49  ;;  %20876 = vmatpush3.bf16.msra.mxu1 %v22217_v15  ;;  %v15360_v49 = vrot.slane %v26687_v27, %v23056_v23  ;;  %v15368_v15 = vrot.slane %v26687_v27, %v23059_v24 }
0x50df   : > { %20855 = vmatprep.subr.bf16.mxu0 %v22218_v1  ;;  %20877 = vmatprep.subr.bf16.mxu1 %v22219_v38  ;;  %v22248_v1 = vld [vmem:[%s27088_s9 + $0x1538] sm:$0xff]  }
0x50e0   : > { %v22249_v38 = vld [vmem:[%s27088_s9 + $0x15b8] sm:$0xff]  }
0x50e2   : > { %20856 = vmatpush3.bf16.msra.mxu0 %v22220_v62  ;;  %20878 = vmatpush3.bf16.msra.mxu1 %v22221_v56 }
0x50e3   : > { %20857 = vmatprep.subr.bf16.mxu0 %v22222_v9  ;;  %20879 = vmatprep.subr.bf16.mxu1 %v22223_v42 }
0x50e6   : > { %20858 = vmatpush3.bf16.msra.mxu0 %v22224_v43  ;;  %20880 = vmatpush3.bf16.msra.mxu1 %v22225_v48  ;;  %v22250_v43 = vld [vmem:[%s27088_s9 + $0x1570] sm:$0xff]  }
0x50e7   : > { %20859 = vmatprep.subr.bf16.mxu0 %v22226_v28  ;;  %20881 = vmatprep.subr.bf16.mxu1 %v22227_v63  ;;  %v22251_v48 = vld [vmem:[%s27088_s9 + $0x15f0] sm:$0xff]  }
0x50ea   : > { %20860 = vmatpush3.bf16.msra.mxu0 %v22228_v17  ;;  %20882 = vmatpush3.bf16.msra.mxu1 %v22229_v34 }
0x50eb   : > { %20861 = vmatprep.subr.bf16.mxu0 %v22230_v22  ;;  %20883 = vmatprep.subr.bf16.mxu1 %v22231_v2  ;;  %v22252_v22 = vld [vmem:[%s27088_s9 + $0x1530] sm:$0xff]  }
0x50ec   : > { %v22253_v2 = vld [vmem:[%s27088_s9 + $0x15b0] sm:$0xff]  }
0x50ee   : > { %20862 = vmatpush3.bf16.msra.mxu0 %v22232_v60  ;;  %20884 = vmatpush3.bf16.msra.mxu1 %v22233_v45 }
0x50ef   : > { %20863 = vmatprep.subr.bf16.mxu0 %v22234_v39  ;;  %20885 = vmatprep.subr.bf16.mxu1 %v22235_v59  ;;  %v22254_v39 = vld [vmem:[%s27088_s9 + $0x1568] sm:$0xff]  }
0x50f0   : > { %v22255_v59 = vld [vmem:[%s27088_s9 + $0x15e8] sm:$0xff]  }
0x50f2   : > { %20864 = vmatpush3.bf16.msra.mxu0 %v22236_v4  ;;  %20886 = vmatpush3.bf16.msra.mxu1 %v22237_v20 }
0x50f3   : > { %20865 = vmatprep.subr.bf16.mxu0 %v22238_v13  ;;  %20887 = vmatprep.subr.bf16.mxu1 %v22239_v19 }
0x50f6   : > { %20866 = vmatpush3.bf16.msra.mxu0 %v22240_v61  ;;  %20888 = vmatpush3.bf16.msra.mxu1 %v22241_v0 }
0x50f7   : > { %20867 = vmatprep.subr.bf16.mxu0 %v22242_v55  ;;  %20889 = vmatprep.subr.bf16.mxu1 %v22243_v26  ;;  %v22256_v55 = vld [vmem:[%s27088_s9 + $0x1528] sm:$0xff]  }
0x50f8   : > { %v22257_v26 = vld [vmem:[%s27088_s9 + $0x15a8] sm:$0xff]  }
0x50fa   : > { %20868 = vmatpush3.bf16.msra.mxu0 %v22244_v35  ;;  %20890 = vmatpush3.bf16.msra.mxu1 %v22245_v57 }
0x50fb   : > { %20897 = vmatprep.subr.bf16.mxu0 %v22246_v58  ;;  %20919 = vmatprep.subr.bf16.mxu1 %v22247_v32  ;;  %v22258_v58 = vld [vmem:[%s27088_s9 + $0x1560] sm:$0xff]  }
0x50fc   : > { %v22259_v32 = vld [vmem:[%s27088_s9 + $0x15e0] sm:$0xff]  }
0x5185   : > { %v15614_v41 = vpop.f32.mrf.mxu0  ;;  %v15655_v44 = vpop.f32.mrf.mxu1 }
0x5186   : > { %v15615_v3 = vadd.f32 %v15614_v41, %v15340_v54  ;;  %v15656_v21 = vadd.f32 %v15655_v44, %v15348_v51  ;;  %v26754_v41 = vld [vmem:[%s27087_s8 + $0x58] sm:$0xff] }
0x5187   : > { %v15616_v50 = vpop.f32.mrf.mxu0  ;;  %v15657_v40 = vpop.f32.mrf.mxu1 }
0x5188   : > { %v15617_v46 = vadd.f32 %v15616_v50, %v15344_v37  ;;  %v15658_v31 = vadd.f32 %v15657_v40, %v15352_v12  ;;  %v15908_v33 = vmax.f32 %v15615_v3, 0.0  ;;  %v15910_v7 = vmax.f32 %v15656_v21, 0.0  ;;  %v22260_v37 = vld [vmem:[%s27088_s9 + $0x1520] sm:$0xff]   ;;  %v22262_v21 = vld [vmem:[%s27088_s9 + $0x1558] sm:$0xff]  }
0x5189   : > { %v15618_v53 = vpop.f32.mrf.mxu0  ;;  %v15659_v36 = vpop.f32.mrf.mxu1  ;;  %v22261_v12 = vld [vmem:[%s27088_s9 + $0x15a0] sm:$0xff]   ;;  %v22263_v50 = vld [vmem:[%s27088_s9 + $0x15d8] sm:$0xff]   ;;  %v15396_v40 = vrot.slane %v26754_v41, %v23110_v14 }
0x518a   : > { %v15909_v30 = vmax.f32 %v15617_v46, 0.0  ;;  %v15911_v52 = vmax.f32 %v15658_v31, 0.0  ;;  %v15924_v62 = vpack.c.bf16 %v15908_v33, %v15908_v33  ;;  %v15926_v56 = vpack.c.bf16 %v15910_v7, %v15910_v7  ;;  %v22264_v33 = vld [vmem:[%s27088_s9 + $0x1518] sm:$0xff]  }
0x518b   : > { %v15619_v47 = vpop.f32.mrf.mxu0  ;;  %v15660_v25 = vpop.f32.mrf.mxu1  ;;  %v22265_v7 = vld [vmem:[%s27088_s9 + $0x1598] sm:$0xff]  }
0x518c   : > { %v15925_v16 = vpack.c.bf16 %v15909_v30, %v15909_v30  ;;  %v15927_v18 = vpack.c.bf16 %v15911_v52, %v15911_v52  ;;  %v22266_v30 = vld [vmem:[%s27088_s9 + $0x1550] sm:$0xff]  }
0x518d   : > { %v26707_v9 = vpop.f32.mrf.mxu0  ;;  %v26709_v42 = vpop.f32.mrf.mxu1  ;;  %v22267_v52 = vld [vmem:[%s27088_s9 + $0x15d0] sm:$0xff]  }
0x518e   : > { %16746 = vmatprep.mubr.bf16.mxu0 %v15925_v16  ;;  %16786 = vmatprep.mubr.bf16.mxu1 %v15927_v18  ;;  %v22268_v18 = vld [vmem:[%s27088_s9 + $0x1510] sm:$0xff]  }
0x518f   : > { %v15698_v28 = vpop.f32.mrf.mxu0  ;;  %v15739_v63 = vpop.f32.mrf.mxu1  ;;  %16747 = vmatmul.mubr.bf16.vlgmr.msra.gmra.mxu0 %v15924_v62  ;;  %16787 = vmatmul.mubr.bf16.vlgmr.msra.gmra.mxu1 %v15926_v56  ;;  %v22270_v56 = vld [vmem:[%s27088_s9 + $0x1548] sm:$0xff]  }
0x5190   : > { %v15699_v17 = vadd.f32 %v15698_v28, %v15360_v49  ;;  %v15740_v34 = vadd.f32 %v15739_v63, %v15368_v15  ;;  %20898 = vmatpush3.bf16.msra.mxu0 %v22248_v1  ;;  %20920 = vmatpush3.bf16.msra.mxu1 %v22249_v38  ;;  %v22269_v49 = vld [vmem:[%s27088_s9 + $0x1590] sm:$0xff]   ;;  %v15356_v15 = vrot.slane %v26687_v27, %v23138_v29 }
0x5191   : > { %v15700_v60 = vpop.f32.mrf.mxu0  ;;  %v15741_v45 = vpop.f32.mrf.mxu1  ;;  %20899 = vmatprep.subr.bf16.mxu0 %v22250_v43  ;;  %20921 = vmatprep.subr.bf16.mxu1 %v22251_v48  ;;  %v15364_v1 = vrot.slane %v26687_v27, %v23110_v14  ;;  %v22271_v43 = vld [vmem:[%s27088_s9 + $0x15c8] sm:$0xff]   ;;  %v15376_v48 = vrot.slane %v26754_v41, %v23042_v8  ;;  %v15384_v28 = vrot.slane %v26754_v41, %v23045_v10  ;;  %v22274_v8 = vld [vmem:[%s27088_s9 + $0x1540] sm:$0xff]  }
0x5192   : > { %v15913_v4 = vmax.f32 %v15699_v17, 0.0  ;;  %v15915_v20 = vmax.f32 %v15740_v34, 0.0  ;;  %v22272_v27 = vld [vmem:[%s27088_s9 + $0x1508] sm:$0xff]   ;;  %v15697_v34 = vadd.f32 %v26707_v9, %v15356_v15  ;;  %v22275_v10 = vld [vmem:[%s27088_s9 + $0x15c0] sm:$0xff]   ;;  %v15372_v15 = vrot.slane %v26754_v41, %v23031_v5 }
0x5193   : > { %v15701_v13 = vpop.f32.mrf.mxu0  ;;  %v15742_v19 = vpop.f32.mrf.mxu1  ;;  %v22273_v17 = vld [vmem:[%s27088_s9 + $0x1588] sm:$0xff]   ;;  %v22276_v9 = vld [vmem:[%s27088_s9 + $0x1500] sm:$0xff]   ;;  %v15392_v5 = vrot.slane %v26754_v41, %v23056_v23 }
0x5194   : > { %v15929_v61 = vpack.c.bf16 %v15913_v4, %v15913_v4  ;;  %v15931_v0 = vpack.c.bf16 %v15915_v20, %v15915_v20  ;;  %20900 = vmatpush3.bf16.msra.mxu0 %v22252_v22  ;;  %20922 = vmatpush3.bf16.msra.mxu1 %v22253_v2  ;;  %v15738_v22 = vadd.f32 %v26709_v42, %v15364_v1  ;;  %v22277_v42 = vld [vmem:[%s27088_s9 + $0x1580] sm:$0xff]   ;;  %v15912_v45 = vmax.f32 %v15697_v34, 0.0  ;;  %v22279_v4 = vld [vmem:[%s27088_s9 + $0x16f8] sm:$0xff]   ;;  %v22301_v1 = vld [vmem:[%s27088_s9 + $0x1690] sm:$0xff]  }
0x5195   : > { %v26735_v35 = vpop.f32.mrf.mxu0  ;;  %v26737_v57 = vpop.f32.mrf.mxu1  ;;  %20901 = vmatprep.subr.bf16.mxu0 %v22254_v39  ;;  %20923 = vmatprep.subr.bf16.mxu1 %v22255_v59  ;;  %v22278_v59 = vld [vmem:[%s27088_s9 + $0x1678] sm:$0xff]   ;;  %v22306_v23 = vld [vmem:[%s27088_s9 + $0x1640] sm:$0xff]  }
0x5196   : > { %16826 = vmatprep.mubr.bf16.mxu0 %v15929_v61  ;;  %16866 = vmatprep.mubr.bf16.mxu1 %v15931_v0  ;;  %v15914_v39 = vmax.f32 %v15738_v22, 0.0  ;;  %v22280_v19 = vld [vmem:[%s27088_s9 + $0x1638] sm:$0xff]   ;;  %v15928_v61 = vpack.c.bf16 %v15912_v45, %v15912_v45 }
0x5197   : > { %v15780_v54 = vpop.f32.mrf.mxu0  ;;  %v15821_v51 = vpop.f32.mrf.mxu1  ;;  %v22310_v34 = vld [vmem:[%s27088_s9 + $0x1778] sm:$0xff]  }
0x5198   : > { %20902 = vmatpush3.bf16.msra.mxu0 %v22256_v55  ;;  %20924 = vmatpush3.bf16.msra.mxu1 %v22257_v26  ;;  %v15781_v2 = vadd.f32 %v15780_v54, %v15376_v48  ;;  %v15822_v60 = vadd.f32 %v15821_v51, %v15384_v28  ;;  %v15930_v0 = vpack.c.bf16 %v15914_v39, %v15914_v39  ;;  %v22281_v55 = vld [vmem:[%s27088_s9 + $0x16b8] sm:$0xff]   ;;  %v22284_v51 = vld [vmem:[%s27088_s9 + $0x1630] sm:$0xff]   ;;  %v22304_v48 = vld [vmem:[%s27088_s9 + $0x1608] sm:$0xff]  }
0x5199   : > { %v15782_v44 = vpop.f32.mrf.mxu0  ;;  %v15823_v3 = vpop.f32.mrf.mxu1  ;;  %20903 = vmatprep.subr.bf16.mxu0 %v22258_v58  ;;  %20925 = vmatprep.subr.bf16.mxu1 %v22259_v32  ;;  %v22282_v58 = vld [vmem:[%s27088_s9 + $0x1670] sm:$0xff]   ;;  %v15779_v28 = vadd.f32 %v26735_v35, %v15372_v15 }
0x519a   : > { %v15917_v20 = vmax.f32 %v15781_v2, 0.0  ;;  %v15919_v13 = vmax.f32 %v15822_v60, 0.0  ;;  %v22283_v32 = vld [vmem:[%s27088_s9 + $0x16f0] sm:$0xff]   ;;  %v22287_v44 = vld [vmem:[%s27088_s9 + $0x16e8] sm:$0xff]   ;;  %v22313_v60 = vld [vmem:[%s27088_s9 + $0x17b8] sm:$0xff]  }
0x519b   : > { %v15783_v46 = vpop.f32.mrf.mxu0  ;;  %v15824_v31 = vpop.f32.mrf.mxu1  ;;  %v22288_v3 = vld [vmem:[%s27088_s9 + $0x1628] sm:$0xff]   ;;  %v22315_v39 = vld [vmem:[%s27088_s9 + $0x17f0] sm:$0xff]  }
0x519c   : > { %20904 = vmatpush3.bf16.msra.mxu0 %v22260_v37  ;;  %20926 = vmatpush3.bf16.msra.mxu1 %v22261_v12  ;;  %v15933_v26 = vpack.c.bf16 %v15917_v20, %v15917_v20  ;;  %v15935_v54 = vpack.c.bf16 %v15919_v13, %v15919_v13  ;;  %v22285_v37 = vld [vmem:[%s27088_s9 + $0x16b0] sm:$0xff]   ;;  %v22286_v12 = vld [vmem:[%s27088_s9 + $0x1668] sm:$0xff]   ;;  %v22292_v46 = vld [vmem:[%s27088_s9 + $0x1620] sm:$0xff]  }
0x519d   : > { %v26770_v53 = vpop.f32.mrf.mxu0  ;;  %v15901_v36 = vpop.f32.mrf.mxu1  ;;  %20905 = vmatprep.subr.bf16.mxu0 %v22262_v21  ;;  %20927 = vmatprep.subr.bf16.mxu1 %v22263_v50  ;;  %v22289_v21 = vld [vmem:[%s27088_s9 + $0x16a8] sm:$0xff]   ;;  %v22290_v50 = vld [vmem:[%s27088_s9 + $0x1660] sm:$0xff]   ;;  %v22317_v20 = vld [vmem:[%s27088_s9 + $0x17b0] sm:$0xff]  }
0x519e   : > { %v26778_v47 = vadd.f32 %v15901_v36, %v15396_v40  ;;  %v22291_v40 = vld [vmem:[%s27088_s9 + $0x16e0] sm:$0xff]   ;;  %v22296_v36 = vld [vmem:[%s27088_s9 + $0x1618] sm:$0xff]   ;;  %v22318_v13 = vld [vmem:[%s27088_s9 + $0x1768] sm:$0xff]  }
0x519f   : > { %v26780_v25 = vpop.f32.mrf.mxu0  ;;  %v26782_v16 = vpop.f32.mrf.mxu1  ;;  %v22293_v31 = vld [vmem:[%s27088_s9 + $0x16a0] sm:$0xff]  }
0x51a0   : > { %20906 = vmatpush3.bf16.msra.mxu0 %v22264_v33  ;;  %20928 = vmatpush3.bf16.msra.mxu1 %v22265_v7  ;;  %v22294_v33 = vld [vmem:[%s27088_s9 + $0x1658] sm:$0xff]  }
0x51a1   : > { %v15864_v38 = vpop.f32.mrf.mxu0  ;;  %v15905_v62 = vpop.f32.mrf.mxu1  ;;  %20907 = vmatprep.subr.bf16.mxu0 %v22266_v30  ;;  %20929 = vmatprep.subr.bf16.mxu1 %v22267_v52  ;;  %v22295_v7 = vld [vmem:[%s27088_s9 + $0x16d8] sm:$0xff]   ;;  %v22298_v52 = vld [vmem:[%s27088_s9 + $0x1650] sm:$0xff]  }
0x51a2   : > { %v22297_v30 = vld [vmem:[%s27088_s9 + $0x1698] sm:$0xff]   ;;  %v22302_v38 = vld [vmem:[%s27088_s9 + $0x1648] sm:$0xff]   ;;  %v15380_v62 = vrot.slane %v26754_v41, %v23034_v6 }
0x51a3   : > { %v15865_v63 = vpop.f32.mrf.mxu0  ;;  %v15906_v14 = vpop.f32.mrf.mxu1  ;;  %v22305_v6 = vld [vmem:[%s27088_s9 + $0x1688] sm:$0xff]  }
0x51a4   : > { %20908 = vmatpush3.bf16.msra.mxu0 %v22268_v18  ;;  %20930 = vmatpush3.bf16.msra.mxu1 %v22269_v49  ;;  %v22299_v18 = vld [vmem:[%s27088_s9 + $0x16d0] sm:$0xff]   ;;  %v15820_v63 = vadd.f32 %v26737_v57, %v15380_v62  ;;  %v15863_v14 = vadd.f32 %v26780_v25, %v15392_v5  ;;  %v22309_v57 = vld [vmem:[%s27088_s9 + $0x1680] sm:$0xff]   ;;  %v22311_v25 = vld [vmem:[%s27088_s9 + $0x17f8] sm:$0xff]  }
0x51a5   : > { %20909 = vmatprep.subr.bf16.mxu0 %v22270_v56  ;;  %20931 = vmatprep.subr.bf16.mxu1 %v22271_v43  ;;  %v22300_v49 = vld [vmem:[%s27088_s9 + $0x1610] sm:$0xff]   ;;  %v22303_v56 = vld [vmem:[%s27088_s9 + $0x16c8] sm:$0xff]   ;;  %v15400_v43 = vrot.slane %v26754_v41, %v23059_v24  ;;  %v22307_v24 = vld [vmem:[%s27088_s9 + $0x16c0] sm:$0xff]  }
0x51a6   : > { %v15918_v22 = vmax.f32 %v15820_v63, 0.0  ;;  %v19676_v62 = vld [vmem:[%s27089_s10 + $0x5] ss:$0 sm:$0xff] }
0x51a7   : > { %v15904_v35 = vadd.f32 %v26782_v16, %v15400_v43  ;;  %v15921_v16 = vmax.f32 %v15863_v14, 0.0 }
0x51a8   : > { %20910 = vmatpush3.bf16.msra.mxu0 %v22272_v27  ;;  %20932 = vmatpush3.bf16.msra.mxu1 %v22273_v17  ;;  %v22308_v27 = vld [vmem:[%s27088_s9 + $0x1600] sm:$0xff]   ;;  %v15916_v17 = vmax.f32 %v15779_v28, 0.0 }
0x51a9   : > { %20911 = vmatprep.subr.bf16.mxu0 %v22274_v8  ;;  %20933 = vmatprep.subr.bf16.mxu1 %v22275_v10  ;;  %v15923_v8 = vmax.f32 %v15904_v35, 0.0  ;;  %v22312_v10 = vld [vmem:[%s27088_s9 + $0x1738] sm:$0xff]   ;;  %v15937_v45 = vpack.c.bf16 %v15921_v16, %v15921_v16 }
0x51aa   : > { %v15932_v2 = vpack.c.bf16 %v15916_v17, %v15916_v17 }
0x51ac   : > { %20912 = vmatpush3.bf16.msra.mxu0 %v22276_v9  ;;  %20934 = vmatpush3.bf16.msra.mxu1 %v22277_v42  ;;  %v15934_v9 = vpack.c.bf16 %v15918_v22, %v15918_v22  ;;  %v22314_v42 = vld [vmem:[%s27088_s9 + $0x1770] sm:$0xff]  }
0x51ad   : > { %20941 = vmatprep.subr.bf16.mxu0 %v22278_v59  ;;  %20963 = vmatprep.subr.bf16.mxu1 %v22279_v4  ;;  %v15939_v59 = vpack.c.bf16 %v15923_v8, %v15923_v8  ;;  %v22316_v4 = vld [vmem:[%s27088_s9 + $0x1730] sm:$0xff]  }
0x51af   : > { %16827 = vmatmul.mubr.bf16.vlgmr.msra.gmra.mxu0 %v15928_v61  ;;  %16867 = vmatmul.mubr.bf16.vlgmr.msra.gmra.mxu1 %v15930_v0  ;;  %v22320_v61 = vld [vmem:[%s27088_s9 + $0x1728] sm:$0xff]  }
0x51b0   : > { %20942 = vmatpush3.bf16.msra.mxu0 %v22280_v19  ;;  %16906 = vmatprep.mubr.bf16.mxu0 %v15933_v26  ;;  %v22319_v19 = vld [vmem:[%s27088_s9 + $0x17e8] sm:$0xff]   ;;  %v22323_v26 = vld [vmem:[%s27088_s9 + $0x17e0] sm:$0xff]  }
0x51b1   : > { %20964 = vmatpush3.bf16.msra.mxu1 %v22281_v55  ;;  %16946 = vmatprep.mubr.bf16.mxu1 %v15935_v54  ;;  %v22321_v0 = vld [vmem:[%s27088_s9 + $0x17a8] sm:$0xff]   ;;  %v22322_v55 = vld [vmem:[%s27088_s9 + $0x1760] sm:$0xff]   ;;  %v22326_v54 = vld [vmem:[%s27088_s9 + $0x1758] sm:$0xff]  }
0x51b2   : > { %20943 = vmatprep.subr.bf16.mxu0 %v22282_v58  ;;  %20965 = vmatprep.subr.bf16.mxu1 %v22283_v32  ;;  %v22324_v58 = vld [vmem:[%s27088_s9 + $0x1720] sm:$0xff]  }
0x51b3   : > { %v22325_v32 = vld [vmem:[%s27088_s9 + $0x17a0] sm:$0xff]  }
0x51b4   : > { %20944 = vmatpush3.bf16.msra.mxu0 %v22284_v51  ;;  %v22327_v51 = vld [vmem:[%s27088_s9 + $0x17d8] sm:$0xff]  }
0x51b5   : > { %20966 = vmatpush3.bf16.msra.mxu1 %v22285_v37  ;;  %20945 = vmatprep.subr.bf16.mxu0 %v22286_v12  ;;  %v22328_v37 = vld [vmem:[%s27088_s9 + $0x1718] sm:$0xff]  }
0x51b6   : > { %20967 = vmatprep.subr.bf16.mxu1 %v22287_v44  ;;  %v22329_v12 = vld [vmem:[%s27088_s9 + $0x1798] sm:$0xff]   ;;  %v22330_v44 = vld [vmem:[%s27088_s9 + $0x1750] sm:$0xff]  }
0x51b8   : > { %20946 = vmatpush3.bf16.msra.mxu0 %v22288_v3  ;;  %v22331_v3 = vld [vmem:[%s27088_s9 + $0x17d0] sm:$0xff]  }
0x51b9   : > { %20968 = vmatpush3.bf16.msra.mxu1 %v22289_v21  ;;  %20947 = vmatprep.subr.bf16.mxu0 %v22290_v50  ;;  %v22332_v21 = vld [vmem:[%s27088_s9 + $0x1710] sm:$0xff]   ;;  %v15388_v50 = vrot.slane %v26754_v41, %v23138_v29  ;;  %v22336_v29 = vld [vmem:[%s27088_s9 + $0x1708] sm:$0xff]  }
0x51ba   : > { %20969 = vmatprep.subr.bf16.mxu1 %v22291_v40  ;;  %v22333_v40 = vld [vmem:[%s27088_s9 + $0x1790] sm:$0xff]  }
0x51bb   : > { %v15861_v41 = vadd.f32 %v26770_v53, %v15388_v50  ;;  %v22340_v53 = vld [vmem:[%s27088_s9 + $0x1700] sm:$0xff]  }
0x51bc   : > { %20948 = vmatpush3.bf16.msra.mxu0 %v22292_v46  ;;  %v22334_v46 = vld [vmem:[%s27088_s9 + $0x1748] sm:$0xff]  }
0x51bd   : > { %20970 = vmatpush3.bf16.msra.mxu1 %v22293_v31  ;;  %20949 = vmatprep.subr.bf16.mxu0 %v22294_v33  ;;  %v22335_v31 = vld [vmem:[%s27088_s9 + $0x17c8] sm:$0xff]  }
0x51be   : > { %20971 = vmatprep.subr.bf16.mxu1 %v22295_v7  ;;  %v22337_v33 = vld [vmem:[%s27088_s9 + $0x1788] sm:$0xff]   ;;  %v22338_v7 = vld [vmem:[%s27088_s9 + $0x1740] sm:$0xff]  }
0x51c0   : > { %20950 = vmatpush3.bf16.msra.mxu0 %v22296_v36  ;;  %v22339_v36 = vld [vmem:[%s27088_s9 + $0x17c0] sm:$0xff]  }
0x51c1   : > { %20972 = vmatpush3.bf16.msra.mxu1 %v22297_v30  ;;  %20951 = vmatprep.subr.bf16.mxu0 %v22298_v52  ;;  %v15920_v30 = vmax.f32 %v15861_v41, 0.0  ;;  %v22341_v52 = vld [vmem:[%s27088_s9 + $0x1780] sm:$0xff]  }
0x51c2   : > { %20973 = vmatprep.subr.bf16.mxu1 %v22299_v18  ;;  %v15922_v18 = vmax.f32 %v26778_v47, 0.0 }
0x51c4   : > { %20952 = vmatpush3.bf16.msra.mxu0 %v22300_v49  ;;  %v15936_v49 = vpack.c.bf16 %v15920_v30, %v15920_v30  ;;  %v15938_v15 = vpack.c.bf16 %v15922_v18, %v15922_v18 }
0x51c5   : > { %20974 = vmatpush3.bf16.msra.mxu1 %v22301_v1  ;;  %20953 = vmatprep.subr.bf16.mxu0 %v22302_v38 }
0x51c6   : > { %20975 = vmatprep.subr.bf16.mxu1 %v22303_v56 }
0x51c8   : > { %20954 = vmatpush3.bf16.msra.mxu0 %v22304_v48 }
0x51c9   : > { %20976 = vmatpush3.bf16.msra.mxu1 %v22305_v6  ;;  %20955 = vmatprep.subr.bf16.mxu0 %v22306_v23 }
0x51ca   : > { %20977 = vmatprep.subr.bf16.mxu1 %v22307_v24 }
0x51cc   : > { %20956 = vmatpush3.bf16.msra.mxu0 %v22308_v27 }
0x51cd   : > { %20978 = vmatpush3.bf16.msra.mxu1 %v22309_v57  ;;  %20985 = vmatprep.subr.bf16.mxu0 %v22310_v34 }
0x51ce   : > { %21007 = vmatprep.subr.bf16.mxu1 %v22311_v25 }
0x51cf   : > { %16907 = vmatmul.mubr.bf16.vlgmr.msra.gmra.mxu0 %v15932_v2 }
0x51d0   : > { %16947 = vmatmul.mubr.bf16.vlgmr.msra.gmra.mxu1 %v15934_v9  ;;  %20986 = vmatpush3.bf16.msra.mxu0 %v22312_v10 }
0x51d1   : > { %16986 = vmatprep.mubr.bf16.mxu0 %v15937_v45  ;;  %21008 = vmatpush3.bf16.msra.mxu1 %v22313_v60 }
0x51d2   : > { %17026 = vmatprep.mubr.bf16.mxu1 %v15939_v59  ;;  %20987 = vmatprep.subr.bf16.mxu0 %v22314_v42 }
0x51d3   : > { %21009 = vmatprep.subr.bf16.mxu1 %v22315_v39 }
0x51d4   : > { %20988 = vmatpush3.bf16.msra.mxu0 %v22316_v4 }
0x51d5   : > { %21010 = vmatpush3.bf16.msra.mxu1 %v22317_v20  ;;  %20989 = vmatprep.subr.bf16.mxu0 %v22318_v13 }
0x51d6   : > { %21011 = vmatprep.subr.bf16.mxu1 %v22319_v19 }
0x51d8   : > { %20990 = vmatpush3.bf16.msra.mxu0 %v22320_v61 }
0x51d9   : > { %21012 = vmatpush3.bf16.msra.mxu1 %v22321_v0  ;;  %20991 = vmatprep.subr.bf16.mxu0 %v22322_v55 }
0x51da   : > { %21013 = vmatprep.subr.bf16.mxu1 %v22323_v26 }
0x51dc   : > { %20992 = vmatpush3.bf16.msra.mxu0 %v22324_v58 }
0x51dd   : > { %21014 = vmatpush3.bf16.msra.mxu1 %v22325_v32  ;;  %20993 = vmatprep.subr.bf16.mxu0 %v22326_v54 }
0x51de   : > { %21015 = vmatprep.subr.bf16.mxu1 %v22327_v51 }
0x51e0   : > { %20994 = vmatpush3.bf16.msra.mxu0 %v22328_v37 }
0x51e1   : > { %21016 = vmatpush3.bf16.msra.mxu1 %v22329_v12  ;;  %20995 = vmatprep.subr.bf16.mxu0 %v22330_v44 }
0x51e2   : > { %21017 = vmatprep.subr.bf16.mxu1 %v22331_v3 }
0x51e4   : > { %20996 = vmatpush3.bf16.msra.mxu0 %v22332_v21 }
0x51e5   : > { %21018 = vmatpush3.bf16.msra.mxu1 %v22333_v40  ;;  %20997 = vmatprep.subr.bf16.mxu0 %v22334_v46 }
0x51e6   : > { %21019 = vmatprep.subr.bf16.mxu1 %v22335_v31 }
0x51e8   : > { %20998 = vmatpush3.bf16.msra.mxu0 %v22336_v29 }
0x51e9   : > { %21020 = vmatpush3.bf16.msra.mxu1 %v22337_v33  ;;  %20999 = vmatprep.subr.bf16.mxu0 %v22338_v7 }
0x51ea   : > { %21021 = vmatprep.subr.bf16.mxu1 %v22339_v36 }
0x51ec   : > { %21000 = vmatpush3.bf16.msra.mxu0 %v22340_v53 }
0x51ed   : > { %21022 = vmatpush3.bf16.msra.mxu1 %v22341_v52 }
0x51ef   : > { %16987 = vmatmul.mubr.bf16.vlgmr.msra.gmra.mxu0 %v15936_v49  ;;  %v19806_v49 = vld [vmem:[%s27091_s12 + $0x5] ss:$0 sm:$0xff] }
0x51f0   : > { %17027 = vmatmul.mubr.bf16.vlgmr.msra.gmra.mxu1 %v15938_v15 }
0x524f   : > { %v20869_v1 = vpop.f32.mrf.mxu0  ;;  %v20891_v38 = vpop.f32.mrf.mxu1 }
0x5251   : > { %v20870_v56 = vpop.f32.mrf.mxu0  ;;  %v20892_v5 = vpop.f32.mrf.mxu1 }
0x5252   : > { %v20871_v43 = vadd.f32 %v20870_v56, %v20869_v1  ;;  %v20893_v48 = vadd.f32 %v20892_v5, %v20891_v38 }
0x5253   : > { %v20872_v28 = vpop.f32.mrf.mxu0  ;;  %v20894_v6 = vpop.f32.mrf.mxu1 }
0x5254   : > { %v16749_v47 = vadd.f32 %v20871_v43, %v19676_v62 }
0x5255   : > { %v20873_v23 = vpop.f32.mrf.mxu0  ;;  %v20895_v63 = vpop.f32.mrf.mxu1 }
0x5256   : > { %v16789_v24 = vadd.f32 %v20893_v48, %v16749_v47 }
0x526f   : > { %v20913_v14 = vpop.f32.mrf.mxu0  ;;  %v20935_v35 = vpop.f32.mrf.mxu1 }
0x5271   : > { %v20914_v27 = vpop.f32.mrf.mxu0  ;;  %v20936_v17 = vpop.f32.mrf.mxu1 }
0x5272   : > { %v20915_v39 = vadd.f32 %v20914_v27, %v20913_v14  ;;  %v20937_v4 = vadd.f32 %v20936_v17, %v20935_v35 }
0x5273   : > { %v20916_v57 = vpop.f32.mrf.mxu0  ;;  %v20938_v34 = vpop.f32.mrf.mxu1 }
0x5274   : > { %v16829_v59 = vadd.f32 %v20915_v39, %v16789_v24 }
0x5275   : > { %v20917_v22 = vpop.f32.mrf.mxu0  ;;  %v20939_v25 = vpop.f32.mrf.mxu1 }
0x5276   : > { %v16869_v13 = vadd.f32 %v20937_v4, %v16829_v59 }
0x528f   : > { %v20957_v16 = vpop.f32.mrf.mxu0 }
0x5290   : > { %v20979_v8 = vpop.f32.mrf.mxu1 }
0x5291   : > { %v20958_v10 = vpop.f32.mrf.mxu0 }
0x5292   : > { %v20980_v2 = vpop.f32.mrf.mxu1  ;;  %v20959_v20 = vadd.f32 %v20958_v10, %v20957_v16 }
0x5293   : > { %v20960_v60 = vpop.f32.mrf.mxu0  ;;  %v20981_v0 = vadd.f32 %v20980_v2, %v20979_v8 }
0x5294   : > { %v20982_v9 = vpop.f32.mrf.mxu1  ;;  %v16909_v19 = vadd.f32 %v20959_v20, %v16869_v13 }
0x5295   : > { %v20961_v42 = vpop.f32.mrf.mxu0 }
0x5296   : > { %v20983_v45 = vpop.f32.mrf.mxu1  ;;  %v16949_v58 = vadd.f32 %v20981_v0, %v16909_v19 }
0x52af   : > { %v21001_v61 = vpop.f32.mrf.mxu0 }
0x52b0   : > { %v21023_v55 = vpop.f32.mrf.mxu1 }
0x52b1   : > { %v21002_v26 = vpop.f32.mrf.mxu0 }
0x52b2   : > { %v21003_v32 = vadd.f32 %v21002_v26, %v21001_v61  ;;  %v21024_v54 = vpop.f32.mrf.mxu1 }
0x52b3   : > { %v21004_v51 = vpop.f32.mrf.mxu0  ;;  %v21025_v12 = vadd.f32 %v21024_v54, %v21023_v55 }
0x52b4   : > { %v16989_v37 = vadd.f32 %v21003_v32, %v16949_v58  ;;  %v21026_v44 = vpop.f32.mrf.mxu1 }
0x52b5   : > { %v21005_v3 = vpop.f32.mrf.mxu0 }
0x52b6   : > { %v17029_v21 = vadd.f32 %v21025_v12, %v16989_v37  ;;  %v21027_v50 = vpop.f32.mrf.mxu1 }
0x52b8   : > { %v17034_v40 = vadd.f32 %v17029_v21, %v26506_v11  ;;  %v19805_v11 = vld [vmem:[%s27090_s11 + $0x5] ss:$0 sm:$0xff] }
0x52ba   : > { %v17035_v46 = vsel %vm762_vm1, %v17034_v40, 0.0 }
0x52bb   : > { %17036 = vadd.xlane.f32.xlu1 %v17035_v46 }
0x5344   : > { %v17037_v31 = vpop.xlane.xlu1 %17036 }
0x5345   : > { %v17038_v29 = vmul.f32 0.03125, %v17037_v31 }
0x5347   : > { %v17039_v41 = vsub.f32 %v17034_v40, %v17038_v29 }
0x5349   : > { %v17040_v33 = vmul.f32 %v17039_v41, %v17039_v41 }
0x534b   : > { %v17041_v7 = vsel %vm762_vm1, %v17040_v33, 0.0 }
0x534c   : > { %17042 = vadd.xlane.f32.xlu1 %v17041_v7 }
0x53d5   : > { %v17043_v36 = vpop.xlane.xlu1 %17042 }
0x53d6   : > { %v17044_v53 = vmul.f32 0.03125, %v17043_v36 }
0x53d8   : > { %v17045_v30 = vadd.f32 1e-05, %v17044_v53 }
0x53da   : > { %22460 = vrsqrt.f32 %v17045_v30 }
0x53e7   : > { %v22461_v52 = vpop.eup %22460 }
0x53e8   : > { %v17047_v18 = vmul.f32 %v22461_v52, %v17039_v41 }
0x53ea   : > { %v17054_v15 = vmul.f32 %v19805_v11, %v17047_v18 }
0x53ec   : > { %v17061_v1 = vadd.f32 %v19806_v49, %v17054_v15 }
0x53ee   : > { %17062 = vst.msk [vmem:[%s431_s28] sm:$0xff] %vm762_vm1, %v17061_v1 }
0x53ef   : > { %22476 = shalt.err (!%p22473_p3)
}
0x53f0   : > { %s22477_s30 = scalar_lea.hbm %s17075_s4, 128  ;;  %s22481_s27 = scalar_lea.hbm %s27165_s18, 256 }
0x53f1   : > { %p22478_p4 = scmp.ne.s32.totalorder %s17075_s4, %s22477_s30  ;;  %p22482_p9 = scmp.lt.s32.totalorder %s17075_s4, %s27165_s18 }
0x53f2   : > { %p22483_p10 = scmp.lt.s32.totalorder %s22481_s27, %s22477_s30 }
0x53f3   : > { %p22479_p7 = pnand %p22478_p4, %p22648_p5 }
0x53f4   : > { %p22484_p11 = por %p22483_p10, %p22482_p9 }
0x53f5   : > { %p22480_p8 = pneg %p22479_p7 }
0x53f7   : > { %p22485_p12 = pnand %p22484_p11, %p22480_p8 }
0x53f9   : > { %22488 = shalt.err (!%p22485_p12)
}
0x53fa   : > { %21509 = dma.vmem_to_hbm [thread:$0]  (%p22648_p5), %s17078_s19, 128, %s17075_s4, %s17064_s29  }
0x53fb PF: > { %s27166_s26 = sld [smem:[#allocation8_spill]] }
0x53fc   : > { %s27167_s14 = sld [smem:[#allocation5_spill]] }
0x5401   : > { %p21515_p13 = scmp.ge.s32.totalorder %s27166_s26, 2 }
0x5402   : > { %s17089_s13 = sand.u32 1, %s27167_s14  }
0x5403   : > { %p21512_p0 = pnand %p21515_p13, %p22652_p6  ;;  %s17090_s25 = scalar_lea.sflag [#allocation3], %s17089_s13 }
0x5405   : > { %p21513_p1 = pneg %p21512_p0 }
0x5407   : > { %22506 = dma.done.wait (%p21513_p1), %s17090_s25, 128  }
0x5408   : > { %22508 = vsyncadd (%p21513_p1), %s17090_s25, 4294967168  ;;  %s27169_s28 = sld [smem:[#allocation10_spill]] }
0x5409   : > { %s27170_s25 = sld [smem:[#allocation6_spill]] }
0x540a   : > { %s27171_s26 = sld [smem:[#allocation7_spill]] }
0x540b   : > { %s27172_s27 = sld [smem:[#allocation11_spill]] }
0x540e   : > { %p23_p2 = scmp.ge.s32.totalorder %s27169_s28, 4  }
0x5410   :  { %25 = sbr.rel (!%p23_p2) target bundleno = 7 (0x7), region = 167 }
0x5415   :  { %17095 = vsyncpa [#allocation3], 1 }
0x5416   :  { %17097 = vsyncpa [#allocation3 + $0x1], 1 }

</bundles_post_ra>
